<compile_context>
chip_gen: v5e
topology: v5e:2x2
jax: 0.10.0
libtpu: 0.0.40
codegen_flags: <defaults>
</compile_context>

<pallas_src>
import functools
import math

import jax
import jax.numpy as jnp
from jax.experimental import pallas as pl
from jax.experimental.pallas import tpu as pltpu


# Packed-parameter layout: each hidden layer's weight (out_f, in_f) lives at
# rows [off, off+out_f) / cols [0, in_f) of the weight buffer; its bias at
# rows [off, off+out_f) of the (rows, 1) bias buffer.  Offsets are 8-aligned.
# The output head's weight is stored transposed as a (12, 1) column at
# _OUT_OFF, its bias at row _OUT_OFF of the bias buffer.
_LAYERS = (  # (row_offset, out_f, in_f)
    (0, 24, 7),
    (24, 48, 24),
    (72, 24, 48),
    (96, 24, 24),
    (120, 12, 24),
)
_OUT_OFF = 136
_OUT_IN = 12
_PACK_ROWS = 152          # 136 + 12 -> padded to a multiple of 8
_PACK_COLS = 48           # max in_f


def _round_up(x, m):
    return ((x + m - 1) // m) * m


def _mish(x):
    # mish(x) = x * tanh(softplus(x))
    #         = x * ((1+e^x)^2 - 1) / ((1+e^x)^2 + 1)
    # Single exp on the EUP; the rational part rides in otherwise-idle VALU
    # slots.  One Newton-Raphson step refines the approx reciprocal back to
    # ~fp32 accuracy for free (EUP is the loaded unit here, not VALU).
    xc = jnp.minimum(x, 20.0)              # exp overflow guard (fp32 safe)
    e = jnp.exp(xc)
    n = e * (e + 2.0)                      # (1+e)^2 - 1  (no cancellation)
    d = n + 2.0                            # (1+e)^2 + 1
    r = pl.reciprocal(d, approx=True)
    r = r * (2.0 - d * r)                  # Newton refinement
    return jnp.where(x > 20.0, x, x * n * r)


def _mlp_kernel(x_ref, w_ref, b_ref, o_ref):
    # x_ref: (7, bt) fp32, batch on lanes (lane-dense activations throughout).
    # w_ref: (_PACK_ROWS, _PACK_COLS) packed weights, VMEM-resident.
    # b_ref: (_PACK_ROWS, 1) packed biases, VMEM-resident.
    h = x_ref[...]
    for off, fo, fi in _LAYERS:
        w = w_ref[off:off + fo, :fi]                 # (fo, fi) static view
        b = b_ref[off:off + fo, :]                   # (fo, 1)
        # (fo, fi) @ (fi, bt) + (fo, 1) -> (fo, bt)
        h = _mish(jnp.dot(w, h, preferred_element_type=jnp.float32) + b)
    # Output head 12 -> 1 on VPU (broadcast FMA) + XLU (sublane reduce);
    # a 1x12 MXU matmul would waste a full MXU pass for one output row.
    wo = w_ref[_OUT_OFF:_OUT_OFF + _OUT_IN, 0:1]     # (12, 1)
    bo = b_ref[_OUT_OFF:_OUT_OFF + 1, :]             # (1, 1)
    out = jnp.sum(wo * h, axis=0, keepdims=True) + bo  # (1, bt), lane-dense
    o_ref[...] = out.astype(o_ref.dtype)


@functools.partial(jax.jit, static_argnames=("batch_tile",))
def taoyuan_features7_nn(x, w_buf, b_buf, *, batch_tile=2048):
    """Fused forward pass.

    x:      (B, 7) float32
    w_buf:  (_PACK_ROWS, _PACK_COLS) packed weights (see pack_params)
    b_buf:  (_PACK_ROWS, 1) packed biases
    Returns (B, 1) float32.
    """
    B, F = x.shape
    assert F == 7

    # Effective tile: big enough to amortize ~0.35 us per grid step, but no
    # larger than the (128-rounded) batch so a small batch stays a single
    # serial step on single-TC chips (v5e/v6e).  For tiny B on v7x, cap
    # batch_tile at ~B/2 externally if both TensorCores must be busy.
    bt = min(batch_tile, _round_up(B, 128))
    num_tiles = pl.cdiv(B, bt)
    Bp = num_tiles * bt

    if Bp != B:
        x = jnp.pad(x, ((0, Bp - B), (0, 0)))
    # Batch on lanes.  Under jit with allow_input_fusion on operand 0, XLA may
    # fold this pad+transpose into the Pallas input pipeline rather than
    # materializing a (7, Bp) copy in HBM.
    xt = x.T                                          # (7, Bp)

    out = pl.pallas_call(
        _mlp_kernel,
        out_shape=jax.ShapeDtypeStruct((1, Bp), jnp.float32),
        grid_spec=pltpu.PrefetchScalarGridSpec(
            num_scalar_prefetch=0,
            grid=(num_tiles,),
            in_specs=[
                pl.BlockSpec((7, bt), lambda i: (0, i)),
                # Whole-array blocks, same block every step -> VMEM-resident.
                pl.BlockSpec((_PACK_ROWS, _PACK_COLS), lambda i: (0, 0)),
                pl.BlockSpec((_PACK_ROWS, 1), lambda i: (0, 0)),
            ],
            out_specs=pl.BlockSpec((1, bt), lambda i: (0, i)),
        ),
        compiler_params=pltpu.CompilerParams(
            dimension_semantics=("parallel",),
            allow_input_fusion=[True, False, False],
        ),
    )(xt, w_buf, b_buf)

    # Fused under the same jit; negligible relayout, no extra dispatch.
    return out[0, :B].reshape(B, 1)


def pack_params(params):
    """Pack per-layer (W, b) pairs into one weight and one bias buffer."""
    w_buf = jnp.zeros((_PACK_ROWS, _PACK_COLS), jnp.float32)
    b_buf = jnp.zeros((_PACK_ROWS, 1), jnp.float32)
    for (off, fo, fi), name in zip(_LAYERS, ("h1", "h2", "h3", "h4", "h5")):
        w, b = params[name]                       # w: (fo, fi), b: (fo,)
        w_buf = w_buf.at[off:off + fo, :fi].set(w)
        b_buf = b_buf.at[off:off + fo, 0].set(b)
    wo, bo = params["out"]                        # wo: (1, 12), bo: (1,)
    w_buf = w_buf.at[_OUT_OFF:_OUT_OFF + _OUT_IN, 0].set(wo[0])
    b_buf = b_buf.at[_OUT_OFF, 0].set(bo[0])
    return w_buf, b_buf


def init_params(key):
    # Hidden layers: xavier_uniform weights (gain=1), zero bias — matches
    # linear_block().  Weights stored PyTorch-style as (out_f, in_f).
    dims = (("h1", 7, 24), ("h2", 24, 48), ("h3", 48, 24),
            ("h4", 24, 24), ("h5", 24, 12))
    keys = jax.random.split(key, len(dims) + 1)
    params = {}
    for (name, fi, fo), k in zip(dims, keys[:-1]):
        a = math.sqrt(6.0 / (fi + fo))
        w = jax.random.uniform(k, (fo, fi), jnp.float32, minval=-a, maxval=a)
        params[name] = (w, jnp.zeros((fo,), jnp.float32))
    # Output head: PyTorch default nn.Linear init, U(-1/sqrt(fan_in), +).
    kw, kb = jax.random.split(keys[-1])
    lim = 1.0 / math.sqrt(12.0)
    wo = jax.random.uniform(kw, (1, 12), jnp.float32, minval=-lim, maxval=lim)
    bo = jax.random.uniform(kb, (1,), jnp.float32, minval=-lim, maxval=lim)
    params["out"] = (wo, bo)
    return params


def _reference(x, params):
    # Pure-JAX reference with exact Mish (x * tanh(softplus(x))).
    def mish(v):
        return v * jnp.tanh(jnp.logaddexp(v, 0.0))
    h = x
    for name in ("h1", "h2", "h3", "h4", "h5"):
        w, b = params[name]
        h = mish(h @ w.T + b)
    wo, bo = params["out"]
    return h @ wo.T + bo


if __name__ == "__main__":
    key = jax.random.PRNGKey(0)
    pkey, xkey = jax.random.split(key)

    params = init_params(pkey)
    w_buf, b_buf = pack_params(params)

    # Small data (112 KB), but 2 grid steps at batch_tile=2048 so both v7x
    # TensorCores get a tile while per-step overhead stays amortized.
    B = 4096
    x = jax.random.normal(xkey, (B, 7), jnp.float32)

    out = jax.block_until_ready(taoyuan_features7_nn(x, w_buf, b_buf))
    ref = _reference(x, params)

    assert out.shape == (B, 1)
    err = float(jnp.max(jnp.abs(out - ref)))
    # Newton-refined reciprocal restores near-fp32 accuracy across 5 layers.
    assert jnp.allclose(out, ref, atol=1e-3, rtol=1e-3), err

    print("KERNEL_OK")
</pallas_src>

<mosaic_0001>
module attributes {stable_mosaic.version = 11 : i64} {
  func.func @_mlp_kernel(%arg0: i32, %arg1: memref<7x2048xf32, #tpu.memory_space<vmem>>, %arg2: memref<152x48xf32, #tpu.memory_space<vmem>>, %arg3: memref<152x1xf32, #tpu.memory_space<vmem>>, %arg4: memref<1x2048xf32, #tpu.memory_space<vmem>>) attributes {dimension_semantics = [#tpu.dimension_semantics<parallel>], iteration_bounds = array<i64: 2>, scalar_prefetch = 0 : i64, scratch_operands = 0 : i64, tpu.core_type = #tpu.core_type<tc>, window_params = [{transform_indices = @transform_0, window_bounds = array<i64: 7, 2048>}, {pipeline_mode = #tpu.pipeline_mode<synchronous>, transform_indices = @transform_1, window_bounds = array<i64: 152, 48>}, {pipeline_mode = #tpu.pipeline_mode<synchronous>, transform_indices = @transform_2, window_bounds = array<i64: 152, 1>}, {transform_indices = @transform_3, window_bounds = array<i64: 1, 2048>}]} {
    %c0 = arith.constant 0 : index
    %c0_0 = arith.constant 0 : index
    %0 = vector.load %arg1[%c0, %c0_0] : memref<7x2048xf32, #tpu.memory_space<vmem>>, vector<7x2048xf32>
    %c0_1 = arith.constant 0 : index
    %c0_2 = arith.constant 0 : index
    %1 = vector.load %arg2[%c0_1, %c0_2] : memref<152x48xf32, #tpu.memory_space<vmem>>, vector<24x7xf32>
    %c0_3 = arith.constant 0 : index
    %c0_4 = arith.constant 0 : index
    %2 = vector.load %arg3[%c0_3, %c0_4] : memref<152x1xf32, #tpu.memory_space<vmem>>, vector<24x1xf32>
    %cst = arith.constant dense<0.000000e+00> : vector<24x2048xf32>
    %3 = tpu.matmul %1, %0, %cst {dimension_numbers = #tpu.dot_dimension_numbers<[1], [0], [0], [1], [0, 0, 1, 1], [], []>} : vector<24x7xf32>, vector<7x2048xf32>, vector<24x2048xf32> -> vector<24x2048xf32>
    %4 = vector.broadcast %2 : vector<24x1xf32> to vector<24x2048xf32>
    %5 = arith.addf %3, %4 : vector<24x2048xf32>
    %cst_5 = arith.constant 2.000000e+01 : f32
    %6 = vector.broadcast %cst_5 : f32 to vector<24x2048xf32>
    %7 = arith.minimumf %5, %6 : vector<24x2048xf32>
    %8 = math.exp %7 : vector<24x2048xf32>
    %cst_6 = arith.constant 2.000000e+00 : f32
    %9 = vector.broadcast %cst_6 : f32 to vector<24x2048xf32>
    %10 = arith.addf %8, %9 : vector<24x2048xf32>
    %11 = arith.mulf %8, %10 : vector<24x2048xf32>
    %cst_7 = arith.constant 2.000000e+00 : f32
    %12 = vector.broadcast %cst_7 : f32 to vector<24x2048xf32>
    %13 = arith.addf %11, %12 : vector<24x2048xf32>
    %14 = tpu.reciprocal %13 {approx = true} : vector<24x2048xf32> -> vector<24x2048xf32>
    %15 = arith.mulf %13, %14 : vector<24x2048xf32>
    %cst_8 = arith.constant 2.000000e+00 : f32
    %16 = vector.broadcast %cst_8 : f32 to vector<24x2048xf32>
    %17 = arith.subf %16, %15 : vector<24x2048xf32>
    %18 = arith.mulf %14, %17 : vector<24x2048xf32>
    %cst_9 = arith.constant 2.000000e+01 : f32
    %19 = vector.broadcast %cst_9 : f32 to vector<24x2048xf32>
    %20 = arith.cmpf ogt, %5, %19 : vector<24x2048xf32>
    %21 = arith.mulf %5, %11 : vector<24x2048xf32>
    %22 = arith.mulf %21, %18 : vector<24x2048xf32>
    %23 = arith.select %20, %5, %22 : vector<24x2048xi1>, vector<24x2048xf32>
    %c24 = arith.constant 24 : index
    %c0_10 = arith.constant 0 : index
    %24 = vector.load %arg2[%c24, %c0_10] : memref<152x48xf32, #tpu.memory_space<vmem>>, vector<48x24xf32>
    %c24_11 = arith.constant 24 : index
    %c0_12 = arith.constant 0 : index
    %25 = vector.load %arg3[%c24_11, %c0_12] : memref<152x1xf32, #tpu.memory_space<vmem>>, vector<48x1xf32>
    %cst_13 = arith.constant dense<0.000000e+00> : vector<48x2048xf32>
    %26 = tpu.matmul %24, %23, %cst_13 {dimension_numbers = #tpu.dot_dimension_numbers<[1], [0], [0], [1], [0, 0, 1, 1], [], []>} : vector<48x24xf32>, vector<24x2048xf32>, vector<48x2048xf32> -> vector<48x2048xf32>
    %27 = vector.broadcast %25 : vector<48x1xf32> to vector<48x2048xf32>
    %28 = arith.addf %26, %27 : vector<48x2048xf32>
    %cst_14 = arith.constant 2.000000e+01 : f32
    %29 = vector.broadcast %cst_14 : f32 to vector<48x2048xf32>
    %30 = arith.minimumf %28, %29 : vector<48x2048xf32>
    %31 = math.exp %30 : vector<48x2048xf32>
    %cst_15 = arith.constant 2.000000e+00 : f32
    %32 = vector.broadcast %cst_15 : f32 to vector<48x2048xf32>
    %33 = arith.addf %31, %32 : vector<48x2048xf32>
    %34 = arith.mulf %31, %33 : vector<48x2048xf32>
    %cst_16 = arith.constant 2.000000e+00 : f32
    %35 = vector.broadcast %cst_16 : f32 to vector<48x2048xf32>
    %36 = arith.addf %34, %35 : vector<48x2048xf32>
    %37 = tpu.reciprocal %36 {approx = true} : vector<48x2048xf32> -> vector<48x2048xf32>
    %38 = arith.mulf %36, %37 : vector<48x2048xf32>
    %cst_17 = arith.constant 2.000000e+00 : f32
    %39 = vector.broadcast %cst_17 : f32 to vector<48x2048xf32>
    %40 = arith.subf %39, %38 : vector<48x2048xf32>
    %41 = arith.mulf %37, %40 : vector<48x2048xf32>
    %cst_18 = arith.constant 2.000000e+01 : f32
    %42 = vector.broadcast %cst_18 : f32 to vector<48x2048xf32>
    %43 = arith.cmpf ogt, %28, %42 : vector<48x2048xf32>
    %44 = arith.mulf %28, %34 : vector<48x2048xf32>
    %45 = arith.mulf %44, %41 : vector<48x2048xf32>
    %46 = arith.select %43, %28, %45 : vector<48x2048xi1>, vector<48x2048xf32>
    %c72 = arith.constant 72 : index
    %c0_19 = arith.constant 0 : index
    %47 = vector.load %arg2[%c72, %c0_19] : memref<152x48xf32, #tpu.memory_space<vmem>>, vector<24x48xf32>
    %c72_20 = arith.constant 72 : index
    %c0_21 = arith.constant 0 : index
    %48 = vector.load %arg3[%c72_20, %c0_21] : memref<152x1xf32, #tpu.memory_space<vmem>>, vector<24x1xf32>
    %cst_22 = arith.constant dense<0.000000e+00> : vector<24x2048xf32>
    %49 = tpu.matmul %47, %46, %cst_22 {dimension_numbers = #tpu.dot_dimension_numbers<[1], [0], [0], [1], [0, 0, 1, 1], [], []>} : vector<24x48xf32>, vector<48x2048xf32>, vector<24x2048xf32> -> vector<24x2048xf32>
    %50 = vector.broadcast %48 : vector<24x1xf32> to vector<24x2048xf32>
    %51 = arith.addf %49, %50 : vector<24x2048xf32>
    %cst_23 = arith.constant 2.000000e+01 : f32
    %52 = vector.broadcast %cst_23 : f32 to vector<24x2048xf32>
    %53 = arith.minimumf %51, %52 : vector<24x2048xf32>
    %54 = math.exp %53 : vector<24x2048xf32>
    %cst_24 = arith.constant 2.000000e+00 : f32
    %55 = vector.broadcast %cst_24 : f32 to vector<24x2048xf32>
    %56 = arith.addf %54, %55 : vector<24x2048xf32>
    %57 = arith.mulf %54, %56 : vector<24x2048xf32>
    %cst_25 = arith.constant 2.000000e+00 : f32
    %58 = vector.broadcast %cst_25 : f32 to vector<24x2048xf32>
    %59 = arith.addf %57, %58 : vector<24x2048xf32>
    %60 = tpu.reciprocal %59 {approx = true} : vector<24x2048xf32> -> vector<24x2048xf32>
    %61 = arith.mulf %59, %60 : vector<24x2048xf32>
    %cst_26 = arith.constant 2.000000e+00 : f32
    %62 = vector.broadcast %cst_26 : f32 to vector<24x2048xf32>
    %63 = arith.subf %62, %61 : vector<24x2048xf32>
    %64 = arith.mulf %60, %63 : vector<24x2048xf32>
    %cst_27 = arith.constant 2.000000e+01 : f32
    %65 = vector.broadcast %cst_27 : f32 to vector<24x2048xf32>
    %66 = arith.cmpf ogt, %51, %65 : vector<24x2048xf32>
    %67 = arith.mulf %51, %57 : vector<24x2048xf32>
    %68 = arith.mulf %67, %64 : vector<24x2048xf32>
    %69 = arith.select %66, %51, %68 : vector<24x2048xi1>, vector<24x2048xf32>
    %c96 = arith.constant 96 : index
    %c0_28 = arith.constant 0 : index
    %70 = vector.load %arg2[%c96, %c0_28] : memref<152x48xf32, #tpu.memory_space<vmem>>, vector<24x24xf32>
    %c96_29 = arith.constant 96 : index
    %c0_30 = arith.constant 0 : index
    %71 = vector.load %arg3[%c96_29, %c0_30] : memref<152x1xf32, #tpu.memory_space<vmem>>, vector<24x1xf32>
    %cst_31 = arith.constant dense<0.000000e+00> : vector<24x2048xf32>
    %72 = tpu.matmul %70, %69, %cst_31 {dimension_numbers = #tpu.dot_dimension_numbers<[1], [0], [0], [1], [0, 0, 1, 1], [], []>} : vector<24x24xf32>, vector<24x2048xf32>, vector<24x2048xf32> -> vector<24x2048xf32>
    %73 = vector.broadcast %71 : vector<24x1xf32> to vector<24x2048xf32>
    %74 = arith.addf %72, %73 : vector<24x2048xf32>
    %cst_32 = arith.constant 2.000000e+01 : f32
    %75 = vector.broadcast %cst_32 : f32 to vector<24x2048xf32>
    %76 = arith.minimumf %74, %75 : vector<24x2048xf32>
    %77 = math.exp %76 : vector<24x2048xf32>
    %cst_33 = arith.constant 2.000000e+00 : f32
    %78 = vector.broadcast %cst_33 : f32 to vector<24x2048xf32>
    %79 = arith.addf %77, %78 : vector<24x2048xf32>
    %80 = arith.mulf %77, %79 : vector<24x2048xf32>
    %cst_34 = arith.constant 2.000000e+00 : f32
    %81 = vector.broadcast %cst_34 : f32 to vector<24x2048xf32>
    %82 = arith.addf %80, %81 : vector<24x2048xf32>
    %83 = tpu.reciprocal %82 {approx = true} : vector<24x2048xf32> -> vector<24x2048xf32>
    %84 = arith.mulf %82, %83 : vector<24x2048xf32>
    %cst_35 = arith.constant 2.000000e+00 : f32
    %85 = vector.broadcast %cst_35 : f32 to vector<24x2048xf32>
    %86 = arith.subf %85, %84 : vector<24x2048xf32>
    %87 = arith.mulf %83, %86 : vector<24x2048xf32>
    %cst_36 = arith.constant 2.000000e+01 : f32
    %88 = vector.broadcast %cst_36 : f32 to vector<24x2048xf32>
    %89 = arith.cmpf ogt, %74, %88 : vector<24x2048xf32>
    %90 = arith.mulf %74, %80 : vector<24x2048xf32>
    %91 = arith.mulf %90, %87 : vector<24x2048xf32>
    %92 = arith.select %89, %74, %91 : vector<24x2048xi1>, vector<24x2048xf32>
    %c120 = arith.constant 120 : index
    %c0_37 = arith.constant 0 : index
    %93 = vector.load %arg2[%c120, %c0_37] : memref<152x48xf32, #tpu.memory_space<vmem>>, vector<12x24xf32>
    %c120_38 = arith.constant 120 : index
    %c0_39 = arith.constant 0 : index
    %94 = vector.load %arg3[%c120_38, %c0_39] : memref<152x1xf32, #tpu.memory_space<vmem>>, vector<12x1xf32>
    %cst_40 = arith.constant dense<0.000000e+00> : vector<12x2048xf32>
    %95 = tpu.matmul %93, %92, %cst_40 {dimension_numbers = #tpu.dot_dimension_numbers<[1], [0], [0], [1], [0, 0, 1, 1], [], []>} : vector<12x24xf32>, vector<24x2048xf32>, vector<12x2048xf32> -> vector<12x2048xf32>
    %96 = vector.broadcast %94 : vector<12x1xf32> to vector<12x2048xf32>
    %97 = arith.addf %95, %96 : vector<12x2048xf32>
    %cst_41 = arith.constant 2.000000e+01 : f32
    %98 = vector.broadcast %cst_41 : f32 to vector<12x2048xf32>
    %99 = arith.minimumf %97, %98 : vector<12x2048xf32>
    %100 = math.exp %99 : vector<12x2048xf32>
    %cst_42 = arith.constant 2.000000e+00 : f32
    %101 = vector.broadcast %cst_42 : f32 to vector<12x2048xf32>
    %102 = arith.addf %100, %101 : vector<12x2048xf32>
    %103 = arith.mulf %100, %102 : vector<12x2048xf32>
    %cst_43 = arith.constant 2.000000e+00 : f32
    %104 = vector.broadcast %cst_43 : f32 to vector<12x2048xf32>
    %105 = arith.addf %103, %104 : vector<12x2048xf32>
    %106 = tpu.reciprocal %105 {approx = true} : vector<12x2048xf32> -> vector<12x2048xf32>
    %107 = arith.mulf %105, %106 : vector<12x2048xf32>
    %cst_44 = arith.constant 2.000000e+00 : f32
    %108 = vector.broadcast %cst_44 : f32 to vector<12x2048xf32>
    %109 = arith.subf %108, %107 : vector<12x2048xf32>
    %110 = arith.mulf %106, %109 : vector<12x2048xf32>
    %cst_45 = arith.constant 2.000000e+01 : f32
    %111 = vector.broadcast %cst_45 : f32 to vector<12x2048xf32>
    %112 = arith.cmpf ogt, %97, %111 : vector<12x2048xf32>
    %113 = arith.mulf %97, %103 : vector<12x2048xf32>
    %114 = arith.mulf %113, %110 : vector<12x2048xf32>
    %115 = arith.select %112, %97, %114 : vector<12x2048xi1>, vector<12x2048xf32>
    %c136 = arith.constant 136 : index
    %c0_46 = arith.constant 0 : index
    %116 = vector.load %arg2[%c136, %c0_46] : memref<152x48xf32, #tpu.memory_space<vmem>>, vector<12x1xf32>
    %c136_47 = arith.constant 136 : index
    %c0_48 = arith.constant 0 : index
    %117 = vector.load %arg3[%c136_47, %c0_48] : memref<152x1xf32, #tpu.memory_space<vmem>>, vector<1x1xf32>
    %118 = vector.broadcast %116 : vector<12x1xf32> to vector<12x2048xf32>
    %119 = arith.mulf %118, %115 : vector<12x2048xf32>
    %cst_49 = arith.constant dense<0.000000e+00> : vector<2048xf32>
    %120 = vector.multi_reduction <add>, %119, %cst_49 [0] : vector<12x2048xf32> to vector<2048xf32>
    %121 = vector.shape_cast %120 : vector<2048xf32> to vector<1x2048xf32>
    %122 = vector.broadcast %117 : vector<1x1xf32> to vector<1x2048xf32>
    %123 = arith.addf %121, %122 : vector<1x2048xf32>
    %c0_50 = arith.constant 0 : index
    %c0_51 = arith.constant 0 : index
    %124 = vector.load %arg4[%c0_50, %c0_51] : memref<1x2048xf32, #tpu.memory_space<vmem>>, vector<1x2048xf32>
    tpu.vector_store %arg4[%c0_50, %c0_51], %123 {strides = array<i32>} : memref<1x2048xf32, #tpu.memory_space<vmem>>, vector<1x2048xf32>,
    return
  }
  func.func @transform_0(%arg0: i32) -> (i32, i32) {
    %c0_i32 = arith.constant 0 : i32
    %c0_i32_0 = arith.constant 0 : i32
    return %c0_i32, %arg0 : i32, i32
  }
  func.func @transform_1(%arg0: i32) -> (i32, i32) {
    %c0_i32 = arith.constant 0 : i32
    %c0_i32_0 = arith.constant 0 : i32
    %c0_i32_1 = arith.constant 0 : i32
    return %c0_i32, %c0_i32_0 : i32, i32
  }
  func.func @transform_2(%arg0: i32) -> (i32, i32) {
    %c0_i32 = arith.constant 0 : i32
    %c0_i32_0 = arith.constant 0 : i32
    %c0_i32_1 = arith.constant 0 : i32
    return %c0_i32, %c0_i32_0 : i32, i32
  }
  func.func @transform_3(%arg0: i32) -> (i32, i32) {
    %c0_i32 = arith.constant 0 : i32
    %c0_i32_0 = arith.constant 0 : i32
    return %c0_i32, %arg0 : i32, i32
  }
}

</mosaic_0001>

<bundles_post_ra>
// kernel: taoyuan_features7_nn.2
= control target key start
LH: loop header
LB: loop body
LE: loop exit
PB: predicated region body
PF: predicated region fallthrough
CT: control target
= control target key end

     0   :  { %8 = vsyncpa [#allocation3], 0  ;;  %s13209_s0 = inlined_call_operand.vmem [shape: f32[152,48], index: 0, kind: input, shape index: {}]   ;;  %s13210_s1 = inlined_call_operand.vmem [shape: f32[152,1], index: 1, kind: input, shape index: {}]   ;;  %s13211_s2 = inlined_call_operand.vmem [shape: f32[4096,7], index: 2, kind: input, shape index: {}]   ;;  %s13212_s3 = inlined_call_operand.hbm [shape: f32[1,4096], index: 3, kind: output, shape index: {}]  }
   0x1   :  { %10 = vsyncpa [#allocation3 + $0x1], 0  ;;  %s8359_s12 = smov 0   ;;  %s8361_s13 = smov 0  }
   0x2   :  { %s8363_s14 = smov 0   ;;  %s8365_s15 = smov 0  }
   0x3 LB: > { %s6811_s16 = sadd.s32 4294967295, %s8336_s15   ;;  %s6812_s17 = sadd.s32 4294967294, %s8336_s15   ;;  %s8336_s15 = sphi %s8365_s15, %s13726_s15   ;;  %s8332_s14 = sphi %s8363_s14, %s13725_s14   ;;  %s8328_s13 = sphi %s8361_s13, %s13724_s13   ;;  %s8324_s12 = sphi %s8359_s12, %s13723_s12  }
   0x4   : > { %s8382_s18 = sadd.s32 1, %s8336_s15   ;;  %s91_s19 = sadd.s32 1, %s8332_s14 }
   0x5   : > { %s88_s20 = ssub.s32 %s8336_s15, %s8382_s18  ;;  %p101_p0 = scmp.ne.s32.totalorder %s8332_s14, %s8328_s13 }
   0x6   : > { %p89_p1 = scmp.eq.s32.totalorder %s88_s20, 0  ;;  %p102_p2 = scmp.eq.s32.totalorder %s6811_s16, 1 }
   0x7   : > { %p107_p3 = scmp.ne.s32.totalorder %s8328_s13, %s8324_s12  ;;  %p108_p4 = scmp.eq.s32.totalorder %s6812_s17, 1 }
   0x8   : > { %s8392_s21 = scalar_select %p89_p1, %s8332_s14, %s91_s19  }
   0x9   : > { %p8394_p5 = por %p102_p2, %p101_p0  ;;  %p8398_p6 = por %p108_p4, %p107_p3 }
   0xa   : > { %p6815_p7 = scmp.ge.s32.totalorder %s8336_s15, 1  ;;  %p141_p8 = scmp.lt.s32.totalorder %s8336_s15, 3 }
   0xc   : > { %p142_p9 = pnand %p6815_p7, %p141_p8 }
   0xe   : > { %145 = sbr.rel (%p142_p9) target bundleno = 1376 (0x560), region = 32 }
  0x13   : > { %v287_v0 = vld [vmem:[%s13210_s1 + $0x10] sm:$0xff]  ;;  %v285_v1 = vld [vmem:[%s13210_s1] sm:$0xff]  ;;  %s8410_s28 = sshll.u32 %s6811_s16, 4  ;;  %v8338_v2 = vmov 0   ;;  %v286_v3 = vld [vmem:[%s13210_s1 + $0x8] sm:$0xff]  ;;  %vm313_vm0 = vcmask 1046528  }
  0x14   : > { %7166 = vset.pattern.permute.xlu0 %v8338_v2  ;;  %7167 = vset.pattern.permute.xlu1 %v8338_v2  ;;  %p166_p10 = scmp.lt.s32.totalorder %s8410_s28, 31  ;;  %v1461_v4 = vld [vmem:[%s13210_s1 + $0x40] sm:$0xff]  ;;  %vm303_vm1 = vcmask 56320   ;;  %v1458_v17 = vld [vmem:[%s13210_s1 + $0x28] sm:$0xff]  ;;  %v3420_v25 = vld [vmem:[%s13210_s1 + $0x58] sm:$0xff]  ;;  %vm1492_vm8 = vcmask 195584   ;;  %s6748_s8 = scalar_lea.hbm %s13212_s3, %s8410_s28 }
  0x15   : > { %300 = vperm.xlu0 %7166, %v287_v0   ;;  %290 = vperm.xlu1 %7167, %v285_v1   ;;  %v8436_v13 = vld [vmem:[%s13209_s0] sm:$0xff]  ;;  %v8460_v23 = vld [vmem:[%s13209_s0 + $0x8] sm:$0xff]  ;;  %v3419_v26 = vld [vmem:[%s13210_s1 + $0x50] sm:$0xff]  ;;  %s6752_s11 = sshll.u32 %s6748_s8, 4  ;;  %s8294_s24 = scalar_lea.hbm %s13212_s3, 32  ;;  %s6753_s11 = int_to_ptr.hbm [resolvable:$true] %s6752_s11 }
  0x16   : > { %s167_s29 = scalar_select %p166_p10, %s8410_s28, 31  ;;  %7168 = vset.pattern.permute.xlu2 %v8338_v2  ;;  %v1457_v19 = vld [vmem:[%s13210_s1 + $0x20] sm:$0xff]  ;;  %v8486_v31 = vld [vmem:[%s13209_s0 + $0x10] sm:$0xff]  ;;  %v4538_v33 = vld [vmem:[%s13210_s1 + $0x68] sm:$0xff] }
  0x17   : > { %v4539_v32 = vld [vmem:[%s13210_s1 + $0x70] sm:$0xff]  ;;  %v5655_v38 = vld [vmem:[%s13210_s1 + $0x80] sm:$0xf]  ;;  %v5654_v39 = vld [vmem:[%s13210_s1 + $0x78] sm:$0xff]  ;;  %s8288_s16 = sshra.s32 %s6753_s11, 4  ;;  %s8289_s16 = int_to_ptr.hbm [resolvable:$true] %s8288_s16 }
  0x18   : > { %s6818_s30 = sshll.u32 %s167_s29, 3  ;;  %v6488_v40 = vld [vmem:[%s13209_s0 + $0x88] sm:$0xff]  ;;  %s8290_s17 = scalar_lea.hbm %s8289_s16, 16 }
  0x19   : > { %s8423_s10 = scalar_lea.vmem %s13211_s2, %s6818_s30  ;;  %v6490_v41 = vld [vmem:[%s13210_s1 + $0x88] sm:$0x1]  ;;  %s162_s30 = sand.u32 1, %s8328_s13  }
  0x1a   : > { %v172_v5 = vld [vmem:[%s8423_s10] sm:$0x7f]  ;;  %v6819_v6 = vld [vmem:[%s8423_s10 + $0x8] sm:$0x7f]  ;;  %v6820_v7 = vld [vmem:[%s8423_s10 + $0x10] sm:$0x7f]  ;;  %p8291_p11 = scmp.ne.s32.totalorder %s8289_s16, %s8290_s17  ;;  %p8295_p0 = scmp.lt.s32.totalorder %s8289_s16, %s13212_s3 }
  0x1b   : > { %175 = vst [vmem:[#allocation4 + $0x30] sm:$0xff] %v172_v5  ;;  %v6821_v8 = vld [vmem:[%s8423_s10 + $0x18] sm:$0x7f]  ;;  %v6822_v9 = vld [vmem:[%s8423_s10 + $0x20] sm:$0x7f]  ;;  %s6816_s4 = sshll.u32 %s162_s30, 4  ;;  %p8296_p1 = scmp.lt.s32.totalorder %s8294_s24, %s8290_s17 }
  0x1c   : > { %181 = vst [vmem:[#allocation4] sm:$0xff] %v6819_v6  ;;  %v6823_v10 = vld [vmem:[%s8423_s10 + $0x28] sm:$0x7f]  ;;  %v6824_v11 = vld [vmem:[%s8423_s10 + $0x30] sm:$0x7f]  ;;  %s12983_s5 = scalar_lea.vmem [#allocation2], %s6816_s4  ;;  %p8292_p12 = pnand %p8291_p11, %p8394_p5 }
  0x1d   : > { %295 = vperm.xlu0 %7166, %v286_v3   ;;  %1489 = vperm.xlu1 %7167, %v1461_v4   ;;  %187 = vst [vmem:[#allocation4 + $0x58] sm:$0xff] %v6820_v7  ;;  %v6825_v12 = vld [vmem:[%s8423_s10 + $0x38] sm:$0x7f]  ;;  %v6826_v27 = vld [vmem:[%s8423_s10 + $0x40] sm:$0x7f]  ;;  %s6750_s9 = sshll.u32 %s12983_s5, 4  ;;  %p8297_p2 = por %p8296_p1, %p8295_p0  ;;  %s6751_s9 = int_to_ptr.vmem [resolvable:$true] %s6750_s9 }
  0x1e   : > { %193 = vst [vmem:[#allocation4 + $0x18] sm:$0xff] %v6821_v8  ;;  %v6827_v28 = vld [vmem:[%s8423_s10 + $0x48] sm:$0x7f]  ;;  %v6828_v29 = vld [vmem:[%s8423_s10 + $0x50] sm:$0x7f]  ;;  %s6738_s28 = scalar_lea.sflag [#allocation3], %s162_s30  ;;  %p8293_p13 = pneg %p8292_p12 }
  0x1f   : > { %199 = vst [vmem:[#allocation4 + $0x50] sm:$0xff] %v6822_v9  ;;  %v6829_v30 = vld [vmem:[%s8423_s10 + $0x58] sm:$0x7f]  ;;  %v6830_v42 = vld [vmem:[%s8423_s10 + $0x60] sm:$0x7f] }
  0x20   : > { %205 = vst [vmem:[#allocation4 + $0x68] sm:$0xff] %v6823_v10  ;;  %v6831_v43 = vld [vmem:[%s8423_s10 + $0x68] sm:$0x7f]  ;;  %v6832_v44 = vld [vmem:[%s8423_s10 + $0x70] sm:$0x7f]  ;;  %p8298_p3 = pnand %p8297_p2, %p8293_p13 }
  0x21   : > { %211 = vst [vmem:[#allocation4 + $0x8] sm:$0xff] %v6824_v11  ;;  %v6833_v45 = vld [vmem:[%s8423_s10 + $0x78] sm:$0x7f] }
  0x22   : > { %v266_v14 = vld [vmem:[#allocation4 + $0x30] sm:$0x7f]  ;;  %217 = vst [vmem:[#allocation4 + $0x48] sm:$0xff] %v6825_v12 }
  0x23   : > { %6834 = vmatpush.msk.msra.mxu0 %vm313_vm0, %v266_v14  ;;  %v267_v15 = vld [vmem:[#allocation4] sm:$0x7f]  ;;  %223 = vst [vmem:[#allocation4 + $0x40] sm:$0xff] %v6826_v27 }
  0x24   : > { %6838 = vmatpush.msk.msra.mxu1 %vm313_vm0, %v267_v15  ;;  %v268_v16 = vld [vmem:[#allocation4 + $0x58] sm:$0x7f]  ;;  %6835 = vmatmul.msk.f32.vlgmr.msra.gmra.mxu0 %vm303_vm1, %v8436_v13  ;;  %229 = vst [vmem:[#allocation4 + $0x20] sm:$0xff] %v6827_v28 }
  0x25   : > { %6842 = vmatpush.msk.msra.mxu2 %vm313_vm0, %v268_v16  ;;  %v269_v18 = vld [vmem:[#allocation4 + $0x18] sm:$0x7f]  ;;  %6839 = vmatmul.msk.f32.vlgmr.msra.gmra.mxu1 %vm303_vm1, %v8436_v13  ;;  %235 = vst [vmem:[#allocation4 + $0x10] sm:$0xff] %v6828_v29 }
  0x26   : > { %6846 = vmatpush.msk.msra.mxu3 %vm313_vm0, %v269_v18  ;;  %6843 = vmatmul.msk.f32.vlgmr.msra.gmra.mxu2 %vm303_vm1, %v8436_v13  ;;  %v270_v20 = vld [vmem:[#allocation4 + $0x50] sm:$0x7f]  ;;  %241 = vst [vmem:[#allocation4 + $0x38] sm:$0xff] %v6829_v30 }
  0x27   : > { %6847 = vmatmul.msk.f32.vlgmr.msra.gmra.mxu3 %vm303_vm1, %v8436_v13  ;;  %1474 = vperm.xlu0 %7166, %v1458_v17   ;;  %v271_v21 = vld [vmem:[#allocation4 + $0x68] sm:$0x7f]  ;;  %247 = vst [vmem:[#allocation4 + $0x60] sm:$0xff] %v6830_v42 }
  0x28   : > { %1469 = vperm.xlu1 %7167, %v1457_v19   ;;  %6850 = vmatpush.msk.msrb.mxu0 %vm313_vm0, %v270_v20  ;;  %v272_v22 = vld [vmem:[#allocation4 + $0x8] sm:$0x7f]  ;;  %253 = vst [vmem:[#allocation4 + $0x70] sm:$0xff] %v6831_v43 }
  0x29   : > { %6854 = vmatpush.msk.msrb.mxu1 %vm313_vm0, %v271_v21  ;;  %6858 = vmatpush.msk.msrb.mxu2 %vm313_vm0, %v272_v22  ;;  %v273_v24 = vld [vmem:[#allocation4 + $0x48] sm:$0x7f]  ;;  %259 = vst [vmem:[#allocation4 + $0x78] sm:$0xff] %v6832_v44 }
  0x2a   : > { %6862 = vmatpush.msk.msrb.mxu3 %vm313_vm0, %v273_v24  ;;  %v274_v34 = vld [vmem:[#allocation4 + $0x40] sm:$0x7f]  ;;  %265 = vst [vmem:[#allocation4 + $0x28] sm:$0xff] %v6833_v45 }
  0x2b   : > { %6866 = vmatpush.msk.msra.mxu0 %vm313_vm0, %v274_v34  ;;  %v275_v35 = vld [vmem:[#allocation4 + $0x20] sm:$0x7f] }
  0x2c   : > { %6836 = vmatmul.msk.f32.gmra.mxu0 %vm303_vm1, %v8460_v23  ;;  %v276_v36 = vld [vmem:[#allocation4 + $0x10] sm:$0x7f]  ;;  %6870 = vmatpush.msk.msra.mxu1 %vm313_vm0, %v275_v35 }
  0x2d   : > { %6840 = vmatmul.msk.f32.gmra.mxu1 %vm303_vm1, %v8460_v23  ;;  %v277_v37 = vld [vmem:[#allocation4 + $0x38] sm:$0x7f]  ;;  %6874 = vmatpush.msk.msra.mxu2 %vm313_vm0, %v276_v36 }
  0x2e   : > { %6844 = vmatmul.msk.f32.gmra.mxu2 %vm303_vm1, %v8460_v23  ;;  %6878 = vmatpush.msk.msra.mxu3 %vm313_vm0, %v277_v37  ;;  %v278_v46 = vld [vmem:[#allocation4 + $0x60] sm:$0x7f] }
  0x2f   : > { %6848 = vmatmul.msk.f32.gmra.mxu3 %vm303_vm1, %v8460_v23  ;;  %3433 = vperm.xlu0 %7166, %v3420_v25   ;;  %v279_v47 = vld [vmem:[#allocation4 + $0x70] sm:$0x7f] }
  0x30   : > { %3428 = vperm.xlu1 %7167, %v3419_v26   ;;  %v280_v48 = vld [vmem:[#allocation4 + $0x78] sm:$0x7f] }
  0x31   : > { %v281_v49 = vld [vmem:[#allocation4 + $0x28] sm:$0x7f] }
  0x34   : > { %6837 = vmatmul.msk.f32.gmra.mxu0 %vm303_vm1, %v8486_v31 }
  0x35   : > { %6841 = vmatmul.msk.f32.gmra.mxu1 %vm303_vm1, %v8486_v31 }
  0x36   : > { %6845 = vmatmul.msk.f32.gmra.mxu2 %vm303_vm1, %v8486_v31 }
  0x37   : > { %6849 = vmatmul.msk.f32.gmra.mxu3 %vm303_vm1, %v8486_v31  ;;  %4552 = vperm.xlu0 %7166, %v4539_v32  }
  0x38   : > { %4547 = vperm.xlu1 %7167, %v4538_v33  }
  0x3c   : > { %6851 = vmatmul.msk.f32.vlgmr.msrb.gmra.mxu0 %vm303_vm1, %v8436_v13 }
  0x3d   : > { %6855 = vmatmul.msk.f32.vlgmr.msrb.gmra.mxu1 %vm303_vm1, %v8436_v13  ;;  %6882 = vmatpush.msk.msrb.mxu0 %vm313_vm0, %v278_v46 }
  0x3e   : > { %6859 = vmatmul.msk.f32.vlgmr.msrb.gmra.mxu2 %vm303_vm1, %v8436_v13  ;;  %6886 = vmatpush.msk.msrb.mxu1 %vm313_vm0, %v279_v47 }
  0x3f   : > { %6863 = vmatmul.msk.f32.vlgmr.msrb.gmra.mxu3 %vm303_vm1, %v8436_v13  ;;  %5663 = vperm.xlu0 %7166, %v5655_v38  }
  0x40   : > { %5658 = vperm.xlu1 %7167, %v5654_v39   ;;  %6890 = vmatpush.msk.msrb.mxu2 %vm313_vm0, %v280_v48 }
  0x41   : > { %6894 = vmatpush.msk.msrb.mxu3 %vm313_vm0, %v281_v49 }
  0x44   : > { %6852 = vmatmul.msk.f32.gmra.mxu0 %vm303_vm1, %v8460_v23 }
  0x45   : > { %6856 = vmatmul.msk.f32.gmra.mxu1 %vm303_vm1, %v8460_v23 }
  0x46   : > { %6860 = vmatmul.msk.f32.gmra.mxu2 %vm303_vm1, %v8460_v23 }
  0x47   : > { %6864 = vmatmul.msk.f32.gmra.mxu3 %vm303_vm1, %v8460_v23  ;;  %6493 = vperm.xlu0 %7166, %v6488_v40  }
  0x48   : > { %6664 = vperm.xlu1 %7167, %v6490_v41  }
  0x4c   : > { %6853 = vmatmul.msk.f32.gmra.mxu0 %vm303_vm1, %v8486_v31 }
  0x4d   : > { %6857 = vmatmul.msk.f32.gmra.mxu1 %vm303_vm1, %v8486_v31 }
  0x4e   : > { %6861 = vmatmul.msk.f32.gmra.mxu2 %vm303_vm1, %v8486_v31 }
  0x4f   : > { %6865 = vmatmul.msk.f32.gmra.mxu3 %vm303_vm1, %v8486_v31 }
  0x54   : > { %6867 = vmatmul.msk.f32.vlgmr.msra.gmra.mxu0 %vm303_vm1, %v8436_v13 }
  0x55   : > { %6871 = vmatmul.msk.f32.vlgmr.msra.gmra.mxu1 %vm303_vm1, %v8436_v13 }
  0x56   : > { %6875 = vmatmul.msk.f32.vlgmr.msra.gmra.mxu2 %vm303_vm1, %v8436_v13 }
  0x57   : > { %6879 = vmatmul.msk.f32.vlgmr.msra.gmra.mxu3 %vm303_vm1, %v8436_v13 }
  0x5c   : > { %6868 = vmatmul.msk.f32.gmra.mxu0 %vm303_vm1, %v8460_v23 }
  0x5d   : > { %6872 = vmatmul.msk.f32.gmra.mxu1 %vm303_vm1, %v8460_v23 }
  0x5e   : > { %6876 = vmatmul.msk.f32.gmra.mxu2 %vm303_vm1, %v8460_v23 }
  0x5f   : > { %6880 = vmatmul.msk.f32.gmra.mxu3 %vm303_vm1, %v8460_v23 }
  0x64   : > { %6869 = vmatmul.msk.f32.gmra.mxu0 %vm303_vm1, %v8486_v31 }
  0x65   : > { %6873 = vmatmul.msk.f32.gmra.mxu1 %vm303_vm1, %v8486_v31 }
  0x66   : > { %6877 = vmatmul.msk.f32.gmra.mxu2 %vm303_vm1, %v8486_v31 }
  0x67   : > { %6881 = vmatmul.msk.f32.gmra.mxu3 %vm303_vm1, %v8486_v31 }
  0x6c   : > { %6883 = vmatmul.msk.f32.vlgmr.msrb.gmra.mxu0 %vm303_vm1, %v8436_v13 }
  0x6d   : > { %6887 = vmatmul.msk.f32.vlgmr.msrb.gmra.mxu1 %vm303_vm1, %v8436_v13 }
  0x6e   : > { %6891 = vmatmul.msk.f32.vlgmr.msrb.gmra.mxu2 %vm303_vm1, %v8436_v13 }
  0x6f   : > { %6895 = vmatmul.msk.f32.vlgmr.msrb.gmra.mxu3 %vm303_vm1, %v8436_v13 }
  0x74   : > { %6884 = vmatmul.msk.f32.gmra.mxu0 %vm303_vm1, %v8460_v23 }
  0x75   : > { %6888 = vmatmul.msk.f32.gmra.mxu1 %vm303_vm1, %v8460_v23 }
  0x76   : > { %6892 = vmatmul.msk.f32.gmra.mxu2 %vm303_vm1, %v8460_v23 }
  0x77   : > { %6896 = vmatmul.msk.f32.gmra.mxu3 %vm303_vm1, %v8460_v23 }
  0x7c   : > { %6885 = vmatmul.msk.f32.gmra.mxu0 %vm303_vm1, %v8486_v31 }
  0x7d   : > { %6889 = vmatmul.msk.f32.gmra.mxu1 %vm303_vm1, %v8486_v31 }
  0x7e   : > { %6893 = vmatmul.msk.f32.gmra.mxu2 %vm303_vm1, %v8486_v31 }
  0x7f   : > { %6897 = vmatmul.msk.f32.gmra.mxu3 %vm303_vm1, %v8486_v31 }
  0x87   : > { %v8598_v50 = vpop.permute.xlu0 %300  ;;  %v8600_v51 = vpop.permute.xlu1 %290 }
  0x8f   : > { %v8610_v60 = vpop.permute.xlu0 %295 }
  0xa1   : > { %v379_v52 = vpop.f32.mrf.mxu0 }
  0xa2   : > { %v8603_v53 = vadd.f32 %v379_v52, %v8600_v51  ;;  %v405_v54 = vpop.f32.mrf.mxu1 }
  0xa3   : > { %v8606_v55 = vadd.f32 %v405_v54, %v8600_v51 }
  0xa4   : > { %v778_v56 = vmin.f32 %v8603_v53, 20.0  ;;  %vm1258_vm6 = vcmp.gt.f32.partialorder %v8603_v53, 20.0 }
  0xa5   : > { %v779_v57 = vmin.f32 %v8606_v55, 20.0  ;;  %vm1259_vm7 = vcmp.gt.f32.partialorder %v8606_v55, 20.0 }
  0xa6   : > { %v826_v58 = vmul.f32 1.442695, %v778_v56 }
  0xa7   : > { %v828_v59 = vmul.f32 1.442695, %v779_v57 }
  0xa8   : > { %7169 = vpow2.f32 %v826_v58 }
  0xa9   : > { %7171 = vpow2.f32 %v828_v59  ;;  %v431_v61 = vpop.f32.mrf.mxu2  ;;  %v382_v63 = vpop.f32.mrf.mxu0 }
  0xaa   : > { %v457_v62 = vpop.f32.mrf.mxu3  ;;  %v8613_v0 = vadd.f32 %v382_v63, %v8610_v60  ;;  %v408_v1 = vpop.f32.mrf.mxu1  ;;  %v8619_v3 = vadd.f32 %v431_v61, %v8600_v51 }
  0xab   : > { %v8616_v2 = vadd.f32 %v408_v1, %v8610_v60  ;;  %v8624_v10 = vadd.f32 %v457_v62, %v8600_v51 }
  0xac   : > { %v794_v4 = vmin.f32 %v8613_v0, 20.0  ;;  %v780_v12 = vmin.f32 %v8619_v3, 20.0  ;;  %vm1274_vm4 = vcmp.gt.f32.partialorder %v8613_v0, 20.0  ;;  %vm1260_vm13 = vcmp.gt.f32.partialorder %v8619_v3, 20.0 }
  0xad   : > { %v795_v6 = vmin.f32 %v8616_v2, 20.0  ;;  %v781_v22 = vmin.f32 %v8624_v10, 20.0  ;;  %vm1275_vm5 = vcmp.gt.f32.partialorder %v8616_v2, 20.0  ;;  %vm1261_vm15 = vcmp.gt.f32.partialorder %v8624_v10, 20.0 }
  0xae   : > { %v7170_v5 = vpop.eup %7169  ;;  %v858_v8 = vmul.f32 1.442695, %v794_v4  ;;  %v830_v24 = vmul.f32 1.442695, %v780_v12 }
  0xaf   : > { %v7172_v7 = vpop.eup %7171  ;;  %v922_v9 = vadd.f32 2.0, %v7170_v5  ;;  %v860_v11 = vmul.f32 1.442695, %v795_v6  ;;  %v832_v32 = vmul.f32 1.442695, %v781_v22 }
  0xb0   : > { %v923_v15 = vadd.f32 2.0, %v7172_v7  ;;  %7173 = vpow2.f32 %v858_v8 }
  0xb1   : > { %v434_v13 = vpop.f32.mrf.mxu2  ;;  %v970_v14 = vmul.f32 %v7170_v5, %v922_v9  ;;  %v385_v18 = vpop.f32.mrf.mxu0  ;;  %7175 = vpow2.f32 %v860_v11 }
  0xb2   : > { %v8628_v16 = vadd.f32 %v434_v13, %v8610_v60  ;;  %v460_v17 = vpop.f32.mrf.mxu3  ;;  %v8631_v19 = vadd.f32 %v385_v18, %v8598_v50  ;;  %v411_v20 = vpop.f32.mrf.mxu1  ;;  %v971_v27 = vmul.f32 %v7172_v7, %v923_v15 }
  0xb3   : > { %v1018_v21 = vadd.f32 2.0, %v970_v14  ;;  %v8635_v23 = vadd.f32 %v411_v20, %v8598_v50  ;;  %v8638_v25 = vadd.f32 %v460_v17, %v8610_v60  ;;  %v8672_v6 = vmul.f32 %v970_v14, %v8603_v53 }
  0xb4   : > { %v810_v26 = vmin.f32 %v8631_v19, 20.0  ;;  %v796_v28 = vmin.f32 %v8628_v16, 20.0  ;;  %v8644_v38 = vadd.f32 2.0, %v971_v27  ;;  %v8675_v12 = vmul.f32 %v971_v27, %v8606_v55 }
  0xb5   : > { %v811_v29 = vmin.f32 %v8635_v23, 20.0  ;;  %7177 = vrcp.f32 %v1018_v21  ;;  %v797_v35 = vmin.f32 %v8638_v25, 20.0  ;;  %vm1290_vm2 = vcmp.gt.f32.partialorder %v8631_v19, 20.0 }
  0xb6   : > { %v890_v30 = vmul.f32 1.442695, %v810_v26  ;;  %v7174_v31 = vpop.eup %7173  ;;  %7179 = vpow2.f32 %v830_v24  ;;  %v862_v39 = vmul.f32 1.442695, %v796_v28  ;;  %vm1291_vm3 = vcmp.gt.f32.partialorder %v8635_v23, 20.0 }
  0xb7   : > { %v892_v33 = vmul.f32 1.442695, %v811_v29  ;;  %v7176_v34 = vpop.eup %7175  ;;  %v938_v37 = vadd.f32 2.0, %v7174_v31  ;;  %v864_v58 = vmul.f32 1.442695, %v797_v35  ;;  %vm1276_vm11 = vcmp.gt.f32.partialorder %v8628_v16, 20.0 }
  0xb8   : > { %7181 = vpow2.f32 %v890_v30  ;;  %v939_v43 = vadd.f32 2.0, %v7176_v34  ;;  %vm1277_vm12 = vcmp.gt.f32.partialorder %v8638_v25, 20.0 }
  0xb9   : > { %v437_v36 = vpop.f32.mrf.mxu2  ;;  %v483_v42 = vpop.f32.mrf.mxu0  ;;  %7183 = vpow2.f32 %v892_v33  ;;  %v8655_v47 = vmul.f32 %v7174_v31, %v938_v37 }
  0xba   : > { %v8647_v40 = vadd.f32 %v437_v36, %v8598_v50  ;;  %v463_v41 = vpop.f32.mrf.mxu3  ;;  %v8653_v45 = vadd.f32 %v483_v42, %v8600_v51  ;;  %v509_v46 = vpop.f32.mrf.mxu1  ;;  %7185 = vpow2.f32 %v832_v32  ;;  %v987_v61 = vmul.f32 %v7176_v34, %v939_v43 }
  0xbb   : > { %v8650_v44 = vadd.f32 %v463_v41, %v8598_v50  ;;  %v8657_v48 = vpop.eup %7177  ;;  %v8661_v52 = vadd.f32 %v509_v46, %v8600_v51  ;;  %v1034_v57 = vadd.f32 2.0, %v8655_v47  ;;  %7187 = vrcp.f32 %v8644_v38 }
  0xbc   : > { %13442 = vst [vmem:[#allocation6_spill] sm:$0xff] %v8653_v45  ;;  %v812_v49 = vmin.f32 %v8647_v40, 20.0  ;;  %v782_v56 = vmin.f32 %v8653_v45, 20.0  ;;  %7189 = vpow2.f32 %v862_v39  ;;  %v8667_v62 = vpop.eup %7179  ;;  %v1114_v1 = vmul.f32 %v8657_v48, %v1018_v21 }
  0xbd   : > { %13443 = vst [vmem:[#allocation7_spill] sm:$0xff] %v8661_v52  ;;  %v813_v54 = vmin.f32 %v8650_v44, 20.0  ;;  %7191 = vrcp.f32 %v1034_v57  ;;  %v783_v5 = vmin.f32 %v8661_v52, 20.0  ;;  %v8682_v21 = vadd.f32 2.0, %v987_v61 }
  0xbe   : > { %v894_v59 = vmul.f32 1.442695, %v812_v49  ;;  %v7182_v4 = vpop.eup %7181  ;;  %v834_v9 = vmul.f32 1.442695, %v782_v56  ;;  %v1162_v28 = vsub.f32 2.0, %v1114_v1  ;;  %vm1292_vm9 = vcmp.gt.f32.partialorder %v8647_v40, 20.0 }
  0xbf   : > { %v896_v63 = vmul.f32 1.442695, %v813_v54  ;;  %v7184_v7 = vpop.eup %7183  ;;  %v954_v8 = vadd.f32 2.0, %v7182_v4  ;;  %v836_v31 = vmul.f32 1.442695, %v783_v5  ;;  %vm1293_vm10 = vcmp.gt.f32.partialorder %v8650_v44, 20.0 }
  0xc0   : > { %7193 = vpow2.f32 %v894_v59  ;;  %v8677_v13 = vpop.eup %7185  ;;  %v955_v15 = vadd.f32 2.0, %v7184_v7 }
  0xc1   : > { %7195 = vpow2.f32 %v896_v63  ;;  %v535_v11 = vpop.f32.mrf.mxu2  ;;  %v486_v20 = vpop.f32.mrf.mxu0  ;;  %v1002_v22 = vmul.f32 %v7182_v4, %v954_v8  ;;  %v1322_v8 = vmul.f32 %v8655_v47, %v8613_v0 }
  0xc2   : > { %7197 = vpow2.f32 %v864_v58  ;;  %v8680_v17 = vadd.f32 %v535_v11, %v8600_v51  ;;  %v561_v18 = vpop.f32.mrf.mxu3  ;;  %v8684_v14 = vpop.eup %7187  ;;  %v8690_v26 = vadd.f32 %v486_v20, %v8610_v60  ;;  %v1003_v30 = vmul.f32 %v7184_v7, %v955_v15 }
  0xc3   : > { %v8687_v24 = vadd.f32 %v561_v18, %v8600_v51  ;;  %v512_v27 = vpop.f32.mrf.mxu1  ;;  %v8692_v29 = vpop.eup %7189  ;;  %v1050_v35 = vadd.f32 2.0, %v1002_v22  ;;  %7199 = vpow2.f32 %v834_v9  ;;  %v1115_v56 = vmul.f32 %v8684_v14, %v8644_v38 }
  0xc4   : > { %13444 = vst [vmem:[#allocation8_spill] sm:$0xff] %v8680_v17  ;;  %v784_v32 = vmin.f32 %v8680_v17, 20.0  ;;  %v8696_v33 = vadd.f32 %v512_v27, %v8610_v60  ;;  %v7192_v34 = vpop.eup %7191  ;;  %v798_v37 = vmin.f32 %v8690_v26, 20.0  ;;  %v1051_v41 = vadd.f32 2.0, %v1003_v30 }
  0xc5   : > { %13445 = vst [vmem:[#allocation9_spill] sm:$0xff] %v8687_v24  ;;  %v785_v36 = vmin.f32 %v8687_v24, 20.0  ;;  %7201 = vrcp.f32 %v8682_v21  ;;  %v1130_v1 = vmul.f32 %v7192_v34, %v1034_v57  ;;  %v8713_v38 = vmul.f32 %v987_v61, %v8616_v2 }
  0xc6   : > { %v7194_v39 = vpop.eup %7193  ;;  %v838_v42 = vmul.f32 1.442695, %v784_v32  ;;  %v799_v43 = vmin.f32 %v8696_v33, 20.0  ;;  %7203 = vrcp.f32 %v1050_v35  ;;  %v866_v63 = vmul.f32 1.442695, %v798_v37 }
  0xc7   : > { %v7196_v46 = vpop.eup %7195  ;;  %v956_v49 = vadd.f32 2.0, %v7194_v39  ;;  %v840_v54 = vmul.f32 1.442695, %v785_v36  ;;  %7205 = vrcp.f32 %v1051_v41  ;;  %v1210_v18 = vmul.f32 %v8657_v48, %v1162_v28 }
  0xc8   : > { %v8704_v58 = vpop.eup %7197  ;;  %v957_v59 = vadd.f32 2.0, %v7196_v46  ;;  %7207 = vpow2.f32 %v836_v31  ;;  %v868_v5 = vmul.f32 1.442695, %v799_v43  ;;  %v1178_v31 = vsub.f32 2.0, %v1130_v1 }
  0xc9   : > { %v8706_v4 = vmul.f32 %v7194_v39, %v956_v49  ;;  %v538_v7 = vpop.f32.mrf.mxu2  ;;  %7209 = vpow2.f32 %v838_v42  ;;  %v489_v15 = vpop.f32.mrf.mxu0  ;;  %v1163_v32 = vsub.f32 2.0, %v1115_v56  ;;  %v1338_v36 = vmul.f32 %v1002_v22, %v8631_v19 }
  0xca   : > { %v8710_v9 = vmul.f32 %v7196_v46, %v957_v59  ;;  %v564_v11 = vpop.f32.mrf.mxu3  ;;  %v8716_v20 = vpop.eup %7199  ;;  %7211 = vpow2.f32 %v840_v54  ;;  %v1339_v37 = vmul.f32 %v1003_v30, %v8635_v23  ;;  %v8727_v48 = vadd.f32 %v538_v7, %v8610_v60 }
  0xcb   : > { %v8719_v57 = vadd.f32 2.0, %v8706_v4  ;;  %v515_v27 = vpop.f32.mrf.mxu1  ;;  %v7202_v47 = vpop.eup %7201  ;;  %7213 = vpow2.f32 %v866_v63  ;;  %v8730_v28 = vadd.f32 %v489_v15, %v8598_v50  ;;  %v8738_v30 = vadd.f32 %v564_v11, %v8610_v60 }
  0xcc   : > { %v8724_v39 = vadd.f32 2.0, %v8710_v9  ;;  %v7204_v61 = vpop.eup %7203  ;;  %7215 = vpow2.f32 %v868_v5  ;;  %13446 = vst [vmem:[#allocation10_spill] sm:$0xff] %v8727_v48  ;;  %v8733_v42 = vadd.f32 %v515_v27, %v8598_v50  ;;  %v8743_v46 = vmul.f32 %v8672_v6, %v1210_v18 }
  0xcd   : > { %v7206_v22 = vpop.eup %7205  ;;  %7217 = vrcp.f32 %v8719_v57  ;;  %13447 = vst [vmem:[#allocation11_spill] sm:$0xff] %v8738_v30  ;;  %v1146_v43 = vmul.f32 %v7204_v61, %v1050_v35  ;;  %v814_v54 = vmin.f32 %v8730_v28, 20.0  ;;  %v1226_v63 = vmul.f32 %v7192_v34, %v1178_v31 }
  0xce   : > { %v8745_v49 = vpop.eup %7207  ;;  %v815_v56 = vmin.f32 %v8733_v42, 20.0  ;;  %v1147_v59 = vmul.f32 %v7206_v22, %v1051_v41  ;;  %7219 = vrcp.f32 %v8724_v39  ;;  %v1131_v5 = vmul.f32 %v7202_v47, %v8682_v21 }
  0xcf   : > { %v8749_v1 = vpop.eup %7209  ;;  %v1194_v35 = vsub.f32 2.0, %v1146_v43  ;;  %v1211_v6 = vmul.f32 %v8684_v14, %v1163_v32  ;;  %v800_v11 = vmin.f32 %v8727_v48, 20.0  ;;  %v898_v15 = vmul.f32 1.442695, %v814_v54 }
  0xd0   : > { %13448 = vst [vmem:[#allocation12_spill] sm:$0xff] %v8749_v1  ;;  %v8755_v7 = vpop.eup %7211  ;;  %v900_v18 = vmul.f32 1.442695, %v815_v56  ;;  %v1195_v41 = vsub.f32 2.0, %v1147_v59  ;;  %v801_v31 = vmin.f32 %v8738_v30, 20.0  ;;  %v1179_v32 = vsub.f32 2.0, %v1131_v5 }
  0xd1   : > { %13449 = vst [vmem:[#allocation13_spill] sm:$0xff] %v8755_v7  ;;  %v541_v27 = vpop.f32.mrf.mxu2  ;;  %v8759_v34 = vpop.eup %7213  ;;  %v1242_v14 = vmul.f32 %v7204_v61, %v1194_v35  ;;  %7221 = vpow2.f32 %v898_v15  ;;  %v1370_v7 = vmul.f32 %v1322_v8, %v1226_v63  ;;  %v870_v35 = vmul.f32 1.442695, %v800_v11 }
  0xd2   : > { %v8763_v21 = vadd.f32 %v541_v27, %v8598_v50  ;;  %v567_v43 = vpop.f32.mrf.mxu3  ;;  %v587_v24 = vpop.f32.mrf.mxu0  ;;  %v1243_v59 = vmul.f32 %v7206_v22, %v1195_v41  ;;  %7223 = vpow2.f32 %v900_v18  ;;  %v1227_v15 = vmul.f32 %v7202_v47, %v1179_v32 }
  0xd3   : > { %v8766_v17 = vpop.eup %7215  ;;  %v8769_v54 = vadd.f32 %v567_v43, %v8598_v50  ;;  %v613_v56 = vpop.f32.mrf.mxu1  ;;  %v8775_v30 = vadd.f32 %v587_v24, %v8600_v51  ;;  %v1386_v61 = vmul.f32 %v1338_v36, %v1242_v14  ;;  %v872_v43 = vmul.f32 1.442695, %v801_v31 }
  0xd4   : > { %v8771_v48 = vpop.eup %7217  ;;  %v816_v27 = vmin.f32 %v8763_v21, 20.0  ;;  %v1387_v52 = vmul.f32 %v1339_v37, %v1243_v59  ;;  %v8781_v8 = vadd.f32 %v613_v56, %v8600_v51  ;;  %v1418_v47 = vsel %vm1274_vm4, %v8613_v0, %v1370_v7  ;;  %v8801_v0 = vld [vmem:[%s13209_s0 + $0x18] sm:$0xff] }
  0xd5   : > { %13450 = vst [vmem:[#allocation14_spill] sm:$0xff] %v8775_v30  ;;  %v817_v5 = vmin.f32 %v8769_v54, 20.0  ;;  %v8778_v45 = vpop.eup %7219  ;;  %v1434_v22 = vsel %vm1290_vm2, %v8631_v19, %v1386_v61  ;;  %v1371_v36 = vmul.f32 %v8713_v38, %v1227_v15  ;;  %v786_v37 = vmin.f32 %v8775_v30, 20.0 }
  0xd6   : > { %v902_v1 = vmul.f32 1.442695, %v816_v27  ;;  %13451 = vst [vmem:[#allocation15_spill] sm:$0xff] %v8781_v8  ;;  %1524 = vmatpush.msra.mxu0 %v1434_v22  ;;  %v1435_v24 = vsel %vm1291_vm3, %v8635_v23, %v1387_v52  ;;  %v1355_v11 = vmul.f32 %v8675_v12, %v1211_v6  ;;  %v1148_v52 = vmul.f32 %v8771_v48, %v8719_v57 }
  0xd7   : > { %v904_v63 = vmul.f32 1.442695, %v817_v5  ;;  %1559 = vmatpush.msra.mxu1 %v1435_v24  ;;  %v7222_v19 = vpop.eup %7221  ;;  %v1419_v23 = vsel %vm1275_vm5, %v8616_v2, %v1371_v36  ;;  %v1149_v12 = vmul.f32 %v8778_v45, %v8724_v39  ;;  %v787_v6 = vmin.f32 %v8781_v8, 20.0 }
  0xd8   : > { %7225 = vpow2.f32 %v902_v1  ;;  %1525 = vmatpush.msra.mxu0 %v1418_v47  ;;  %v7224_v38 = vpop.eup %7223  ;;  %v958_v1 = vadd.f32 2.0, %v7222_v19  ;;  %v1402_v31 = vsel %vm1258_vm6, %v8603_v53, %v8743_v46  ;;  %v1403_v32 = vsel %vm1259_vm7, %v8606_v55, %v1355_v11 }
  0xd9   : > { %7227 = vpow2.f32 %v904_v63  ;;  %v639_v18 = vpop.f32.mrf.mxu2  ;;  %1560 = vmatpush.msra.mxu1 %v1419_v23  ;;  %v959_v14 = vadd.f32 2.0, %v7224_v38  ;;  %v842_v59 = vmul.f32 1.442695, %v786_v37  ;;  %v1196_v61 = vsub.f32 2.0, %v1148_v52 }
  0xda   : > { %v8809_v7 = vadd.f32 %v639_v18, %v8600_v51  ;;  %v665_v41 = vpop.f32.mrf.mxu3  ;;  %v590_v2 = vpop.f32.mrf.mxu0  ;;  %1526 = vmatpush.msra.mxu0 %v1402_v31  ;;  %7229 = vpow2.f32 %v870_v35  ;;  %v8824_v56 = vmul.f32 %v7222_v19, %v958_v1  ;;  %v1197_v55 = vsub.f32 2.0, %v1149_v12 }
  0xdb   : > { %v8816_v57 = vadd.f32 %v665_v41, %v8600_v51  ;;  %v8819_v39 = vadd.f32 %v590_v2, %v8610_v60  ;;  %v616_v27 = vpop.f32.mrf.mxu1  ;;  %1561 = vmatpush.msra.mxu1 %v1403_v32  ;;  %6898 = vmatmul.msk.f32.vlgmr.msra.gmra.mxu0 %vm1492_vm8, %v8801_v0  ;;  %v8829_v53 = vmul.f32 %v7224_v38, %v959_v14  ;;  %7231 = vpow2.f32 %v872_v43  ;;  %v8857_v38 = vld [vmem:[%s13209_s0 + $0x20] sm:$0xff] }
  0xdc   : > { %13452 = vst [vmem:[#allocation16_spill] sm:$0xff] %v8809_v7  ;;  %v788_v46 = vmin.f32 %v8809_v7, 20.0  ;;  %6904 = vmatmul.msk.f32.vlgmr.msra.gmra.mxu1 %vm1492_vm8, %v8801_v0  ;;  %v1340_v5 = vmul.f32 %v8706_v4, %v8647_v40  ;;  %v844_v15 = vmul.f32 1.442695, %v787_v6  ;;  %v8839_v24 = vadd.f32 2.0, %v8824_v56 }
  0xdd   : > { %13453 = vst [vmem:[#allocation17_spill] sm:$0xff] %v8816_v57  ;;  %v789_v22 = vmin.f32 %v8816_v57, 20.0  ;;  %v802_v36 = vmin.f32 %v8819_v39, 20.0  ;;  %v8843_v37 = vadd.f32 %v616_v27, %v8610_v60  ;;  %v1341_v11 = vmul.f32 %v8710_v9, %v8650_v44 }
  0xde   : > { %13454 = vst [vmem:[#allocation18_spill] sm:$0xff] %v8819_v39  ;;  %v7226_v35 = vpop.eup %7225  ;;  %v8848_v19 = vadd.f32 2.0, %v8829_v53  ;;  %7233 = vpow2.f32 %v842_v59  ;;  %v846_v18 = vmul.f32 1.442695, %v788_v46  ;;  %v1244_v23 = vmul.f32 %v8771_v48, %v1196_v61 }
  0xdf   : > { %v7228_v63 = vpop.eup %7227  ;;  %v960_v47 = vadd.f32 2.0, %v7226_v35  ;;  %13455 = vst [vmem:[#allocation19_spill] sm:$0xff] %v8843_v37  ;;  %v1245_v52 = vmul.f32 %v8778_v45, %v1197_v55  ;;  %7235 = vpow2.f32 %v844_v15  ;;  %v848_v9 = vmul.f32 1.442695, %v789_v22 }
  0xe0   : > { %v961_v4 = vadd.f32 2.0, %v7228_v63  ;;  %v8859_v1 = vpop.eup %7229  ;;  %v940_v6 = vadd.f32 2.0, %v8692_v29  ;;  %v941_v41 = vadd.f32 2.0, %v8704_v58  ;;  %7237 = vrcp.f32 %v8839_v24 }
  0xe1   : > { %v8850_v43 = vmul.f32 %v7226_v35, %v960_v47  ;;  %v642_v12 = vpop.f32.mrf.mxu2  ;;  %v874_v48 = vmul.f32 1.442695, %v802_v36  ;;  %v803_v45 = vmin.f32 %v8843_v37, 20.0  ;;  %v1388_v31 = vmul.f32 %v1340_v5, %v1244_v23  ;;  %v8865_v14 = vpop.eup %7231  ;;  %v1460_v36 = vld [vmem:[%s13210_s1 + $0x38] sm:$0xff]  ;;  %v8906_v23 = vld [vmem:[%s13209_s0 + $0x28] sm:$0xff] }
  0xe2   : > { %v668_v2 = vpop.f32.mrf.mxu3  ;;  %7239 = vrcp.f32 %v8848_v19  ;;  %v8871_v59 = vmul.f32 %v7228_v63, %v961_v4  ;;  %v1389_v27 = vmul.f32 %v1341_v11, %v1245_v52  ;;  %v988_v61 = vmul.f32 %v8692_v29, %v940_v6  ;;  %v593_v35 = vpop.f32.mrf.mxu0  ;;  %1484 = vperm.xlu2 %7168, %v1460_v36  }
  0xe3   : > { %v8869_v32 = vadd.f32 2.0, %v8850_v43  ;;  %6899 = vmatmul.msk.f32.gmra.mxu0 %vm1492_vm8, %v8857_v38  ;;  %7241 = vpow2.f32 %v846_v18  ;;  %v1436_v46 = vsel %vm1292_vm9, %v8647_v40, %v1388_v31  ;;  %v8880_v55 = vmul.f32 %v8704_v58, %v941_v41  ;;  %v619_v47 = vpop.f32.mrf.mxu1 }
  0xe4   : > { %6905 = vmatmul.msk.f32.gmra.mxu1 %vm1492_vm8, %v8857_v38  ;;  %v8884_v5 = vpop.eup %7233  ;;  %7243 = vpow2.f32 %v848_v9  ;;  %1594 = vmatpush.msra.mxu2 %v1436_v46  ;;  %v1437_v15 = vsel %vm1293_vm10, %v8650_v44, %v1389_v27  ;;  %v1036_v40 = vadd.f32 2.0, %v988_v61  ;;  %v8894_v58 = vadd.f32 2.0, %v8871_v59 }
  0xe5   : > { %13456 = vst [vmem:[#allocation20_spill] sm:$0xff] %v8884_v5  ;;  %7245 = vpow2.f32 %v874_v48  ;;  %1629 = vmatpush.msra.mxu3 %v1437_v15  ;;  %v1037_v29 = vadd.f32 2.0, %v8880_v55  ;;  %v8890_v22 = vpop.eup %7235  ;;  %v924_v63 = vadd.f32 2.0, %v8667_v62  ;;  %v876_v11 = vmul.f32 1.442695, %v803_v45 }
  0xe6   : > { %13457 = vst [vmem:[#allocation21_spill] sm:$0xff] %v8890_v22  ;;  %7247 = vrcp.f32 %v8869_v32  ;;  %v8900_v44 = vpop.eup %7237  ;;  %v925_v4 = vadd.f32 2.0, %v8677_v13  ;;  %v8912_v9 = vmul.f32 %v8824_v56, %v8730_v28  ;;  %v8915_v6 = vadd.f32 %v642_v12, %v8610_v60 }
  0xe7   : > { %7249 = vrcp.f32 %v1036_v40  ;;  %v972_v41 = vmul.f32 %v8667_v62, %v924_v63  ;;  %v8922_v27 = vadd.f32 %v593_v35, %v8598_v50  ;;  %v8925_v46 = vadd.f32 %v619_v47, %v8598_v50 }
  0xe8   : > { %v8908_v52 = vpop.eup %7239  ;;  %7251 = vrcp.f32 %v1037_v29  ;;  %13458 = vst [vmem:[#allocation22_spill] sm:$0xff] %v8915_v6  ;;  %v973_v31 = vmul.f32 %v8677_v13, %v925_v4  ;;  %v8934_v12 = vmul.f32 %v8829_v53, %v8733_v42  ;;  %v8945_v63 = vadd.f32 %v668_v2, %v8610_v60 }
  0xe9   : > { %v645_v18 = vpop.f32.mrf.mxu2  ;;  %v8918_v45 = vpop.eup %7241  ;;  %7253 = vrcp.f32 %v8894_v58  ;;  %v1020_v62 = vadd.f32 2.0, %v972_v41  ;;  %v818_v36 = vmin.f32 %v8922_v27, 20.0  ;;  %v819_v4 = vmin.f32 %v8925_v46, 20.0 }
  0xea   : > { %v671_v48 = vpop.f32.mrf.mxu3  ;;  %13459 = vst [vmem:[#allocation23_spill] sm:$0xff] %v8918_v45  ;;  %v8928_v56 = vadd.f32 %v645_v18, %v8598_v50  ;;  %v8930_v15 = vpop.eup %7243  ;;  %7255 = vpow2.f32 %v876_v11  ;;  %v1021_v47 = vadd.f32 2.0, %v973_v31  ;;  %v1324_v2 = vmul.f32 %v988_v61, %v8628_v16 }
  0xeb   : > { %13461 = vst [vmem:[#allocation25_spill] sm:$0xff] %v8930_v15  ;;  %v8938_v13 = vadd.f32 %v671_v48, %v8598_v50  ;;  %6900 = vmatmul.msk.f32.gmra.mxu0 %vm1492_vm8, %v8906_v23  ;;  %v8942_v35 = vpop.eup %7245  ;;  %7257 = vrcp.f32 %v1020_v62  ;;  %v804_v11 = vmin.f32 %v8915_v6, 20.0  ;;  %v906_v7 = vmul.f32 1.442695, %v818_v36  ;;  %v691_v8 = vpop.f32.mrf.mxu0 }
  0xec   : > { %13460 = vst [vmem:[#allocation24_spill] sm:$0xff] %v8928_v56  ;;  %6906 = vmatmul.msk.f32.gmra.mxu1 %vm1492_vm8, %v8906_v23  ;;  %v8950_v53 = vpop.eup %7247  ;;  %v820_v18 = vmin.f32 %v8928_v56, 20.0  ;;  %7259 = vrcp.f32 %v1021_v47  ;;  %v908_v45 = vmul.f32 1.442695, %v819_v4  ;;  %v1325_v39 = vmul.f32 %v8880_v55, %v8638_v25 }
  0xed   : > { %13462 = vst [vmem:[#allocation26_spill] sm:$0xff] %v8938_v13  ;;  %v821_v48 = vmin.f32 %v8938_v13, 20.0  ;;  %v7250_v57 = vpop.eup %7249  ;;  %v805_v13 = vmin.f32 %v8945_v63, 20.0  ;;  %7261 = vpow2.f32 %v906_v7  ;;  %v8965_v36 = vadd.f32 %v691_v8, %v8600_v51 }
  0xee   : > { %13463 = vst [vmem:[#allocation27_spill] sm:$0xff] %v8942_v35  ;;  %v7252_v15 = vpop.eup %7251  ;;  %v1132_v30 = vmul.f32 %v7250_v57, %v1036_v40  ;;  %v910_v37 = vmul.f32 1.442695, %v820_v18  ;;  %7263 = vpow2.f32 %v908_v45  ;;  %v717_v40 = vpop.f32.mrf.mxu1  ;;  %v1150_v4 = vmul.f32 %v8900_v44, %v8839_v24 }
  0xef   : > { %13464 = vst [vmem:[#allocation28_spill] sm:$0xff] %v8945_v63  ;;  %v912_v22 = vmul.f32 1.442695, %v821_v48  ;;  %v1133_v5 = vmul.f32 %v7252_v15, %v1037_v29  ;;  %v8962_v61 = vpop.eup %7253  ;;  %v8971_v48 = vmul.f32 1.442695, %v804_v11  ;;  %v1308_v55 = vmul.f32 %v972_v41, %v8619_v3 }
  0xf0   : > { %v1180_v6 = vsub.f32 2.0, %v1132_v30  ;;  %13465 = vst [vmem:[#allocation29_spill] sm:$0xff] %v8965_v36  ;;  %v8969_v18 = vpop.eup %7255  ;;  %7265 = vpow2.f32 %v910_v37  ;;  %v1198_v30 = vsub.f32 2.0, %v1150_v4  ;;  %v1151_v8 = vmul.f32 %v8908_v52, %v8848_v19 }
  0xf1   : > { %13466 = vst [vmem:[#allocation30_spill] sm:$0xff] %v8969_v18  ;;  %v1181_v29 = vsub.f32 2.0, %v1133_v5  ;;  %v7258_v7 = vpop.eup %7257  ;;  %7267 = vpow2.f32 %v912_v22  ;;  %v1309_v18 = vmul.f32 %v973_v31, %v8624_v10  ;;  %v8979_v5 = vadd.f32 %v717_v40, %v8600_v51 }
  0xf2   : > { %v1228_v63 = vmul.f32 %v7250_v57, %v1180_v6  ;;  %v7260_v45 = vpop.eup %7259  ;;  %v1116_v24 = vmul.f32 %v7258_v7, %v1020_v62  ;;  %v790_v37 = vmin.f32 %v8965_v36, 20.0  ;;  %v1246_v57 = vmul.f32 %v8900_v44, %v1198_v30  ;;  %v13472_v36 = vld [vmem:[#allocation6_spill] sm:$0xff] }
  0xf3   : > { %v1229_v56 = vmul.f32 %v7252_v15, %v1181_v29  ;;  %13467 = vst [vmem:[#allocation31_spill] sm:$0xff] %v8979_v5  ;;  %v1117_v41 = vmul.f32 %v7260_v45, %v1021_v47  ;;  %v7262_v6 = vpop.eup %7261  ;;  %vm1294_vm14 = vcmp.gt.f32.partialorder %v8730_v28, 20.0  ;;  %v1199_v19 = vsub.f32 2.0, %v1151_v8  ;;  %v743_v8 = vpop.f32.mrf.mxu2 }
  0xf4   : > { %v1372_v11 = vmul.f32 %v1324_v2, %v1228_v63  ;;  %v1164_v4 = vsub.f32 2.0, %v1116_v24  ;;  %v7264_v35 = vpop.eup %7263  ;;  %v962_v62 = vadd.f32 2.0, %v7262_v6  ;;  %v1390_v63 = vmul.f32 %v8912_v9, %v1246_v57 }
  0xf5   : > { %v1373_v22 = vmul.f32 %v1325_v39, %v1229_v56  ;;  %v1165_v15 = vsub.f32 2.0, %v1117_v41  ;;  %v963_v56 = vadd.f32 2.0, %v7264_v35  ;;  %v1247_v2 = vmul.f32 %v8908_v52, %v1199_v19 }
  0xf6   : > { %v1420_v31 = vsel %vm1276_vm11, %v8628_v16, %v1372_v11  ;;  %v7266_v47 = vpop.eup %7265  ;;  %v1212_v39 = vmul.f32 %v7258_v7, %v1164_v4  ;;  %v791_v16 = vmin.f32 %v8979_v5, 20.0  ;;  %v1438_v9 = vsel %vm1294_vm14, %v8730_v28, %v1390_v63  ;;  %v1459_v28 = vld [vmem:[%s13210_s1 + $0x30] sm:$0xff] }
  0xf7   : > { %1595 = vmatpush.msra.mxu2 %v1420_v31  ;;  %v1421_v44 = vsel %vm1277_vm12, %v8638_v25, %v1373_v22  ;;  %v7268_v40 = vpop.eup %7267  ;;  %v1213_v29 = vmul.f32 %v7260_v45, %v1165_v15  ;;  %v964_v30 = vadd.f32 2.0, %v7266_v47  ;;  %v1010_v11 = vmul.f32 %v7262_v6, %v962_v62  ;;  %1664 = vmatpush.msrb.mxu0 %v1438_v9  ;;  %v9003_v45 = vld [vmem:[%s13209_s0 + $0x30] sm:$0xff] }
  0xf8   : > { %1630 = vmatpush.msra.mxu3 %v1421_v44  ;;  %v1356_v24 = vmul.f32 %v1308_v55, %v1212_v39  ;;  %v965_v41 = vadd.f32 2.0, %v7268_v40  ;;  %v1391_v25 = vmul.f32 %v8934_v12, %v1247_v2  ;;  %v880_v7 = vmul.f32 1.442695, %v805_v13  ;;  %6901 = vmatmul.msk.f32.gmra.mxu0 %vm1492_vm8, %v9003_v45 }
  0xf9   : > { %v1357_v52 = vmul.f32 %v1309_v18, %v1213_v29  ;;  %v8998_v57 = vmul.f32 %v7264_v35, %v963_v56  ;;  %v9011_v12 = vmul.f32 %v7266_v47, %v964_v30  ;;  %v850_v13 = vmul.f32 1.442695, %v790_v37  ;;  %v769_v35 = vpop.f32.mrf.mxu3  ;;  %6907 = vmatmul.msk.f32.gmra.mxu1 %vm1492_vm8, %v9003_v45  ;;  %1479 = vperm.xlu2 %7168, %v1459_v28  }
  0xfa   : > { %v1404_v55 = vsel %vm1260_vm13, %v8619_v3, %v1356_v24  ;;  %v9014_v18 = vadd.f32 %v743_v8, %v8600_v51  ;;  %v9021_v22 = vmul.f32 %v7268_v40, %v965_v41  ;;  %v852_v4 = vmul.f32 1.442695, %v791_v16  ;;  %v720_v16 = vpop.f32.mrf.mxu1 }
  0xfb   : > { %1596 = vmatpush.msra.mxu2 %v1404_v55  ;;  %v1405_v6 = vsel %vm1261_vm15, %v8624_v10, %v1357_v52  ;;  %vm1295_vm0 = vcmp.gt.f32.partialorder %v8733_v42, 20.0  ;;  %7269 = vpow2.f32 %v8971_v48  ;;  %v9027_v3 = vadd.f32 2.0, %v1010_v11 }
  0xfc   : > { %13468 = vst [vmem:[#allocation32_spill] sm:$0xff] %v9014_v18  ;;  %1631 = vmatpush.msra.mxu3 %v1405_v6  ;;  %6910 = vmatmul.msk.f32.vlgmr.msra.gmra.mxu2 %vm1492_vm8, %v8801_v0  ;;  %v1439_v37 = vsel %vm1295_vm0, %v8733_v42, %v1391_v25  ;;  %7271 = vpow2.f32 %v880_v7  ;;  %v9033_v10 = vadd.f32 2.0, %v8998_v57  ;;  %v9036_v19 = vadd.f32 %v769_v35, %v8600_v51  ;;  %v694_v51 = vpop.f32.mrf.mxu0 }
  0xfd   : > { %6916 = vmatmul.msk.f32.vlgmr.msra.gmra.mxu3 %vm1492_vm8, %v8801_v0  ;;  %1699 = vmatpush.msrb.mxu1 %v1439_v37  ;;  %v942_v48 = vadd.f32 2.0, %v8759_v34  ;;  %v9040_v31 = vadd.f32 2.0, %v9011_v12  ;;  %7273 = vpow2.f32 %v850_v13  ;;  %v792_v15 = vmin.f32 %v9014_v18, 20.0 }
  0xfe   : > { %13469 = vst [vmem:[#allocation33_spill] sm:$0xff] %v9036_v19  ;;  %v943_v42 = vadd.f32 2.0, %v8766_v17  ;;  %v9045_v62 = vadd.f32 2.0, %v9021_v22  ;;  %7275 = vpow2.f32 %v852_v4  ;;  %v793_v63 = vmin.f32 %v9036_v19, 20.0 }
  0xff   : > { %v990_v47 = vmul.f32 %v8759_v34, %v942_v48  ;;  %7277 = vrcp.f32 %v9027_v3  ;;  %v926_v39 = vadd.f32 2.0, %v8716_v20  ;;  %v1344_v56 = vmul.f32 %v8850_v43, %v8763_v21 }
 0x100   : > { %v991_v44 = vmul.f32 %v8766_v17, %v943_v42  ;;  %7279 = vrcp.f32 %v9033_v10  ;;  %v854_v29 = vmul.f32 1.442695, %v792_v15  ;;  %v9059_v34 = vadd.f32 %v694_v51, %v8610_v60 }
 0x101   : > { %v1038_v2 = vadd.f32 2.0, %v990_v47  ;;  %v9055_v40 = vpop.eup %7269  ;;  %7281 = vrcp.f32 %v9040_v31  ;;  %v856_v17 = vmul.f32 1.442695, %v793_v63  ;;  %v9065_v43 = vmul.f32 %v8716_v20, %v926_v39  ;;  %v772_v19 = vpop.f32.mrf.mxu3 }
 0x102   : > { %v1039_v30 = vadd.f32 2.0, %v991_v44  ;;  %v9061_v9 = vpop.eup %7271  ;;  %7283 = vrcp.f32 %v9045_v62  ;;  %v927_v8 = vadd.f32 2.0, %v8745_v49  ;;  %v1345_v41 = vmul.f32 %v8871_v59, %v8769_v54 }
 0x103   : > { %v9068_v24 = vpop.eup %7273  ;;  %v9073_v25 = vmul.f32 %v1010_v11, %v8922_v27  ;;  %7285 = vrcp.f32 %v1038_v2  ;;  %v1152_v7 = vmul.f32 %v8950_v53, %v8869_v32  ;;  %v9084_v20 = vadd.f32 %v720_v16, %v8610_v60 }
 0x104   : > { %6911 = vmatmul.msk.f32.gmra.mxu2 %vm1492_vm8, %v8857_v38  ;;  %v9079_v52 = vpop.eup %7275  ;;  %7287 = vrcp.f32 %v1039_v30  ;;  %v1022_v59 = vadd.f32 2.0, %v9065_v43  ;;  %v9088_v11 = vmul.f32 %v8745_v49, %v927_v8  ;;  %v806_v55 = vmin.f32 %v9059_v34, 20.0  ;;  %v9118_v8 = vld [vmem:[%s13209_s0 + $0x38] sm:$0xff] }
 0x105   : > { %6917 = vmatmul.msk.f32.gmra.mxu3 %vm1492_vm8, %v8857_v38  ;;  %v9090_v28 = vpop.eup %7277  ;;  %7289 = vpow2.f32 %v854_v29  ;;  %v1200_v32 = vsub.f32 2.0, %v1152_v7  ;;  %v1153_v13 = vmul.f32 %v8962_v61, %v8894_v58  ;;  %v9099_v6 = vmul.f32 %v8998_v57, %v8925_v46  ;;  %6902 = vmatmul.msk.f32.gmra.mxu0 %vm1492_vm8, %v9118_v8 }
 0x106   : > { %v9095_v35 = vpop.eup %7279  ;;  %7291 = vpow2.f32 %v856_v17  ;;  %v1326_v4 = vmul.f32 %v990_v47, %v8690_v26  ;;  %v1023_v49 = vadd.f32 2.0, %v9088_v11  ;;  %v944_v42 = vadd.f32 2.0, %v8859_v1  ;;  %v746_v17 = vpop.f32.mrf.mxu2  ;;  %6908 = vmatmul.msk.f32.gmra.mxu1 %vm1492_vm8, %v9118_v8 }
 0x107   : > { %v9103_v37 = vpop.eup %7281  ;;  %7293 = vrcp.f32 %v1022_v59  ;;  %v1248_v48 = vmul.f32 %v8950_v53, %v1200_v32  ;;  %v1201_v15 = vsub.f32 2.0, %v1153_v13  ;;  %v1327_v63 = vmul.f32 %v991_v44, %v8696_v33  ;;  %v1456_v44 = vld [vmem:[%s13210_s1 + $0x18] sm:$0xff] }
 0x108   : > { %v9107_v58 = vpop.eup %7283  ;;  %v807_v57 = vmin.f32 %v9084_v20, 20.0  ;;  %7295 = vrcp.f32 %v1023_v49  ;;  %v945_v51 = vadd.f32 2.0, %v8865_v14  ;;  %vm1278_vm1 = vcmp.gt.f32.partialorder %v8690_v26, 20.0  ;;  %1464 = vperm.xlu2 %7168, %v1456_v44  }
 0x109   : > { %v7286_v47 = vpop.eup %7285  ;;  %v882_v39 = vmul.f32 1.442695, %v806_v55  ;;  %v1392_v29 = vmul.f32 %v1344_v56, %v1248_v48  ;;  %v1249_v16 = vmul.f32 %v8962_v61, %v1201_v15  ;;  %v992_v53 = vmul.f32 %v8859_v1, %v944_v42  ;;  %v13470_v56 = vld [vmem:[#allocation12_spill] sm:$0xff] }
 0x10a   : > { %v7288_v7 = vpop.eup %7287  ;;  %v1134_v32 = vmul.f32 %v7286_v47, %v1038_v2  ;;  %vm1279_vm2 = vcmp.gt.f32.partialorder %v8696_v33, 20.0  ;;  %vm1296_vm3 = vcmp.gt.f32.partialorder %v8763_v21, 20.0  ;;  %v993_v61 = vmul.f32 %v8865_v14, %v945_v51 }
 0x10b   : > { %v928_v1 = vadd.f32 2.0, %v13470_v56  ;;  %v9131_v55 = vpop.eup %7289  ;;  %v1135_v13 = vmul.f32 %v7288_v7, %v1039_v30  ;;  %v1440_v2 = vsel %vm1296_vm3, %v8763_v21, %v1392_v29  ;;  %v1393_v48 = vmul.f32 %v1345_v41, %v1249_v16 }
 0x10c   : > { %6912 = vmatmul.msk.f32.gmra.mxu2 %vm1492_vm8, %v8906_v23  ;;  %v1040_v15 = vadd.f32 2.0, %v992_v53  ;;  %v9136_v14 = vpop.eup %7291  ;;  %v1182_v42 = vsub.f32 2.0, %v1134_v32  ;;  %v9140_v51 = vmul.f32 1.442695, %v807_v57  ;;  %vm1297_vm4 = vcmp.gt.f32.partialorder %v8769_v54, 20.0  ;;  %v13473_v57 = vld [vmem:[#allocation7_spill] sm:$0xff] }
 0x10d   : > { %13471 = vst [vmem:[#allocation12_spill] sm:$0xff] %v9136_v14  ;;  %6918 = vmatmul.msk.f32.gmra.mxu3 %vm1492_vm8, %v8906_v23  ;;  %1734 = vmatpush.msrb.mxu2 %v1440_v2  ;;  %v1041_v30 = vadd.f32 2.0, %v993_v61  ;;  %v7294_v18 = vpop.eup %7293  ;;  %v1183_v5 = vsub.f32 2.0, %v1135_v13  ;;  %vm1262_vm5 = vcmp.gt.f32.partialorder %v13472_v36, 20.0  ;;  %v1310_v21 = vmul.f32 %v9065_v43, %v13472_v36 }
 0x10e   : > { %v1441_v41 = vsel %vm1297_vm4, %v8769_v54, %v1393_v48  ;;  %7297 = vrcp.f32 %v1040_v15  ;;  %v7296_v29 = vpop.eup %7295  ;;  %v1230_v16 = vmul.f32 %v7286_v47, %v1182_v42  ;;  %v1118_v44 = vmul.f32 %v7294_v18, %v1022_v59  ;;  %v9157_v54 = vld [vmem:[%s13209_s0 + $0x40] sm:$0xff] }
 0x10f   : > { %vm1263_vm6 = vcmp.gt.f32.partialorder %v13473_v57, 20.0  ;;  %1769 = vmatpush.msrb.mxu3 %v1441_v41  ;;  %7299 = vrcp.f32 %v1041_v30  ;;  %v9149_v32 = vadd.f32 %v746_v17, %v8610_v60  ;;  %v1231_v2 = vmul.f32 %v7288_v7, %v1183_v5  ;;  %6903 = vmatmul.msk.f32.gmra.mxu0 %vm1492_vm8, %v9157_v54 }
 0x110   : > { %7301 = vpow2.f32 %v882_v39  ;;  %v1119_v13 = vmul.f32 %v7296_v29, %v1023_v49  ;;  %v9152_v14 = vmul.f32 %v13470_v56, %v928_v1  ;;  %v1374_v43 = vmul.f32 %v1326_v4, %v1230_v16  ;;  %v13474_v39 = vld [vmem:[#allocation10_spill] sm:$0xff]  ;;  %v697_v56 = vpop.f32.mrf.mxu0  ;;  %v13475_v4 = vld [vmem:[#allocation11_spill] sm:$0xff]  ;;  %6909 = vmatmul.msk.f32.gmra.mxu1 %vm1492_vm8, %v9157_v54 }
 0x111   : > { %v1166_v59 = vsub.f32 2.0, %v1118_v44  ;;  %v1311_v47 = vmul.f32 %v9088_v11, %v13473_v57  ;;  %v9162_v48 = vadd.f32 %v772_v19, %v8610_v60  ;;  %v1375_v17 = vmul.f32 %v1327_v63, %v1231_v2  ;;  %v723_v11 = vpop.f32.mrf.mxu1 }
 0x112   : > { %v1167_v5 = vsub.f32 2.0, %v1119_v13  ;;  %v1328_v49 = vmul.f32 %v992_v53, %v13474_v39  ;;  %v1024_v7 = vadd.f32 2.0, %v9152_v14  ;;  %v1422_v1 = vsel %vm1278_vm1, %v8690_v26, %v1374_v43  ;;  %v13476_v26 = vld [vmem:[#allocation13_spill] sm:$0xff]  ;;  %v749_v53 = vpop.f32.mrf.mxu2 }
 0x113   : > { %v1214_v42 = vmul.f32 %v7294_v18, %v1166_v59  ;;  %v1329_v41 = vmul.f32 %v993_v61, %v13475_v4  ;;  %v808_v16 = vmin.f32 %v9149_v32, 20.0  ;;  %1665 = vmatpush.msrb.mxu0 %v1422_v1  ;;  %v1423_v19 = vsel %vm1279_vm2, %v8696_v33, %v1375_v17 }
 0x114   : > { %v7298_v60 = vpop.eup %7297  ;;  %v1215_v63 = vmul.f32 %v7296_v29, %v1167_v5  ;;  %vm1280_vm7 = vcmp.gt.f32.partialorder %v13474_v39, 20.0  ;;  %7303 = vrcp.f32 %v1024_v7  ;;  %v929_v18 = vadd.f32 2.0, %v13476_v26  ;;  %6913 = vmatmul.msk.f32.gmra.mxu2 %vm1492_vm8, %v9003_v45  ;;  %1700 = vmatpush.msrb.mxu1 %v1423_v19 }
 0x115   : > { %v7300_v61 = vpop.eup %7299  ;;  %v1358_v44 = vmul.f32 %v1310_v21, %v1214_v42  ;;  %v1136_v2 = vmul.f32 %v7298_v60, %v1040_v15  ;;  %vm1281_vm9 = vcmp.gt.f32.partialorder %v13475_v4, 20.0  ;;  %v809_v13 = vmin.f32 %v9162_v48, 20.0  ;;  %6919 = vmatmul.msk.f32.gmra.mxu3 %vm1492_vm8, %v9003_v45  ;;  %v775_v42 = vpop.f32.mrf.mxu3 }
 0x116   : > { %v9187_v33 = vadd.f32 %v697_v56, %v8598_v50  ;;  %v9189_v29 = vpop.eup %7301  ;;  %v1359_v43 = vmul.f32 %v1311_v47, %v1215_v63  ;;  %v1137_v59 = vmul.f32 %v7300_v61, %v1041_v30  ;;  %v9192_v17 = vmul.f32 %v13476_v26, %v929_v18 }
 0x117   : > { %v9195_v21 = vadd.f32 %v723_v11, %v8598_v50  ;;  %v1406_v15 = vsel %vm1262_vm5, %v13472_v36, %v1358_v44  ;;  %v1184_v5 = vsub.f32 2.0, %v1136_v2  ;;  %v9202_v56 = vadd.f32 %v749_v53, %v8598_v50 }
 0x118   : > { %v822_v1 = vmin.f32 %v9187_v33, 20.0  ;;  %1666 = vmatpush.msrb.mxu0 %v1406_v15  ;;  %v1407_v30 = vsel %vm1263_vm6, %v13473_v57, %v1359_v43  ;;  %v1185_v47 = vsub.f32 2.0, %v1137_v59  ;;  %v9207_v19 = vmul.f32 1.442695, %v808_v16 }
 0x119   : > { %v1025_v11 = vadd.f32 2.0, %v9192_v17  ;;  %1701 = vmatpush.msrb.mxu1 %v1407_v30  ;;  %v1232_v63 = vmul.f32 %v7298_v60, %v1184_v5  ;;  %v823_v26 = vmin.f32 %v9195_v21, 20.0  ;;  %v824_v18 = vmin.f32 %v9202_v56, 20.0  ;;  %6922 = vmatmul.msk.f32.vlgmr.msrb.gmra.mxu0 %vm1492_vm8, %v8801_v0  ;;  %v13477_v30 = vld [vmem:[#allocation8_spill] sm:$0xff] }
 0x11a   : > { %v914_v36 = vmul.f32 1.442695, %v822_v1  ;;  %v7304_v53 = vpop.eup %7303  ;;  %v1233_v44 = vmul.f32 %v7300_v61, %v1185_v47  ;;  %v9213_v2 = vadd.f32 %v775_v42, %v8598_v50  ;;  %v1154_v57 = vmul.f32 %v9090_v28, %v9027_v3  ;;  %6928 = vmatmul.msk.f32.vlgmr.msrb.gmra.mxu1 %vm1492_vm8, %v8801_v0  ;;  %v13478_v47 = vld [vmem:[#allocation27_spill] sm:$0xff] }
 0x11b   : > { %7305 = vrcp.f32 %v1025_v11  ;;  %v1376_v16 = vmul.f32 %v1328_v49, %v1232_v63  ;;  %v1120_v43 = vmul.f32 %v7304_v53, %v1024_v7  ;;  %v916_v59 = vmul.f32 1.442695, %v823_v26  ;;  %v13479_v26 = vld [vmem:[#allocation30_spill] sm:$0xff] }
 0x11c   : > { %7307 = vpow2.f32 %v914_v36  ;;  %v1377_v60 = vmul.f32 %v1329_v41, %v1233_v44  ;;  %v918_v15 = vmul.f32 1.442695, %v824_v18  ;;  %v825_v61 = vmin.f32 %v9213_v2, 20.0  ;;  %6914 = vmatmul.msk.f32.gmra.mxu2 %vm1492_vm8, %v9118_v8 }
 0x11d   : > { %v1202_v50 = vsub.f32 2.0, %v1154_v57  ;;  %v1424_v3 = vsel %vm1280_vm7, %v13474_v39, %v1376_v16  ;;  %v888_v49 = vmul.f32 1.442695, %v809_v13  ;;  %v1168_v7 = vsub.f32 2.0, %v1120_v43  ;;  %6920 = vmatmul.msk.f32.gmra.mxu3 %vm1492_vm8, %v9118_v8 }
 0x11e   : > { %7309 = vpow2.f32 %v916_v59  ;;  %1735 = vmatpush.msrb.mxu2 %v1424_v3  ;;  %v1425_v41 = vsel %vm1281_vm9, %v13475_v4, %v1377_v60  ;;  %v920_v5 = vmul.f32 1.442695, %v825_v61  ;;  %v1312_v39 = vmul.f32 %v9152_v14, %v13477_v30 }
 0x11f   : > { %7311 = vpow2.f32 %v918_v15  ;;  %v1250_v1 = vmul.f32 %v9090_v28, %v1202_v50  ;;  %1770 = vmatpush.msrb.mxu3 %v1425_v41  ;;  %v1216_v42 = vmul.f32 %v7304_v53, %v1168_v7  ;;  %v1155_v13 = vmul.f32 %v9095_v35, %v9033_v10  ;;  %v13480_v50 = vld [vmem:[#allocation9_spill] sm:$0xff] }
 0x120   : > { %v946_v63 = vadd.f32 2.0, %v13478_v47  ;;  %7313 = vpow2.f32 %v920_v5  ;;  %vm1298_vm10 = vcmp.gt.f32.partialorder %v8922_v27, 20.0  ;;  %v947_v18 = vadd.f32 2.0, %v13479_v26 }
 0x121   : > { %v7306_v36 = vpop.eup %7305  ;;  %v1394_v4 = vmul.f32 %v9073_v25, %v1250_v1  ;;  %v1360_v28 = vmul.f32 %v1312_v39, %v1216_v42  ;;  %v1203_v53 = vsub.f32 2.0, %v1155_v13  ;;  %vm1264_vm11 = vcmp.gt.f32.partialorder %v13477_v30, 20.0  ;;  %6923 = vmatmul.msk.f32.gmra.mxu0 %vm1492_vm8, %v8857_v38 }
 0x122   : > { %v7308_v44 = vpop.eup %7307  ;;  %v1121_v57 = vmul.f32 %v7306_v36, %v1025_v11  ;;  %v994_v16 = vmul.f32 %v13478_v47, %v946_v63  ;;  %v995_v43 = vmul.f32 %v13479_v26, %v947_v18  ;;  %6929 = vmatmul.msk.f32.gmra.mxu1 %vm1492_vm8, %v8857_v38  ;;  %v1313_v3 = vmul.f32 %v9192_v17, %v13480_v50  ;;  %v13481_v47 = vld [vmem:[#allocation24_spill] sm:$0xff]  ;;  %v13482_v63 = vld [vmem:[#allocation26_spill] sm:$0xff] }
 0x123   : > { %v966_v14 = vadd.f32 2.0, %v7308_v44  ;;  %v1442_v10 = vsel %vm1298_vm10, %v8922_v27, %v1394_v4  ;;  %v1408_v60 = vsel %vm1264_vm11, %v13477_v30, %v1360_v28  ;;  %v1251_v25 = vmul.f32 %v9095_v35, %v1203_v53 }
 0x124   : > { %v7310_v59 = vpop.eup %7309  ;;  %v1169_v15 = vsub.f32 2.0, %v1121_v57  ;;  %1804 = vmatpush.msra.mxu0 %v1442_v10  ;;  %v1042_v61 = vadd.f32 2.0, %v994_v16  ;;  %1736 = vmatpush.msrb.mxu2 %v1408_v60  ;;  %v1043_v41 = vadd.f32 2.0, %v995_v43  ;;  %vm1299_vm12 = vcmp.gt.f32.partialorder %v8925_v46, 20.0  ;;  %v13485_v57 = vld [vmem:[#allocation21_spill] sm:$0xff]  ;;  %v13486_v10 = vld [vmem:[#allocation19_spill] sm:$0xff] }
 0x125   : > { %v7312_v11 = vpop.eup %7311  ;;  %v1014_v7 = vmul.f32 %v7308_v44, %v966_v14  ;;  %v967_v27 = vadd.f32 2.0, %v7310_v59  ;;  %v1395_v42 = vmul.f32 %v9099_v6, %v1251_v25  ;;  %6915 = vmatmul.msk.f32.gmra.mxu2 %vm1492_vm8, %v9157_v54  ;;  %6921 = vmatmul.msk.f32.gmra.mxu3 %vm1492_vm8, %v9157_v54  ;;  %v1348_v6 = vmul.f32 %v9011_v12, %v13481_v47  ;;  %v13484_v12 = vld [vmem:[#allocation20_spill] sm:$0xff] }
 0x126   : > { %v1217_v5 = vmul.f32 %v7306_v36, %v1169_v15  ;;  %v968_v1 = vadd.f32 2.0, %v7312_v11  ;;  %7315 = vrcp.f32 %v1042_v61  ;;  %v7314_v35 = vpop.eup %7313  ;;  %v1349_v36 = vmul.f32 %v9021_v22, %v13482_v63 }
 0x127   : > { %v1015_v30 = vmul.f32 %v7310_v59, %v967_v27  ;;  %7317 = vrcp.f32 %v1043_v41  ;;  %v1443_v13 = vsel %vm1299_vm12, %v8925_v46, %v1395_v42  ;;  %vm1265_vm13 = vcmp.gt.f32.partialorder %v13480_v50, 20.0  ;;  %v13483_v46 = vld [vmem:[#allocation18_spill] sm:$0xff] }
 0x128   : > { %7319 = vpow2.f32 %v9140_v51  ;;  %v1361_v17 = vmul.f32 %v1313_v3, %v1217_v5  ;;  %v1016_v39 = vmul.f32 %v7312_v11, %v968_v1  ;;  %1839 = vmatpush.msra.mxu1 %v1443_v13  ;;  %v9268_v26 = vadd.f32 2.0, %v1014_v7 }
 0x129   : > { %7321 = vpow2.f32 %v9207_v19  ;;  %v969_v51 = vadd.f32 2.0, %v7314_v35  ;;  %v9270_v18 = vadd.f32 2.0, %v1015_v30  ;;  %v1330_v44 = vmul.f32 %v994_v16, %v13483_v46  ;;  %6924 = vmatmul.msk.f32.gmra.mxu0 %vm1492_vm8, %v8906_v23 }
 0x12a   : > { %7323 = vpow2.f32 %v888_v49  ;;  %v1409_v4 = vsel %vm1265_vm13, %v13480_v50, %v1361_v17  ;;  %v930_v28 = vadd.f32 2.0, %v13484_v12  ;;  %v931_v22 = vadd.f32 2.0, %v13485_v57  ;;  %6930 = vmatmul.msk.f32.gmra.mxu1 %vm1492_vm8, %v8906_v23 }
 0x12b   : > { %1771 = vmatpush.msrb.mxu3 %v1409_v4  ;;  %v9276_v19 = vmul.f32 %v1014_v7, %v9187_v33  ;;  %v9279_v49 = vmul.f32 %v1015_v30, %v9195_v21  ;;  %v9281_v14 = vadd.f32 2.0, %v1016_v39  ;;  %vm1282_vm14 = vcmp.gt.f32.partialorder %v13483_v46, 20.0 }
 0x12c   : > { %v7316_v53 = vpop.eup %7315  ;;  %v1331_v59 = vmul.f32 %v995_v43, %v13486_v10  ;;  %vm1283_vm15 = vcmp.gt.f32.partialorder %v13486_v10, 20.0  ;;  %v9289_v15 = vmul.f32 %v13484_v12, %v930_v28  ;;  %v9292_v25 = vmul.f32 %v13485_v57, %v931_v22 }
 0x12d   : > { %v7318_v16 = vpop.eup %7317  ;;  %v1138_v60 = vmul.f32 %v7316_v53, %v1042_v61  ;;  %v1156_v11 = vmul.f32 %v9103_v37, %v9040_v31  ;;  %7325 = vrcp.f32 %v9268_v26  ;;  %v1017_v50 = vmul.f32 %v7314_v35, %v969_v51  ;;  %6934 = vmatmul.msk.f32.vlgmr.msrb.gmra.mxu2 %vm1492_vm8, %v8801_v0  ;;  %6940 = vmatmul.msk.f32.vlgmr.msrb.gmra.mxu3 %vm1492_vm8, %v8801_v0 }
 0x12e   : > { %v9298_v43 = vpop.eup %7319  ;;  %v1139_v61 = vmul.f32 %v7318_v16, %v1043_v41  ;;  %v1157_v3 = vmul.f32 %v9107_v58, %v9045_v62  ;;  %7327 = vrcp.f32 %v9270_v18  ;;  %v1026_v27 = vadd.f32 2.0, %v9289_v15 }
 0x12f   : > { %v9307_v7 = vpop.eup %7321  ;;  %v1186_v31 = vsub.f32 2.0, %v1138_v60  ;;  %v1027_v5 = vadd.f32 2.0, %v9292_v25  ;;  %7329 = vrcp.f32 %v9281_v14  ;;  %v1204_v41 = vsub.f32 2.0, %v1156_v11 }
 0x130   : > { %v9312_v1 = vpop.eup %7323  ;;  %v1187_v62 = vsub.f32 2.0, %v1139_v61  ;;  %v1205_v42 = vsub.f32 2.0, %v1157_v3  ;;  %v9316_v35 = vmul.f32 %v1016_v39, %v9202_v56  ;;  %7331 = vrcp.f32 %v1026_v27  ;;  %v13488_v3 = vld [vmem:[#allocation14_spill] sm:$0xff] }
 0x131   : > { %v1234_v0 = vmul.f32 %v7316_v53, %v1186_v31  ;;  %v948_v30 = vadd.f32 2.0, %v9055_v40  ;;  %7333 = vrcp.f32 %v1027_v5  ;;  %v1252_v13 = vmul.f32 %v9103_v37, %v1204_v41  ;;  %6925 = vmatmul.msk.f32.gmra.mxu0 %vm1492_vm8, %v9003_v45 }
 0x132   : > { %v1235_v17 = vmul.f32 %v7318_v16, %v1187_v62  ;;  %v1253_v4 = vmul.f32 %v9107_v58, %v1205_v42  ;;  %v9321_v51 = vadd.f32 2.0, %v1017_v50  ;;  %v949_v57 = vadd.f32 2.0, %v9061_v9  ;;  %6931 = vmatmul.msk.f32.gmra.mxu1 %vm1492_vm8, %v9003_v45  ;;  %v13489_v62 = vld [vmem:[#allocation25_spill] sm:$0xff] }
 0x133   : > { %v1378_v12 = vmul.f32 %v1330_v44, %v1234_v0  ;;  %v996_v28 = vmul.f32 %v9055_v40, %v948_v30  ;;  %v7326_v22 = vpop.eup %7325  ;;  %vm1300_vm0 = vcmp.gt.f32.partialorder %v13481_v47, 20.0  ;;  %v1396_v53 = vmul.f32 %v1348_v6, %v1252_v13 }
 0x134   : > { %v1379_v39 = vmul.f32 %v1331_v59, %v1235_v17  ;;  %v1397_v60 = vmul.f32 %v1349_v36, %v1253_v4  ;;  %v7328_v16 = vpop.eup %7327  ;;  %vm1301_vm1 = vcmp.gt.f32.partialorder %v13482_v63, 20.0  ;;  %v9333_v40 = vmul.f32 %v9061_v9, %v949_v57  ;;  %v13487_v59 = vld [vmem:[#allocation23_spill] sm:$0xff] }
 0x135   : > { %v1426_v37 = vsel %vm1282_vm14, %v13483_v46, %v1378_v12  ;;  %v1044_v58 = vadd.f32 2.0, %v996_v28  ;;  %v9337_v44 = vpop.eup %7329  ;;  %v1444_v36 = vsel %vm1300_vm0, %v13481_v47, %v1396_v53  ;;  %v932_v11 = vadd.f32 2.0, %v13487_v59  ;;  %6935 = vmatmul.msk.f32.gmra.mxu2 %vm1492_vm8, %v8857_v38  ;;  %6941 = vmatmul.msk.f32.gmra.mxu3 %vm1492_vm8, %v8857_v38  ;;  %v13491_v38 = vld [vmem:[#allocation22_spill] sm:$0xff] }
 0x136   : > { %1805 = vmatpush.msra.mxu0 %v1426_v37  ;;  %v1427_v6 = vsel %vm1283_vm15, %v13486_v10, %v1379_v39  ;;  %v1445_v46 = vsel %vm1301_vm1, %v13482_v63, %v1397_v60  ;;  %v7332_v9 = vpop.eup %7331  ;;  %v9348_v61 = vmul.f32 %v1017_v50, %v9213_v2  ;;  %vm1266_vm2 = vcmp.gt.f32.partialorder %v13488_v3, 20.0  ;;  %1874 = vmatpush.msra.mxu2 %v1444_v36  ;;  %v13490_v50 = vld [vmem:[#allocation15_spill] sm:$0xff] }
 0x137   : > { %1840 = vmatpush.msra.mxu1 %v1427_v6  ;;  %7335 = vrcp.f32 %v1044_v58  ;;  %v1045_v10 = vadd.f32 2.0, %v9333_v40  ;;  %v7334_v31 = vpop.eup %7333  ;;  %v1122_v47 = vmul.f32 %v7332_v9, %v1026_v27  ;;  %1909 = vmatpush.msra.mxu3 %v1445_v46  ;;  %v9354_v63 = vmul.f32 %v13487_v59, %v932_v11 }
 0x138   : > { %7337 = vrcp.f32 %v9321_v51  ;;  %v933_v41 = vadd.f32 2.0, %v13489_v62  ;;  %v1123_v42 = vmul.f32 %v7334_v31, %v1027_v5  ;;  %vm1267_vm3 = vcmp.gt.f32.partialorder %v13490_v50, 20.0 }
 0x139   : > { %7339 = vrcp.f32 %v1045_v10  ;;  %v1158_v0 = vmul.f32 %v7326_v22, %v9268_v26  ;;  %v1170_v30 = vsub.f32 2.0, %v1122_v47  ;;  %v1314_v17 = vmul.f32 %v9289_v15, %v13488_v3  ;;  %6926 = vmatmul.msk.f32.gmra.mxu0 %vm1492_vm8, %v9118_v8 }
 0x13a   : > { %v1028_v27 = vadd.f32 2.0, %v9354_v63  ;;  %v9365_v13 = vmul.f32 %v13489_v62, %v933_v41  ;;  %v1171_v4 = vsub.f32 2.0, %v1123_v42  ;;  %v1315_v5 = vmul.f32 %v9292_v25, %v13490_v50  ;;  %6932 = vmatmul.msk.f32.gmra.mxu1 %vm1492_vm8, %v9118_v8 }
 0x13b   : > { %v1206_v12 = vsub.f32 2.0, %v1158_v0  ;;  %v1159_v57 = vmul.f32 %v7328_v16, %v9270_v18  ;;  %v1218_v39 = vmul.f32 %v7332_v9, %v1170_v30  ;;  %v1332_v53 = vmul.f32 %v996_v28, %v13491_v38 }
 0x13c   : > { %7341 = vrcp.f32 %v1028_v27  ;;  %v1029_v26 = vadd.f32 2.0, %v9365_v13  ;;  %v1219_v60 = vmul.f32 %v7334_v31, %v1171_v4  ;;  %v950_v36 = vadd.f32 2.0, %v9189_v29 }
 0x13d   : > { %v7336_v15 = vpop.eup %7335  ;;  %v1254_v37 = vmul.f32 %v7326_v22, %v1206_v12  ;;  %v1207_v6 = vsub.f32 2.0, %v1159_v57  ;;  %v1362_v18 = vmul.f32 %v1314_v17, %v1218_v39  ;;  %vm1302_vm4 = vcmp.gt.f32.partialorder %v9187_v33, 20.0  ;;  %6936 = vmatmul.msk.f32.gmra.mxu2 %vm1492_vm8, %v8906_v23  ;;  %6942 = vmatmul.msk.f32.gmra.mxu3 %vm1492_vm8, %v8906_v23  ;;  %v13492_v23 = vld [vmem:[#allocation28_spill] sm:$0xff] }
 0x13e   : > { %v9377_v25 = vpop.eup %7337  ;;  %v1140_v46 = vmul.f32 %v7336_v15, %v1044_v58  ;;  %7343 = vrcp.f32 %v1029_v26  ;;  %v1363_v59 = vmul.f32 %v1315_v5, %v1219_v60  ;;  %v9384_v9 = vmul.f32 %v9189_v29, %v950_v36 }
 0x13f   : > { %v7340_v28 = vpop.eup %7339  ;;  %v1398_v22 = vmul.f32 %v9276_v19, %v1254_v37  ;;  %v1255_v11 = vmul.f32 %v7328_v16, %v1207_v6  ;;  %v1410_v31 = vsel %vm1266_vm2, %v13488_v3, %v1362_v18  ;;  %v951_v62 = vadd.f32 2.0, %v9298_v43 }
 0x140   : > { %v1188_v47 = vsub.f32 2.0, %v1140_v46  ;;  %v1141_v58 = vmul.f32 %v7340_v28, %v1045_v10  ;;  %1806 = vmatpush.msra.mxu0 %v1410_v31  ;;  %v1411_v41 = vsel %vm1267_vm3, %v13490_v50, %v1363_v59  ;;  %v1046_v29 = vadd.f32 2.0, %v9384_v9  ;;  %v13494_v46 = vld [vmem:[#allocation17_spill] sm:$0xff] }
 0x141   : > { %v1446_v42 = vsel %vm1302_vm4, %v9187_v33, %v1398_v22  ;;  %v1399_v19 = vmul.f32 %v9279_v49, %v1255_v11  ;;  %1841 = vmatpush.msra.mxu1 %v1411_v41  ;;  %vm1303_vm5 = vcmp.gt.f32.partialorder %v9195_v21, 20.0  ;;  %v9400_v0 = vmul.f32 %v9298_v43, %v951_v62  ;;  %6927 = vmatmul.msk.f32.gmra.mxu0 %vm1492_vm8, %v9157_v54 }
 0x142   : > { %v7342_v16 = vpop.eup %7341  ;;  %v1236_v3 = vmul.f32 %v7336_v15, %v1188_v47  ;;  %v1189_v10 = vsub.f32 2.0, %v1141_v58  ;;  %1944 = vmatpush.msrb.mxu0 %v1446_v42  ;;  %vm1284_vm6 = vcmp.gt.f32.partialorder %v13491_v38, 20.0  ;;  %7345 = vrcp.f32 %v1046_v29  ;;  %6933 = vmatmul.msk.f32.gmra.mxu1 %vm1492_vm8, %v9157_v54 }
 0x143   : > { %v1124_v33 = vmul.f32 %v7342_v16, %v1028_v27  ;;  %v1447_v49 = vsel %vm1303_vm5, %v9195_v21, %v1399_v19  ;;  %v1333_v4 = vmul.f32 %v9333_v40, %v13492_v23  ;;  %v1047_v5 = vadd.f32 2.0, %v9400_v0  ;;  %v9450_v19 = vld [vmem:[%s13209_s0 + $0x18] sm:$0xff] }
 0x144   : > { %v7344_v50 = vpop.eup %7343  ;;  %v1380_v30 = vmul.f32 %v1332_v53, %v1236_v3  ;;  %v1237_v17 = vmul.f32 %v7340_v28, %v1189_v10  ;;  %1979 = vmatpush.msrb.mxu1 %v1447_v49  ;;  %vm1285_vm7 = vcmp.gt.f32.partialorder %v13492_v23, 20.0  ;;  %v934_v57 = vadd.f32 2.0, %v9068_v24  ;;  %v13493_v53 = vld [vmem:[#allocation16_spill] sm:$0xff] }
 0x145   : > { %v1172_v12 = vsub.f32 2.0, %v1124_v33  ;;  %v1125_v43 = vmul.f32 %v7344_v50, %v1029_v26  ;;  %7347 = vrcp.f32 %v1047_v5  ;;  %v935_v27 = vadd.f32 2.0, %v9079_v52  ;;  %6937 = vmatmul.msk.f32.gmra.mxu2 %vm1492_vm8, %v9003_v45  ;;  %6943 = vmatmul.msk.f32.gmra.mxu3 %vm1492_vm8, %v9003_v45 }
 0x146   : > { %v1428_v21 = vsel %vm1284_vm6, %v13491_v38, %v1380_v30  ;;  %v1381_v40 = vmul.f32 %v1333_v4, %v1237_v17  ;;  %v1316_v26 = vmul.f32 %v9354_v63, %v13493_v53  ;;  %v9422_v60 = vmul.f32 %v9068_v24, %v934_v57 }
 0x147   : > { %1875 = vmatpush.msra.mxu2 %v1428_v21  ;;  %v1220_v39 = vmul.f32 %v7342_v16, %v1172_v12  ;;  %v1173_v15 = vsub.f32 2.0, %v1125_v43  ;;  %vm1268_vm9 = vcmp.gt.f32.partialorder %v13493_v53, 20.0  ;;  %v9429_v37 = vmul.f32 %v9079_v52, %v935_v27 }
 0x148   : > { %v1429_v38 = vsel %vm1285_vm7, %v13492_v23, %v1381_v40  ;;  %v1160_v6 = vmul.f32 %v9337_v44, %v9281_v14  ;;  %v7346_v36 = vpop.eup %7345  ;;  %v1317_v24 = vmul.f32 %v9365_v13, %v13494_v46  ;;  %v1030_v28 = vadd.f32 2.0, %v9422_v60  ;;  %v13495_v40 = vld [vmem:[#allocation12_spill] sm:$0xff] }
 0x149   : > { %1910 = vmatpush.msra.mxu3 %v1429_v38  ;;  %v1364_v18 = vmul.f32 %v1316_v26, %v1220_v39  ;;  %v1221_v63 = vmul.f32 %v7344_v50, %v1173_v15  ;;  %vm1269_vm10 = vcmp.gt.f32.partialorder %v13494_v46, 20.0  ;;  %v1142_v59 = vmul.f32 %v7346_v36, %v1046_v29  ;;  %6946 = vmatmul.msk.f32.vlgmr.msra.gmra.mxu0 %vm1492_vm8, %v9450_v19  ;;  %v9491_v39 = vld [vmem:[%s13209_s0 + $0x20] sm:$0xff]  ;;  %v13497_v15 = vld [vmem:[#allocation31_spill] sm:$0xff] }
 0x14a   : > { %v1031_v22 = vadd.f32 2.0, %v9429_v37  ;;  %v1208_v11 = vsub.f32 2.0, %v1160_v6  ;;  %7349 = vrcp.f32 %v1030_v28  ;;  %v1161_v31 = vmul.f32 %v9377_v25, %v9321_v51  ;;  %6952 = vmatmul.msk.f32.vlgmr.msra.gmra.mxu1 %vm1492_vm8, %v9450_v19 }
 0x14b   : > { %v1412_v52 = vsel %vm1268_vm9, %v13493_v53, %v1364_v18  ;;  %v1365_v14 = vmul.f32 %v1317_v24, %v1221_v63  ;;  %v7348_v47 = vpop.eup %7347  ;;  %v1190_v13 = vsub.f32 2.0, %v1142_v59  ;;  %vm1286_vm11 = vcmp.gt.f32.partialorder %v9059_v34, 20.0  ;;  %v13496_v53 = vld [vmem:[#allocation29_spill] sm:$0xff] }
 0x14c   : > { %1876 = vmatpush.msra.mxu2 %v1412_v52  ;;  %7351 = vrcp.f32 %v1031_v22  ;;  %v1256_v58 = vmul.f32 %v9337_v44, %v1208_v11  ;;  %v1143_v41 = vmul.f32 %v7348_v47, %v1047_v5  ;;  %v1209_v42 = vsub.f32 2.0, %v1161_v31 }
 0x14d   : > { %v1413_v62 = vsel %vm1269_vm10, %v13494_v46, %v1365_v14  ;;  %v952_v45 = vadd.f32 2.0, %v9307_v7  ;;  %v1238_v51 = vmul.f32 %v7346_v36, %v1190_v13  ;;  %v1334_v44 = vmul.f32 %v9384_v9, %v9059_v34  ;;  %6938 = vmatmul.msk.f32.gmra.mxu2 %vm1492_vm8, %v9118_v8  ;;  %6944 = vmatmul.msk.f32.gmra.mxu3 %vm1492_vm8, %v9118_v8  ;;  %v9516_v14 = vld [vmem:[%s13209_s0 + $0x28] sm:$0xff] }
 0x14e   : > { %1911 = vmatpush.msra.mxu3 %v1413_v62  ;;  %v1400_v29 = vmul.f32 %v9316_v35, %v1256_v58  ;;  %v953_v16 = vadd.f32 2.0, %v9312_v1  ;;  %v1191_v3 = vsub.f32 2.0, %v1143_v41  ;;  %vm1304_vm12 = vcmp.gt.f32.partialorder %v9202_v56, 20.0 }
 0x14f   : > { %v1257_v10 = vmul.f32 %v9377_v25, %v1209_v42  ;;  %v9465_v33 = vmul.f32 %v9307_v7, %v952_v45  ;;  %v1382_v49 = vmul.f32 %v1334_v44, %v1238_v51  ;;  %v936_v35 = vadd.f32 2.0, %v9131_v55 }
 0x150   : > { %v1448_v50 = vsel %vm1304_vm12, %v9202_v56, %v1400_v29  ;;  %v9469_v9 = vmul.f32 %v9312_v1, %v953_v16  ;;  %v7350_v30 = vpop.eup %7349  ;;  %v1239_v17 = vmul.f32 %v7348_v47, %v1191_v3  ;;  %v1335_v23 = vmul.f32 %v9400_v0, %v9084_v20 }
 0x151   : > { %2014 = vmatpush.msrb.mxu2 %v1448_v50  ;;  %v1401_v4 = vmul.f32 %v9348_v61, %v1257_v10  ;;  %v1048_v25 = vadd.f32 2.0, %v9465_v33  ;;  %v1430_v56 = vsel %vm1286_vm11, %v9059_v34, %v1382_v49  ;;  %v1126_v5 = vmul.f32 %v7350_v30, %v1030_v28  ;;  %6947 = vmatmul.msk.f32.gmra.mxu0 %vm1492_vm8, %v9491_v39  ;;  %v13498_v50 = vld [vmem:[#allocation32_spill] sm:$0xff] }
 0x152   : > { %v7352_v7 = vpop.eup %7351  ;;  %vm1305_vm13 = vcmp.gt.f32.partialorder %v9213_v2, 20.0  ;;  %v1049_v1 = vadd.f32 2.0, %v9469_v9  ;;  %1945 = vmatpush.msrb.mxu0 %v1430_v56  ;;  %v1383_v0 = vmul.f32 %v1335_v23, %v1239_v17  ;;  %vm1287_vm14 = vcmp.gt.f32.partialorder %v9084_v20, 20.0  ;;  %6953 = vmatmul.msk.f32.gmra.mxu1 %vm1492_vm8, %v9491_v39  ;;  %v13499_v17 = vld [vmem:[#allocation33_spill] sm:$0xff] }
 0x153   : > { %v1127_v12 = vmul.f32 %v7352_v7, %v1031_v22  ;;  %v1449_v61 = vsel %vm1305_vm13, %v9213_v2, %v1401_v4  ;;  %7353 = vrcp.f32 %v1048_v25  ;;  %v1174_v43 = vsub.f32 2.0, %v1126_v5 }
 0x154   : > { %2049 = vmatpush.msrb.mxu3 %v1449_v61  ;;  %7355 = vrcp.f32 %v1049_v1  ;;  %v984_v34 = vmul.f32 %v9131_v55, %v936_v35  ;;  %v1431_v57 = vsel %vm1287_vm14, %v9084_v20, %v1383_v0  ;;  %v937_v27 = vadd.f32 2.0, %v13495_v40  ;;  %v6489_v0 = vld [vmem:[%s13209_s0 + $0x90] sm:$0xf] }
 0x155   : > { %v1175_v21 = vsub.f32 2.0, %v1127_v12  ;;  %1980 = vmatpush.msrb.mxu1 %v1431_v57  ;;  %v1222_v2 = vmul.f32 %v7350_v30, %v1174_v43  ;;  %v1318_v55 = vmul.f32 %v9422_v60, %v13496_v53  ;;  %6939 = vmatmul.msk.f32.gmra.mxu2 %vm1492_vm8, %v9157_v54  ;;  %v1319_v38 = vmul.f32 %v9429_v37, %v13497_v15  ;;  %v3418_v37 = vld [vmem:[%s13210_s1 + $0x48] sm:$0xff]  ;;  %v9565_v12 = vpop.permute.xlu2 %1484 }
 0x156   : > { %v1032_v20 = vadd.f32 2.0, %v984_v34  ;;  %v985_v6 = vmul.f32 %v13495_v40, %v937_v27  ;;  %vm1270_vm15 = vcmp.gt.f32.partialorder %v13496_v53, 20.0  ;;  %vm1271_vm0 = vcmp.gt.f32.partialorder %v13497_v15, 20.0  ;;  %6945 = vmatmul.msk.f32.gmra.mxu3 %vm1492_vm8, %v9157_v54  ;;  %3423 = vperm.xlu2 %7168, %v3418_v37  }
 0x157   : > { %v1223_v26 = vmul.f32 %v7352_v7, %v1175_v21  ;;  %v1366_v36 = vmul.f32 %v1318_v55, %v1222_v2  ;;  %v1336_v13 = vmul.f32 %v9465_v33, %v9149_v32  ;;  %v1337_v62 = vmul.f32 %v9469_v9, %v9162_v48  ;;  %v4537_v7 = vld [vmem:[%s13210_s1 + $0x60] sm:$0xff] }
 0x158   : > { %7357 = vrcp.f32 %v1032_v20  ;;  %v1033_v46 = vadd.f32 2.0, %v985_v6  ;;  %vm1288_vm1 = vcmp.gt.f32.partialorder %v9149_v32, 20.0  ;;  %v1528_v29 = vpop.f32.mrf.mxu0  ;;  %vm1289_vm2 = vcmp.gt.f32.partialorder %v9162_v48, 20.0 }
 0x159   : > { %v7354_v18 = vpop.eup %7353  ;;  %v1367_v63 = vmul.f32 %v1319_v38, %v1223_v26  ;;  %v1414_v60 = vsel %vm1270_vm15, %v13496_v53, %v1366_v36  ;;  %6948 = vmatmul.msk.f32.gmra.mxu0 %vm1492_vm8, %v9516_v14  ;;  %v1563_v10 = vpop.f32.mrf.mxu1  ;;  %v1320_v9 = vmul.f32 %v984_v34, %v13498_v50  ;;  %vm1272_vm3 = vcmp.gt.f32.partialorder %v13498_v50, 20.0 }
 0x15a   : > { %v7356_v24 = vpop.eup %7355  ;;  %v1144_v28 = vmul.f32 %v7354_v18, %v1048_v25  ;;  %1946 = vmatpush.msrb.mxu0 %v1414_v60  ;;  %7359 = vrcp.f32 %v1033_v46  ;;  %6954 = vmatmul.msk.f32.gmra.mxu1 %vm1492_vm8, %v9516_v14  ;;  %v1321_v23 = vmul.f32 %v985_v6, %v13499_v17  ;;  %vm1273_vm4 = vcmp.gt.f32.partialorder %v13499_v17, 20.0  ;;  %v9575_v34 = vpop.permute.xlu1 %1489 }
 0x15b   : > { %v1415_v59 = vsel %vm1271_vm0, %v13497_v15, %v1367_v63  ;;  %v1145_v22 = vmul.f32 %v7356_v24, %v1049_v1 }
 0x15c   : > { %1981 = vmatpush.msrb.mxu1 %v1415_v59  ;;  %v1192_v11 = vsub.f32 2.0, %v1144_v28 }
 0x15d   : > { %v1193_v52 = vsub.f32 2.0, %v1145_v22  ;;  %6958 = vmatmul.msk.f32.vlgmr.msra.gmra.mxu2 %vm1492_vm8, %v9450_v19  ;;  %v9579_v57 = vpop.permute.xlu2 %1479 }
 0x15e   : > { %v7358_v31 = vpop.eup %7357  ;;  %v1240_v47 = vmul.f32 %v7354_v18, %v1192_v11  ;;  %6964 = vmatmul.msk.f32.vlgmr.msra.gmra.mxu3 %vm1492_vm8, %v9450_v19  ;;  %4542 = vperm.xlu2 %7168, %v4537_v7   ;;  %13500 = vst [vmem:[#allocation6_spill] sm:$0xff] %v9579_v57 }
 0x15f   : > { %v1241_v58 = vmul.f32 %v7356_v24, %v1193_v52  ;;  %v1128_v41 = vmul.f32 %v7358_v31, %v1032_v20 }
 0x160   : > { %v1384_v42 = vmul.f32 %v1336_v13, %v1240_v47  ;;  %v7360_v45 = vpop.eup %7359  ;;  %v1531_v5 = vpop.f32.mrf.mxu0 }
 0x161   : > { %v1385_v51 = vmul.f32 %v1337_v62, %v1241_v58  ;;  %v1176_v44 = vsub.f32 2.0, %v1128_v41  ;;  %v1129_v3 = vmul.f32 %v7360_v45, %v1033_v46  ;;  %v1566_v1 = vpop.f32.mrf.mxu1 }
 0x162   : > { %v1432_v16 = vsel %vm1288_vm1, %v9149_v32, %v1384_v42  ;;  %v9538_v32 = vld [vmem:[%s13209_s0 + $0x30] sm:$0xff]  ;;  %v9589_v53 = vpop.permute.xlu1 %1469 }
 0x163   : > { %2015 = vmatpush.msrb.mxu2 %v1432_v16  ;;  %v1433_v33 = vsel %vm1289_vm2, %v9162_v48, %v1385_v51  ;;  %v1224_v49 = vmul.f32 %v7358_v31, %v1176_v44  ;;  %v1177_v35 = vsub.f32 2.0, %v1129_v3  ;;  %6949 = vmatmul.msk.f32.gmra.mxu0 %vm1492_vm8, %v9538_v32  ;;  %13501 = vst [vmem:[#allocation7_spill] sm:$0xff] %v9589_v53 }
 0x164   : > { %2050 = vmatpush.msrb.mxu3 %v1433_v33  ;;  %6955 = vmatmul.msk.f32.gmra.mxu1 %vm1492_vm8, %v9538_v32  ;;  %v9594_v20 = vadd.f32 %v1531_v5, %v9589_v53  ;;  %v9601_v26 = vadd.f32 %v1566_v1, %v9589_v53 }
 0x165   : > { %v1368_v30 = vmul.f32 %v1320_v9, %v1224_v49  ;;  %v1225_v48 = vmul.f32 %v7360_v45, %v1177_v35  ;;  %6959 = vmatmul.msk.f32.gmra.mxu2 %vm1492_vm8, %v9491_v39  ;;  %v9591_v55 = vpop.permute.xlu2 %1464 }
 0x166   : > { %6965 = vmatmul.msk.f32.gmra.mxu3 %vm1492_vm8, %v9491_v39  ;;  %6498 = vperm.xlu2 %7168, %v6489_v0   ;;  %v9608_v15 = vadd.f32 %v1528_v29, %v9591_v55  ;;  %v9611_v6 = vadd.f32 %v1563_v10, %v9591_v55  ;;  %v2087_v36 = vmin.f32 %v9594_v20, 20.0  ;;  %v2088_v46 = vmin.f32 %v9601_v26, 20.0 }
 0x167   : > { %v1416_v4 = vsel %vm1272_vm3, %v13498_v50, %v1368_v30  ;;  %v1369_v25 = vmul.f32 %v1321_v23, %v1225_v48  ;;  %vm3047_vm14 = vcmp.gt.f32.partialorder %v9594_v20, 20.0  ;;  %vm3048_vm15 = vcmp.gt.f32.partialorder %v9601_v26, 20.0 }
 0x168   : > { %2016 = vmatpush.msrb.mxu2 %v1416_v4  ;;  %v1534_v61 = vpop.f32.mrf.mxu0  ;;  %v2071_v37 = vmin.f32 %v9608_v15, 20.0  ;;  %v2072_v59 = vmin.f32 %v9611_v6, 20.0  ;;  %v2199_v22 = vmul.f32 1.442695, %v2087_v36  ;;  %v2201_v11 = vmul.f32 1.442695, %v2088_v46 }
 0x169   : > { %v1417_v56 = vsel %vm1273_vm4, %v13499_v17, %v1369_v25  ;;  %v1569_v43 = vpop.f32.mrf.mxu1  ;;  %vm3031_vm0 = vcmp.gt.f32.partialorder %v9608_v15, 20.0  ;;  %vm3032_vm1 = vcmp.gt.f32.partialorder %v9611_v6, 20.0  ;;  %vm3436_vm3 = vcmask 392192  }
 0x16a   : > { %2051 = vmatpush.msrb.mxu3 %v1417_v56  ;;  %v2167_v47 = vmul.f32 1.442695, %v2071_v37  ;;  %v2169_v62 = vmul.f32 1.442695, %v2072_v59  ;;  %7361 = vpow2.f32 %v2199_v22 }
 0x16b   : > { %6950 = vmatmul.msk.f32.gmra.mxu0 %vm1492_vm8, %v9118_v8  ;;  %7363 = vpow2.f32 %v2201_v11 }
 0x16c   : > { %6956 = vmatmul.msk.f32.gmra.mxu1 %vm1492_vm8, %v9118_v8  ;;  %7365 = vpow2.f32 %v2167_v47 }
 0x16d   : > { %6960 = vmatmul.msk.f32.gmra.mxu2 %vm1492_vm8, %v9516_v14  ;;  %7367 = vpow2.f32 %v2169_v62 }
 0x16e   : > { %6966 = vmatmul.msk.f32.gmra.mxu3 %vm1492_vm8, %v9516_v14 }
 0x170   : > { %v9674_v4 = vpop.eup %7361 }
 0x171   : > { %v9680_v1 = vpop.eup %7363 }
 0x172   : > { %v9689_v36 = vpop.eup %7365 }
 0x173   : > { %6951 = vmatmul.msk.f32.gmra.mxu0 %vm1492_vm8, %v9157_v54 }
 0x174   : > { %6957 = vmatmul.msk.f32.gmra.mxu1 %vm1492_vm8, %v9157_v54 }
 0x175   : > { %6961 = vmatmul.msk.f32.gmra.mxu2 %vm1492_vm8, %v9538_v32  ;;  %v1537_v21 = vpop.f32.mrf.mxu0 }
 0x176   : > { %6967 = vmatmul.msk.f32.gmra.mxu3 %vm1492_vm8, %v9538_v32  ;;  %v1572_v27 = vpop.f32.mrf.mxu1  ;;  %v9634_v31 = vadd.f32 %v1537_v21, %v9579_v57 }
 0x177   : > { %v9637_v13 = vadd.f32 %v1572_v27, %v9579_v57 }
 0x178   : > { %v2119_v33 = vmin.f32 %v9634_v31, 20.0  ;;  %vm3079_vm10 = vcmp.gt.f32.partialorder %v9634_v31, 20.0 }
 0x179   : > { %v2120_v9 = vmin.f32 %v9637_v13, 20.0  ;;  %vm3080_vm11 = vcmp.gt.f32.partialorder %v9637_v13, 20.0 }
 0x17a   : > { %v2263_v7 = vmul.f32 1.442695, %v2119_v33 }
 0x17b   : > { %6970 = vmatmul.msk.f32.vlgmr.msrb.gmra.mxu0 %vm1492_vm8, %v9450_v19 }
 0x17c   : > { %6976 = vmatmul.msk.f32.vlgmr.msrb.gmra.mxu1 %vm1492_vm8, %v9450_v19 }
 0x17d   : > { %6962 = vmatmul.msk.f32.gmra.mxu2 %vm1492_vm8, %v9118_v8 }
 0x17e   : > { %6968 = vmatmul.msk.f32.gmra.mxu3 %vm1492_vm8, %v9118_v8  ;;  %v9605_v8 = vpop.permute.xlu0 %1474 }
 0x17f   : > { %v1598_v40 = vpop.f32.mrf.mxu2  ;;  %13502 = vst [vmem:[#allocation10_spill] sm:$0xff] %v9605_v8  ;;  %v9616_v24 = vadd.f32 %v1534_v61, %v9605_v8  ;;  %v9621_v28 = vadd.f32 %v1569_v43, %v9605_v8  ;;  %v2265_v61 = vmul.f32 1.442695, %v2120_v9 }
 0x180   : > { %v1633_v2 = vpop.f32.mrf.mxu3  ;;  %v9640_v41 = vadd.f32 %v1598_v40, %v9591_v55 }
 0x181   : > { %v2103_v52 = vmin.f32 %v9616_v24, 20.0  ;;  %v9643_v51 = vadd.f32 %v1633_v2, %v9591_v55  ;;  %vm3063_vm12 = vcmp.gt.f32.partialorder %v9616_v24, 20.0  ;;  %vm3064_vm13 = vcmp.gt.f32.partialorder %v9621_v28, 20.0 }
 0x182   : > { %v1540_v63 = vpop.f32.mrf.mxu0  ;;  %13503 = vst [vmem:[#allocation11_spill] sm:$0xff] %v9640_v41  ;;  %v2073_v35 = vmin.f32 %v9640_v41, 20.0 }
 0x183   : > { %6971 = vmatmul.msk.f32.gmra.mxu0 %vm1492_vm8, %v9491_v39  ;;  %v1575_v60 = vpop.f32.mrf.mxu1  ;;  %13504 = vst [vmem:[#allocation13_spill] sm:$0xff] %v9643_v51  ;;  %v2231_v44 = vmul.f32 1.442695, %v2103_v52  ;;  %v2074_v48 = vmin.f32 %v9643_v51, 20.0  ;;  %v9670_v17 = vadd.f32 %v1540_v63, %v9565_v12 }
 0x184   : > { %6977 = vmatmul.msk.f32.gmra.mxu1 %vm1492_vm8, %v9491_v39  ;;  %v9678_v56 = vadd.f32 %v1575_v60, %v9565_v12  ;;  %v2171_v40 = vmul.f32 1.442695, %v2073_v35  ;;  %v9694_v60 = vpop.eup %7367 }
 0x185   : > { %6963 = vmatmul.msk.f32.gmra.mxu2 %vm1492_vm8, %v9157_v54  ;;  %7369 = vpow2.f32 %v2231_v44  ;;  %v2135_v63 = vmin.f32 %v9670_v17, 20.0  ;;  %vm3095_vm7 = vcmp.gt.f32.partialorder %v9670_v17, 20.0 }
 0x186   : > { %6969 = vmatmul.msk.f32.gmra.mxu3 %vm1492_vm8, %v9157_v54  ;;  %v2104_v54 = vmin.f32 %v9621_v28, 20.0  ;;  %v2136_v59 = vmin.f32 %v9678_v56, 20.0  ;;  %vm3096_vm9 = vcmp.gt.f32.partialorder %v9678_v56, 20.0 }
 0x187   : > { %v1601_v38 = vpop.f32.mrf.mxu2 }
 0x188   : > { %v1636_v18 = vpop.f32.mrf.mxu3  ;;  %v2233_v3 = vmul.f32 1.442695, %v2104_v54  ;;  %v9651_v10 = vadd.f32 %v1601_v38, %v9589_v53 }
 0x189   : > { %v9658_v50 = vadd.f32 %v1636_v18, %v9589_v53  ;;  %v2173_v18 = vmul.f32 1.442695, %v2074_v48 }
 0x18a   : > { %13505 = vst [vmem:[#allocation8_spill] sm:$0xff] %v9651_v10  ;;  %v2089_v25 = vmin.f32 %v9651_v10, 20.0  ;;  %7371 = vpow2.f32 %v2233_v3 }
 0x18b   : > { %6972 = vmatmul.msk.f32.gmra.mxu0 %vm1492_vm8, %v9516_v14  ;;  %13506 = vst [vmem:[#allocation27_spill] sm:$0xff] %v9658_v50  ;;  %v2090_v0 = vmin.f32 %v9658_v50, 20.0  ;;  %v9697_v22 = vpop.eup %7369 }
 0x18c   : > { %6978 = vmatmul.msk.f32.gmra.mxu1 %vm1492_vm8, %v9516_v14  ;;  %v1543_v45 = vpop.f32.mrf.mxu0  ;;  %v2203_v37 = vmul.f32 1.442695, %v2089_v25 }
 0x18d   : > { %6982 = vmatmul.msk.f32.vlgmr.msrb.gmra.mxu2 %vm1492_vm8, %v9450_v19  ;;  %v9648_v29 = vadd.f32 %v1543_v45, %v9575_v34  ;;  %v1578_v16 = vpop.f32.mrf.mxu1  ;;  %v2205_v11 = vmul.f32 1.442695, %v2090_v0 }
 0x18e   : > { %6988 = vmatmul.msk.f32.vlgmr.msrb.gmra.mxu3 %vm1492_vm8, %v9450_v19  ;;  %v9655_v49 = vadd.f32 %v1578_v16, %v9575_v34  ;;  %v2297_v16 = vmul.f32 1.442695, %v2136_v59 }
 0x18f   : > { %v1604_v58 = vpop.f32.mrf.mxu2  ;;  %v2151_v19 = vmin.f32 %v9648_v29, 20.0  ;;  %vm3111_vm5 = vcmp.gt.f32.partialorder %v9648_v29, 20.0 }
 0x190   : > { %v1639_v42 = vpop.f32.mrf.mxu3  ;;  %v2152_v30 = vmin.f32 %v9655_v49, 20.0  ;;  %v9684_v43 = vadd.f32 %v1604_v58, %v9605_v8  ;;  %v9710_v58 = vld [vmem:[%s13209_s0 + $0x38] sm:$0xff]  ;;  %v9716_v62 = vpop.eup %7371  ;;  %vm3112_vm6 = vcmp.gt.f32.partialorder %v9655_v49, 20.0 }
 0x191   : > { %v2327_v23 = vmul.f32 1.442695, %v2151_v19  ;;  %v9687_v27 = vadd.f32 %v1639_v42, %v9605_v8  ;;  %v2295_v42 = vmul.f32 1.442695, %v2135_v63 }
 0x192   : > { %v2329_v5 = vmul.f32 1.442695, %v2152_v30  ;;  %13507 = vst [vmem:[#allocation30_spill] sm:$0xff] %v9684_v43  ;;  %v2105_v52 = vmin.f32 %v9684_v43, 20.0 }
 0x193   : > { %6973 = vmatmul.msk.f32.gmra.mxu0 %vm1492_vm8, %v9538_v32  ;;  %13508 = vst [vmem:[#allocation9_spill] sm:$0xff] %v9687_v27  ;;  %7373 = vpow2.f32 %v2327_v23 }
 0x194   : > { %6979 = vmatmul.msk.f32.gmra.mxu1 %vm1492_vm8, %v9538_v32  ;;  %7375 = vpow2.f32 %v2329_v5  ;;  %v2235_v9 = vmul.f32 1.442695, %v2105_v52 }
 0x195   : > { %6983 = vmatmul.msk.f32.gmra.mxu2 %vm1492_vm8, %v9491_v39  ;;  %7377 = vpow2.f32 %v2263_v7 }
 0x196   : > { %v1668_v38 = vpop.f32.mrf.mxu0  ;;  %6989 = vmatmul.msk.f32.gmra.mxu3 %vm1492_vm8, %v9491_v39  ;;  %7379 = vpow2.f32 %v2265_v61  ;;  %v2106_v39 = vmin.f32 %v9687_v27, 20.0 }
 0x197   : > { %v1607_v21 = vpop.f32.mrf.mxu2  ;;  %v1703_v46 = vpop.f32.mrf.mxu1  ;;  %7381 = vpow2.f32 %v2171_v40  ;;  %v9721_v45 = vadd.f32 %v1668_v38, %v9591_v55 }
 0x198   : > { %v1642_v2 = vpop.f32.mrf.mxu3  ;;  %v9701_v54 = vadd.f32 %v1607_v21, %v9579_v57  ;;  %7383 = vpow2.f32 %v2173_v18  ;;  %v9724_v3 = vadd.f32 %v1703_v46, %v9591_v55  ;;  %v2237_v23 = vmul.f32 1.442695, %v2106_v39 }
 0x199   : > { %v9705_v47 = vadd.f32 %v1642_v2, %v9579_v57  ;;  %13511 = vst [vmem:[#allocation18_spill] sm:$0xff] %v9721_v45  ;;  %v7374_v44 = vpop.eup %7373  ;;  %7385 = vpow2.f32 %v2203_v37  ;;  %v2075_v40 = vmin.f32 %v9721_v45, 20.0 }
 0x19a   : > { %13509 = vst [vmem:[#allocation24_spill] sm:$0xff] %v9701_v54  ;;  %v7376_v33 = vpop.eup %7375  ;;  %7387 = vpow2.f32 %v2205_v11  ;;  %v2121_v19 = vmin.f32 %v9701_v54, 20.0  ;;  %v2439_v35 = vadd.f32 2.0, %v7374_v44  ;;  %v2076_v37 = vmin.f32 %v9724_v3, 20.0 }
 0x19b   : > { %13510 = vst [vmem:[#allocation26_spill] sm:$0xff] %v9705_v47  ;;  %6974 = vmatmul.msk.f32.gmra.mxu0 %vm1492_vm8, %v9710_v58  ;;  %v9727_v48 = vpop.eup %7377  ;;  %v2122_v25 = vmin.f32 %v9705_v47, 20.0  ;;  %v2440_v7 = vadd.f32 2.0, %v7376_v33  ;;  %7389 = vpow2.f32 %v2295_v42 }
 0x19c   : > { %6980 = vmatmul.msk.f32.gmra.mxu1 %vm1492_vm8, %v9710_v58  ;;  %13512 = vst [vmem:[#allocation20_spill] sm:$0xff] %v9724_v3  ;;  %v9733_v61 = vpop.eup %7379  ;;  %v2535_v21 = vmul.f32 %v7374_v44, %v2439_v35  ;;  %7391 = vpow2.f32 %v2297_v16  ;;  %v2267_v11 = vmul.f32 1.442695, %v2121_v19  ;;  %v9752_v16 = vld [vmem:[%s13209_s0 + $0x40] sm:$0xff]  ;;  %v2177_v35 = vmul.f32 1.442695, %v2076_v37 }
 0x19d   : > { %6984 = vmatmul.msk.f32.gmra.mxu2 %vm1492_vm8, %v9516_v14  ;;  %v9738_v18 = vpop.eup %7381  ;;  %v2536_v63 = vmul.f32 %v7376_v33, %v2440_v7  ;;  %7393 = vpow2.f32 %v2235_v9  ;;  %v2175_v9 = vmul.f32 1.442695, %v2075_v40 }
 0x19e   : > { %6990 = vmatmul.msk.f32.gmra.mxu3 %vm1492_vm8, %v9516_v14  ;;  %v1671_v2 = vpop.f32.mrf.mxu0  ;;  %13513 = vst [vmem:[#allocation21_spill] sm:$0xff] %v9738_v18  ;;  %v9744_v59 = vpop.eup %7383  ;;  %v2631_v52 = vadd.f32 2.0, %v2535_v21  ;;  %7395 = vpow2.f32 %v2237_v23  ;;  %v2269_v14 = vmul.f32 1.442695, %v2122_v25  ;;  %v3207_v51 = vmul.f32 %v2535_v21, %v9648_v29 }
 0x19f   : > { %v1610_v30 = vpop.f32.mrf.mxu2  ;;  %v1706_v38 = vpop.f32.mrf.mxu1  ;;  %13514 = vst [vmem:[#allocation19_spill] sm:$0xff] %v9744_v59  ;;  %v2632_v42 = vadd.f32 2.0, %v2536_v63  ;;  %v9764_v23 = vadd.f32 %v1671_v2, %v9589_v53 }
 0x1a0   : > { %v9731_v5 = vadd.f32 %v1610_v30, %v9565_v12  ;;  %v1645_v0 = vpop.f32.mrf.mxu3  ;;  %v9746_v39 = vpop.eup %7385  ;;  %7397 = vrcp.f32 %v2631_v52  ;;  %v9767_v45 = vadd.f32 %v1706_v38, %v9589_v53  ;;  %v3208_v38 = vmul.f32 %v2536_v63, %v9655_v49 }
 0x1a1   : > { %v9741_v46 = vadd.f32 %v1645_v0, %v9565_v12  ;;  %v9758_v33 = vpop.eup %7387  ;;  %7399 = vrcp.f32 %v2632_v42  ;;  %13516 = vst [vmem:[#allocation14_spill] sm:$0xff] %v9764_v23 }
 0x1a2   : > { %v2137_v44 = vmin.f32 %v9731_v5, 20.0  ;;  %13515 = vst [vmem:[#allocation23_spill] sm:$0xff] %v9758_v33  ;;  %v7390_v30 = vpop.eup %7389  ;;  %7401 = vpow2.f32 %v2267_v11  ;;  %v2092_v59 = vmin.f32 %v9767_v45, 20.0 }
 0x1a3   : > { %6975 = vmatmul.msk.f32.gmra.mxu0 %vm1492_vm8, %v9752_v16  ;;  %v2138_v19 = vmin.f32 %v9741_v46, 20.0  ;;  %v7392_v25 = vpop.eup %7391  ;;  %7403 = vpow2.f32 %v2269_v14  ;;  %13517 = vst [vmem:[#allocation25_spill] sm:$0xff] %v9767_v45  ;;  %v2423_v10 = vadd.f32 2.0, %v7390_v30 }
 0x1a4   : > { %6981 = vmatmul.msk.f32.gmra.mxu1 %vm1492_vm8, %v9752_v16  ;;  %v2299_v7 = vmul.f32 1.442695, %v2137_v44  ;;  %v9769_v40 = vpop.eup %7393  ;;  %7405 = vpow2.f32 %v2175_v9 }
 0x1a5   : > { %6985 = vmatmul.msk.f32.gmra.mxu2 %vm1492_vm8, %v9538_v32  ;;  %v9779_v44 = vpop.eup %7395  ;;  %v2301_v41 = vmul.f32 1.442695, %v2138_v19  ;;  %7407 = vpow2.f32 %v2177_v35  ;;  %v9794_v43 = vmul.f32 %v7390_v30, %v2423_v10  ;;  %v2209_v10 = vmul.f32 1.442695, %v2092_v59 }
 0x1a6   : > { %6991 = vmatmul.msk.f32.gmra.mxu3 %vm1492_vm8, %v9538_v32  ;;  %v1674_v11 = vpop.f32.mrf.mxu0  ;;  %v7398_v9 = vpop.eup %7397  ;;  %7409 = vpow2.f32 %v2299_v7 }
 0x1a7   : > { %v1709_v14 = vpop.f32.mrf.mxu1  ;;  %v9788_v18 = vadd.f32 %v1674_v11, %v9605_v8  ;;  %v2823_v21 = vmul.f32 %v7398_v9, %v2631_v52  ;;  %7411 = vpow2.f32 %v2301_v41  ;;  %v2424_v11 = vadd.f32 2.0, %v7392_v25 }
 0x1a8   : > { %v1613_v0 = vpop.f32.mrf.mxu2  ;;  %v1648_v3 = vpop.f32.mrf.mxu3  ;;  %v9799_v7 = vadd.f32 %v1709_v14, %v9605_v8 }
 0x1a9   : > { %v9774_v37 = vadd.f32 %v1613_v0, %v9575_v34  ;;  %v9777_v2 = vadd.f32 %v1648_v3, %v9575_v34  ;;  %v2091_v0 = vmin.f32 %v9764_v23, 20.0  ;;  %v7400_v3 = vpop.eup %7399  ;;  %13518 = vst [vmem:[#allocation15_spill] sm:$0xff] %v9788_v18  ;;  %v2919_v45 = vsub.f32 2.0, %v2823_v21 }
 0x1aa   : > { %v9790_v27 = vpop.eup %7401  ;;  %v2824_v35 = vmul.f32 %v7400_v3, %v2632_v42  ;;  %13519 = vst [vmem:[#allocation22_spill] sm:$0xff] %v9799_v7  ;;  %v9806_v41 = vmul.f32 %v7392_v25, %v2424_v11  ;;  %v2107_v21 = vmin.f32 %v9788_v18, 20.0  ;;  %v9841_v18 = vadd.f32 2.0, %v9689_v36 }
 0x1ab   : > { %v2153_v50 = vmin.f32 %v9774_v37, 20.0  ;;  %v2154_v32 = vmin.f32 %v9777_v2, 20.0  ;;  %v9796_v23 = vpop.eup %7403  ;;  %v2207_v52 = vmul.f32 1.442695, %v2091_v0  ;;  %v3015_v33 = vmul.f32 %v7398_v9, %v2919_v45 }
 0x1ac   : > { %v9801_v47 = vpop.eup %7405  ;;  %v2108_v45 = vmin.f32 %v9799_v7, 20.0  ;;  %vm3113_vm2 = vcmp.gt.f32.partialorder %v9774_v37, 20.0  ;;  %vm3114_vm4 = vcmp.gt.f32.partialorder %v9777_v2, 20.0 }
 0x1ad   : > { %v2331_v63 = vmul.f32 1.442695, %v2153_v50  ;;  %v2333_v19 = vmul.f32 1.442695, %v2154_v32  ;;  %6986 = vmatmul.msk.f32.gmra.mxu2 %vm1492_vm8, %v9710_v58  ;;  %13520 = vst [vmem:[#allocation28_spill] sm:$0xff] %v9801_v47  ;;  %v2920_v50 = vsub.f32 2.0, %v2824_v35  ;;  %v9804_v54 = vpop.eup %7407 }
 0x1ae   : > { %v2615_v32 = vadd.f32 2.0, %v9794_v43  ;;  %13521 = vst [vmem:[#allocation16_spill] sm:$0xff] %v9804_v54  ;;  %6992 = vmatmul.msk.f32.gmra.mxu3 %vm1492_vm8, %v9710_v58  ;;  %v9817_v59 = vpop.eup %7409  ;;  %v3303_v58 = vmul.f32 %v3207_v51, %v3015_v33  ;;  %v2239_v51 = vmul.f32 1.442695, %v2107_v21 }
 0x1af   : > { %7413 = vpow2.f32 %v2331_v63  ;;  %v1677_v63 = vpop.f32.mrf.mxu0  ;;  %v1712_v35 = vpop.f32.mrf.mxu1 }
 0x1b0   : > { %7415 = vpow2.f32 %v2333_v19  ;;  %v1738_v42 = vpop.f32.mrf.mxu2  ;;  %v1773_v30 = vpop.f32.mrf.mxu3  ;;  %v3016_v19 = vmul.f32 %v7400_v3, %v2920_v50  ;;  %v9821_v25 = vadd.f32 %v1677_v63, %v9579_v57  ;;  %v9826_v11 = vadd.f32 %v1712_v35, %v9579_v57 }
 0x1b1   : > { %v9811_v14 = vadd.f32 %v1738_v42, %v9591_v55  ;;  %v9814_v0 = vadd.f32 %v1773_v30, %v9591_v55  ;;  %7417 = vrcp.f32 %v2615_v32  ;;  %v9828_v30 = vpop.eup %7411  ;;  %v3399_v50 = vsel %vm3111_vm5, %v9648_v29, %v3303_v58 }
 0x1b2   : > { %13524 = vst [vmem:[#allocation29_spill] sm:$0xff] %v9821_v25  ;;  %v3304_v42 = vmul.f32 %v3208_v38, %v3016_v19  ;;  %v2616_v63 = vadd.f32 2.0, %v9806_v41  ;;  %7419 = vpow2.f32 %v2207_v52  ;;  %v2123_v33 = vmin.f32 %v9821_v25, 20.0  ;;  %3456 = vmatpush.msra.mxu0 %v3399_v50 }
 0x1b3   : > { %13522 = vst [vmem:[#allocation17_spill] sm:$0xff] %v9811_v14  ;;  %v2077_v9 = vmin.f32 %v9811_v14, 20.0  ;;  %v2078_v3 = vmin.f32 %v9814_v0, 20.0  ;;  %v2124_v14 = vmin.f32 %v9826_v11, 20.0  ;;  %v2407_v52 = vadd.f32 2.0, %v9727_v48 }
 0x1b4   : > { %13523 = vst [vmem:[#allocation12_spill] sm:$0xff] %v9814_v0  ;;  %v3400_v38 = vsel %vm3112_vm6, %v9655_v49, %v3304_v42  ;;  %v2241_v0 = vmul.f32 1.442695, %v2108_v45  ;;  %7421 = vrcp.f32 %v2616_v63  ;;  %v2271_v45 = vmul.f32 1.442695, %v2123_v33 }
 0x1b5   : > { %13525 = vst [vmem:[#allocation31_spill] sm:$0xff] %v9826_v11  ;;  %v7414_v54 = vpop.eup %7413  ;;  %6987 = vmatmul.msk.f32.gmra.mxu2 %vm1492_vm8, %v9752_v16  ;;  %3482 = vmatpush.msra.mxu1 %v3400_v38  ;;  %v2179_v58 = vmul.f32 1.442695, %v2077_v9  ;;  %7423 = vpow2.f32 %v2209_v10  ;;  %v2181_v21 = vmul.f32 1.442695, %v2078_v3  ;;  %v9852_v10 = vmul.f32 %v9727_v48, %v2407_v52 }
 0x1b6   : > { %v7416_v35 = vpop.eup %7415  ;;  %v2441_v19 = vadd.f32 2.0, %v7414_v54  ;;  %7425 = vpow2.f32 %v2239_v51  ;;  %6993 = vmatmul.msk.f32.gmra.mxu3 %vm1492_vm8, %v9752_v16  ;;  %v2273_v38 = vmul.f32 1.442695, %v2124_v14  ;;  %v3191_v33 = vmul.f32 %v9794_v43, %v9670_v17 }
 0x1b7   : > { %v2442_v29 = vadd.f32 2.0, %v7416_v35  ;;  %v7418_v50 = vpop.eup %7417  ;;  %v1680_v9 = vpop.f32.mrf.mxu0  ;;  %7427 = vpow2.f32 %v2241_v0  ;;  %vm3097_vm5 = vcmp.gt.f32.partialorder %v9731_v5, 20.0  ;;  %vm3098_vm6 = vcmp.gt.f32.partialorder %v9741_v46, 20.0 }
 0x1b8   : > { %v1741_v7 = vpop.f32.mrf.mxu2  ;;  %v9843_v47 = vmul.f32 %v7414_v54, %v2441_v19  ;;  %v2807_v42 = vmul.f32 %v7418_v50, %v2615_v32  ;;  %v9854_v3 = vpop.eup %7419  ;;  %7429 = vpow2.f32 %v2179_v58  ;;  %v9859_v16 = vadd.f32 %v1680_v9, %v9565_v12 }
 0x1b9   : > { %v9848_v49 = vadd.f32 %v1741_v7, %v9589_v53  ;;  %13527 = vst [vmem:[#allocation33_spill] sm:$0xff] %v9854_v3  ;;  %v9856_v54 = vmul.f32 %v7416_v35, %v2442_v29  ;;  %v1776_v51 = vpop.f32.mrf.mxu3  ;;  %7431 = vpow2.f32 %v2181_v21  ;;  %v2408_v19 = vadd.f32 2.0, %v9733_v61  ;;  %v1715_v21 = vpop.f32.mrf.mxu1 }
 0x1ba   : > { %13528 = vst [vmem:[#allocation34_spill] sm:$0xff] %v9859_v16  ;;  %v7422_v7 = vpop.eup %7421  ;;  %v2903_v32 = vsub.f32 2.0, %v2807_v42  ;;  %v9865_v48 = vadd.f32 2.0, %v9843_v47  ;;  %7433 = vpow2.f32 %v2271_v45  ;;  %v9871_v14 = vadd.f32 %v1776_v51, %v9589_v53 }
 0x1bb   : > { %13526 = vst [vmem:[#allocation32_spill] sm:$0xff] %v9848_v49  ;;  %v2093_v0 = vmin.f32 %v9848_v49, 20.0  ;;  %v2808_v35 = vmul.f32 %v7422_v7, %v2616_v63  ;;  %v9868_v29 = vpop.eup %7423  ;;  %v2139_v52 = vmin.f32 %v9859_v16, 20.0  ;;  %v2599_v9 = vadd.f32 2.0, %v9852_v10 }
 0x1bc   : > { %13529 = vst [vmem:[#allocation35_spill] sm:$0xff] %v9868_v29  ;;  %v2999_v58 = vmul.f32 %v7418_v50, %v2903_v32  ;;  %v9875_v42 = vpop.eup %7425  ;;  %v9878_v43 = vadd.f32 2.0, %v9856_v54  ;;  %7435 = vpow2.f32 %v2273_v38  ;;  %v3192_v45 = vmul.f32 %v9806_v41, %v9678_v56 }
 0x1bd   : > { %13530 = vst [vmem:[#allocation36_spill] sm:$0xff] %v9871_v14  ;;  %v2904_v63 = vsub.f32 2.0, %v2808_v35  ;;  %v9882_v49 = vpop.eup %7427  ;;  %v2211_v51 = vmul.f32 1.442695, %v2093_v0  ;;  %7437 = vrcp.f32 %v2599_v9  ;;  %v9889_v25 = vadd.f32 %v1715_v21, %v9565_v12 }
 0x1be   : > { %13531 = vst [vmem:[#allocation37_spill] sm:$0xff] %v9875_v42  ;;  %v3287_v50 = vmul.f32 %v3191_v33, %v2999_v58  ;;  %v9885_v32 = vpop.eup %7429  ;;  %7439 = vrcp.f32 %v9865_v48  ;;  %v2504_v38 = vmul.f32 %v9733_v61, %v2408_v19  ;;  %v2094_v41 = vmin.f32 %v9871_v14, 20.0 }
 0x1bf   : > { %13532 = vst [vmem:[#allocation38_spill] sm:$0xff] %v9882_v49  ;;  %v3000_v29 = vmul.f32 %v7422_v7, %v2904_v63  ;;  %v9892_v35 = vpop.eup %7431  ;;  %v2303_v33 = vmul.f32 1.442695, %v2139_v52  ;;  %v2391_v58 = vadd.f32 2.0, %v9697_v22  ;;  %7441 = vrcp.f32 %v9878_v43 }
 0x1c0   : > { %v1744_v11 = vpop.f32.mrf.mxu2  ;;  %13533 = vst [vmem:[#allocation39_spill] sm:$0xff] %v9885_v32  ;;  %v3383_v0 = vsel %vm3095_vm7, %v9670_v17, %v3287_v50  ;;  %v9899_v32 = vpop.eup %7433  ;;  %v2600_v21 = vadd.f32 2.0, %v2504_v38  ;;  %7443 = vpow2.f32 %v2211_v51  ;;  %v2392_v63 = vadd.f32 2.0, %v9716_v62 }
 0x1c1   : > { %13534 = vst [vmem:[#allocation40_spill] sm:$0xff] %v9889_v25  ;;  %3457 = vmatpush.msra.mxu0 %v3383_v0  ;;  %v3288_v7 = vmul.f32 %v3192_v45, %v3000_v29  ;;  %v1779_v61 = vpop.f32.mrf.mxu3  ;;  %v2487_v19 = vmul.f32 %v9697_v22, %v2391_v58  ;;  %v9906_v14 = vmul.f32 %v9689_v36, %v9841_v18  ;;  %v2140_v45 = vmin.f32 %v9889_v25, 20.0 }
 0x1c2   : > { %13535 = vst [vmem:[#allocation41_spill] sm:$0xff] %v9892_v35  ;;  %v9908_v17 = vpop.eup %7435  ;;  %v9911_v52 = vadd.f32 %v1744_v11, %v9605_v8  ;;  %7445 = vrcp.f32 %v2600_v21  ;;  %v2213_v22 = vmul.f32 1.442695, %v2094_v41  ;;  %v2488_v36 = vmul.f32 %v9716_v62, %v2392_v63 }
 0x1c3   : > { %13536 = vst [vmem:[#allocation42_spill] sm:$0xff] %v9899_v32  ;;  %v3384_v29 = vsel %vm3096_vm9, %v9678_v56, %v3288_v7  ;;  %v7438_v51 = vpop.eup %7437  ;;  %7447 = vpow2.f32 %v2303_v33  ;;  %v2583_v50 = vadd.f32 2.0, %v2487_v19  ;;  %v9921_v0 = vadd.f32 %v1779_v61, %v9605_v8 }
 0x1c4   : > { %13537 = vst [vmem:[#allocation43_spill] sm:$0xff] %v9908_v17  ;;  %3483 = vmatpush.msra.mxu1 %v3384_v29  ;;  %v9918_v18 = vpop.eup %7439  ;;  %v2791_v11 = vmul.f32 %v7438_v51, %v2599_v9  ;;  %v2375_v58 = vadd.f32 2.0, %v9674_v4  ;;  %v2376_v56 = vadd.f32 2.0, %v9680_v1  ;;  %v3175_v41 = vmul.f32 %v9852_v10, %v9634_v31 }
 0x1c5   : > { %13538 = vst [vmem:[#allocation44_spill] sm:$0xff] %v9911_v52  ;;  %7449 = vrcp.f32 %v2583_v50  ;;  %v2584_v33 = vadd.f32 2.0, %v2488_v36  ;;  %v9928_v7 = vpop.eup %7441  ;;  %v2109_v62 = vmin.f32 %v9911_v52, 20.0  ;;  %v9938_v35 = vmul.f32 %v9843_v47, %v9774_v37 }
 0x1c6   : > { %13539 = vst [vmem:[#allocation45_spill] sm:$0xff] %v9921_v0  ;;  %v2887_v63 = vsub.f32 2.0, %v2791_v11  ;;  %v2471_v9 = vmul.f32 %v9674_v4, %v2375_v58  ;;  %v2472_v61 = vmul.f32 %v9680_v1, %v2376_v56  ;;  %v9934_v29 = vpop.eup %7443  ;;  %v9942_v10 = vmul.f32 %v9856_v54, %v9777_v2 }
 0x1c7   : > { %13540 = vst [vmem:[#allocation46_spill] sm:$0xff] %v9934_v29  ;;  %7451 = vpow2.f32 %v2213_v22  ;;  %v9944_v3 = vmul.f32 1.442695, %v2140_v45  ;;  %v2110_v25 = vmin.f32 %v9921_v0, 20.0  ;;  %v3176_v47 = vmul.f32 %v2504_v38, %v9637_v13  ;;  %v1683_v38 = vpop.f32.mrf.mxu0 }
 0x1c8   : > { %v1747_v11 = vpop.f32.mrf.mxu2  ;;  %v7446_v52 = vpop.eup %7445  ;;  %v2983_v4 = vmul.f32 %v7438_v51, %v2887_v63  ;;  %7453 = vrcp.f32 %v2584_v33  ;;  %v2567_v1 = vadd.f32 2.0, %v2471_v9  ;;  %v2568_v29 = vadd.f32 2.0, %v2472_v61 }
 0x1c9   : > { %v9947_v58 = vpop.eup %7447  ;;  %v2792_v56 = vmul.f32 %v7446_v52, %v2600_v21  ;;  %v2551_v16 = vadd.f32 2.0, %v9906_v14  ;;  %v9951_v54 = vmul.f32 1.442695, %v2109_v62  ;;  %v9954_v45 = vadd.f32 %v1747_v11, %v9579_v57  ;;  %v1718_v63 = vpop.f32.mrf.mxu1 }
 0x1ca   : > { %13541 = vst [vmem:[#allocation47_spill] sm:$0xff] %v9947_v58  ;;  %v3271_v22 = vmul.f32 %v3175_v41, %v2983_v4  ;;  %7455 = vrcp.f32 %v2567_v1  ;;  %v3159_v51 = vmul.f32 %v2487_v19, %v9616_v24  ;;  %v2360_v21 = vadd.f32 2.0, %v9694_v60 }
 0x1cb   : > { %13542 = vst [vmem:[#allocation48_spill] sm:$0xff] %v9954_v45  ;;  %v7450_v49 = vpop.eup %7449  ;;  %v2888_v0 = vsub.f32 2.0, %v2792_v56  ;;  %7457 = vrcp.f32 %v2568_v29  ;;  %v9959_v42 = vmul.f32 1.442695, %v2110_v25  ;;  %v3160_v11 = vmul.f32 %v2488_v36, %v9621_v28 }
 0x1cc   : > { %v3367_v41 = vsel %vm3079_vm10, %v9634_v31, %v3271_v22  ;;  %v2775_v62 = vmul.f32 %v7450_v49, %v2583_v50  ;;  %7459 = vrcp.f32 %v2551_v16  ;;  %v9969_v19 = vmul.f32 %v9906_v14, %v9608_v15 }
 0x1cd   : > { %v9965_v4 = vpop.eup %7451  ;;  %3458 = vmatpush.msra.mxu0 %v3367_v41  ;;  %v2984_v56 = vmul.f32 %v7446_v52, %v2888_v0  ;;  %v2456_v17 = vmul.f32 %v9694_v60, %v2360_v21  ;;  %v9975_v50 = vadd.f32 %v1683_v38, %v9575_v34  ;;  %v9978_v36 = vadd.f32 %v1718_v63, %v9575_v34  ;;  %v1782_v60 = vpop.f32.mrf.mxu3 }
 0x1ce   : > { %13543 = vst [vmem:[#allocation49_spill] sm:$0xff] %v9965_v4  ;;  %v7454_v25 = vpop.eup %7453  ;;  %v2871_v32 = vsub.f32 2.0, %v2775_v62  ;;  %v3143_v22 = vmul.f32 %v2471_v9, %v9594_v20  ;;  %v3144_v21 = vmul.f32 %v2472_v61, %v9601_v26 }
 0x1cf   : > { %13544 = vst [vmem:[#allocation50_spill] sm:$0xff] %v9975_v50  ;;  %v3272_v52 = vmul.f32 %v3176_v47, %v2984_v56  ;;  %v2776_v0 = vmul.f32 %v7454_v25, %v2584_v33  ;;  %v2552_v14 = vadd.f32 2.0, %v2456_v17  ;;  %v2155_v62 = vmin.f32 %v9975_v50, 20.0 }
 0x1d0   : > { %13545 = vst [vmem:[#allocation51_spill] sm:$0xff] %v9978_v36  ;;  %v7456_v41 = vpop.eup %7455  ;;  %v2967_v4 = vmul.f32 %v7450_v49, %v2871_v32  ;;  %v2156_v38 = vmin.f32 %v9978_v36, 20.0  ;;  %v9991_v36 = vadd.f32 %v1782_v60, %v9579_v57 }
 0x1d1   : > { %v7458_v31 = vpop.eup %7457  ;;  %v3368_v47 = vsel %vm3080_vm11, %v9637_v13, %v3272_v52  ;;  %v2872_v33 = vsub.f32 2.0, %v2776_v0  ;;  %v2759_v63 = vmul.f32 %v7456_v41, %v2567_v1  ;;  %7461 = vrcp.f32 %v2552_v14 }
 0x1d2   : > { %3484 = vmatpush.msra.mxu1 %v3368_v47  ;;  %v3255_v49 = vmul.f32 %v3159_v51, %v2967_v4  ;;  %v2760_v32 = vmul.f32 %v7458_v31, %v2568_v29  ;;  %v2335_v9 = vmul.f32 1.442695, %v2155_v62  ;;  %v2337_v61 = vmul.f32 1.442695, %v2156_v38  ;;  %v7460_v56 = vpop.eup %7459  ;;  %13546 = vst [vmem:[#allocation52_spill] sm:$0xff] %v9991_v36 }
 0x1d3   : > { %v2968_v58 = vmul.f32 %v7454_v25, %v2872_v33  ;;  %v2855_v50 = vsub.f32 2.0, %v2759_v63  ;;  %v2825_v13 = vmul.f32 %v9918_v18, %v9865_v48  ;;  %v2743_v0 = vmul.f32 %v7460_v56, %v2551_v16 }
 0x1d4   : > { %v3351_v1 = vsel %vm3063_vm12, %v9616_v24, %v3255_v49  ;;  %v2856_v52 = vsub.f32 2.0, %v2760_v32  ;;  %7463 = vpow2.f32 %v2335_v9  ;;  %v3128_v62 = vmul.f32 %v2456_v17, %v9611_v6 }
 0x1d5   : > { %3459 = vmatpush.msra.mxu0 %v3351_v1  ;;  %v3256_v29 = vmul.f32 %v3160_v11, %v2968_v58  ;;  %v2951_v51 = vmul.f32 %v7456_v41, %v2855_v50  ;;  %7465 = vpow2.f32 %v2337_v61  ;;  %v2921_v4 = vsub.f32 2.0, %v2825_v13 }
 0x1d6   : > { %v2952_v25 = vmul.f32 %v7458_v31, %v2856_v52  ;;  %v2839_v60 = vsub.f32 2.0, %v2743_v0  ;;  %v2826_v48 = vmul.f32 %v9928_v7, %v9878_v43  ;;  %v2425_v11 = vadd.f32 2.0, %v9817_v59  ;;  %v1785_v52 = vpop.f32.mrf.mxu3 }
 0x1d7   : > { %v7462_v38 = vpop.eup %7461  ;;  %v3352_v24 = vsel %vm3064_vm13, %v9621_v28, %v3256_v29  ;;  %v3239_v16 = vmul.f32 %v3143_v22, %v2951_v51  ;;  %v3017_v58 = vmul.f32 %v9918_v18, %v2921_v4  ;;  %v2126_v9 = vmin.f32 %v9991_v36, 20.0 }
 0x1d8   : > { %3485 = vmatpush.msra.mxu1 %v3352_v24  ;;  %v3240_v50 = vmul.f32 %v3144_v21, %v2952_v25  ;;  %v2935_v41 = vmul.f32 %v7460_v56, %v2839_v60  ;;  %v2744_v31 = vmul.f32 %v7462_v38, %v2552_v14  ;;  %v2922_v47 = vsub.f32 2.0, %v2826_v48 }
 0x1d9   : > { %v3335_v17 = vsel %vm3047_vm14, %v9594_v20, %v3239_v16  ;;  %v3305_v43 = vmul.f32 %v9938_v35, %v3017_v58  ;;  %v10013_v28 = vmul.f32 %v9817_v59, %v2425_v11  ;;  %v10023_v20 = vld [vmem:[%s13209_s0 + $0x48] sm:$0xff]  ;;  %v2426_v61 = vadd.f32 2.0, %v9828_v30 }
 0x1da   : > { %v7464_v22 = vpop.eup %7463  ;;  %3460 = vmatpush.msra.mxu0 %v3335_v17  ;;  %v3336_v18 = vsel %vm3048_vm15, %v9601_v26, %v3240_v50  ;;  %v3223_v14 = vmul.f32 %v9969_v19, %v2935_v41  ;;  %v2840_v21 = vsub.f32 2.0, %v2744_v31  ;;  %v3018_v33 = vmul.f32 %v9928_v7, %v2922_v47 }
 0x1db   : > { %v7466_v63 = vpop.eup %7465  ;;  %3486 = vmatpush.msra.mxu1 %v3336_v18  ;;  %v2443_v59 = vadd.f32 2.0, %v7464_v22  ;;  %v3401_v35 = vsel %vm3113_vm2, %v9774_v37, %v3305_v43  ;;  %v2617_v49 = vadd.f32 2.0, %v10013_v28  ;;  %v1750_v37 = vpop.f32.mrf.mxu2  ;;  %v13547_v56 = vmin.f32 %v9954_v45, 20.0 }
 0x1dc   : > { %v3319_v26 = vsel %vm3031_vm0, %v9608_v15, %v3223_v14  ;;  %v2936_v19 = vmul.f32 %v7462_v38, %v2840_v21  ;;  %v2444_v32 = vadd.f32 2.0, %v7466_v63  ;;  %3508 = vmatpush.msra.mxu2 %v3401_v35  ;;  %v3306_v7 = vmul.f32 %v9942_v10, %v3018_v33  ;;  %v1808_v14 = vpop.f32.mrf.mxu0 }
 0x1dd   : > { %3461 = vmatpush.msra.mxu0 %v3319_v26  ;;  %7467 = vrcp.f32 %v2617_v49  ;;  %v2275_v13 = vmul.f32 1.442695, %v13547_v56  ;;  %v10038_v15 = vmul.f32 %v7464_v22, %v2443_v59  ;;  %v10045_v29 = vmul.f32 %v9828_v30, %v2426_v61  ;;  %v13548_v56 = vld [vmem:[#allocation23_spill] sm:$0xff] }
 0x1de   : > { %v3224_v1 = vmul.f32 %v3128_v62, %v2936_v19  ;;  %6994 = vmatmul.msk.f32.vlgmr.msra.gmra.mxu0 %vm3436_vm3, %v10023_v20  ;;  %v3402_v10 = vsel %vm3114_vm4, %v9777_v2, %v3306_v7  ;;  %7469 = vpow2.f32 %v9944_v3  ;;  %v10042_v0 = vmul.f32 %v7466_v63, %v2444_v32  ;;  %v10072_v62 = vld [vmem:[%s13209_s0 + $0x50] sm:$0xff]  ;;  %v10106_v7 = vld [vmem:[%s13209_s0 + $0x58] sm:$0xff] }
 0x1df   : > { %3534 = vmatpush.msra.mxu3 %v3402_v10  ;;  %7471 = vpow2.f32 %v9951_v54  ;;  %v10052_v4 = vadd.f32 %v1750_v37, %v9565_v12  ;;  %v2277_v2 = vmul.f32 1.442695, %v2126_v9  ;;  %v2618_v3 = vadd.f32 2.0, %v10045_v29 }
 0x1e0   : > { %v3320_v51 = vsel %vm3032_vm1, %v9611_v6, %v3224_v1  ;;  %7473 = vpow2.f32 %v9959_v42  ;;  %v10057_v25 = vadd.f32 %v1785_v52, %v9565_v12  ;;  %v10062_v30 = vadd.f32 2.0, %v10038_v15 }
 0x1e1   : > { %3487 = vmatpush.msra.mxu1 %v3320_v51  ;;  %7475 = vpow2.f32 %v2275_v13  ;;  %v2409_v6 = vadd.f32 2.0, %v9790_v27  ;;  %v10066_v60 = vadd.f32 2.0, %v10042_v0  ;;  %v2410_v42 = vadd.f32 2.0, %v9796_v23  ;;  %v13549_v51 = vld [vmem:[#allocation24_spill] sm:$0xff] }
 0x1e2   : > { %6997 = vmatmul.msk.f32.vlgmr.msra.gmra.mxu1 %vm3436_vm3, %v10023_v20  ;;  %7477 = vrcp.f32 %v2618_v3  ;;  %v2141_v38 = vmin.f32 %v10052_v4, 20.0  ;;  %v2393_v16 = vadd.f32 2.0, %v9769_v40  ;;  %v2142_v11 = vmin.f32 %v10057_v25, 20.0 }
 0x1e3   : > { %v7468_v54 = vpop.eup %7467  ;;  %v2505_v24 = vmul.f32 %v9790_v27, %v2409_v6  ;;  %7479 = vpow2.f32 %v2277_v2  ;;  %v2506_v50 = vmul.f32 %v9796_v23, %v2410_v42  ;;  %v2394_v41 = vadd.f32 2.0, %v9779_v44  ;;  %v1753_v1 = vpop.f32.mrf.mxu2 }
 0x1e4   : > { %v2809_v48 = vmul.f32 %v7468_v54, %v2617_v49  ;;  %v10077_v58 = vpop.eup %7469  ;;  %7481 = vrcp.f32 %v10062_v30  ;;  %v2489_v43 = vmul.f32 %v9769_v40, %v2393_v16  ;;  %v3193_v23 = vmul.f32 %v10013_v28, %v9731_v5 }
 0x1e5   : > { %v10082_v31 = vpop.eup %7471  ;;  %v2601_v17 = vadd.f32 2.0, %v2505_v24  ;;  %7483 = vrcp.f32 %v10066_v60  ;;  %v2602_v22 = vadd.f32 2.0, %v2506_v50  ;;  %v2490_v18 = vmul.f32 %v9779_v44, %v2394_v41  ;;  %v1843_v44 = vpop.f32.mrf.mxu1 }
 0x1e6   : > { %v2905_v47 = vsub.f32 2.0, %v2809_v48  ;;  %6995 = vmatmul.msk.f32.gmra.mxu0 %vm3436_vm3, %v10072_v62  ;;  %v10088_v27 = vpop.eup %7473  ;;  %v2307_v63 = vmul.f32 1.442695, %v2141_v38  ;;  %v2585_v40 = vadd.f32 2.0, %v2489_v43  ;;  %v2309_v35 = vmul.f32 1.442695, %v2142_v11  ;;  %v1788_v11 = vpop.f32.mrf.mxu3 }
 0x1e7   : > { %v10094_v21 = vpop.eup %7475  ;;  %7485 = vrcp.f32 %v2601_v17  ;;  %v2586_v49 = vadd.f32 2.0, %v2490_v18  ;;  %v2377_v32 = vadd.f32 2.0, %v9746_v39  ;;  %v2378_v13 = vadd.f32 2.0, %v13548_v56  ;;  %v13551_v48 = vld [vmem:[#allocation30_spill] sm:$0xff] }
 0x1e8   : > { %v3001_v33 = vmul.f32 %v7468_v54, %v2905_v47  ;;  %v7478_v59 = vpop.eup %7477  ;;  %7487 = vrcp.f32 %v2602_v22  ;;  %v3194_v52 = vmul.f32 %v10045_v29, %v9741_v46  ;;  %v3177_v2 = vmul.f32 %v2505_v24, %v13549_v51 }
 0x1e9   : > { %v2810_v19 = vmul.f32 %v7478_v59, %v2618_v3  ;;  %7489 = vrcp.f32 %v2585_v40  ;;  %v10098_v28 = vpop.eup %7479  ;;  %v10118_v3 = vmul.f32 %v9746_v39, %v2377_v32  ;;  %vm3081_vm7 = vcmp.gt.f32.partialorder %v13549_v51, 20.0  ;;  %v13552_v39 = vld [vmem:[#allocation9_spill] sm:$0xff]  ;;  %v1811_v32 = vpop.f32.mrf.mxu0 }
 0x1ea   : > { %v3289_v26 = vmul.f32 %v3193_v23, %v3001_v33  ;;  %6998 = vmatmul.msk.f32.gmra.mxu1 %vm3436_vm3, %v10072_v62  ;;  %7491 = vrcp.f32 %v2586_v49  ;;  %v10108_v9 = vpop.eup %7481  ;;  %v3161_v38 = vmul.f32 %v2489_v43, %v13551_v48  ;;  %v10124_v16 = vmul.f32 %v13548_v56, %v2378_v13  ;;  %v13553_v23 = vld [vmem:[#allocation21_spill] sm:$0xff] }
 0x1eb   : > { %v2906_v37 = vsub.f32 2.0, %v2810_v19  ;;  %7493 = vpow2.f32 %v2307_v63  ;;  %v10112_v10 = vpop.eup %7483  ;;  %v3162_v41 = vmul.f32 %v2490_v18, %v13552_v39  ;;  %v2569_v47 = vadd.f32 2.0, %v10118_v3 }
 0x1ec   : > { %v3385_v61 = vsel %vm3097_vm5, %v9731_v5, %v3289_v26  ;;  %7495 = vpow2.f32 %v2309_v35  ;;  %v13550_v5 = vld [vmem:[#allocation26_spill] sm:$0xff]  ;;  %v2361_v33 = vadd.f32 2.0, %v13553_v23  ;;  %vm3065_vm10 = vcmp.gt.f32.partialorder %v13551_v48, 20.0 }
 0x1ed   : > { %3509 = vmatpush.msra.mxu2 %v3385_v61  ;;  %v7486_v6 = vpop.eup %7485  ;;  %v3002_v54 = vmul.f32 %v7478_v59, %v2906_v37  ;;  %v3178_v42 = vmul.f32 %v2506_v50, %v13550_v5  ;;  %vm3082_vm9 = vcmp.gt.f32.partialorder %v13550_v5, 20.0  ;;  %v10134_v59 = vadd.f32 %v1808_v14, %v9591_v55 }
 0x1ee   : > { %6996 = vmatmul.msk.f32.gmra.mxu0 %vm3436_vm3, %v10106_v7  ;;  %v7488_v29 = vpop.eup %7487  ;;  %v2793_v24 = vmul.f32 %v7486_v6, %v2601_v17  ;;  %v2570_v35 = vadd.f32 2.0, %v10124_v16  ;;  %vm3066_vm11 = vcmp.gt.f32.partialorder %v13552_v39, 20.0  ;;  %v10139_v18 = vadd.f32 %v1843_v44, %v9591_v55 }
 0x1ef   : > { %v7490_v50 = vpop.eup %7489  ;;  %v3290_v63 = vmul.f32 %v3194_v52, %v3002_v54  ;;  %v2794_v43 = vmul.f32 %v7488_v29, %v2602_v22  ;;  %13554 = vst [vmem:[#allocation23_spill] sm:$0xff] %v10134_v59  ;;  %7497 = vrcp.f32 %v2569_v47  ;;  %v10151_v13 = vmul.f32 %v13553_v23, %v2361_v33  ;;  %v13556_v52 = vld [vmem:[#allocation19_spill] sm:$0xff]  ;;  %v1878_v33 = vpop.f32.mrf.mxu2 }
 0x1f0   : > { %v7492_v26 = vpop.eup %7491  ;;  %v2889_v17 = vsub.f32 2.0, %v2793_v24  ;;  %v2777_v19 = vmul.f32 %v7490_v50, %v2585_v40  ;;  %13555 = vst [vmem:[#allocation24_spill] sm:$0xff] %v10139_v18  ;;  %7499 = vrcp.f32 %v2570_v35  ;;  %v2362_v54 = vadd.f32 2.0, %v13556_v52 }
 0x1f1   : > { %v10141_v61 = vpop.eup %7493  ;;  %v3386_v22 = vsel %vm3098_vm6, %v9741_v46, %v3290_v63  ;;  %v2890_v14 = vsub.f32 2.0, %v2794_v43  ;;  %v2778_v37 = vmul.f32 %v7492_v26, %v2586_v49  ;;  %v2079_v46 = vmin.f32 %v10134_v59, 20.0 }
 0x1f2   : > { %6999 = vmatmul.msk.f32.gmra.mxu1 %vm3436_vm3, %v10106_v7  ;;  %v10148_v40 = vpop.eup %7495  ;;  %3535 = vmatpush.msra.mxu3 %v3386_v22  ;;  %v2985_v56 = vmul.f32 %v7486_v6, %v2889_v17  ;;  %v2873_v44 = vsub.f32 2.0, %v2777_v19  ;;  %v10156_v49 = vadd.f32 %v1753_v1, %v9575_v34  ;;  %v2080_v45 = vmin.f32 %v10139_v18, 20.0  ;;  %v1846_v6 = vpop.f32.mrf.mxu1  ;;  %v13593_v18 = vld [vmem:[#allocation34_spill] sm:$0xff] }
 0x1f3   : > { %v2986_v24 = vmul.f32 %v7488_v29, %v2890_v14  ;;  %v2874_v36 = vsub.f32 2.0, %v2778_v37  ;;  %v2553_v22 = vadd.f32 2.0, %v10151_v13  ;;  %v10161_v23 = vmul.f32 %v13556_v52, %v2362_v54  ;;  %v1913_v52 = vpop.f32.mrf.mxu3 }
 0x1f4   : > { %v3273_v63 = vmul.f32 %v3177_v2, %v2985_v56  ;;  %v2969_v43 = vmul.f32 %v7490_v50, %v2873_v44  ;;  %v2157_v29 = vmin.f32 %v10156_v49, 20.0  ;;  %v13557_v50 = vld [vmem:[#allocation8_spill] sm:$0xff]  ;;  %v10169_v37 = vadd.f32 %v1788_v11, %v9575_v34 }
 0x1f5   : > { %v3274_v17 = vmul.f32 %v3178_v42, %v2986_v24  ;;  %v2970_v19 = vmul.f32 %v7492_v26, %v2874_v36  ;;  %v7498_v14 = vpop.eup %7497  ;;  %vm3049_vm12 = vcmp.gt.f32.partialorder %v13557_v50, 20.0  ;;  %7501 = vrcp.f32 %v2553_v22 }
 0x1f6   : > { %v3369_v1 = vsel %vm3081_vm7, %v13549_v51, %v3273_v63  ;;  %v3257_v2 = vmul.f32 %v3161_v38, %v2969_v43  ;;  %v7500_v42 = vpop.eup %7499  ;;  %v2761_v56 = vmul.f32 %v7498_v14, %v2569_v47  ;;  %v2554_v44 = vadd.f32 2.0, %v10161_v23  ;;  %v13558_v47 = vld [vmem:[#allocation27_spill] sm:$0xff] }
 0x1f7   : > { %3510 = vmatpush.msra.mxu2 %v3369_v1  ;;  %v3370_v36 = vsel %vm3082_vm9, %v13550_v5, %v3274_v17  ;;  %v3258_v26 = vmul.f32 %v3162_v41, %v2970_v19  ;;  %v2183_v38 = vmul.f32 1.442695, %v2079_v46  ;;  %v2762_v54 = vmul.f32 %v7500_v42, %v2570_v35 }
 0x1f8   : > { %3536 = vmatpush.msra.mxu3 %v3370_v36  ;;  %v3353_v51 = vsel %vm3065_vm10, %v13551_v48, %v3257_v2  ;;  %v2339_v11 = vmul.f32 1.442695, %v2157_v29  ;;  %v2857_v63 = vsub.f32 2.0, %v2761_v56  ;;  %7503 = vrcp.f32 %v2554_v44  ;;  %v1814_v48 = vpop.f32.mrf.mxu0 }
 0x1f9   : > { %3511 = vmatpush.msra.mxu2 %v3353_v51  ;;  %v3354_v24 = vsel %vm3066_vm11, %v13552_v39, %v3258_v26  ;;  %v2158_v5 = vmin.f32 %v10169_v37, 20.0  ;;  %v2858_v41 = vsub.f32 2.0, %v2762_v54  ;;  %vm3050_vm13 = vcmp.gt.f32.partialorder %v13558_v47, 20.0  ;;  %v1881_v54 = vpop.f32.mrf.mxu2 }
 0x1fa   : > { %3537 = vmatpush.msra.mxu3 %v3354_v24  ;;  %7505 = vpow2.f32 %v2339_v11  ;;  %v10184_v43 = vadd.f32 %v1811_v32, %v9589_v53  ;;  %v2953_v35 = vmul.f32 %v7498_v14, %v2857_v63  ;;  %v3145_v46 = vmul.f32 %v10118_v3, %v13557_v50  ;;  %v1849_v51 = vpop.f32.mrf.mxu1 }
 0x1fb   : > { %v2341_v17 = vmul.f32 1.442695, %v2158_v5  ;;  %v10189_v39 = vadd.f32 %v1846_v6, %v9589_v53  ;;  %v7502_v19 = vpop.eup %7501  ;;  %v2954_v29 = vmul.f32 %v7500_v42, %v2858_v41  ;;  %v3146_v1 = vmul.f32 %v10124_v16, %v13558_v47  ;;  %v13563_v6 = vld [vmem:[#allocation11_spill] sm:$0xff] }
 0x1fc   : > { %13559 = vst [vmem:[#allocation26_spill] sm:$0xff] %v10184_v43  ;;  %v10194_v2 = vadd.f32 %v1878_v33, %v9591_v55  ;;  %v10197_v32 = vadd.f32 %v1913_v52, %v9591_v55  ;;  %v3241_v36 = vmul.f32 %v3145_v46, %v2953_v35  ;;  %v2745_v14 = vmul.f32 %v7502_v19, %v2553_v22  ;;  %v1916_v35 = vpop.f32.mrf.mxu3 }
 0x1fd   : > { %13560 = vst [vmem:[#allocation30_spill] sm:$0xff] %v10189_v39  ;;  %7507 = vpow2.f32 %v2341_v17  ;;  %v2095_v3 = vmin.f32 %v10184_v43, 20.0  ;;  %v2185_v26 = vmul.f32 1.442695, %v2080_v45  ;;  %v3242_v56 = vmul.f32 %v3146_v1, %v2954_v29 }
 0x1fe   : > { %13561 = vst [vmem:[#allocation9_spill] sm:$0xff] %v10194_v2  ;;  %vm3033_vm14 = vcmp.gt.f32.partialorder %v13563_v6, 20.0  ;;  %v10202_v42 = vadd.f32 %v1814_v48, %v9605_v8  ;;  %v7504_v16 = vpop.eup %7503  ;;  %7509 = vpow2.f32 %v2183_v38  ;;  %v3337_v33 = vsel %vm3049_vm12, %v13557_v50, %v3241_v36 }
 0x1ff   : > { %13562 = vst [vmem:[#allocation21_spill] sm:$0xff] %v10197_v32  ;;  %v2841_v52 = vsub.f32 2.0, %v2745_v14  ;;  %v2096_v22 = vmin.f32 %v10189_v39, 20.0  ;;  %3512 = vmatpush.msra.mxu2 %v3337_v33  ;;  %v3338_v45 = vsel %vm3050_vm13, %v13558_v47, %v3242_v56  ;;  %v3129_v24 = vmul.f32 %v10151_v13, %v13563_v6  ;;  %v13567_v14 = vld [vmem:[#allocation13_spill] sm:$0xff] }
 0x200   : > { %13564 = vst [vmem:[#allocation19_spill] sm:$0xff] %v10202_v42  ;;  %v7506_v11 = vpop.eup %7505  ;;  %v2746_v63 = vmul.f32 %v7504_v16, %v2554_v44  ;;  %v2081_v38 = vmin.f32 %v10194_v2, 20.0  ;;  %3538 = vmatpush.msra.mxu3 %v3338_v45  ;;  %v2215_v50 = vmul.f32 1.442695, %v2095_v3  ;;  %v2082_v48 = vmin.f32 %v10197_v32, 20.0  ;;  %v13595_v39 = vld [vmem:[#allocation33_spill] sm:$0xff] }
 0x201   : > { %v2937_v5 = vmul.f32 %v7502_v19, %v2841_v52  ;;  %v2445_v41 = vadd.f32 2.0, %v7506_v11  ;;  %v2111_v17 = vmin.f32 %v10202_v42, 20.0  ;;  %v10217_v29 = vadd.f32 %v1849_v51, %v9605_v8  ;;  %v1817_v52 = vpop.f32.mrf.mxu0  ;;  %v13597_v42 = vld [vmem:[#allocation29_spill] sm:$0xff] }
 0x202   : > { %v2842_v46 = vsub.f32 2.0, %v2746_v63  ;;  %v10220_v47 = vadd.f32 %v1881_v54, %v9589_v53  ;;  %7511 = vpow2.f32 %v2185_v26  ;;  %v2217_v19 = vmul.f32 1.442695, %v2096_v22 }
 0x203   : > { %13565 = vst [vmem:[#allocation8_spill] sm:$0xff] %v10217_v29  ;;  %v7508_v13 = vpop.eup %7507  ;;  %v3225_v44 = vmul.f32 %v3129_v24, %v2937_v5  ;;  %v10222_v1 = vmul.f32 %v7506_v11, %v2445_v41  ;;  %v3130_v3 = vmul.f32 %v10161_v23, %v13567_v14  ;;  %v2187_v33 = vmul.f32 1.442695, %v2081_v38  ;;  %v1852_v5 = vpop.f32.mrf.mxu1 }
 0x204   : > { %13566 = vst [vmem:[#allocation27_spill] sm:$0xff] %v10220_v47  ;;  %v2938_v36 = vmul.f32 %v7504_v16, %v2842_v46  ;;  %v2446_v56 = vadd.f32 2.0, %v7508_v13  ;;  %v10226_v45 = vpop.eup %7509  ;;  %v2189_v54 = vmul.f32 1.442695, %v2082_v48  ;;  %v2112_v26 = vmin.f32 %v10217_v29, 20.0 }
 0x205   : > { %13568 = vst [vmem:[#allocation11_spill] sm:$0xff] %v10226_v45  ;;  %v3321_v51 = vsel %vm3033_vm14, %v13563_v6, %v3225_v44  ;;  %v10233_v11 = vadd.f32 %v1916_v35, %v9589_v53  ;;  %7513 = vpow2.f32 %v2215_v50  ;;  %v2247_v22 = vmul.f32 1.442695, %v2111_v17  ;;  %v1884_v35 = vpop.f32.mrf.mxu2  ;;  %v13599_v45 = vld [vmem:[#allocation35_spill] sm:$0xff] }
 0x206   : > { %3513 = vmatpush.msra.mxu2 %v3321_v51  ;;  %v3226_v16 = vmul.f32 %v3130_v3, %v2938_v36  ;;  %v2097_v23 = vmin.f32 %v10220_v47, 20.0  ;;  %vm3034_vm15 = vcmp.gt.f32.partialorder %v13567_v14, 20.0  ;;  %v10240_v24 = vadd.f32 2.0, %v10222_v1 }
 0x207   : > { %13569 = vst [vmem:[#allocation13_spill] sm:$0xff] %v10233_v11  ;;  %7000 = vmatmul.msk.f32.vlgmr.msra.gmra.mxu2 %vm3436_vm3, %v10023_v20  ;;  %7515 = vpow2.f32 %v2217_v19  ;;  %v10243_v6 = vadd.f32 %v1817_v52, %v9579_v57  ;;  %v10246_v38 = vmul.f32 %v7508_v13, %v2446_v56  ;;  %v2249_v50 = vmul.f32 1.442695, %v2112_v26  ;;  %v1919_v19 = vpop.f32.mrf.mxu3  ;;  %v13577_v26 = vld [vmem:[#allocation47_spill] sm:$0xff] }
 0x208   : > { %v3322_v63 = vsel %vm3034_vm15, %v13567_v14, %v3226_v16  ;;  %7517 = vpow2.f32 %v2187_v33  ;;  %v10248_v41 = vpop.eup %7511  ;;  %v2098_v48 = vmin.f32 %v10233_v11, 20.0  ;;  %v2219_v46 = vmul.f32 1.442695, %v2097_v23 }
 0x209   : > { %13570 = vst [vmem:[#allocation53_spill] sm:$0xff] %v10243_v6  ;;  %3539 = vmatpush.msra.mxu3 %v3322_v63  ;;  %7519 = vpow2.f32 %v2189_v54  ;;  %v2127_v17 = vmin.f32 %v10243_v6, 20.0  ;;  %v2827_v13 = vmul.f32 %v10108_v9, %v10062_v30  ;;  %v10258_v44 = vadd.f32 %v1852_v5, %v9579_v57  ;;  %v13576_v30 = vld [vmem:[#allocation50_spill] sm:$0xff] }
 0x20a   : > { %13571 = vst [vmem:[#allocation54_spill] sm:$0xff] %v10248_v41  ;;  %7003 = vmatmul.msk.f32.vlgmr.msra.gmra.mxu3 %vm3436_vm3, %v10023_v20  ;;  %7521 = vpow2.f32 %v2247_v22  ;;  %v10263_v14 = vadd.f32 2.0, %v10246_v38  ;;  %v10266_v3 = vadd.f32 %v1884_v35, %v9605_v8  ;;  %v2828_v33 = vmul.f32 %v10112_v10, %v10066_v60 }
 0x20b   : > { %7523 = vrcp.f32 %v10240_v24  ;;  %13572 = vst [vmem:[#allocation55_spill] sm:$0xff] %v10258_v44  ;;  %v10260_v36 = vpop.eup %7513  ;;  %v2923_v56 = vsub.f32 2.0, %v2827_v13  ;;  %v3211_v51 = vmul.f32 %v10038_v15, %v13576_v30  ;;  %v2221_v54 = vmul.f32 1.442695, %v2098_v48 }
 0x20c   : > { %13573 = vst [vmem:[#allocation56_spill] sm:$0xff] %v10260_v36  ;;  %7525 = vpow2.f32 %v2249_v50  ;;  %v2427_v16 = vadd.f32 2.0, %v13577_v26  ;;  %v2279_v23 = vmul.f32 1.442695, %v2127_v17  ;;  %v10278_v63 = vadd.f32 %v1919_v19, %v9605_v8 }
 0x20d   : > { %13574 = vst [vmem:[#allocation57_spill] sm:$0xff] %v10266_v3  ;;  %v10270_v52 = vpop.eup %7515  ;;  %7527 = vpow2.f32 %v2219_v46  ;;  %v3019_v5 = vmul.f32 %v10108_v9, %v2923_v56  ;;  %v2128_v15 = vmin.f32 %v10258_v44, 20.0  ;;  %v2924_v60 = vsub.f32 2.0, %v2828_v33  ;;  %v13582_v46 = vld [vmem:[#allocation51_spill] sm:$0xff]  ;;  %v1887_v59 = vpop.f32.mrf.mxu2 }
 0x20e   : > { %13575 = vst [vmem:[#allocation58_spill] sm:$0xff] %v10270_v52  ;;  %v10275_v22 = vpop.eup %7517  ;;  %v2523_v50 = vmul.f32 %v13577_v26, %v2427_v16  ;;  %v2428_v48 = vadd.f32 2.0, %v10077_v58  ;;  %v3212_v17 = vmul.f32 %v10042_v0, %v13582_v46  ;;  %7529 = vrcp.f32 %v10263_v14  ;;  %v1820_v16 = vpop.f32.mrf.mxu0 }
 0x20f   : > { %13578 = vst [vmem:[#allocation50_spill] sm:$0xff] %v10275_v22  ;;  %v10281_v35 = vpop.eup %7519  ;;  %7001 = vmatmul.msk.f32.gmra.mxu2 %vm3436_vm3, %v10072_v62  ;;  %v2113_v9 = vmin.f32 %v10266_v3, 20.0  ;;  %v3307_v19 = vmul.f32 %v3211_v51, %v3019_v5  ;;  %7531 = vpow2.f32 %v2221_v54  ;;  %vm3115_vm0 = vcmp.gt.f32.partialorder %v13576_v30, 20.0  ;;  %v1855_v51 = vpop.f32.mrf.mxu1 }
 0x210   : > { %13579 = vst [vmem:[#allocation47_spill] sm:$0xff] %v10278_v63  ;;  %v10288_v13 = vpop.eup %7521  ;;  %v3020_v33 = vmul.f32 %v10112_v10, %v2924_v60  ;;  %v2619_v26 = vadd.f32 2.0, %v2523_v50  ;;  %7533 = vpow2.f32 %v2279_v23  ;;  %v2114_v0 = vmin.f32 %v10278_v63, 20.0  ;;  %v13584_v10 = vld [vmem:[#allocation42_spill] sm:$0xff] }
 0x211   : > { %13580 = vst [vmem:[#allocation59_spill] sm:$0xff] %v10281_v35  ;;  %v10294_v56 = vpop.eup %7523  ;;  %v3403_v32 = vsel %vm3115_vm0, %v13576_v30, %v3307_v19  ;;  %v2524_v2 = vmul.f32 %v10077_v58, %v2428_v48  ;;  %v2281_v54 = vmul.f32 1.442695, %v2128_v15  ;;  %v2411_v60 = vadd.f32 2.0, %v13584_v10  ;;  %v13588_v15 = vld [vmem:[#allocation43_spill] sm:$0xff]  ;;  %v13590_v35 = vld [vmem:[#allocation38_spill] sm:$0xff] }
 0x212   : > { %13581 = vst [vmem:[#allocation60_spill] sm:$0xff] %v10288_v13  ;;  %7004 = vmatmul.msk.f32.gmra.mxu3 %vm3436_vm3, %v10072_v62  ;;  %v10303_v5 = vpop.eup %7525  ;;  %3560 = vmatpush.msrb.mxu0 %v3403_v32  ;;  %v3308_v11 = vmul.f32 %v3212_v17, %v3020_v33  ;;  %7535 = vrcp.f32 %v2619_v26  ;;  %v2251_v3 = vmul.f32 1.442695, %v2113_v9  ;;  %vm3116_vm1 = vcmp.gt.f32.partialorder %v13582_v46, 20.0  ;;  %v13589_v9 = vld [vmem:[#allocation37_spill] sm:$0xff] }
 0x213   : > { %13583 = vst [vmem:[#allocation51_spill] sm:$0xff] %v10303_v5  ;;  %v10306_v47 = vpop.eup %7527  ;;  %v2620_v23 = vadd.f32 2.0, %v2524_v2  ;;  %v10310_v63 = vadd.f32 %v1820_v16, %v9565_v12  ;;  %v10314_v30 = vadd.f32 %v1855_v51, %v9565_v12  ;;  %v2507_v32 = vmul.f32 %v13584_v10, %v2411_v60 }
 0x214   : > { %13585 = vst [vmem:[#allocation42_spill] sm:$0xff] %v10306_v47  ;;  %v3404_v58 = vsel %vm3116_vm1, %v13582_v46, %v3308_v11  ;;  %v2412_v48 = vadd.f32 2.0, %v13588_v15  ;;  %v10318_v17 = vpop.eup %7529  ;;  %v2253_v19 = vmul.f32 1.442695, %v2114_v0  ;;  %v2395_v33 = vadd.f32 2.0, %v13589_v9 }
 0x215   : > { %13586 = vst [vmem:[#allocation61_spill] sm:$0xff] %v10310_v63  ;;  %3586 = vmatpush.msrb.mxu1 %v3404_v58  ;;  %7537 = vrcp.f32 %v2620_v23  ;;  %v2396_v22 = vadd.f32 2.0, %v13590_v35  ;;  %v10322_v16 = vpop.eup %7531  ;;  %v10326_v11 = vmul.f32 %v10222_v1, %v10156_v49  ;;  %v2603_v46 = vadd.f32 2.0, %v2507_v32 }
 0x216   : > { %13587 = vst [vmem:[#allocation62_spill] sm:$0xff] %v10314_v30  ;;  %7539 = vpow2.f32 %v2281_v54  ;;  %v2508_v51 = vmul.f32 %v13588_v15, %v2412_v48  ;;  %v10331_v0 = vpop.eup %7533  ;;  %v10335_v10 = vmul.f32 %v10246_v38, %v10169_v37  ;;  %v2491_v60 = vmul.f32 %v13589_v9, %v2395_v33  ;;  %v13594_v9 = vld [vmem:[#allocation40_spill] sm:$0xff] }
 0x217   : > { %13591 = vst [vmem:[#allocation43_spill] sm:$0xff] %v10322_v16  ;;  %7002 = vmatmul.msk.f32.gmra.mxu2 %vm3436_vm3, %v10106_v7  ;;  %7541 = vpow2.f32 %v2251_v3  ;;  %v2492_v58 = vmul.f32 %v13590_v35, %v2396_v22  ;;  %v2143_v16 = vmin.f32 %v10310_v63, 20.0  ;;  %v2144_v47 = vmin.f32 %v10314_v30, 20.0  ;;  %v13600_v30 = vld [vmem:[#allocation31_spill] sm:$0xff] }
 0x218   : > { %13592 = vst [vmem:[#allocation37_spill] sm:$0xff] %v10331_v0  ;;  %v7536_v1 = vpop.eup %7535  ;;  %7543 = vrcp.f32 %v2603_v46  ;;  %v2604_v54 = vadd.f32 2.0, %v2508_v51  ;;  %v2587_v48 = vadd.f32 2.0, %v2491_v60  ;;  %vm3099_vm2 = vcmp.gt.f32.partialorder %v13593_v18, 20.0 }
 0x219   : > { %7545 = vpow2.f32 %v2253_v19  ;;  %v2811_v15 = vmul.f32 %v7536_v1, %v2619_v26  ;;  %v2588_v38 = vadd.f32 2.0, %v2492_v58  ;;  %v3195_v3 = vmul.f32 %v2523_v50, %v13593_v18 }
 0x21a   : > { %7005 = vmatmul.msk.f32.gmra.mxu3 %vm3436_vm3, %v10106_v7  ;;  %vm3100_vm4 = vcmp.gt.f32.partialorder %v13594_v9, 20.0  ;;  %7547 = vrcp.f32 %v2604_v54  ;;  %v3196_v33 = vmul.f32 %v2524_v2, %v13594_v9  ;;  %v2379_v43 = vadd.f32 2.0, %v13595_v39 }
 0x21b   : > { %v7538_v22 = vpop.eup %7537  ;;  %v2907_v35 = vsub.f32 2.0, %v2811_v15  ;;  %7549 = vrcp.f32 %v2587_v48  ;;  %v10350_v19 = vmul.f32 1.442695, %v2143_v16  ;;  %v10352_v29 = vmul.f32 1.442695, %v2144_v47  ;;  %v13601_v16 = vld [vmem:[#allocation28_spill] sm:$0xff] }
 0x21c   : > { %v10348_v41 = vpop.eup %7539  ;;  %v2812_v26 = vmul.f32 %v7538_v22, %v2620_v23  ;;  %vm3083_vm5 = vcmp.gt.f32.partialorder %v13597_v42, 20.0  ;;  %7551 = vrcp.f32 %v2588_v38  ;;  %v3179_v15 = vmul.f32 %v2507_v32, %v13597_v42  ;;  %v13603_v32 = vld [vmem:[#allocation15_spill] sm:$0xff] }
 0x21d   : > { %13596 = vst [vmem:[#allocation38_spill] sm:$0xff] %v10348_v41  ;;  %v10355_v50 = vpop.eup %7541  ;;  %v3003_v44 = vmul.f32 %v7536_v1, %v2907_v35  ;;  %v2475_v2 = vmul.f32 %v13595_v39, %v2379_v43  ;;  %v2380_v52 = vadd.f32 2.0, %v13599_v45  ;;  %vm3084_vm6 = vcmp.gt.f32.partialorder %v13600_v30, 20.0  ;;  %v1922_v43 = vpop.f32.mrf.mxu3 }
 0x21e   : > { %13598 = vst [vmem:[#allocation34_spill] sm:$0xff] %v10355_v50  ;;  %v7544_v6 = vpop.eup %7543  ;;  %v2908_v36 = vsub.f32 2.0, %v2812_v26  ;;  %v3180_v23 = vmul.f32 %v2508_v51, %v13600_v30  ;;  %v10363_v47 = vadd.f32 %v1887_v59, %v9579_v57  ;;  %v2363_v63 = vadd.f32 2.0, %v13601_v16  ;;  %v13604_v26 = vld [vmem:[#allocation22_spill] sm:$0xff] }
 0x21f   : > { %v10366_v5 = vpop.eup %7545  ;;  %v3291_v1 = vmul.f32 %v3195_v3, %v3003_v44  ;;  %v2795_v35 = vmul.f32 %v7544_v6, %v2603_v46  ;;  %v3163_v50 = vmul.f32 %v2491_v60, %v13603_v32  ;;  %v2571_v39 = vadd.f32 2.0, %v2475_v2 }
 0x220   : > { %13602 = vst [vmem:[#allocation40_spill] sm:$0xff] %v10366_v5  ;;  %v7548_v13 = vpop.eup %7547  ;;  %v3004_v41 = vmul.f32 %v7538_v22, %v2908_v36  ;;  %v3164_v0 = vmul.f32 %v2492_v58, %v13604_v26  ;;  %v2476_v8 = vmul.f32 %v13599_v45, %v2380_v52  ;;  %v10372_v51 = vmul.f32 %v13601_v16, %v2363_v63 }
 0x221   : > { %v7550_v59 = vpop.eup %7549  ;;  %v3387_v5 = vsel %vm3099_vm2, %v13593_v18, %v3291_v1  ;;  %v2891_v44 = vsub.f32 2.0, %v2795_v35  ;;  %v2796_v46 = vmul.f32 %v7548_v13, %v2604_v54  ;;  %vm3067_vm7 = vcmp.gt.f32.partialorder %v13603_v32, 20.0  ;;  %v1858_v35 = vpop.f32.mrf.mxu1 }
 0x222   : > { %7553 = vrcp.f32 %v2571_v39  ;;  %v7552_v60 = vpop.eup %7551  ;;  %3561 = vmatpush.msrb.mxu0 %v3387_v5  ;;  %v3292_v36 = vmul.f32 %v3196_v33, %v3004_v41  ;;  %v2779_v3 = vmul.f32 %v7550_v59, %v2587_v48  ;;  %vm3068_vm9 = vcmp.gt.f32.partialorder %v13604_v26, 20.0  ;;  %v1823_v41 = vpop.f32.mrf.mxu0 }
 0x223   : > { %v10380_v45 = vadd.f32 %v1922_v43, %v9579_v57  ;;  %v2572_v52 = vadd.f32 2.0, %v2476_v8  ;;  %v2987_v63 = vmul.f32 %v7544_v6, %v2891_v44  ;;  %v2892_v58 = vsub.f32 2.0, %v2796_v46  ;;  %v13605_v43 = vld [vmem:[#allocation14_spill] sm:$0xff]  ;;  %v13606_v46 = vld [vmem:[#allocation16_spill] sm:$0xff] }
 0x224   : > { %v2780_v22 = vmul.f32 %v7552_v60, %v2588_v38  ;;  %v2555_v18 = vadd.f32 2.0, %v10372_v51  ;;  %v3388_v54 = vsel %vm3100_vm4, %v13594_v9, %v3292_v36  ;;  %v2875_v16 = vsub.f32 2.0, %v2779_v3 }
 0x225   : > { %v2129_v5 = vmin.f32 %v10363_v47, 20.0  ;;  %7555 = vrcp.f32 %v2572_v52  ;;  %3587 = vmatpush.msrb.mxu1 %v3388_v54  ;;  %v3275_v48 = vmul.f32 %v3179_v15, %v2987_v63  ;;  %v2988_v33 = vmul.f32 %v7548_v13, %v2892_v58 }
 0x226   : > { %v2876_v1 = vsub.f32 2.0, %v2780_v22  ;;  %7557 = vrcp.f32 %v2555_v18  ;;  %v2971_v6 = vmul.f32 %v7550_v59, %v2875_v16  ;;  %v2130_v38 = vmin.f32 %v10380_v45, 20.0 }
 0x227   : > { %v3147_v44 = vmul.f32 %v2475_v2, %v13605_v43  ;;  %v2364_v57 = vadd.f32 2.0, %v13606_v46  ;;  %v3371_v9 = vsel %vm3083_vm5, %v13597_v42, %v3275_v48  ;;  %v3276_v36 = vmul.f32 %v3180_v23, %v2988_v33 }
 0x228   : > { %v7554_v53 = vpop.eup %7553  ;;  %v2972_v3 = vmul.f32 %v7552_v60, %v2876_v1  ;;  %vm3051_vm10 = vcmp.gt.f32.partialorder %v13605_v43, 20.0  ;;  %v10395_v13 = vadd.f32 %v1823_v41, %v9575_v34  ;;  %3562 = vmatpush.msrb.mxu0 %v3371_v9  ;;  %v3259_v15 = vmul.f32 %v3163_v50, %v2971_v6  ;;  %v13608_v6 = vld [vmem:[#allocation18_spill] sm:$0xff] }
 0x229   : > { %v2763_v59 = vmul.f32 %v7554_v53, %v2571_v39  ;;  %v10398_v63 = vmul.f32 %v13606_v46, %v2364_v57  ;;  %v10401_v2 = vadd.f32 %v1858_v35, %v9575_v34  ;;  %v3372_v42 = vsel %vm3084_vm6, %v13600_v30, %v3276_v36  ;;  %v13607_v39 = vld [vmem:[#allocation25_spill] sm:$0xff] }
 0x22a   : > { %v3260_v23 = vmul.f32 %v3164_v0, %v2972_v3  ;;  %v2159_v60 = vmin.f32 %v10395_v13, 20.0  ;;  %v2829_v58 = vmul.f32 %v10294_v56, %v10240_v24  ;;  %3588 = vmatpush.msrb.mxu1 %v3372_v42  ;;  %v3355_v57 = vsel %vm3067_vm7, %v13603_v32, %v3259_v15 }
 0x22b   : > { %v7556_v22 = vpop.eup %7555  ;;  %v2859_v50 = vsub.f32 2.0, %v2763_v59  ;;  %v3148_v54 = vmul.f32 %v2476_v8, %v13607_v39  ;;  %v2556_v16 = vadd.f32 2.0, %v10398_v63  ;;  %3563 = vmatpush.msrb.mxu0 %v3355_v57  ;;  %v2160_v24 = vmin.f32 %v10401_v2, 20.0 }
 0x22c   : > { %v7558_v41 = vpop.eup %7557  ;;  %v3356_v30 = vsel %vm3068_vm9, %v13604_v26, %v3260_v23  ;;  %v2764_v0 = vmul.f32 %v7556_v22, %v2572_v52  ;;  %v2343_v48 = vmul.f32 1.442695, %v2159_v60  ;;  %v2925_v32 = vsub.f32 2.0, %v2829_v58 }
 0x22d   : > { %3589 = vmatpush.msrb.mxu1 %v3356_v30  ;;  %v2955_v33 = vmul.f32 %v7554_v53, %v2859_v50  ;;  %v2747_v1 = vmul.f32 %v7558_v41, %v2555_v18  ;;  %7559 = vrcp.f32 %v2556_v16  ;;  %v3131_v8 = vmul.f32 %v10372_v51, %v13608_v6 }
 0x22e   : > { %v2860_v35 = vsub.f32 2.0, %v2764_v0  ;;  %7561 = vpow2.f32 %v2343_v48  ;;  %v2345_v46 = vmul.f32 1.442695, %v2160_v24  ;;  %v3021_v3 = vmul.f32 %v10294_v56, %v2925_v32  ;;  %v13609_v0 = vld [vmem:[#allocation20_spill] sm:$0xff]  ;;  %v1925_v24 = vpop.f32.mrf.mxu3 }
 0x22f   : > { %v3243_v9 = vmul.f32 %v3147_v44, %v2955_v33  ;;  %v2843_v36 = vsub.f32 2.0, %v2747_v1  ;;  %v2830_v26 = vmul.f32 %v10318_v17, %v10263_v14  ;;  %vm3035_vm11 = vcmp.gt.f32.partialorder %v13608_v6, 20.0 }
 0x230   : > { %v2956_v52 = vmul.f32 %v7556_v22, %v2860_v35  ;;  %7563 = vpow2.f32 %v2345_v46  ;;  %v2429_v53 = vadd.f32 2.0, %v10141_v61  ;;  %v3309_v15 = vmul.f32 %v10326_v11, %v3021_v3 }
 0x231   : > { %v3339_v18 = vsel %vm3051_vm10, %v13605_v43, %v3243_v9  ;;  %v2939_v51 = vmul.f32 %v7558_v41, %v2843_v36  ;;  %v2926_v44 = vsub.f32 2.0, %v2830_v26  ;;  %vm3117_vm12 = vcmp.gt.f32.partialorder %v10156_v49, 20.0 }
 0x232   : > { %3564 = vmatpush.msrb.mxu0 %v3339_v18  ;;  %v3244_v59 = vmul.f32 %v3148_v54, %v2956_v52  ;;  %v2525_v14 = vmul.f32 %v10141_v61, %v2429_v53  ;;  %v2430_v56 = vadd.f32 2.0, %v10148_v40  ;;  %vm3052_vm13 = vcmp.gt.f32.partialorder %v13607_v39, 20.0 }
 0x233   : > { %v7560_v42 = vpop.eup %7559  ;;  %v3227_v23 = vmul.f32 %v3131_v8, %v2939_v51  ;;  %v3405_v60 = vsel %vm3117_vm12, %v10156_v49, %v3309_v15  ;;  %v3022_v43 = vmul.f32 %v10318_v17, %v2926_v44  ;;  %v2283_v11 = vmul.f32 1.442695, %v2129_v5  ;;  %v1890_v17 = vpop.f32.mrf.mxu2 }
 0x234   : > { %v7562_v58 = vpop.eup %7561  ;;  %v3340_v22 = vsel %vm3052_vm13, %v13607_v39, %v3244_v59  ;;  %v2748_v57 = vmul.f32 %v7560_v42, %v2556_v16  ;;  %3612 = vmatpush.msrb.mxu2 %v3405_v60  ;;  %v2621_v50 = vadd.f32 2.0, %v2525_v14  ;;  %v10443_v49 = vmul.f32 %v10148_v40, %v2430_v56 }
 0x235   : > { %3590 = vmatpush.msrb.mxu1 %v3340_v22  ;;  %v3323_v61 = vsel %vm3035_vm11, %v13608_v6, %v3227_v23  ;;  %v2447_v54 = vadd.f32 2.0, %v7562_v58  ;;  %v3310_v41 = vmul.f32 %v10335_v10, %v3022_v43  ;;  %v3132_v39 = vmul.f32 %v10398_v63, %v13609_v0 }
 0x236   : > { %v7564_v30 = vpop.eup %7563  ;;  %3565 = vmatpush.msrb.mxu0 %v3323_v61  ;;  %v2844_v5 = vsub.f32 2.0, %v2748_v57  ;;  %vm3118_vm14 = vcmp.gt.f32.partialorder %v10169_v37, 20.0  ;;  %7565 = vrcp.f32 %v2621_v50  ;;  %v2285_v16 = vmul.f32 1.442695, %v2130_v38  ;;  %v1983_v57 = vpop.f32.mrf.mxu1 }
 0x237   : > { %7567 = vpow2.f32 %v10350_v19  ;;  %7006 = vmatmul.msk.f32.vlgmr.msrb.gmra.mxu0 %vm3436_vm3, %v10023_v20  ;;  %v3406_v40 = vsel %vm3118_vm14, %v10169_v37, %v3310_v41  ;;  %v2622_v10 = vadd.f32 2.0, %v10443_v49  ;;  %v10457_v63 = vadd.f32 %v1890_v17, %v9565_v12 }
 0x238   : > { %7569 = vpow2.f32 %v10352_v29  ;;  %v2940_v48 = vmul.f32 %v7560_v42, %v2844_v5  ;;  %3638 = vmatpush.msrb.mxu3 %v3406_v40  ;;  %vm3036_vm15 = vcmp.gt.f32.partialorder %v13609_v0, 20.0  ;;  %v10460_v19 = vmul.f32 %v7562_v58, %v2447_v54  ;;  %v1948_v42 = vpop.f32.mrf.mxu0 }
 0x239   : > { %7571 = vrcp.f32 %v2622_v10  ;;  %v2448_v20 = vadd.f32 2.0, %v7564_v30  ;;  %v2413_v37 = vadd.f32 2.0, %v10094_v21  ;;  %v10464_v33 = vadd.f32 %v1925_v24, %v9565_v12  ;;  %v10531_v24 = vld [vmem:[%s13209_s0 + $0x50] sm:$0xff] }
 0x23a   : > { %7573 = vpow2.f32 %v2283_v11  ;;  %v3228_v38 = vmul.f32 %v3132_v39, %v2940_v48  ;;  %v2145_v32 = vmin.f32 %v10457_v63, 20.0  ;;  %v2414_v6 = vadd.f32 2.0, %v10098_v28  ;;  %v13613_v48 = vld [vmem:[#allocation48_spill] sm:$0xff] }
 0x23b   : > { %7575 = vpow2.f32 %v2285_v16  ;;  %v10469_v35 = vmul.f32 %v10094_v21, %v2413_v37  ;;  %v10475_v46 = vadd.f32 2.0, %v10460_v19  ;;  %vm3101_vm0 = vcmp.gt.f32.partialorder %v10052_v4, 20.0  ;;  %v10484_v21 = vld [vmem:[%s13209_s0 + $0x48] sm:$0xff]  ;;  %v10517_v5 = vpop.f32.mrf.mxu2  ;;  %v13612_v16 = vld [vmem:[#allocation49_spill] sm:$0xff] }
 0x23c   : > { %v7566_v29 = vpop.eup %7565  ;;  %v3324_v1 = vsel %vm3036_vm15, %v13609_v0, %v3228_v38  ;;  %v2397_v36 = vadd.f32 2.0, %v10082_v31  ;;  %v10488_v26 = vmul.f32 %v7564_v30, %v2448_v20  ;;  %v3197_v52 = vmul.f32 %v2525_v14, %v10052_v4  ;;  %v1928_v38 = vpop.f32.mrf.mxu3 }
 0x23d   : > { %v10472_v8 = vpop.eup %7567  ;;  %3591 = vmatpush.msrb.mxu1 %v3324_v1  ;;  %v2813_v9 = vmul.f32 %v7566_v29, %v2621_v50  ;;  %v2605_v53 = vadd.f32 2.0, %v10469_v35  ;;  %v2510_v18 = vmul.f32 %v10098_v28, %v2414_v6  ;;  %v2146_v44 = vmin.f32 %v10464_v33, 20.0  ;;  %v13614_v1 = vld [vmem:[#allocation39_spill] sm:$0xff] }
 0x23e   : > { %v10479_v3 = vpop.eup %7569  ;;  %7009 = vmatmul.msk.f32.vlgmr.msrb.gmra.mxu1 %vm3436_vm3, %v10484_v21  ;;  %v10495_v59 = vmul.f32 %v10082_v31, %v2397_v36  ;;  %v2398_v56 = vadd.f32 2.0, %v10088_v27  ;;  %v2315_v60 = vmul.f32 1.442695, %v2145_v32  ;;  %v10510_v22 = vadd.f32 2.0, %v10488_v26 }
 0x23f   : > { %v7572_v51 = vpop.eup %7571  ;;  %v2909_v15 = vsub.f32 2.0, %v2813_v9  ;;  %7007 = vmatmul.msk.f32.gmra.mxu0 %vm3436_vm3, %v10072_v62  ;;  %7577 = vrcp.f32 %v2605_v53  ;;  %v2606_v43 = vadd.f32 2.0, %v2510_v18  ;;  %vm3102_vm1 = vcmp.gt.f32.partialorder %v10057_v25, 20.0 }
 0x240   : > { %v10500_v23 = vpop.eup %7573  ;;  %v2814_v14 = vmul.f32 %v7572_v51, %v2622_v10  ;;  %7579 = vrcp.f32 %v10475_v46  ;;  %v2589_v31 = vadd.f32 2.0, %v10495_v59  ;;  %v10507_v11 = vmul.f32 %v10088_v27, %v2398_v56  ;;  %v13610_v27 = vld [vmem:[#allocation46_spill] sm:$0xff] }
 0x241   : > { %v10502_v28 = vpop.eup %7575  ;;  %v3005_v58 = vmul.f32 %v7566_v29, %v2909_v15  ;;  %7581 = vrcp.f32 %v2606_v43  ;;  %v2317_v61 = vmul.f32 1.442695, %v2146_v44  ;;  %v3198_v17 = vmul.f32 %v10443_v49, %v10057_v25 }
 0x242   : > { %v2910_v62 = vsub.f32 2.0, %v2814_v14  ;;  %7583 = vrcp.f32 %v2589_v31  ;;  %v2590_v54 = vadd.f32 2.0, %v10507_v11  ;;  %v2381_v30 = vadd.f32 2.0, %v13610_v27 }
 0x243   : > { %v3293_v50 = vmul.f32 %v3197_v52, %v3005_v58  ;;  %7585 = vpow2.f32 %v2315_v60  ;;  %v10523_v39 = vadd.f32 %v1948_v42, %v9591_v55  ;;  %v2382_v40 = vadd.f32 2.0, %v13612_v16  ;;  %v13615_v52 = vld [vmem:[#allocation52_spill] sm:$0xff] }
 0x244   : > { %v3006_v41 = vmul.f32 %v7572_v51, %v2910_v62  ;;  %7587 = vrcp.f32 %v2590_v54  ;;  %vm3085_vm2 = vcmp.gt.f32.partialorder %v13613_v48, 20.0  ;;  %v2365_v32 = vadd.f32 2.0, %v13614_v1  ;;  %v13616_v42 = vld [vmem:[#allocation44_spill] sm:$0xff] }
 0x245   : > { %v3389_v0 = vsel %vm3101_vm0, %v10052_v4, %v3293_v50  ;;  %13611 = vst [vmem:[#allocation33_spill] sm:$0xff] %v10523_v39  ;;  %v7578_v10 = vpop.eup %7577  ;;  %7589 = vrcp.f32 %v10510_v22  ;;  %v10536_v4 = vmul.f32 %v13610_v27, %v2381_v30  ;;  %v10541_v29 = vmul.f32 %v13612_v16, %v2382_v40 }
 0x246   : > { %3613 = vmatpush.msrb.mxu2 %v3389_v0  ;;  %v3294_v49 = vmul.f32 %v3198_v17, %v3006_v41  ;;  %7010 = vmatmul.msk.f32.gmra.mxu1 %vm3436_vm3, %v10531_v24  ;;  %v10538_v20 = vpop.eup %7579  ;;  %7591 = vpow2.f32 %v2317_v61  ;;  %v2797_v37 = vmul.f32 %v7578_v10, %v2605_v53  ;;  %v3181_v36 = vmul.f32 %v10469_v35, %v13613_v48  ;;  %v13618_v41 = vld [vmem:[#allocation45_spill] sm:$0xff] }
 0x247   : > { %7008 = vmatmul.msk.f32.gmra.mxu0 %vm3436_vm3, %v10106_v7  ;;  %v7582_v6 = vpop.eup %7581  ;;  %vm3086_vm4 = vcmp.gt.f32.partialorder %v13615_v52, 20.0  ;;  %v3182_v53 = vmul.f32 %v2510_v18, %v13615_v52  ;;  %v2573_v51 = vadd.f32 2.0, %v10536_v4  ;;  %vm3069_vm5 = vcmp.gt.f32.partialorder %v13616_v42, 20.0 }
 0x248   : > { %v3390_v9 = vsel %vm3102_vm1, %v10057_v25, %v3294_v49  ;;  %v7584_v15 = vpop.eup %7583  ;;  %v2893_v44 = vsub.f32 2.0, %v2797_v37  ;;  %v2798_v56 = vmul.f32 %v7582_v6, %v2606_v43  ;;  %v2083_v7 = vmin.f32 %v10523_v39, 20.0  ;;  %v1951_v25 = vpop.f32.mrf.mxu0  ;;  %v13619_v49 = vld [vmem:[#allocation41_spill] sm:$0xff] }
 0x249   : > { %3639 = vmatpush.msrb.mxu3 %v3390_v9  ;;  %v2574_v14 = vadd.f32 2.0, %v10541_v29  ;;  %v10557_v60 = vpop.eup %7585  ;;  %v2781_v35 = vmul.f32 %v7584_v15, %v2589_v31  ;;  %v3165_v58 = vmul.f32 %v10495_v59, %v13616_v42  ;;  %v10562_v18 = vadd.f32 %v1983_v57, %v9591_v55  ;;  %v1986_v59 = vpop.f32.mrf.mxu1 }
 0x24a   : > { %v10565_v62 = vmul.f32 %v13614_v1, %v2365_v32  ;;  %v7588_v43 = vpop.eup %7587  ;;  %v2989_v50 = vmul.f32 %v7578_v10, %v2893_v44  ;;  %v2894_v61 = vsub.f32 2.0, %v2798_v56  ;;  %vm3070_vm6 = vcmp.gt.f32.partialorder %v13618_v41, 20.0  ;;  %v2018_v9 = vpop.f32.mrf.mxu2 }
 0x24b   : > { %13617 = vst [vmem:[#allocation29_spill] sm:$0xff] %v10562_v18  ;;  %7593 = vrcp.f32 %v2573_v51  ;;  %v10568_v17 = vpop.eup %7589  ;;  %v2877_v27 = vsub.f32 2.0, %v2781_v35  ;;  %v2782_v30 = vmul.f32 %v7588_v43, %v2590_v54  ;;  %v2191_v40 = vmul.f32 1.442695, %v2083_v7  ;;  %v10578_v54 = vld [vmem:[%s13209_s0 + $0x58] sm:$0xff] }
 0x24c   : > { %7595 = vrcp.f32 %v2574_v14  ;;  %v2557_v31 = vadd.f32 2.0, %v10565_v62  ;;  %v10571_v0 = vpop.eup %7591  ;;  %v3277_v57 = vmul.f32 %v3181_v36, %v2989_v50  ;;  %v2990_v16 = vmul.f32 %v7582_v6, %v2894_v61  ;;  %v2053_v61 = vpop.f32.mrf.mxu3 }
 0x24d   : > { %v2366_v37 = vadd.f32 2.0, %v13619_v49  ;;  %v2973_v10 = vmul.f32 %v7584_v15, %v2877_v27  ;;  %v2878_v1 = vsub.f32 2.0, %v2782_v30  ;;  %v2084_v32 = vmin.f32 %v10562_v18, 20.0 }
 0x24e   : > { %7597 = vrcp.f32 %v2557_v31  ;;  %7011 = vmatmul.msk.f32.gmra.mxu1 %vm3436_vm3, %v10578_v54  ;;  %v3373_v6 = vsel %vm3085_vm2, %v13613_v48, %v3277_v57  ;;  %v3278_v36 = vmul.f32 %v3182_v53, %v2990_v16  ;;  %v10590_v44 = vadd.f32 %v10517_v5, %v9575_v34  ;;  %v13620_v53 = vld [vmem:[#allocation32_spill] sm:$0xff] }
 0x24f   : > { %v10586_v15 = vmul.f32 %v13619_v49, %v2366_v37  ;;  %3614 = vmatpush.msrb.mxu2 %v3373_v6  ;;  %v3261_v56 = vmul.f32 %v3165_v58, %v2973_v10  ;;  %v2974_v7 = vmul.f32 %v7588_v43, %v2878_v1  ;;  %v3166_v35 = vmul.f32 %v10507_v11, %v13618_v41  ;;  %v13621_v57 = vld [vmem:[#allocation36_spill] sm:$0xff] }
 0x250   : > { %v10595_v50 = vadd.f32 %v1928_v38, %v9575_v34  ;;  %v3374_v48 = vsel %vm3086_vm4, %v13615_v52, %v3278_v36  ;;  %7599 = vpow2.f32 %v2191_v40  ;;  %vm3053_vm7 = vcmp.gt.f32.partialorder %v13620_v53, 20.0  ;;  %v1954_v37 = vpop.f32.mrf.mxu0 }
 0x251   : > { %v7594_v27 = vpop.eup %7593  ;;  %v2558_v5 = vadd.f32 2.0, %v10586_v15  ;;  %v2161_v58 = vmin.f32 %v10590_v44, 20.0  ;;  %3640 = vmatpush.msrb.mxu3 %v3374_v48  ;;  %v3357_v11 = vsel %vm3069_vm5, %v13616_v42, %v3261_v56  ;;  %v3262_v38 = vmul.f32 %v3166_v35, %v2974_v7  ;;  %v13622_v42 = vld [vmem:[#allocation7_spill] sm:$0xff] }
 0x252   : > { %v7596_v43 = vpop.eup %7595  ;;  %v2765_v30 = vmul.f32 %v7594_v27, %v2573_v51  ;;  %vm3054_vm9 = vcmp.gt.f32.partialorder %v13621_v57, 20.0  ;;  %v2162_v16 = vmin.f32 %v10595_v50, 20.0  ;;  %3615 = vmatpush.msrb.mxu2 %v3357_v11  ;;  %v2193_v52 = vmul.f32 1.442695, %v2084_v32 }
 0x253   : > { %v2766_v40 = vmul.f32 %v7596_v43, %v2574_v14  ;;  %7601 = vrcp.f32 %v2558_v5  ;;  %v2347_v49 = vmul.f32 1.442695, %v2161_v58  ;;  %v3358_v1 = vsel %vm3070_vm6, %v13618_v41, %v3262_v38  ;;  %v1989_v41 = vpop.f32.mrf.mxu1 }
 0x254   : > { %v7598_v10 = vpop.eup %7597  ;;  %v2861_v6 = vsub.f32 2.0, %v2765_v30  ;;  %v2349_v36 = vmul.f32 1.442695, %v2162_v16  ;;  %v10612_v56 = vadd.f32 %v1951_v25, %v13622_v42  ;;  %3641 = vmatpush.msrb.mxu3 %v3358_v1  ;;  %v10615_v32 = vadd.f32 %v1986_v59, %v13622_v42  ;;  %v13629_v16 = vld [vmem:[#allocation10_spill] sm:$0xff] }
 0x255   : > { %v2862_v51 = vsub.f32 2.0, %v2766_v40  ;;  %v2749_v7 = vmul.f32 %v7598_v10, %v2557_v31  ;;  %7603 = vpow2.f32 %v2347_v49  ;;  %v3149_v35 = vmul.f32 %v10536_v4, %v13620_v53  ;;  %v2021_v40 = vpop.f32.mrf.mxu2 }
 0x256   : > { %13623 = vst [vmem:[#allocation35_spill] sm:$0xff] %v10612_v56  ;;  %v2957_v14 = vmul.f32 %v7594_v27, %v2861_v6  ;;  %7605 = vpow2.f32 %v2349_v36  ;;  %v10620_v48 = vadd.f32 %v2018_v9, %v9591_v55  ;;  %v10622_v58 = vpop.eup %7599  ;;  %v3150_v11 = vmul.f32 %v10541_v29, %v13621_v57  ;;  %v13628_v27 = vld [vmem:[#allocation17_spill] sm:$0xff] }
 0x257   : > { %13624 = vst [vmem:[#allocation31_spill] sm:$0xff] %v10615_v32  ;;  %v2958_v25 = vmul.f32 %v7596_v43, %v2862_v51  ;;  %v2845_v31 = vsub.f32 2.0, %v2749_v7  ;;  %v10627_v38 = vadd.f32 %v2053_v61, %v9591_v55  ;;  %v3133_v30 = vmul.f32 %v10565_v62, %v13628_v27  ;;  %v13632_v7 = vld [vmem:[#allocation12_spill] sm:$0xff] }
 0x258   : > { %13625 = vst [vmem:[#allocation28_spill] sm:$0xff] %v10620_v48  ;;  %v3245_v59 = vmul.f32 %v3149_v35, %v2957_v14  ;;  %v2099_v4 = vmin.f32 %v10612_v56, 20.0  ;;  %v10633_v9 = vadd.f32 %v1954_v37, %v13629_v16  ;;  %v2100_v6 = vmin.f32 %v10615_v32, 20.0  ;;  %v2056_v37 = vpop.f32.mrf.mxu3  ;;  %v13659_v56 = vld [vmem:[#allocation53_spill] sm:$0xff] }
 0x259   : > { %13626 = vst [vmem:[#allocation15_spill] sm:$0xff] %v10622_v58  ;;  %v7602_v49 = vpop.eup %7601  ;;  %v3246_v1 = vmul.f32 %v3150_v11, %v2958_v25  ;;  %v2941_v43 = vmul.f32 %v7598_v10, %v2845_v31  ;;  %v10637_v29 = vadd.f32 %v1989_v41, %v13629_v16  ;;  %vm3037_vm10 = vcmp.gt.f32.partialorder %v13628_v27, 20.0 }
 0x25a   : > { %13627 = vst [vmem:[#allocation22_spill] sm:$0xff] %v10627_v38  ;;  %v3341_v55 = vsel %vm3053_vm7, %v13620_v53, %v3245_v59  ;;  %v2750_v62 = vmul.f32 %v7602_v49, %v2558_v5  ;;  %v2085_v61 = vmin.f32 %v10620_v48, 20.0  ;;  %v3134_v14 = vmul.f32 %v10586_v15, %v13632_v7 }
 0x25b   : > { %13630 = vst [vmem:[#allocation14_spill] sm:$0xff] %v10633_v9  ;;  %v7604_v36 = vpop.eup %7603  ;;  %3616 = vmatpush.msrb.mxu2 %v3341_v55  ;;  %v3342_v10 = vsel %vm3054_vm9, %v13621_v57, %v3246_v1  ;;  %v3229_v51 = vmul.f32 %v3133_v30, %v2941_v43  ;;  %v2086_v35 = vmin.f32 %v10627_v38, 20.0  ;;  %v2223_v5 = vmul.f32 1.442695, %v2099_v4  ;;  %v1957_v30 = vpop.f32.mrf.mxu0 }
 0x25c   : > { %13631 = vst [vmem:[#allocation16_spill] sm:$0xff] %v10637_v29  ;;  %v7606_v41 = vpop.eup %7605  ;;  %3642 = vmatpush.msrb.mxu3 %v3342_v10  ;;  %v2846_v53 = vsub.f32 2.0, %v2750_v62  ;;  %v2449_v25 = vadd.f32 2.0, %v7604_v36  ;;  %v2115_v11 = vmin.f32 %v10633_v9, 20.0  ;;  %v2225_v55 = vmul.f32 1.442695, %v2100_v6 }
 0x25d   : > { %v3325_v31 = vsel %vm3037_vm10, %v13628_v27, %v3229_v51  ;;  %v2450_v59 = vadd.f32 2.0, %v7606_v41  ;;  %v2116_v57 = vmin.f32 %v10637_v29, 20.0  ;;  %v2195_v43 = vmul.f32 1.442695, %v2085_v61  ;;  %v1992_v61 = vpop.f32.mrf.mxu1 }
 0x25e   : > { %3617 = vmatpush.msrb.mxu2 %v3325_v31  ;;  %v2942_v15 = vmul.f32 %v7602_v49, %v2846_v53  ;;  %v10655_v1 = vmul.f32 %v7604_v36, %v2449_v25  ;;  %v10658_v62 = vadd.f32 %v2021_v40, %v13622_v42  ;;  %7607 = vpow2.f32 %v2193_v52  ;;  %v13635_v49 = vld [vmem:[#allocation6_spill] sm:$0xff] }
 0x25f   : > { %7012 = vmatmul.msk.f32.vlgmr.msrb.gmra.mxu2 %vm3436_vm3, %v10484_v21  ;;  %v10662_v4 = vmul.f32 %v7606_v41, %v2450_v59  ;;  %v2197_v27 = vmul.f32 1.442695, %v2086_v35  ;;  %v10665_v6 = vadd.f32 %v2056_v37, %v13622_v42  ;;  %7609 = vpow2.f32 %v2223_v5  ;;  %v2024_v37 = vpop.f32.mrf.mxu2 }
 0x260   : > { %13633 = vst [vmem:[#allocation25_spill] sm:$0xff] %v10658_v62  ;;  %v3230_v10 = vmul.f32 %v3134_v14, %v2942_v15  ;;  %v2255_v51 = vmul.f32 1.442695, %v2115_v11  ;;  %v10668_v36 = vadd.f32 %v1957_v30, %v13635_v49  ;;  %vm3038_vm11 = vcmp.gt.f32.partialorder %v13632_v7, 20.0  ;;  %v2059_v25 = vpop.f32.mrf.mxu3 }
 0x261   : > { %13634 = vst [vmem:[#allocation18_spill] sm:$0xff] %v10665_v6  ;;  %7611 = vpow2.f32 %v2225_v55  ;;  %v2257_v40 = vmul.f32 1.442695, %v2116_v57  ;;  %v2101_v52 = vmin.f32 %v10658_v62, 20.0  ;;  %v10674_v35 = vadd.f32 2.0, %v10655_v1 }
 0x262   : > { %13636 = vst [vmem:[#allocation20_spill] sm:$0xff] %v10668_v36  ;;  %v3326_v41 = vsel %vm3038_vm11, %v13632_v7, %v3230_v10  ;;  %7613 = vpow2.f32 %v2195_v43  ;;  %v2102_v42 = vmin.f32 %v10665_v6, 20.0  ;;  %v10678_v14 = vadd.f32 2.0, %v10662_v4 }
 0x263   : > { %3643 = vmatpush.msrb.mxu3 %v3326_v41  ;;  %7615 = vpow2.f32 %v2197_v27  ;;  %v2131_v53 = vmin.f32 %v10668_v36, 20.0  ;;  %v10684_v7 = vadd.f32 %v1992_v61, %v13635_v49  ;;  %v2831_v5 = vmul.f32 %v10538_v20, %v10475_v46 }
 0x264   : > { %7015 = vmatmul.msk.f32.vlgmr.msrb.gmra.mxu3 %vm3436_vm3, %v10484_v21  ;;  %7617 = vpow2.f32 %v2255_v51  ;;  %v10688_v11 = vpop.eup %7607  ;;  %v2227_v31 = vmul.f32 1.442695, %v2101_v52  ;;  %v10691_v59 = vadd.f32 %v2024_v37, %v13629_v16  ;;  %v2832_v55 = vmul.f32 %v10568_v17, %v10510_v22  ;;  %v1960_v37 = vpop.f32.mrf.mxu0 }
 0x265   : > { %13637 = vst [vmem:[#allocation46_spill] sm:$0xff] %v10684_v7  ;;  %7619 = vpow2.f32 %v2257_v40  ;;  %v10695_v57 = vpop.eup %7609  ;;  %v3215_v30 = vmul.f32 %v10460_v19, %v10395_v13  ;;  %v2229_v15 = vmul.f32 1.442695, %v2102_v42  ;;  %v2927_v43 = vsub.f32 2.0, %v2831_v5 }
 0x266   : > { %13638 = vst [vmem:[#allocation49_spill] sm:$0xff] %v10688_v11  ;;  %7621 = vrcp.f32 %v10674_v35  ;;  %v3216_v27 = vmul.f32 %v10488_v26, %v10401_v2  ;;  %v10708_v22 = vadd.f32 %v2059_v25, %v13629_v16  ;;  %v2928_v10 = vsub.f32 2.0, %v2832_v55 }
 0x267   : > { %13639 = vst [vmem:[#allocation48_spill] sm:$0xff] %v10691_v59  ;;  %v10700_v46 = vpop.eup %7611  ;;  %7623 = vrcp.f32 %v10678_v14  ;;  %7013 = vmatmul.msk.f32.gmra.mxu2 %vm3436_vm3, %v10531_v24  ;;  %v2287_v19 = vmul.f32 1.442695, %v2131_v53  ;;  %v2132_v40 = vmin.f32 %v10684_v7, 20.0  ;;  %v3023_v52 = vmul.f32 %v10538_v20, %v2927_v43 }
 0x268   : > { %13640 = vst [vmem:[#allocation39_spill] sm:$0xff] %v10695_v57  ;;  %v10710_v51 = vpop.eup %7613  ;;  %v2431_v61 = vadd.f32 2.0, %v10472_v8  ;;  %7625 = vpow2.f32 %v2227_v31  ;;  %v2117_v26 = vmin.f32 %v10691_v59, 20.0  ;;  %v3024_v42 = vmul.f32 %v10568_v17, %v2928_v10 }
 0x269   : > { %13641 = vst [vmem:[#allocation52_spill] sm:$0xff] %v10700_v46  ;;  %v10715_v41 = vpop.eup %7615  ;;  %v2432_v16 = vadd.f32 2.0, %v10479_v3  ;;  %7627 = vpow2.f32 %v2229_v15  ;;  %vm3119_vm12 = vcmp.gt.f32.partialorder %v10395_v13, 20.0  ;;  %v3311_v53 = vmul.f32 %v3215_v30, %v3023_v52  ;;  %v13648_v52 = vld [vmem:[#allocation37_spill] sm:$0xff] }
 0x26a   : > { %13642 = vst [vmem:[#allocation44_spill] sm:$0xff] %v10708_v22  ;;  %v10720_v25 = vpop.eup %7617  ;;  %v2527_v20 = vmul.f32 %v10472_v8, %v2431_v61  ;;  %v2118_v55 = vmin.f32 %v10708_v22, 20.0  ;;  %vm3120_vm13 = vcmp.gt.f32.partialorder %v10401_v2, 20.0  ;;  %v3312_v31 = vmul.f32 %v3216_v27, %v3024_v42  ;;  %v1995_v8 = vpop.f32.mrf.mxu1 }
 0x26b   : > { %13643 = vst [vmem:[#allocation45_spill] sm:$0xff] %v10710_v51  ;;  %v10724_v5 = vpop.eup %7619  ;;  %v2528_v17 = vmul.f32 %v10479_v3, %v2432_v16  ;;  %v3407_v15 = vsel %vm3119_vm12, %v10395_v13, %v3311_v53  ;;  %v10735_v30 = vadd.f32 %v1960_v37, %v9565_v12  ;;  %v2415_v61 = vadd.f32 2.0, %v13648_v52 }
 0x26c   : > { %13644 = vst [vmem:[#allocation41_spill] sm:$0xff] %v10715_v41  ;;  %v10729_v43 = vpop.eup %7621  ;;  %7016 = vmatmul.msk.f32.gmra.mxu3 %vm3436_vm3, %v10531_v24  ;;  %v2623_v10 = vadd.f32 2.0, %v2527_v20  ;;  %7629 = vpow2.f32 %v2287_v19  ;;  %v2289_v27 = vmul.f32 1.442695, %v2132_v40  ;;  %3664 = vmatpush.msra.mxu0 %v3407_v15  ;;  %v3408_v3 = vsel %vm3120_vm13, %v10401_v2, %v3312_v31  ;;  %v13651_v19 = vld [vmem:[#allocation38_spill] sm:$0xff] }
 0x26d   : > { %13645 = vst [vmem:[#allocation32_spill] sm:$0xff] %v10720_v25  ;;  %v10738_v38 = vpop.eup %7623  ;;  %v2624_v42 = vadd.f32 2.0, %v2528_v17  ;;  %v2259_v16 = vmul.f32 1.442695, %v2117_v26  ;;  %3690 = vmatpush.msra.mxu1 %v3408_v3  ;;  %v2511_v13 = vmul.f32 %v13648_v52, %v2415_v61  ;;  %v10747_v37 = vadd.f32 %v1995_v8, %v9565_v12  ;;  %v13653_v3 = vld [vmem:[#allocation60_spill] sm:$0xff]  ;;  %v13654_v61 = vld [vmem:[#allocation51_spill] sm:$0xff] }
 0x26e   : > { %13646 = vst [vmem:[#allocation36_spill] sm:$0xff] %v10724_v5  ;;  %7631 = vrcp.f32 %v2623_v10  ;;  %v10742_v53 = vpop.eup %7625  ;;  %v2416_v40 = vadd.f32 2.0, %v13651_v19  ;;  %v2261_v2 = vmul.f32 1.442695, %v2118_v55  ;;  %v2147_v26 = vmin.f32 %v10735_v30, 20.0 }
 0x26f   : > { %13647 = vst [vmem:[#allocation7_spill] sm:$0xff] %v10735_v30  ;;  %7014 = vmatmul.msk.f32.gmra.mxu2 %vm3436_vm3, %v10578_v54  ;;  %7633 = vrcp.f32 %v2624_v42  ;;  %v10750_v15 = vpop.eup %7627  ;;  %v2607_v31 = vadd.f32 2.0, %v2511_v13  ;;  %v2399_v48 = vadd.f32 2.0, %v13653_v3  ;;  %v2400_v6 = vadd.f32 2.0, %v13654_v61 }
 0x270   : > { %13649 = vst [vmem:[#allocation17_spill] sm:$0xff] %v10742_v53  ;;  %7635 = vpow2.f32 %v2289_v27  ;;  %v2512_v52 = vmul.f32 %v13651_v19, %v2416_v40  ;;  %v10758_v62 = vmul.f32 %v10655_v1, %v10590_v44  ;;  %v10762_v8 = vmul.f32 %v10662_v4, %v10595_v50  ;;  %v13655_v1 = vld [vmem:[#allocation61_spill] sm:$0xff]  ;;  %v2027_v53 = vpop.f32.mrf.mxu2 }
 0x271   : > { %13650 = vst [vmem:[#allocation10_spill] sm:$0xff] %v10747_v37  ;;  %7637 = vpow2.f32 %v2259_v16  ;;  %v2495_v55 = vmul.f32 %v13653_v3, %v2399_v48  ;;  %v2148_v41 = vmin.f32 %v10747_v37, 20.0  ;;  %v10769_v19 = vmul.f32 %v13654_v61, %v2400_v6  ;;  %v13656_v3 = vld [vmem:[#allocation62_spill] sm:$0xff]  ;;  %v2062_v37 = vpop.f32.mrf.mxu3 }
 0x272   : > { %13652 = vst [vmem:[#allocation12_spill] sm:$0xff] %v10750_v15  ;;  %v10765_v22 = vpop.eup %7629  ;;  %7639 = vrcp.f32 %v2607_v31  ;;  %v2608_v27 = vadd.f32 2.0, %v2512_v52  ;;  %vm3103_vm14 = vcmp.gt.f32.partialorder %v13655_v1, 20.0  ;;  %v2319_v4 = vmul.f32 1.442695, %v2147_v26  ;;  %v13657_v26 = vld [vmem:[#allocation56_spill] sm:$0xff]  ;;  %v1998_v5 = vpop.f32.mrf.mxu1 }
 0x273   : > { %7641 = vpow2.f32 %v2261_v2  ;;  %v2591_v16 = vadd.f32 2.0, %v2495_v55  ;;  %vm3104_vm15 = vcmp.gt.f32.partialorder %v13656_v3, 20.0  ;;  %v2592_v51 = vadd.f32 2.0, %v10769_v19 }
 0x274   : > { %v7632_v40 = vpop.eup %7631  ;;  %7017 = vmatmul.msk.f32.gmra.mxu3 %vm3436_vm3, %v10578_v54  ;;  %7643 = vrcp.f32 %v2608_v27  ;;  %v3199_v15 = vmul.f32 %v2527_v20, %v13655_v1  ;;  %v3200_v61 = vmul.f32 %v2528_v17, %v13656_v3  ;;  %v10780_v39 = vmul.f32 1.442695, %v2148_v41  ;;  %v13660_v20 = vld [vmem:[#allocation58_spill] sm:$0xff] }
 0x275   : > { %v7634_v59 = vpop.eup %7633  ;;  %v2815_v48 = vmul.f32 %v7632_v40, %v2623_v10  ;;  %7645 = vrcp.f32 %v2591_v16  ;;  %v2383_v10 = vadd.f32 2.0, %v13657_v26  ;;  %v3183_v58 = vmul.f32 %v2511_v13, %v13659_v56 }
 0x276   : > { %v2816_v6 = vmul.f32 %v7634_v59, %v2624_v42  ;;  %v10778_v18 = vpop.eup %7635  ;;  %7647 = vrcp.f32 %v2592_v51  ;;  %v2384_v42 = vadd.f32 2.0, %v13660_v20  ;;  %vm3087_vm0 = vcmp.gt.f32.partialorder %v13659_v56, 20.0 }
 0x277   : > { %v2911_v2 = vsub.f32 2.0, %v2815_v48  ;;  %v10783_v32 = vpop.eup %7637  ;;  %7649 = vpow2.f32 %v2319_v4  ;;  %v10789_v9 = vadd.f32 %v2027_v53, %v13635_v49  ;;  %v10792_v41 = vmul.f32 %v13657_v26, %v2383_v10  ;;  %v13661_v48 = vld [vmem:[#allocation11_spill] sm:$0xff] }
 0x278   : > { %13658 = vst [vmem:[#allocation6_spill] sm:$0xff] %v10783_v32  ;;  %v2912_v11 = vsub.f32 2.0, %v2816_v6  ;;  %v7640_v29 = vpop.eup %7639  ;;  %v2367_v7 = vadd.f32 2.0, %v13661_v48  ;;  %v13663_v32 = vld [vmem:[#allocation55_spill] sm:$0xff]  ;;  %v10799_v30 = vmul.f32 %v13660_v20, %v2384_v42  ;;  %vm3121_vm6 = vcmp.gt.f32.partialorder %v10590_v44, 20.0 }
 0x279   : > { %v3007_v17 = vmul.f32 %v7632_v40, %v2911_v2  ;;  %v10795_v36 = vpop.eup %7641  ;;  %v2799_v4 = vmul.f32 %v7640_v29, %v2607_v31  ;;  %v3184_v13 = vmul.f32 %v2512_v52, %v13663_v32  ;;  %vm3088_vm1 = vcmp.gt.f32.partialorder %v13663_v32, 20.0  ;;  %v13664_v53 = vld [vmem:[#allocation19_spill] sm:$0xff] }
 0x27a   : > { %13662 = vst [vmem:[#allocation37_spill] sm:$0xff] %v10795_v36  ;;  %v3008_v6 = vmul.f32 %v7634_v59, %v2912_v11  ;;  %v7644_v40 = vpop.eup %7643  ;;  %v3167_v46 = vmul.f32 %v2495_v55, %v13664_v53  ;;  %v2575_v26 = vadd.f32 2.0, %v10792_v41  ;;  %v10805_v10 = vmul.f32 %v13661_v48, %v2367_v7  ;;  %v13665_v55 = vld [vmem:[#allocation8_spill] sm:$0xff] }
 0x27b   : > { %v3295_v2 = vmul.f32 %v3199_v15, %v3007_v17  ;;  %v7646_v36 = vpop.eup %7645  ;;  %v2895_v59 = vsub.f32 2.0, %v2799_v4  ;;  %v2800_v31 = vmul.f32 %v7644_v40, %v2608_v27  ;;  %vm3071_vm2 = vcmp.gt.f32.partialorder %v13664_v53, 20.0 }
 0x27c   : > { %v3296_v11 = vmul.f32 %v3200_v61, %v3008_v6  ;;  %v2576_v52 = vadd.f32 2.0, %v10799_v30  ;;  %v7648_v20 = vpop.eup %7647  ;;  %v2783_v42 = vmul.f32 %v7646_v36, %v2591_v16  ;;  %vm3072_vm4 = vcmp.gt.f32.partialorder %v13665_v55, 20.0 }
 0x27d   : > { %v3391_v15 = vsel %vm3103_vm14, %v13655_v1, %v3295_v2  ;;  %v10814_v17 = vadd.f32 %v2062_v37, %v13635_v49  ;;  %7651 = vrcp.f32 %v2575_v26  ;;  %v10816_v7 = vpop.eup %7649  ;;  %v2991_v61 = vmul.f32 %v7640_v29, %v2895_v59  ;;  %v1963_v49 = vpop.f32.mrf.mxu0 }
 0x27e   : > { %3665 = vmatpush.msra.mxu0 %v3391_v15  ;;  %v3392_v27 = vsel %vm3104_vm15, %v13656_v3, %v3296_v11  ;;  %v2896_v48 = vsub.f32 2.0, %v2800_v31  ;;  %v2784_v6 = vmul.f32 %v7648_v20, %v2592_v51  ;;  %v2879_v4 = vsub.f32 2.0, %v2783_v42  ;;  %v13666_v51 = vld [vmem:[#allocation54_spill] sm:$0xff] }
 0x27f   : > { %3691 = vmatpush.msra.mxu1 %v3392_v27  ;;  %v2133_v1 = vmin.f32 %v10789_v9, 20.0  ;;  %7653 = vrcp.f32 %v2576_v52  ;;  %v2559_v16 = vadd.f32 2.0, %v10805_v10  ;;  %v3279_v37 = vmul.f32 %v3183_v58, %v2991_v61 }
 0x280   : > { %v2992_v2 = vmul.f32 %v7644_v40, %v2896_v48  ;;  %v2880_v57 = vsub.f32 2.0, %v2784_v6  ;;  %v3168_v15 = vmul.f32 %v10769_v19, %v13665_v55  ;;  %v2975_v25 = vmul.f32 %v7646_v36, %v2879_v4  ;;  %v13667_v19 = vld [vmem:[#allocation26_spill] sm:$0xff] }
 0x281   : > { %v2134_v29 = vmin.f32 %v10814_v17, 20.0  ;;  %7655 = vrcp.f32 %v2559_v16  ;;  %v2368_v3 = vadd.f32 2.0, %v13666_v51  ;;  %v3375_v11 = vsel %vm3087_vm0, %v13659_v56, %v3279_v37  ;;  %v13668_v37 = vld [vmem:[#allocation30_spill] sm:$0xff] }
 0x282   : > { %v3280_v59 = vmul.f32 %v3184_v13, %v2992_v2  ;;  %v2976_v31 = vmul.f32 %v7648_v20, %v2880_v57  ;;  %v10831_v58 = vadd.f32 %v1963_v49, %v9575_v34  ;;  %3666 = vmatpush.msra.mxu0 %v3375_v11  ;;  %v3263_v42 = vmul.f32 %v3167_v46, %v2975_v25  ;;  %v13669_v11 = vld [vmem:[#allocation23_spill] sm:$0xff] }
 0x283   : > { %v7652_v40 = vpop.eup %7651  ;;  %vm3055_vm5 = vcmp.gt.f32.partialorder %v13667_v19, 20.0  ;;  %v10835_v36 = vmul.f32 %v13666_v51, %v2368_v3  ;;  %v10838_v27 = vadd.f32 %v1998_v5, %v9575_v34  ;;  %v2833_v61 = vmul.f32 %v10729_v43, %v10674_v35 }
 0x284   : > { %v3376_v56 = vsel %vm3088_vm1, %v13663_v32, %v3280_v59  ;;  %v3264_v57 = vmul.f32 %v3168_v15, %v2976_v31  ;;  %v2767_v13 = vmul.f32 %v7652_v40, %v2575_v26  ;;  %v2163_v20 = vmin.f32 %v10831_v58, 20.0 }
 0x285   : > { %v7654_v46 = vpop.eup %7653  ;;  %3692 = vmatpush.msra.mxu1 %v3376_v56  ;;  %v3359_v25 = vsel %vm3071_vm2, %v13664_v53, %v3263_v42  ;;  %v3151_v5 = vmul.f32 %v10792_v41, %v13667_v19  ;;  %v2560_v48 = vadd.f32 2.0, %v10835_v36  ;;  %v2164_v35 = vmin.f32 %v10838_v27, 20.0 }
 0x286   : > { %3667 = vmatpush.msra.mxu0 %v3359_v25  ;;  %v3360_v32 = vsel %vm3072_vm4, %v13665_v55, %v3264_v57  ;;  %v2863_v26 = vsub.f32 2.0, %v2767_v13  ;;  %v2768_v6 = vmul.f32 %v7654_v46, %v2576_v52  ;;  %v2351_v4 = vmul.f32 1.442695, %v2163_v20 }
 0x287   : > { %v7656_v49 = vpop.eup %7655  ;;  %3693 = vmatpush.msra.mxu1 %v3360_v32  ;;  %v3152_v53 = vmul.f32 %v10799_v30, %v13668_v37  ;;  %7657 = vrcp.f32 %v2560_v48  ;;  %v2353_v2 = vmul.f32 1.442695, %v2164_v35  ;;  %v2929_v41 = vsub.f32 2.0, %v2833_v61 }
 0x288   : > { %v2959_v15 = vmul.f32 %v7652_v40, %v2863_v26  ;;  %v2864_v51 = vsub.f32 2.0, %v2768_v6  ;;  %v2751_v3 = vmul.f32 %v7656_v49, %v2559_v16  ;;  %7659 = vpow2.f32 %v2351_v4 }
 0x289   : > { %v3135_v59 = vmul.f32 %v10805_v10, %v13669_v11  ;;  %7661 = vpow2.f32 %v2353_v2  ;;  %v3025_v55 = vmul.f32 %v10729_v43, %v2929_v41  ;;  %v2834_v52 = vmul.f32 %v10738_v38, %v10678_v14 }
 0x28a   : > { %v3247_v31 = vmul.f32 %v3151_v5, %v2959_v15  ;;  %v2960_v42 = vmul.f32 %v7654_v46, %v2864_v51  ;;  %v2847_v56 = vsub.f32 2.0, %v2751_v3  ;;  %v2433_v30 = vadd.f32 2.0, %v10557_v60 }
 0x28b   : > { %v3313_v40 = vmul.f32 %v10758_v62, %v3025_v55  ;;  %v2930_v16 = vsub.f32 2.0, %v2834_v52  ;;  %v2434_v61 = vadd.f32 2.0, %v10571_v0  ;;  %vm3056_vm7 = vcmp.gt.f32.partialorder %v13668_v37, 20.0 }
 0x28c   : > { %v3343_v10 = vsel %vm3055_vm5, %v13667_v19, %v3247_v31  ;;  %v3248_v43 = vmul.f32 %v3152_v53, %v2960_v42  ;;  %v2943_v57 = vmul.f32 %v7656_v49, %v2847_v56  ;;  %v2529_v14 = vmul.f32 %v10557_v60, %v2433_v30  ;;  %v2065_v42 = vpop.f32.mrf.mxu3  ;;  %v13671_v30 = vld [vmem:[#allocation34_spill] sm:$0xff] }
 0x28d   : > { %v7658_v13 = vpop.eup %7657  ;;  %3668 = vmatpush.msra.mxu0 %v3343_v10  ;;  %v3409_v20 = vsel %vm3121_vm6, %v10590_v44, %v3313_v40  ;;  %v3026_v46 = vmul.f32 %v10738_v38, %v2930_v16  ;;  %v2530_v62 = vmul.f32 %v10571_v0, %v2434_v61  ;;  %v2291_v60 = vmul.f32 1.442695, %v2133_v1 }
 0x28e   : > { %v7660_v25 = vpop.eup %7659  ;;  %v3344_v5 = vsel %vm3056_vm7, %v13668_v37, %v3248_v43  ;;  %v3231_v35 = vmul.f32 %v3135_v59, %v2943_v57  ;;  %v2752_v32 = vmul.f32 %v7658_v13, %v2560_v48  ;;  %3716 = vmatpush.msra.mxu2 %v3409_v20  ;;  %v2625_v19 = vadd.f32 2.0, %v2529_v14  ;;  %v13670_v37 = vld [vmem:[#allocation24_spill] sm:$0xff] }
 0x28f   : > { %v7662_v26 = vpop.eup %7661  ;;  %3694 = vmatpush.msra.mxu1 %v3344_v5  ;;  %vm3039_vm9 = vcmp.gt.f32.partialorder %v13669_v11, 20.0  ;;  %v3314_v44 = vmul.f32 %v10762_v8, %v3026_v46  ;;  %v2626_v6 = vadd.f32 2.0, %v2530_v62  ;;  %vm3122_vm10 = vcmp.gt.f32.partialorder %v10595_v50, 20.0  ;;  %v13672_v57 = vld [vmem:[#allocation40_spill] sm:$0xff] }
 0x290   : > { %v3327_v38 = vsel %vm3039_vm9, %v13669_v11, %v3231_v35  ;;  %v2848_v0 = vsub.f32 2.0, %v2752_v32  ;;  %7663 = vrcp.f32 %v2625_v19  ;;  %v2293_v48 = vmul.f32 1.442695, %v2134_v29 }
 0x291   : > { %3669 = vmatpush.msra.mxu0 %v3327_v38  ;;  %v2451_v4 = vadd.f32 2.0, %v7660_v25  ;;  %v3410_v49 = vsel %vm3122_vm10, %v10595_v50, %v3314_v44  ;;  %7665 = vrcp.f32 %v2626_v6  ;;  %v3136_v53 = vmul.f32 %v10835_v36, %v13670_v37  ;;  %v2030_v50 = vpop.f32.mrf.mxu2 }
 0x292   : > { %v2944_v1 = vmul.f32 %v7658_v13, %v2848_v0  ;;  %7018 = vmatmul.msk.f32.vlgmr.msra.gmra.mxu0 %vm3436_vm3, %v10484_v21  ;;  %v2452_v8 = vadd.f32 2.0, %v7662_v26  ;;  %3742 = vmatpush.msra.mxu3 %v3410_v49  ;;  %v2417_v2 = vadd.f32 2.0, %v10500_v23  ;;  %7667 = vpow2.f32 %v10780_v39 }
 0x293   : > { %7669 = vpow2.f32 %v2291_v60  ;;  %vm3040_vm11 = vcmp.gt.f32.partialorder %v13670_v37, 20.0  ;;  %v10892_v41 = vmul.f32 %v7660_v25, %v2451_v4  ;;  %v2418_v36 = vadd.f32 2.0, %v10502_v28 }
 0x294   : > { %v3232_v29 = vmul.f32 %v3136_v53, %v2944_v1  ;;  %v10895_v15 = vmul.f32 %v10500_v23, %v2417_v2  ;;  %7671 = vpow2.f32 %v2293_v48  ;;  %v10899_v11 = vmul.f32 %v7662_v26, %v2452_v8  ;;  %v13673_v26 = vld [vmem:[#allocation42_spill] sm:$0xff]  ;;  %v13674_v48 = vld [vmem:[#allocation43_spill] sm:$0xff] }
 0x295   : > { %vm3105_vm12 = vcmp.gt.f32.partialorder %v10457_v63, 20.0  ;;  %v3201_v55 = vmul.f32 %v2529_v14, %v10457_v63  ;;  %v10907_v31 = vadd.f32 %v2030_v50, %v9565_v12  ;;  %v2514_v56 = vmul.f32 %v10502_v28, %v2418_v36  ;;  %v13675_v1 = vld [vmem:[#allocation50_spill] sm:$0xff] }
 0x296   : > { %v7664_v51 = vpop.eup %7663  ;;  %v3328_v3 = vsel %vm3040_vm11, %v13670_v37, %v3232_v29  ;;  %v2609_v52 = vadd.f32 2.0, %v10895_v15  ;;  %v2401_v40 = vadd.f32 2.0, %v13671_v30  ;;  %v10914_v61 = vadd.f32 2.0, %v10892_v41 }
 0x297   : > { %v7666_v59 = vpop.eup %7665  ;;  %3695 = vmatpush.msra.mxu1 %v3328_v3  ;;  %v2817_v39 = vmul.f32 %v7664_v51, %v2625_v19  ;;  %v3202_v43 = vmul.f32 %v2530_v62, %v10464_v33  ;;  %v2402_v14 = vadd.f32 2.0, %v13672_v57  ;;  %v10921_v13 = vadd.f32 2.0, %v10899_v11 }
 0x298   : > { %7021 = vmatmul.msk.f32.vlgmr.msra.gmra.mxu1 %vm3436_vm3, %v10484_v21  ;;  %v2818_v23 = vmul.f32 %v7666_v59, %v2626_v6  ;;  %v10911_v16 = vpop.eup %7667  ;;  %7673 = vrcp.f32 %v2609_v52  ;;  %v2610_v28 = vadd.f32 2.0, %v2514_v56  ;;  %v10926_v25 = vadd.f32 %v2065_v42, %v9565_v12 }
 0x299   : > { %v2913_v10 = vsub.f32 2.0, %v2817_v39  ;;  %v10918_v21 = vpop.eup %7669  ;;  %v10929_v5 = vmul.f32 %v13671_v30, %v2401_v40  ;;  %v10932_v62 = vmul.f32 %v13672_v57, %v2402_v14  ;;  %v2149_v19 = vmin.f32 %v10907_v31, 20.0  ;;  %v2033_v53 = vpop.f32.mrf.mxu2 }
 0x29a   : > { %v2914_v20 = vsub.f32 2.0, %v2818_v23  ;;  %7019 = vmatmul.msk.f32.gmra.mxu0 %vm3436_vm3, %v10531_v24  ;;  %v10934_v35 = vpop.eup %7671  ;;  %7675 = vrcp.f32 %v2610_v28  ;;  %v2385_v60 = vadd.f32 2.0, %v13673_v26  ;;  %v2386_v4 = vadd.f32 2.0, %v13674_v48 }
 0x29b   : > { %v3009_v46 = vmul.f32 %v7664_v51, %v2913_v10  ;;  %7677 = vrcp.f32 %v10914_v61  ;;  %v2593_v12 = vadd.f32 2.0, %v10929_v5  ;;  %v2594_v6 = vadd.f32 2.0, %v10932_v62 }
 0x29c   : > { %v3010_v32 = vmul.f32 %v7666_v59, %v2914_v20  ;;  %7679 = vrcp.f32 %v10921_v13  ;;  %v10943_v0 = vmul.f32 %v13673_v26, %v2385_v60  ;;  %vm3106_vm13 = vcmp.gt.f32.partialorder %v10464_v33, 20.0  ;;  %v13676_v59 = vld [vmem:[#allocation59_spill] sm:$0xff]  ;;  %v13677_v26 = vld [vmem:[#allocation57_spill] sm:$0xff] }
 0x29d   : > { %v3297_v44 = vmul.f32 %v3201_v55, %v3009_v46  ;;  %7681 = vrcp.f32 %v2593_v12  ;;  %v2369_v37 = vadd.f32 2.0, %v13675_v1  ;;  %v2150_v29 = vmin.f32 %v10926_v25, 20.0 }
 0x29e   : > { %v3298_v38 = vmul.f32 %v3202_v43, %v3010_v32  ;;  %v7674_v8 = vpop.eup %7673  ;;  %vm3089_vm14 = vcmp.gt.f32.partialorder %v10363_v47, 20.0  ;;  %7683 = vrcp.f32 %v2594_v6  ;;  %v10957_v50 = vmul.f32 1.442695, %v2149_v19 }
 0x29f   : > { %v3393_v49 = vsel %vm3105_vm12, %v10457_v63, %v3297_v44  ;;  %v2577_v63 = vadd.f32 2.0, %v10943_v0  ;;  %v2801_v36 = vmul.f32 %v7674_v8, %v2609_v52  ;;  %v2482_v51 = vmul.f32 %v13674_v48, %v2386_v4  ;;  %v13678_v44 = vld [vmem:[#allocation47_spill] sm:$0xff] }
 0x2a0   : > { %3717 = vmatpush.msra.mxu2 %v3393_v49  ;;  %v3394_v2 = vsel %vm3106_vm13, %v10464_v33, %v3298_v38  ;;  %7022 = vmatmul.msk.f32.gmra.mxu1 %vm3436_vm3, %v10531_v24  ;;  %v10961_v3 = vmul.f32 %v13675_v1, %v2369_v37  ;;  %v7676_v33 = vpop.eup %7675  ;;  %vm3090_vm15 = vcmp.gt.f32.partialorder %v10380_v45, 20.0  ;;  %v2370_v39 = vadd.f32 2.0, %v13676_v59  ;;  %v2068_v24 = vpop.f32.mrf.mxu3 }
 0x2a1   : > { %3743 = vmatpush.msra.mxu3 %v3394_v2  ;;  %7685 = vrcp.f32 %v2577_v63  ;;  %v10966_v55 = vadd.f32 %v2033_v53, %v9575_v34  ;;  %v10970_v23 = vpop.eup %7677  ;;  %v2897_v52 = vsub.f32 2.0, %v2801_v36  ;;  %v3185_v42 = vmul.f32 %v10895_v15, %v10363_v47 }
 0x2a2   : > { %7020 = vmatmul.msk.f32.gmra.mxu0 %vm3436_vm3, %v10578_v54  ;;  %v2802_v30 = vmul.f32 %v7676_v33, %v2610_v28  ;;  %v2578_v40 = vadd.f32 2.0, %v2482_v51  ;;  %v10974_v10 = vpop.eup %7679  ;;  %v3186_v43 = vmul.f32 %v2514_v56, %v10380_v45  ;;  %v2561_v57 = vadd.f32 2.0, %v10961_v3 }
 0x2a3   : > { %v10979_v14 = vmul.f32 %v13676_v59, %v2370_v39  ;;  %v2165_v20 = vmin.f32 %v10966_v55, 20.0  ;;  %v7682_v46 = vpop.eup %7681  ;;  %v2993_v32 = vmul.f32 %v7674_v8, %v2897_v52  ;;  %vm3073_vm0 = vcmp.gt.f32.partialorder %v13677_v26, 20.0  ;;  %v13679_v8 = vld [vmem:[#allocation27_spill] sm:$0xff] }
 0x2a4   : > { %v2898_v19 = vsub.f32 2.0, %v2802_v30  ;;  %7687 = vrcp.f32 %v2578_v40  ;;  %v10984_v15 = vadd.f32 %v2068_v24, %v9575_v34  ;;  %v7684_v28 = vpop.eup %7683  ;;  %v2785_v60 = vmul.f32 %v7682_v46, %v2593_v12  ;;  %v3489_v24 = vpop.f32.mrf.mxu1 }
 0x2a5   : > { %vm3074_vm1 = vcmp.gt.f32.partialorder %v13678_v44, 20.0  ;;  %7689 = vrcp.f32 %v2561_v57  ;;  %v2562_v56 = vadd.f32 2.0, %v10979_v14  ;;  %v3281_v38 = vmul.f32 %v3185_v42, %v2993_v32  ;;  %v10999_v42 = vpop.permute.xlu2 %3423 }
 0x2a6   : > { %v2994_v48 = vmul.f32 %v7676_v33, %v2898_v19  ;;  %v2786_v4 = vmul.f32 %v7684_v28, %v2594_v6  ;;  %v2355_v49 = vmul.f32 1.442695, %v2165_v20  ;;  %v2881_v37 = vsub.f32 2.0, %v2785_v60  ;;  %v3463_v33 = vpop.f32.mrf.mxu0 }
 0x2a7   : > { %v7686_v1 = vpop.eup %7685  ;;  %v3169_v53 = vmul.f32 %v10929_v5, %v13677_v26  ;;  %vm3057_vm2 = vcmp.gt.f32.partialorder %v13679_v8, 20.0  ;;  %7691 = vrcp.f32 %v2562_v56  ;;  %v2166_v34 = vmin.f32 %v10984_v15, 20.0 }
 0x2a8   : > { %7023 = vmatmul.msk.f32.gmra.mxu1 %vm3436_vm3, %v10578_v54  ;;  %v3377_v12 = vsel %vm3089_vm14, %v10363_v47, %v3281_v38  ;;  %v3282_v2 = vmul.f32 %v3186_v43, %v2994_v48  ;;  %v2882_v6 = vsub.f32 2.0, %v2786_v4  ;;  %v2769_v36 = vmul.f32 %v7686_v1, %v2577_v63 }
 0x2a9   : > { %3718 = vmatpush.msra.mxu2 %v3377_v12  ;;  %v2977_v59 = vmul.f32 %v7682_v46, %v2881_v37  ;;  %v3170_v5 = vmul.f32 %v10932_v62, %v13678_v44  ;;  %7693 = vpow2.f32 %v2355_v49  ;;  %v2357_v39 = vmul.f32 1.442695, %v2166_v34  ;;  %v13680_v62 = vld [vmem:[#allocation13_spill] sm:$0xff] }
 0x2aa   : > { %v7688_v52 = vpop.eup %7687  ;;  %v3378_v54 = vsel %vm3090_vm15, %v10380_v45, %v3282_v2  ;;  %v2978_v47 = vmul.f32 %v7684_v28, %v2882_v6  ;;  %v2865_v30 = vsub.f32 2.0, %v2769_v36  ;;  %v3153_v63 = vmul.f32 %v10943_v0, %v13679_v8  ;;  %v13683_v34 = vld [vmem:[#allocation9_spill] sm:$0xff] }
 0x2ab   : > { %v7690_v43 = vpop.eup %7689  ;;  %3744 = vmatpush.msra.mxu3 %v3378_v54  ;;  %v3265_v20 = vmul.f32 %v3169_v53, %v2977_v59  ;;  %v2770_v46 = vmul.f32 %v7688_v52, %v2578_v40  ;;  %v3154_v32 = vmul.f32 %v2482_v51, %v13680_v62  ;;  %v11008_v19 = vadd.f32 %v3463_v33, %v10999_v42 }
 0x2ac   : > { %v3266_v60 = vmul.f32 %v3170_v5, %v2978_v47  ;;  %v2961_v38 = vmul.f32 %v7686_v1, %v2865_v30  ;;  %v2753_v48 = vmul.f32 %v7690_v43, %v2561_v57  ;;  %v11011_v4 = vadd.f32 %v3489_v24, %v10999_v42  ;;  %v13684_v24 = vld [vmem:[#allocation21_spill] sm:$0xff]  ;;  %v3492_v30 = vpop.f32.mrf.mxu1 }
 0x2ad   : > { %13681 = vst [vmem:[#allocation38_spill] sm:$0xff] %v11008_v19  ;;  %v7692_v45 = vpop.eup %7691  ;;  %v3361_v0 = vsel %vm3073_vm0, %v13677_v26, %v3265_v20  ;;  %v2866_v28 = vsub.f32 2.0, %v2770_v46  ;;  %7695 = vpow2.f32 %v2357_v39  ;;  %v2835_v40 = vmul.f32 %v10970_v23, %v10914_v61 }
 0x2ae   : > { %13682 = vst [vmem:[#allocation60_spill] sm:$0xff] %v11011_v4  ;;  %3719 = vmatpush.msra.mxu2 %v3361_v0  ;;  %v3362_v51 = vsel %vm3074_vm1, %v13678_v44, %v3266_v60  ;;  %v3249_v49 = vmul.f32 %v3153_v63, %v2961_v38  ;;  %v2849_v57 = vsub.f32 2.0, %v2753_v48  ;;  %v2754_v1 = vmul.f32 %v7692_v45, %v2562_v56  ;;  %v11038_v63 = vpop.permute.xlu1 %3428 }
 0x2af   : > { %v7694_v37 = vpop.eup %7693  ;;  %3745 = vmatpush.msra.mxu3 %v3362_v51  ;;  %v2962_v53 = vmul.f32 %v7688_v52, %v2866_v28  ;;  %v3137_v12 = vmul.f32 %v10961_v3, %v13683_v34  ;;  %v3862_v26 = vmin.f32 %v11008_v19, 20.0  ;;  %v2931_v2 = vsub.f32 2.0, %v2835_v40  ;;  %v3466_v52 = vpop.f32.mrf.mxu0 }
 0x2b0   : > { %v3345_v61 = vsel %vm3057_vm2, %v13679_v8, %v3249_v49  ;;  %v2945_v6 = vmul.f32 %v7690_v43, %v2849_v57  ;;  %v2850_v36 = vsub.f32 2.0, %v2754_v1  ;;  %v2453_v33 = vadd.f32 2.0, %v7694_v37 }
 0x2b1   : > { %v3219_v44 = vmul.f32 %v10892_v41, %v10831_v58  ;;  %v2325_v56 = vmul.f32 1.442695, %v2150_v29  ;;  %3720 = vmatpush.msra.mxu2 %v3345_v61  ;;  %v3250_v59 = vmul.f32 %v3154_v32, %v2962_v53  ;;  %v3863_v3 = vmin.f32 %v11011_v4, 20.0 }
 0x2b2   : > { %vm3058_vm4 = vcmp.gt.f32.partialorder %v13680_v62, 20.0  ;;  %v3233_v5 = vmul.f32 %v3137_v12, %v2945_v6  ;;  %v2946_v39 = vmul.f32 %v7692_v45, %v2850_v36  ;;  %v3138_v8 = vmul.f32 %v10979_v14, %v13684_v24 }
 0x2b3   : > { %v7696_v54 = vpop.eup %7695  ;;  %v3346_v47 = vsel %vm3058_vm4, %v13680_v62, %v3250_v59  ;;  %vm3041_vm5 = vcmp.gt.f32.partialorder %v13683_v34, 20.0  ;;  %v3910_v41 = vmul.f32 1.442695, %v3862_v26  ;;  %v3027_v29 = vmul.f32 %v10970_v23, %v2931_v2  ;;  %v11050_v23 = vld [vmem:[%s13209_s0 + $0x48] sm:$0xff]  ;;  %v13687_v2 = vld [vmem:[#allocation32_spill] sm:$0xff] }
 0x2b4   : > { %7697 = vpow2.f32 %v10957_v50  ;;  %3746 = vmatpush.msra.mxu3 %v3346_v47  ;;  %v3329_v43 = vsel %vm3041_vm5, %v13683_v34, %v3233_v5  ;;  %v3234_v20 = vmul.f32 %v3138_v8, %v2946_v39  ;;  %v2549_v46 = vmul.f32 %v7694_v37, %v2453_v33  ;;  %v3495_v5 = vpop.f32.mrf.mxu1  ;;  %v13690_v47 = vld [vmem:[#allocation36_spill] sm:$0xff] }
 0x2b5   : > { %7699 = vpow2.f32 %v2325_v56  ;;  %3721 = vmatpush.msra.mxu2 %v3329_v43  ;;  %vm3042_vm6 = vcmp.gt.f32.partialorder %v13684_v24, 20.0  ;;  %v3912_v14 = vmul.f32 1.442695, %v3863_v3  ;;  %v11044_v62 = vadd.f32 %v3466_v52, %v11038_v63  ;;  %v11100_v56 = vld [vmem:[%s13209_s0 + $0x50] sm:$0xff]  ;;  %v11110_v52 = vpop.permute.xlu0 %3433 }
 0x2b6   : > { %v3330_v32 = vsel %vm3042_vm6, %v13684_v24, %v3234_v20  ;;  %7024 = vmatmul.msk.f32.vlgmr.msra.gmra.mxu2 %vm3436_vm3, %v11050_v23  ;;  %v11055_v50 = vadd.f32 %v3492_v30, %v11038_v63  ;;  %v3315_v60 = vmul.f32 %v3219_v44, %v3027_v29  ;;  %v2836_v38 = vmul.f32 %v10974_v10, %v10921_v13 }
 0x2b7   : > { %13685 = vst [vmem:[#allocation51_spill] sm:$0xff] %v11044_v62  ;;  %3747 = vmatpush.msra.mxu3 %v3330_v32  ;;  %v2454_v48 = vadd.f32 2.0, %v7696_v54  ;;  %7701 = vpow2.f32 %v3910_v41  ;;  %vm3123_vm7 = vcmp.gt.f32.partialorder %v10831_v58, 20.0  ;;  %v11062_v45 = vadd.f32 2.0, %v2549_v46  ;;  %v3469_v3 = vpop.f32.mrf.mxu0  ;;  %v13691_v32 = vld [vmem:[#allocation39_spill] sm:$0xff] }
 0x2b8   : > { %13686 = vst [vmem:[#allocation61_spill] sm:$0xff] %v11055_v50  ;;  %7027 = vmatmul.msk.f32.vlgmr.msra.gmra.mxu3 %vm3436_vm3, %v11050_v23  ;;  %v3411_v0 = vsel %vm3123_vm7, %v10831_v58, %v3315_v60  ;;  %v2932_v28 = vsub.f32 2.0, %v2836_v38  ;;  %v2435_v40 = vadd.f32 2.0, %v10816_v7  ;;  %v3220_v51 = vmul.f32 %v10899_v11, %v10838_v27 }
 0x2b9   : > { %7703 = vpow2.f32 %v3912_v14  ;;  %v3878_v13 = vmin.f32 %v11044_v62, 20.0  ;;  %3768 = vmatpush.msrb.mxu0 %v3411_v0  ;;  %v2436_v49 = vadd.f32 2.0, %v10911_v16  ;;  %v3879_v1 = vmin.f32 %v11055_v50, 20.0  ;;  %v13692_v0 = vld [vmem:[#allocation52_spill] sm:$0xff] }
 0x2ba   : > { %v11070_v57 = vpop.eup %7697  ;;  %v3028_v37 = vmul.f32 %v10974_v10, %v2932_v28  ;;  %v2531_v58 = vmul.f32 %v10816_v7, %v2435_v40  ;;  %v2419_v53 = vadd.f32 2.0, %v10765_v22  ;;  %v2550_v12 = vmul.f32 %v7696_v54, %v2454_v48 }
 0x2bb   : > { %v11076_v34 = vpop.eup %7699  ;;  %v11079_v11 = vmul.f32 %v10911_v16, %v2436_v49  ;;  %v2420_v26 = vadd.f32 2.0, %v10778_v18  ;;  %v2403_v61 = vadd.f32 2.0, %v13687_v2  ;;  %7705 = vrcp.f32 %v11062_v45 }
 0x2bc   : > { %v3316_v6 = vmul.f32 %v3220_v51, %v3028_v37  ;;  %v2627_v36 = vadd.f32 2.0, %v2531_v58  ;;  %v11085_v10 = vmul.f32 %v10765_v22, %v2419_v53  ;;  %vm3124_vm9 = vcmp.gt.f32.partialorder %v10838_v27, 20.0  ;;  %v13693_v51 = vld [vmem:[#allocation7_spill] sm:$0xff]  ;;  %v13694_v53 = vld [vmem:[#allocation10_spill] sm:$0xff] }
 0x2bd   : > { %v11087_v7 = vpop.eup %7701  ;;  %v2628_v33 = vadd.f32 2.0, %v11079_v11  ;;  %v11092_v16 = vmul.f32 %v10778_v18, %v2420_v26  ;;  %v11095_v44 = vmul.f32 %v13687_v2, %v2403_v61  ;;  %v3942_v39 = vmul.f32 1.442695, %v3878_v13  ;;  %v11153_v61 = vld [vmem:[%s13209_s0 + $0x58] sm:$0xff] }
 0x2be   : > { %13688 = vst [vmem:[#allocation62_spill] sm:$0xff] %v11087_v7  ;;  %7025 = vmatmul.msk.f32.gmra.mxu2 %vm3436_vm3, %v11100_v56  ;;  %v3412_v22 = vsel %vm3124_vm9, %v10838_v27, %v3316_v6  ;;  %7707 = vrcp.f32 %v2627_v36  ;;  %v2611_v59 = vadd.f32 2.0, %v11085_v10  ;;  %v11113_v54 = vmul.f32 %v2549_v46, %v10966_v55 }
 0x2bf   : > { %v11106_v18 = vpop.eup %7703  ;;  %3794 = vmatpush.msrb.mxu1 %v3412_v22  ;;  %7709 = vrcp.f32 %v2628_v33  ;;  %v2612_v24 = vadd.f32 2.0, %v11092_v16  ;;  %v2595_v8 = vadd.f32 2.0, %v11095_v44  ;;  %v11115_v27 = vadd.f32 2.0, %v2550_v12 }
 0x2c0   : > { %13689 = vst [vmem:[#allocation56_spill] sm:$0xff] %v11106_v18  ;;  %7028 = vmatmul.msk.f32.gmra.mxu3 %vm3436_vm3, %v11100_v56  ;;  %7711 = vrcp.f32 %v2611_v59  ;;  %v2404_v41 = vadd.f32 2.0, %v13690_v47  ;;  %v11120_v30 = vmul.f32 1.442695, %v3879_v1  ;;  %v11123_v29 = vadd.f32 %v3469_v3, %v11110_v52  ;;  %v13695_v3 = vld [vmem:[#allocation20_spill] sm:$0xff] }
 0x2c1   : > { %7713 = vrcp.f32 %v2612_v24  ;;  %v11126_v43 = vadd.f32 %v3495_v5, %v11110_v52  ;;  %v11128_v20 = vpop.eup %7705  ;;  %v11131_v46 = vmul.f32 %v2550_v12, %v10984_v15  ;;  %v2387_v60 = vadd.f32 2.0, %v13691_v32 }
 0x2c2   : > { %7715 = vrcp.f32 %v2595_v8  ;;  %v11134_v14 = vmul.f32 %v13690_v47, %v2404_v41  ;;  %v3894_v38 = vmin.f32 %v11123_v29, 20.0  ;;  %v2388_v28 = vadd.f32 2.0, %v13692_v0 }
 0x2c3   : > { %7717 = vpow2.f32 %v3942_v39  ;;  %v3895_v48 = vmin.f32 %v11126_v43, 20.0  ;;  %vm3107_vm10 = vcmp.gt.f32.partialorder %v13693_v51, 20.0  ;;  %v11144_v49 = vmul.f32 %v13691_v32, %v2387_v60 }
 0x2c4   : > { %v7708_v40 = vpop.eup %7707  ;;  %7719 = vrcp.f32 %v11115_v27  ;;  %v2596_v13 = vadd.f32 2.0, %v11134_v14  ;;  %vm3108_vm11 = vcmp.gt.f32.partialorder %v13694_v53, 20.0  ;;  %v3974_v12 = vmul.f32 1.442695, %v3894_v38 }
 0x2c5   : > { %v7710_v1 = vpop.eup %7709  ;;  %v2819_v37 = vmul.f32 %v7708_v40, %v2627_v36  ;;  %v11148_v26 = vmul.f32 %v13692_v0, %v2388_v28  ;;  %v3203_v6 = vmul.f32 %v2531_v58, %v13693_v51  ;;  %vm3091_vm12 = vcmp.gt.f32.partialorder %v13695_v3, 20.0 }
 0x2c6   : > { %v7712_v2 = vpop.eup %7711  ;;  %7026 = vmatmul.msk.f32.gmra.mxu2 %vm3436_vm3, %v11153_v61  ;;  %v2820_v22 = vmul.f32 %v7710_v1, %v2628_v33  ;;  %7721 = vrcp.f32 %v2596_v13  ;;  %v2579_v36 = vadd.f32 2.0, %v11144_v49  ;;  %v3976_v41 = vmul.f32 1.442695, %v3895_v48 }
 0x2c7   : > { %v7714_v5 = vpop.eup %7713  ;;  %v2915_v39 = vsub.f32 2.0, %v2819_v37  ;;  %v2803_v47 = vmul.f32 %v7712_v2, %v2611_v59  ;;  %v2580_v32 = vadd.f32 2.0, %v11148_v26  ;;  %v3204_v58 = vmul.f32 %v11079_v11, %v13694_v53  ;;  %v3515_v11 = vpop.f32.mrf.mxu2 }
 0x2c8   : > { %v7716_v60 = vpop.eup %7715  ;;  %7029 = vmatmul.msk.f32.gmra.mxu3 %vm3436_vm3, %v11153_v61  ;;  %v2916_v38 = vsub.f32 2.0, %v2820_v22  ;;  %v2804_v33 = vmul.f32 %v7714_v5, %v2612_v24  ;;  %7723 = vpow2.f32 %v3974_v12  ;;  %v3187_v37 = vmul.f32 %v11085_v10, %v13695_v3 }
 0x2c9   : > { %v11165_v0 = vpop.eup %7717  ;;  %v3011_v28 = vmul.f32 %v7708_v40, %v2915_v39  ;;  %v2899_v4 = vsub.f32 2.0, %v2803_v47  ;;  %v2787_v19 = vmul.f32 %v7716_v60, %v2595_v8  ;;  %7725 = vrcp.f32 %v2579_v36  ;;  %v13696_v40 = vld [vmem:[#allocation46_spill] sm:$0xff] }
 0x2ca   : > { %v11167_v59 = vpop.eup %7719  ;;  %v3012_v48 = vmul.f32 %v7710_v1, %v2916_v38  ;;  %v2900_v50 = vsub.f32 2.0, %v2804_v33  ;;  %7727 = vrcp.f32 %v2580_v32  ;;  %v3188_v8 = vmul.f32 %v11092_v16, %v13696_v40  ;;  %v13697_v39 = vld [vmem:[#allocation14_spill] sm:$0xff] }
 0x2cb   : > { %v3299_v22 = vmul.f32 %v3203_v6, %v3011_v28  ;;  %v2995_v62 = vmul.f32 %v7712_v2, %v2899_v4  ;;  %v2883_v18 = vsub.f32 2.0, %v2787_v19  ;;  %7729 = vpow2.f32 %v3976_v41  ;;  %v13698_v2 = vld [vmem:[#allocation16_spill] sm:$0xff]  ;;  %v13699_v41 = vld [vmem:[#allocation15_spill] sm:$0xff] }
 0x2cc   : > { %v7722_v24 = vpop.eup %7721  ;;  %v3300_v12 = vmul.f32 %v3204_v58, %v3012_v48  ;;  %v2996_v7 = vmul.f32 %v7714_v5, %v2900_v50  ;;  %v3171_v47 = vmul.f32 %v11095_v44, %v13697_v39  ;;  %vm3092_vm13 = vcmp.gt.f32.partialorder %v13696_v40, 20.0 }
 0x2cd   : > { %v3395_v10 = vsel %vm3107_vm10, %v13693_v51, %v3299_v22  ;;  %v3283_v1 = vmul.f32 %v3187_v37, %v2995_v62  ;;  %v2979_v38 = vmul.f32 %v7716_v60, %v2883_v18  ;;  %v2788_v6 = vmul.f32 %v7722_v24, %v2596_v13 }
 0x2ce   : > { %v7724_v4 = vpop.eup %7723  ;;  %3769 = vmatpush.msrb.mxu0 %v3395_v10  ;;  %v3396_v19 = vsel %vm3108_vm11, %v13694_v53, %v3300_v12  ;;  %v3284_v50 = vmul.f32 %v3188_v8, %v2996_v7  ;;  %v11183_v16 = vadd.f32 %v3515_v11, %v10999_v42  ;;  %vm3075_vm14 = vcmp.gt.f32.partialorder %v13697_v39, 20.0 }
 0x2cf   : > { %v7726_v44 = vpop.eup %7725  ;;  %3795 = vmatpush.msrb.mxu1 %v3396_v19  ;;  %v3379_v62 = vsel %vm3091_vm12, %v13695_v3, %v3283_v1  ;;  %v3267_v18 = vmul.f32 %v3171_v47, %v2979_v38  ;;  %v2884_v51 = vsub.f32 2.0, %v2788_v6  ;;  %v3172_v7 = vmul.f32 %v11134_v14, %v13698_v2  ;;  %v13700_v14 = vld [vmem:[#allocation35_spill] sm:$0xff] }
 0x2d0   : > { %v7728_v13 = vpop.eup %7727  ;;  %3770 = vmatpush.msrb.mxu0 %v3379_v62  ;;  %v3380_v53 = vsel %vm3092_vm13, %v13696_v40, %v3284_v50  ;;  %v2771_v5 = vmul.f32 %v7726_v44, %v2579_v36  ;;  %v2371_v60 = vadd.f32 2.0, %v13699_v41  ;;  %v4038_v3 = vadd.f32 2.0, %v7724_v4  ;;  %v13702_v38 = vld [vmem:[#allocation31_spill] sm:$0xff] }
 0x2d1   : > { %v7730_v58 = vpop.eup %7729  ;;  %3796 = vmatpush.msrb.mxu1 %v3380_v53  ;;  %v3363_v33 = vsel %vm3075_vm14, %v13697_v39, %v3267_v18  ;;  %v2980_v28 = vmul.f32 %v7722_v24, %v2884_v51  ;;  %v2772_v48 = vmul.f32 %v7728_v13, %v2580_v32  ;;  %7731 = vpow2.f32 %v11120_v30  ;;  %v3541_v24 = vpop.f32.mrf.mxu3  ;;  %v13701_v30 = vld [vmem:[#allocation49_spill] sm:$0xff] }
 0x2d2   : > { %3771 = vmatpush.msrb.mxu0 %v3363_v33  ;;  %vm3076_vm15 = vcmp.gt.f32.partialorder %v13698_v2, 20.0  ;;  %v2867_v37 = vsub.f32 2.0, %v2771_v5  ;;  %v3864_v22 = vmin.f32 %v11183_v16, 20.0  ;;  %vm3059_vm0 = vcmp.gt.f32.partialorder %v13700_v14, 20.0 }
 0x2d3   : > { %v3268_v11 = vmul.f32 %v3172_v7, %v2980_v28  ;;  %v3155_v36 = vmul.f32 %v11144_v49, %v13700_v14  ;;  %v2868_v12 = vsub.f32 2.0, %v2772_v48  ;;  %v4039_v40 = vadd.f32 2.0, %v7730_v58 }
 0x2d4   : > { %v2963_v8 = vmul.f32 %v7726_v44, %v2867_v37  ;;  %v11201_v32 = vmul.f32 %v13699_v41, %v2371_v60  ;;  %v2372_v39 = vadd.f32 2.0, %v13701_v30  ;;  %v4086_v10 = vmul.f32 %v7724_v4, %v4038_v3 }
 0x2d5   : > { %v3364_v47 = vsel %vm3076_vm15, %v13698_v2, %v3268_v11  ;;  %v2964_v1 = vmul.f32 %v7728_v13, %v2868_v12  ;;  %v3156_v6 = vmul.f32 %v11148_v26, %v13702_v38  ;;  %vm3060_vm1 = vcmp.gt.f32.partialorder %v13702_v38, 20.0 }
 0x2d6   : > { %3797 = vmatpush.msrb.mxu1 %v3364_v47  ;;  %v3251_v19 = vmul.f32 %v3155_v36, %v2963_v8  ;;  %v3914_v49 = vmul.f32 1.442695, %v3864_v22  ;;  %v2563_v50 = vadd.f32 2.0, %v11201_v32  ;;  %v11210_v62 = vadd.f32 %v3541_v24, %v10999_v42 }
 0x2d7   : > { %v3252_v44 = vmul.f32 %v3156_v6, %v2964_v1  ;;  %v11213_v18 = vmul.f32 %v13701_v30, %v2372_v39  ;;  %v2837_v4 = vmul.f32 %v11128_v20, %v11062_v45  ;;  %v11217_v51 = vpop.eup %7731  ;;  %v4087_v26 = vmul.f32 %v7730_v58, %v4039_v40 }
 0x2d8   : > { %v3347_v13 = vsel %vm3059_vm0, %v13700_v14, %v3251_v19  ;;  %7733 = vrcp.f32 %v2563_v50  ;;  %v2838_v53 = vmul.f32 %v11167_v59, %v11115_v27  ;;  %v11224_v2 = vadd.f32 2.0, %v4086_v10  ;;  %v13704_v19 = vld [vmem:[#allocation6_spill] sm:$0xff] }
 0x2d9   : > { %3772 = vmatpush.msrb.mxu0 %v3347_v13  ;;  %v3348_v7 = vsel %vm3060_vm1, %v13702_v38, %v3252_v44  ;;  %v2564_v5 = vadd.f32 2.0, %v11213_v18  ;;  %v2933_v41 = vsub.f32 2.0, %v2837_v4  ;;  %7735 = vpow2.f32 %v3914_v49  ;;  %v13705_v44 = vld [vmem:[#allocation29_spill] sm:$0xff] }
 0x2da   : > { %3798 = vmatpush.msrb.mxu1 %v3348_v7  ;;  %v2934_v45 = vsub.f32 2.0, %v2838_v53  ;;  %v2437_v60 = vadd.f32 2.0, %v11070_v57  ;;  %v2438_v58 = vadd.f32 2.0, %v11076_v34  ;;  %v3865_v33 = vmin.f32 %v11210_v62, 20.0  ;;  %v13706_v4 = vld [vmem:[#allocation37_spill] sm:$0xff] }
 0x2db   : > { %7737 = vrcp.f32 %v2564_v5  ;;  %v3029_v27 = vmul.f32 %v11128_v20, %v2933_v41  ;;  %v2421_v28 = vadd.f32 2.0, %v10918_v21  ;;  %v11233_v3 = vadd.f32 2.0, %v4087_v26 }
 0x2dc   : > { %v3030_v48 = vmul.f32 %v11167_v59, %v2934_v45  ;;  %v2533_v37 = vmul.f32 %v11070_v57, %v2437_v60  ;;  %v11238_v22 = vmul.f32 %v11076_v34, %v2438_v58  ;;  %7739 = vrcp.f32 %v11224_v2  ;;  %v13707_v45 = vld [vmem:[#allocation17_spill] sm:$0xff] }
 0x2dd   : > { %v3317_v11 = vmul.f32 %v11113_v54, %v3029_v27  ;;  %v11243_v14 = vmul.f32 %v10918_v21, %v2421_v28  ;;  %v2422_v20 = vadd.f32 2.0, %v10934_v35  ;;  %vm3125_vm2 = vcmp.gt.f32.partialorder %v10966_v55, 20.0  ;;  %v13703_v21 = vld [vmem:[#allocation33_spill] sm:$0xff] }
 0x2de   : > { %v7734_v36 = vpop.eup %7733  ;;  %v3318_v12 = vmul.f32 %v11131_v46, %v3030_v48  ;;  %v2629_v59 = vadd.f32 2.0, %v2533_v37  ;;  %v2630_v57 = vadd.f32 2.0, %v11238_v22  ;;  %vm3126_vm4 = vcmp.gt.f32.partialorder %v10984_v15, 20.0 }
 0x2df   : > { %v2755_v40 = vmul.f32 %v7734_v36, %v2563_v50  ;;  %v3413_v34 = vsel %vm3125_vm2, %v10966_v55, %v3317_v11  ;;  %v2613_v54 = vadd.f32 2.0, %v11243_v14  ;;  %v11252_v8 = vpop.eup %7735  ;;  %vm3043_vm5 = vcmp.gt.f32.partialorder %v13703_v21, 20.0 }
 0x2e0   : > { %3820 = vmatpush.msrb.mxu2 %v3413_v34  ;;  %v3414_v24 = vsel %vm3126_vm4, %v10984_v15, %v3318_v12  ;;  %7741 = vrcp.f32 %v2629_v59  ;;  %v11257_v46 = vmul.f32 %v10934_v35, %v2422_v20  ;;  %v11260_v39 = vmul.f32 %v4086_v10, %v11123_v29  ;;  %v3544_v12 = vpop.f32.mrf.mxu3 }
 0x2e1   : > { %v7738_v30 = vpop.eup %7737  ;;  %v3916_v55 = vmul.f32 1.442695, %v3865_v33  ;;  %v2851_v47 = vsub.f32 2.0, %v2755_v40  ;;  %3846 = vmatpush.msrb.mxu3 %v3414_v24  ;;  %7743 = vrcp.f32 %v2630_v57  ;;  %v11263_v1 = vmul.f32 %v4087_v26, %v11126_v43 }
 0x2e2   : > { %v2756_v38 = vmul.f32 %v7738_v30, %v2564_v5  ;;  %7745 = vrcp.f32 %v2613_v54  ;;  %v2614_v6 = vadd.f32 2.0, %v11257_v46  ;;  %v11266_v15 = vpop.eup %7739  ;;  %v3139_v10 = vmul.f32 %v11201_v32, %v13703_v21 }
 0x2e3   : > { %7747 = vrcp.f32 %v11233_v3  ;;  %v2947_v35 = vmul.f32 %v7734_v36, %v2851_v47  ;;  %v2405_v49 = vadd.f32 2.0, %v13704_v19  ;;  %vm3044_vm6 = vcmp.gt.f32.partialorder %v13705_v44, 20.0 }
 0x2e4   : > { %v2852_v50 = vsub.f32 2.0, %v2756_v38  ;;  %7749 = vrcp.f32 %v2614_v6  ;;  %v2406_v26 = vadd.f32 2.0, %v13706_v4  ;;  %v3140_v53 = vmul.f32 %v11213_v18, %v13705_v44  ;;  %v3518_v18 = vpop.f32.mrf.mxu2 }
 0x2e5   : > { %7751 = vpow2.f32 %v3916_v55  ;;  %v3235_v13 = vmul.f32 %v3139_v10, %v2947_v35  ;;  %v11277_v7 = vmul.f32 %v13704_v19, %v2405_v49  ;;  %vm3109_vm7 = vcmp.gt.f32.partialorder %v10907_v31, 20.0 }
 0x2e6   : > { %v7742_v5 = vpop.eup %7741  ;;  %v2948_v41 = vmul.f32 %v7738_v30, %v2852_v50  ;;  %v11281_v32 = vmul.f32 %v13706_v4, %v2406_v26  ;;  %v2389_v60 = vadd.f32 2.0, %v13707_v45  ;;  %vm3110_vm9 = vcmp.gt.f32.partialorder %v10926_v25, 20.0  ;;  %v13708_v26 = vld [vmem:[#allocation12_spill] sm:$0xff] }
 0x2e7   : > { %v7744_v58 = vpop.eup %7743  ;;  %v3331_v33 = vsel %vm3043_vm5, %v13703_v21, %v3235_v13  ;;  %v2821_v27 = vmul.f32 %v7742_v5, %v2629_v59  ;;  %v2597_v28 = vadd.f32 2.0, %v11277_v7  ;;  %v3205_v20 = vmul.f32 %v2533_v37, %v10907_v31 }
 0x2e8   : > { %v7746_v48 = vpop.eup %7745  ;;  %3773 = vmatpush.msrb.mxu0 %v3331_v33  ;;  %v3236_v11 = vmul.f32 %v3140_v53, %v2948_v41  ;;  %v2822_v36 = vmul.f32 %v7744_v58, %v2630_v57  ;;  %vm3093_vm10 = vcmp.gt.f32.partialorder %v10789_v9, 20.0  ;;  %v2598_v21 = vadd.f32 2.0, %v11281_v32 }
 0x2e9   : > { %v11291_v40 = vpop.eup %7747  ;;  %7030 = vmatmul.msk.f32.vlgmr.msrb.gmra.mxu0 %vm3436_vm3, %v11050_v23  ;;  %v2917_v59 = vsub.f32 2.0, %v2821_v27  ;;  %v2805_v34 = vmul.f32 %v7746_v48, %v2613_v54  ;;  %7753 = vrcp.f32 %v2597_v28  ;;  %v3206_v57 = vmul.f32 %v11238_v22, %v10926_v25 }
 0x2ea   : > { %v7750_v24 = vpop.eup %7749  ;;  %v3332_v30 = vsel %vm3044_vm6, %v13705_v44, %v3236_v11  ;;  %v2918_v37 = vsub.f32 2.0, %v2822_v36  ;;  %v11302_v55 = vmul.f32 %v13707_v45, %v2389_v60  ;;  %7755 = vrcp.f32 %v2598_v21 }
 0x2eb   : > { %v11304_v47 = vpop.eup %7751  ;;  %3799 = vmatpush.msrb.mxu1 %v3332_v30  ;;  %v3013_v38 = vmul.f32 %v7742_v5, %v2917_v59  ;;  %v2901_v54 = vsub.f32 2.0, %v2805_v34  ;;  %v2806_v35 = vmul.f32 %v7750_v24, %v2614_v6  ;;  %v3189_v19 = vmul.f32 %v11243_v14, %v10789_v9  ;;  %v13709_v5 = vld [vmem:[#allocation45_spill] sm:$0xff]  ;;  %v3547_v30 = vpop.f32.mrf.mxu3 }
 0x2ec   : > { %7033 = vmatmul.msk.f32.vlgmr.msrb.gmra.mxu1 %vm3436_vm3, %v11050_v23  ;;  %v3014_v10 = vmul.f32 %v7744_v58, %v2918_v37  ;;  %v11311_v49 = vadd.f32 %v3518_v18, %v11038_v63  ;;  %v2581_v22 = vadd.f32 2.0, %v11302_v55  ;;  %v2390_v13 = vadd.f32 2.0, %v13708_v26  ;;  %v3521_v36 = vpop.f32.mrf.mxu2 }
 0x2ed   : > { %v3301_v50 = vmul.f32 %v3205_v20, %v3013_v38  ;;  %v2997_v44 = vmul.f32 %v7746_v48, %v2901_v54  ;;  %v2902_v4 = vsub.f32 2.0, %v2806_v35  ;;  %v3190_v6 = vmul.f32 %v11257_v46, %v10814_v17 }
 0x2ee   : > { %v3302_v53 = vmul.f32 %v3206_v57, %v3014_v10  ;;  %7757 = vrcp.f32 %v2581_v22  ;;  %v2373_v41 = vadd.f32 2.0, %v13709_v5  ;;  %v11322_v33 = vmul.f32 %v13708_v26, %v2390_v13  ;;  %v13711_v57 = vld [vmem:[#allocation41_spill] sm:$0xff]  ;;  %v13712_v26 = vld [vmem:[#allocation44_spill] sm:$0xff] }
 0x2ef   : > { %v7754_v45 = vpop.eup %7753  ;;  %v3397_v14 = vsel %vm3109_vm7, %v10907_v31, %v3301_v50  ;;  %v3285_v60 = vmul.f32 %v3189_v19, %v2997_v44  ;;  %v2998_v58 = vmul.f32 %v7750_v24, %v2902_v4  ;;  %vm3094_vm11 = vcmp.gt.f32.partialorder %v10814_v17, 20.0 }
 0x2f0   : > { %3821 = vmatpush.msrb.mxu2 %v3397_v14  ;;  %v3398_v27 = vsel %vm3110_vm9, %v10926_v25, %v3302_v53  ;;  %v2789_v46 = vmul.f32 %v7754_v45, %v2597_v28  ;;  %v11329_v18 = vmul.f32 %v13709_v5, %v2373_v41  ;;  %v7756_v48 = vpop.eup %7755  ;;  %v11335_v20 = vadd.f32 %v3544_v12, %v11038_v63  ;;  %v13710_v12 = vld [vmem:[#allocation48_spill] sm:$0xff] }
 0x2f1   : > { %3847 = vmatpush.msrb.mxu3 %v3398_v27  ;;  %v3381_v31 = vsel %vm3093_vm10, %v10789_v9, %v3285_v60  ;;  %v3286_v11 = vmul.f32 %v3190_v6, %v2998_v58  ;;  %7031 = vmatmul.msk.f32.gmra.mxu0 %vm3436_vm3, %v11100_v56  ;;  %v2582_v25 = vadd.f32 2.0, %v11322_v33  ;;  %v3880_v28 = vmin.f32 %v11311_v49, 20.0  ;;  %v13713_v27 = vld [vmem:[#allocation25_spill] sm:$0xff] }
 0x2f2   : > { %3822 = vmatpush.msrb.mxu2 %v3381_v31  ;;  %v2885_v59 = vsub.f32 2.0, %v2789_v46  ;;  %v2790_v34 = vmul.f32 %v7756_v48, %v2598_v21  ;;  %v2565_v24 = vadd.f32 2.0, %v11329_v18  ;;  %v3173_v37 = vmul.f32 %v11277_v7, %v13710_v12 }
 0x2f3   : > { %v3382_v9 = vsel %vm3094_vm11, %v10814_v17, %v3286_v11  ;;  %7759 = vrcp.f32 %v2582_v25  ;;  %v2374_v38 = vadd.f32 2.0, %v13711_v57  ;;  %v11351_v21 = vadd.f32 %v3521_v36, %v11110_v52  ;;  %v3567_v36 = vpop.f32.mrf.mxu0 }
 0x2f4   : > { %v7758_v54 = vpop.eup %7757  ;;  %3848 = vmatpush.msrb.mxu3 %v3382_v9  ;;  %v2981_v35 = vmul.f32 %v7754_v45, %v2885_v59  ;;  %v2886_v10 = vsub.f32 2.0, %v2790_v34  ;;  %7034 = vmatmul.msk.f32.gmra.mxu1 %vm3436_vm3, %v11100_v56  ;;  %7761 = vrcp.f32 %v2565_v24  ;;  %v3881_v19 = vmin.f32 %v11335_v20, 20.0  ;;  %v3593_v59 = vpop.f32.mrf.mxu1 }
 0x2f5   : > { %v2773_v17 = vmul.f32 %v7758_v54, %v2581_v22  ;;  %v2470_v50 = vmul.f32 %v13711_v57, %v2374_v38  ;;  %v11356_v7 = vadd.f32 %v3547_v30, %v11110_v52  ;;  %v3174_v13 = vmul.f32 %v11281_v32, %v13712_v26 }
 0x2f6   : > { %v3269_v44 = vmul.f32 %v3173_v37, %v2981_v35  ;;  %v2982_v4 = vmul.f32 %v7756_v48, %v2886_v10  ;;  %v3896_v53 = vmin.f32 %v11351_v21, 20.0  ;;  %vm3077_vm12 = vcmp.gt.f32.partialorder %v13710_v12, 20.0  ;;  %v13714_v37 = vld [vmem:[#allocation18_spill] sm:$0xff] }
 0x2f7   : > { %v2869_v6 = vsub.f32 2.0, %v2773_v17  ;;  %v2566_v5 = vadd.f32 2.0, %v2470_v50  ;;  %v3897_v41 = vmin.f32 %v11356_v7, 20.0  ;;  %vm3078_vm13 = vcmp.gt.f32.partialorder %v13712_v26, 20.0 }
 0x2f8   : > { %v3365_v22 = vsel %vm3077_vm12, %v13710_v12, %v3269_v44  ;;  %v3270_v45 = vmul.f32 %v3174_v13, %v2982_v4  ;;  %v3978_v14 = vmul.f32 1.442695, %v3896_v53  ;;  %v3157_v32 = vmul.f32 %v11302_v55, %v13713_v27  ;;  %v13716_v4 = vld [vmem:[#allocation22_spill] sm:$0xff] }
 0x2f9   : > { %v7760_v60 = vpop.eup %7759  ;;  %3823 = vmatpush.msrb.mxu2 %v3365_v22  ;;  %v2965_v58 = vmul.f32 %v7758_v54, %v2869_v6  ;;  %7763 = vrcp.f32 %v2566_v5  ;;  %v3980_v46 = vmul.f32 1.442695, %v3897_v41  ;;  %7032 = vmatmul.msk.f32.gmra.mxu0 %vm3436_vm3, %v11153_v61  ;;  %v4230_v34 = vmul.f32 %v11266_v15, %v11224_v2  ;;  %v13715_v54 = vld [vmem:[#allocation28_spill] sm:$0xff] }
 0x2fa   : > { %v7762_v48 = vpop.eup %7761  ;;  %v3366_v31 = vsel %vm3078_vm13, %v13712_v26, %v3270_v45  ;;  %v2774_v11 = vmul.f32 %v7760_v60, %v2582_v25  ;;  %7765 = vpow2.f32 %v3978_v14  ;;  %v11372_v30 = vmul.f32 1.442695, %v3880_v28 }
 0x2fb   : > { %3849 = vmatpush.msrb.mxu3 %v3366_v31  ;;  %v3253_v9 = vmul.f32 %v3157_v32, %v2965_v58  ;;  %v2757_v55 = vmul.f32 %v7762_v48, %v2565_v24  ;;  %7767 = vpow2.f32 %v3980_v46  ;;  %vm3061_vm14 = vcmp.gt.f32.partialorder %v13713_v27, 20.0 }
 0x2fc   : > { %v2870_v12 = vsub.f32 2.0, %v2774_v11  ;;  %vm3062_vm15 = vcmp.gt.f32.partialorder %v13714_v37, 20.0  ;;  %7035 = vmatmul.msk.f32.gmra.mxu1 %vm3436_vm3, %v11153_v61  ;;  %v4278_v25 = vsub.f32 2.0, %v4230_v34  ;;  %vm3045_vm0 = vcmp.gt.f32.partialorder %v13715_v54, 20.0 }
 0x2fd   : > { %v3349_v57 = vsel %vm3061_vm14, %v13713_v27, %v3253_v9  ;;  %v2853_v38 = vsub.f32 2.0, %v2757_v55  ;;  %v4231_v2 = vmul.f32 %v11291_v40, %v11233_v3  ;;  %v3158_v24 = vmul.f32 %v11322_v33, %v13714_v37 }
 0x2fe   : > { %3824 = vmatpush.msrb.mxu2 %v3349_v57  ;;  %v2966_v28 = vmul.f32 %v7760_v60, %v2870_v12  ;;  %v3141_v35 = vmul.f32 %v11329_v18, %v13715_v54  ;;  %v4326_v10 = vmul.f32 %v11266_v15, %v4278_v25  ;;  %v3142_v26 = vmul.f32 %v2470_v50, %v13716_v4 }
 0x2ff   : > { %v7764_v17 = vpop.eup %7763  ;;  %v2949_v44 = vmul.f32 %v7762_v48, %v2853_v38  ;;  %v11389_v13 = vadd.f32 %v3567_v36, %v10999_v42  ;;  %v4279_v53 = vsub.f32 2.0, %v4231_v2  ;;  %v4022_v33 = vadd.f32 2.0, %v11165_v0 }
 0x300   : > { %v7766_v6 = vpop.eup %7765  ;;  %v3254_v3 = vmul.f32 %v3158_v24, %v2966_v28  ;;  %v2758_v41 = vmul.f32 %v7764_v17, %v2566_v5  ;;  %v4470_v22 = vmul.f32 %v11260_v39, %v4326_v10  ;;  %v11394_v15 = vadd.f32 %v3593_v59, %v10999_v42  ;;  %v3570_v5 = vpop.f32.mrf.mxu0 }
 0x301   : > { %v7768_v45 = vpop.eup %7767  ;;  %v3237_v14 = vmul.f32 %v3141_v35, %v2949_v44  ;;  %v4040_v18 = vadd.f32 2.0, %v7766_v6  ;;  %v4327_v60 = vmul.f32 %v11291_v40, %v4279_v53  ;;  %vm4374_vm1 = vcmp.gt.f32.partialorder %v11123_v29, 20.0  ;;  %v3596_v39 = vpop.f32.mrf.mxu1 }
 0x302   : > { %v3350_v50 = vsel %vm3062_vm15, %v13714_v37, %v3254_v3  ;;  %v2854_v58 = vsub.f32 2.0, %v2758_v41  ;;  %v4041_v27 = vadd.f32 2.0, %v7768_v45  ;;  %v4518_v48 = vsel %vm4374_vm1, %v11123_v29, %v4470_v22 }
 0x303   : > { %3850 = vmatpush.msrb.mxu3 %v3350_v50  ;;  %v3333_v32 = vsel %vm3045_vm0, %v13715_v54, %v3237_v14  ;;  %v4088_v46 = vmul.f32 %v7766_v6, %v4040_v18  ;;  %v4471_v40 = vmul.f32 %v11263_v1, %v4327_v60  ;;  %4577 = vmatpush.msra.mxu0 %v4518_v48  ;;  %vm4375_vm2 = vcmp.gt.f32.partialorder %v11126_v43, 20.0  ;;  %v13717_v54 = vld [vmem:[#allocation62_spill] sm:$0xff]  ;;  %v13719_v14 = vld [vmem:[#allocation51_spill] sm:$0xff] }
 0x304   : > { %3825 = vmatpush.msrb.mxu2 %v3333_v32  ;;  %v2950_v31 = vmul.f32 %v7764_v17, %v2854_v58  ;;  %v4089_v11 = vmul.f32 %v7768_v45, %v4041_v27  ;;  %v4070_v36 = vmul.f32 %v11165_v0, %v4022_v33  ;;  %v3866_v34 = vmin.f32 %v11389_v13, 20.0 }
 0x305   : > { %7036 = vmatmul.msk.f32.vlgmr.msrb.gmra.mxu2 %vm3436_vm3, %v11050_v23  ;;  %v4136_v59 = vadd.f32 2.0, %v4088_v46  ;;  %v4519_v9 = vsel %vm4375_vm2, %v11126_v43, %v4471_v40  ;;  %v4023_v29 = vadd.f32 2.0, %v11217_v51  ;;  %v3867_v12 = vmin.f32 %v11394_v15, 20.0 }
 0x306   : > { %v3238_v55 = vmul.f32 %v3142_v26, %v2950_v31  ;;  %v11413_v1 = vadd.f32 2.0, %v4089_v11  ;;  %4603 = vmatpush.msra.mxu1 %v4519_v9  ;;  %v4118_v37 = vadd.f32 2.0, %v4070_v36  ;;  %vm3046_vm4 = vcmp.gt.f32.partialorder %v13716_v4, 20.0 }
 0x307   : > { %7769 = vrcp.f32 %v4136_v59  ;;  %v4071_v0 = vmul.f32 %v11217_v51, %v4023_v29  ;;  %v3948_v25 = vmul.f32 1.442695, %v3881_v19  ;;  %v3918_v57 = vmul.f32 1.442695, %v3866_v34  ;;  %v13718_v51 = vld [vmem:[#allocation56_spill] sm:$0xff] }
 0x308   : > { %7771 = vpow2.f32 %v11372_v30  ;;  %v3334_v43 = vsel %vm3046_vm4, %v13716_v4, %v3238_v55  ;;  %v4006_v2 = vadd.f32 2.0, %v13717_v54  ;;  %v3920_v28 = vmul.f32 1.442695, %v3867_v12  ;;  %v3573_v30 = vpop.f32.mrf.mxu0  ;;  %v11437_v4 = vpop.f32.mrf.mxu3 }
 0x309   : > { %3851 = vmatpush.msrb.mxu3 %v3334_v43  ;;  %7773 = vrcp.f32 %v4118_v37  ;;  %v4119_v38 = vadd.f32 2.0, %v4071_v0  ;;  %v4007_v24 = vadd.f32 2.0, %v13718_v51  ;;  %v3599_v35 = vpop.f32.mrf.mxu1  ;;  %v11429_v10 = vadd.f32 %v3573_v30, %v11110_v52 }
 0x30a   : > { %7039 = vmatmul.msk.f32.vlgmr.msrb.gmra.mxu3 %vm3436_vm3, %v11050_v23  ;;  %7775 = vrcp.f32 %v11413_v1  ;;  %v4054_v19 = vmul.f32 %v13717_v54, %v4006_v2  ;;  %v11435_v44 = vadd.f32 %v3599_v35, %v11110_v52  ;;  %v3619_v23 = vpop.f32.mrf.mxu2  ;;  %v4424_v45 = vmul.f32 %v4088_v46, %v11351_v21  ;;  %v13720_v46 = vld [vmem:[#allocation61_spill] sm:$0xff] }
 0x30b   : > { %7777 = vrcp.f32 %v4119_v38  ;;  %v11432_v17 = vmul.f32 %v13718_v51, %v4007_v24  ;;  %v3898_v6 = vmin.f32 %v11429_v10, 20.0  ;;  %vm4358_vm5 = vcmp.gt.f32.partialorder %v13719_v14, 20.0 }
 0x30c   : > { %7779 = vpow2.f32 %v3948_v25  ;;  %v4102_v53 = vadd.f32 2.0, %v4054_v19  ;;  %v3899_v22 = vmin.f32 %v11435_v44, 20.0  ;;  %v11447_v18 = vadd.f32 %v3570_v5, %v11038_v63 }
 0x30d   : > { %v7770_v26 = vpop.eup %7769  ;;  %7037 = vmatmul.msk.f32.gmra.mxu2 %vm3436_vm3, %v11100_v56  ;;  %7781 = vpow2.f32 %v3918_v57  ;;  %v4103_v41 = vadd.f32 2.0, %v11432_v17  ;;  %v11450_v60 = vadd.f32 %v3596_v39, %v11038_v63  ;;  %v3982_v50 = vmul.f32 1.442695, %v3898_v6  ;;  %v13721_v57 = vld [vmem:[#allocation38_spill] sm:$0xff] }
 0x30e   : > { %v7772_v3 = vpop.eup %7771  ;;  %7783 = vpow2.f32 %v3920_v28  ;;  %v3984_v32 = vmul.f32 1.442695, %v3899_v22  ;;  %v4232_v48 = vmul.f32 %v7770_v26, %v4136_v59  ;;  %v4425_v31 = vmul.f32 %v4089_v11, %v11356_v7 }
 0x30f   : > { %v7774_v33 = vpop.eup %7773  ;;  %7785 = vrcp.f32 %v4102_v53  ;;  %v4406_v34 = vmul.f32 %v4070_v36, %v13719_v14  ;;  %vm4359_vm6 = vcmp.gt.f32.partialorder %v13720_v46, 20.0  ;;  %v4407_v59 = vmul.f32 %v4071_v0, %v13720_v46 }
 0x310   : > { %v7776_v58 = vpop.eup %7775  ;;  %v4214_v27 = vmul.f32 %v7774_v33, %v4118_v37  ;;  %7787 = vrcp.f32 %v4103_v41  ;;  %v4280_v29 = vsub.f32 2.0, %v4232_v48  ;;  %v3882_v12 = vmin.f32 %v11447_v18, 20.0  ;;  %v11474_v35 = vpop.f32.mrf.mxu3 }
 0x311   : > { %v7778_v40 = vpop.eup %7777  ;;  %7789 = vpow2.f32 %v3982_v50  ;;  %v4233_v11 = vmul.f32 %v7776_v58, %v11413_v1  ;;  %v3883_v43 = vmin.f32 %v11450_v60, 20.0  ;;  %v11469_v54 = vadd.f32 %v3619_v23, %v10999_v42 }
 0x312   : > { %v7780_v9 = vpop.eup %7779  ;;  %7040 = vmatmul.msk.f32.gmra.mxu3 %vm3436_vm3, %v11100_v56  ;;  %v4262_v5 = vsub.f32 2.0, %v4214_v27  ;;  %v4215_v39 = vmul.f32 %v7778_v40, %v4119_v38  ;;  %7791 = vpow2.f32 %v3984_v32  ;;  %v4328_v56 = vmul.f32 %v7770_v26, %v4280_v29  ;;  %v11472_v30 = vpop.f32.mrf.mxu2  ;;  %v13722_v29 = vld [vmem:[#allocation60_spill] sm:$0xff] }
 0x313   : > { %v11457_v55 = vpop.eup %7781  ;;  %v4390_v38 = vmul.f32 %v4054_v19, %v13721_v57  ;;  %v4281_v0 = vsub.f32 2.0, %v4233_v11  ;;  %v4024_v2 = vadd.f32 2.0, %v7772_v3  ;;  %vm4376_vm7 = vcmp.gt.f32.partialorder %v11351_v21, 20.0 }
 0x314   : > { %v11462_v36 = vpop.eup %7783  ;;  %v4310_v37 = vmul.f32 %v7774_v33, %v4262_v5  ;;  %v4263_v25 = vsub.f32 2.0, %v4215_v39  ;;  %v4472_v24 = vmul.f32 %v4424_v45, %v4328_v56  ;;  %v4025_v19 = vadd.f32 2.0, %v7780_v9 }
 0x315   : > { %7038 = vmatmul.msk.f32.gmra.mxu2 %vm3436_vm3, %v11153_v61  ;;  %v7786_v28 = vpop.eup %7785  ;;  %v4329_v22 = vmul.f32 %v7776_v58, %v4281_v0  ;;  %v11476_v33 = vmul.f32 %v7772_v3, %v4024_v2  ;;  %vm4377_vm9 = vcmp.gt.f32.partialorder %v11356_v7, 20.0  ;;  %v3950_v56 = vmul.f32 1.442695, %v3882_v12 }
 0x316   : > { %v4454_v51 = vmul.f32 %v4406_v34, %v4310_v37  ;;  %v4311_v1 = vmul.f32 %v7778_v40, %v4263_v25  ;;  %v7788_v26 = vpop.eup %7787  ;;  %v4198_v6 = vmul.f32 %v7786_v28, %v4102_v53  ;;  %v4520_v48 = vsel %vm4376_vm7, %v11351_v21, %v4472_v24 }
 0x317   : > { %v7790_v23 = vpop.eup %7789  ;;  %v4199_v32 = vmul.f32 %v7788_v26, %v4103_v41  ;;  %4629 = vmatpush.msra.mxu2 %v4520_v48  ;;  %v4473_v5 = vmul.f32 %v4425_v31, %v4329_v22  ;;  %v4120_v53 = vadd.f32 2.0, %v11476_v33  ;;  %v11496_v11 = vmul.f32 %v7780_v9, %v4025_v19 }
 0x318   : > { %v4502_v50 = vsel %vm4358_vm5, %v13719_v14, %v4454_v51  ;;  %v4455_v27 = vmul.f32 %v4407_v59, %v4311_v1  ;;  %v7792_v45 = vpop.eup %7791  ;;  %v4246_v40 = vsub.f32 2.0, %v4198_v6  ;;  %v4042_v34 = vadd.f32 2.0, %v7790_v23  ;;  %v3651_v24 = vpop.f32.mrf.mxu3 }
 0x319   : > { %4578 = vmatpush.msra.mxu0 %v4502_v50  ;;  %v4247_v14 = vsub.f32 2.0, %v4199_v32  ;;  %v4043_v58 = vadd.f32 2.0, %v7792_v45  ;;  %v4521_v39 = vsel %vm4377_vm9, %v11356_v7, %v4473_v5  ;;  %7793 = vrcp.f32 %v4120_v53  ;;  %v11504_v7 = vld [vmem:[%s13209_s0 + $0x60] sm:$0xff] }
 0x31a   : > { %7041 = vmatmul.msk.f32.gmra.mxu3 %vm3436_vm3, %v11153_v61  ;;  %v4503_v3 = vsel %vm4359_vm6, %v13720_v46, %v4455_v27  ;;  %v4294_v21 = vmul.f32 %v7786_v28, %v4246_v40  ;;  %v11489_v41 = vmul.f32 %v7790_v23, %v4042_v34  ;;  %v4391_v59 = vmul.f32 %v11432_v17, %v13722_v29  ;;  %v3625_v1 = vpop.f32.mrf.mxu2 }
 0x31b   : > { %4604 = vmatpush.msra.mxu1 %v4503_v3  ;;  %v4295_v31 = vmul.f32 %v7788_v26, %v4247_v14  ;;  %v11494_v61 = vmul.f32 %v7792_v45, %v4043_v58  ;;  %4655 = vmatpush.msra.mxu3 %v4521_v39  ;;  %vm4342_vm3 = vcmp.gt.f32.partialorder %v13721_v57, 20.0  ;;  %v3868_v25 = vmin.f32 %v11469_v54, 20.0 }
 0x31c   : > { %v4438_v46 = vmul.f32 %v4390_v38, %v4294_v21  ;;  %v4138_v37 = vadd.f32 2.0, %v11489_v41  ;;  %v4121_v2 = vadd.f32 2.0, %v11496_v11  ;;  %vm4343_vm10 = vcmp.gt.f32.partialorder %v13722_v29, 20.0 }
 0x31d   : > { %v4439_v0 = vmul.f32 %v4391_v59, %v4295_v31  ;;  %v4139_v17 = vadd.f32 2.0, %v11494_v61  ;;  %v11512_v38 = vadd.f32 %v11437_v4, %v10999_v42  ;;  %v3952_v12 = vmul.f32 1.442695, %v3883_v43  ;;  %v11545_v59 = vpop.f32.mrf.mxu0 }
 0x31e   : > { %v4486_v9 = vsel %vm4342_vm3, %v13721_v57, %v4438_v46  ;;  %7795 = vrcp.f32 %v4138_v37  ;;  %v4008_v51 = vadd.f32 2.0, %v11252_v8  ;;  %v3922_v57 = vmul.f32 1.442695, %v3868_v25  ;;  %v11547_v46 = vpop.f32.mrf.mxu1 }
 0x31f   : > { %4579 = vmatpush.msra.mxu0 %v4486_v9  ;;  %v4487_v28 = vsel %vm4343_vm10, %v13722_v29, %v4439_v0  ;;  %7797 = vrcp.f32 %v4139_v17  ;;  %v7794_v26 = vpop.eup %7793  ;;  %v4009_v6 = vadd.f32 2.0, %v11304_v47  ;;  %v3869_v22 = vmin.f32 %v11512_v38, 20.0 }
 0x320   : > { %4605 = vmatpush.msra.mxu1 %v4487_v28  ;;  %7042 = vmatmul.msk.f32.vlgmr.msra.gmra.mxu0 %vm1492_vm8, %v11504_v7  ;;  %7799 = vrcp.f32 %v4121_v2  ;;  %v4216_v4 = vmul.f32 %v7794_v26, %v4120_v53  ;;  %v4056_v43 = vmul.f32 %v11252_v8, %v4008_v51  ;;  %v11527_v23 = vadd.f32 %v3625_v1, %v11110_v52 }
 0x321   : > { %7801 = vpow2.f32 %v3950_v56  ;;  %7045 = vmatmul.msk.f32.vlgmr.msra.gmra.mxu1 %vm1492_vm8, %v11504_v7  ;;  %v11524_v19 = vmul.f32 %v11304_v47, %v4009_v6  ;;  %v11530_v50 = vadd.f32 %v3651_v24, %v11110_v52  ;;  %v11538_v47 = vld [vmem:[%s13209_s0 + $0x68] sm:$0xff]  ;;  %v4408_v53 = vmul.f32 %v11476_v33, %v11311_v49 }
 0x322   : > { %7803 = vpow2.f32 %v3952_v12  ;;  %v4264_v27 = vsub.f32 2.0, %v4216_v4  ;;  %v4104_v32 = vadd.f32 2.0, %v4056_v43  ;;  %v3900_v8 = vmin.f32 %v11527_v23, 20.0 }
 0x323   : > { %7805 = vpow2.f32 %v3922_v57  ;;  %v4105_v45 = vadd.f32 2.0, %v11524_v19  ;;  %v3901_v40 = vmin.f32 %v11530_v50, 20.0  ;;  %v11542_v14 = vmul.f32 1.442695, %v3869_v22 }
 0x324   : > { %v7796_v48 = vpop.eup %7795  ;;  %v4312_v5 = vmul.f32 %v7794_v26, %v4264_v27  ;;  %7807 = vrcp.f32 %v4104_v32  ;;  %v3986_v58 = vmul.f32 1.442695, %v3900_v8  ;;  %vm4360_vm11 = vcmp.gt.f32.partialorder %v11311_v49, 20.0 }
 0x325   : > { %v7798_v34 = vpop.eup %7797  ;;  %7809 = vrcp.f32 %v4105_v45  ;;  %v3988_v21 = vmul.f32 1.442695, %v3901_v40  ;;  %v4234_v25 = vmul.f32 %v7796_v48, %v4138_v37  ;;  %vm4361_vm12 = vcmp.gt.f32.partialorder %v11335_v20, 20.0 }
 0x326   : > { %v7800_v3 = vpop.eup %7799  ;;  %v4456_v31 = vmul.f32 %v4408_v53, %v4312_v5  ;;  %v11554_v33 = vadd.f32 %v11472_v30, %v11038_v63  ;;  %7811 = vpow2.f32 %v3986_v58  ;;  %v4235_v56 = vmul.f32 %v7798_v34, %v4139_v17 }
 0x327   : > { %v7802_v39 = vpop.eup %7801  ;;  %v4217_v29 = vmul.f32 %v7800_v3, %v4121_v2  ;;  %7813 = vpow2.f32 %v3988_v21  ;;  %v4282_v37 = vsub.f32 2.0, %v4234_v25  ;;  %v4426_v28 = vmul.f32 %v11489_v41, %v11429_v10  ;;  %v11585_v21 = vpop.f32.mrf.mxu0 }
 0x328   : > { %7043 = vmatmul.msk.f32.gmra.mxu0 %vm1492_vm8, %v11538_v47  ;;  %v7804_v0 = vpop.eup %7803  ;;  %v4504_v2 = vsel %vm4360_vm11, %v11311_v49, %v4456_v31  ;;  %v4427_v30 = vmul.f32 %v11494_v61, %v11435_v44  ;;  %v11567_v17 = vadd.f32 %v11474_v35, %v11038_v63  ;;  %v4283_v51 = vsub.f32 2.0, %v4235_v56  ;;  %v11576_v35 = vld [vmem:[%s13209_s0 + $0x70] sm:$0xff] }
 0x329   : > { %7046 = vmatmul.msk.f32.gmra.mxu1 %vm1492_vm8, %v11538_v47  ;;  %v4265_v9 = vsub.f32 2.0, %v4217_v29  ;;  %v11559_v12 = vpop.eup %7805  ;;  %4630 = vmatpush.msra.mxu2 %v4504_v2  ;;  %v4409_v49 = vmul.f32 %v11496_v11, %v11335_v20  ;;  %v4330_v26 = vmul.f32 %v7796_v48, %v4282_v37  ;;  %v4026_v57 = vadd.f32 2.0, %v7802_v39 }
 0x32a   : > { %v7808_v1 = vpop.eup %7807  ;;  %v3884_v4 = vmin.f32 %v11554_v33, 20.0  ;;  %v4392_v22 = vmul.f32 %v4056_v43, %v11183_v16  ;;  %v4331_v61 = vmul.f32 %v7798_v34, %v4283_v51  ;;  %vm4378_vm13 = vcmp.gt.f32.partialorder %v11429_v10, 20.0 }
 0x32b   : > { %v4313_v24 = vmul.f32 %v7800_v3, %v4265_v9  ;;  %v7810_v6 = vpop.eup %7809  ;;  %v4200_v41 = vmul.f32 %v7808_v1, %v4104_v32  ;;  %v4474_v40 = vmul.f32 %v4426_v28, %v4330_v26  ;;  %v11578_v5 = vmul.f32 %v7802_v39, %v4026_v57 }
 0x32c   : > { %v4201_v8 = vmul.f32 %v7810_v6, %v4105_v45  ;;  %v7812_v11 = vpop.eup %7811  ;;  %v4475_v53 = vmul.f32 %v4427_v30, %v4331_v61  ;;  %v4027_v3 = vadd.f32 2.0, %v7804_v0  ;;  %vm4379_vm14 = vcmp.gt.f32.partialorder %v11435_v44, 20.0  ;;  %v11587_v45 = vpop.f32.mrf.mxu1 }
 0x32d   : > { %v4457_v27 = vmul.f32 %v4409_v49, %v4313_v24  ;;  %v4248_v48 = vsub.f32 2.0, %v4200_v41  ;;  %v7814_v32 = vpop.eup %7813  ;;  %v4044_v58 = vadd.f32 2.0, %v7812_v11  ;;  %v4522_v29 = vsel %vm4378_vm13, %v11429_v10, %v4474_v40 }
 0x32e   : > { %v4249_v34 = vsub.f32 2.0, %v4201_v8  ;;  %v4045_v31 = vadd.f32 2.0, %v7814_v32  ;;  %v4523_v25 = vsel %vm4379_vm14, %v11435_v44, %v4475_v53  ;;  %v4393_v56 = vmul.f32 %v11524_v19, %v11210_v62  ;;  %4681 = vmatpush.msrb.mxu0 %v4522_v29 }
 0x32f   : > { %v4505_v43 = vsel %vm4361_vm12, %v11335_v20, %v4457_v27  ;;  %v4296_v39 = vmul.f32 %v7808_v1, %v4248_v48  ;;  %v11597_v2 = vmul.f32 %v7812_v11, %v4044_v58  ;;  %v4122_v9 = vadd.f32 2.0, %v11578_v5  ;;  %4707 = vmatpush.msrb.mxu1 %v4523_v25 }
 0x330   : > { %4656 = vmatpush.msra.mxu3 %v4505_v43  ;;  %7044 = vmatmul.msk.f32.gmra.mxu0 %vm1492_vm8, %v11576_v35  ;;  %v4297_v20 = vmul.f32 %v7810_v6, %v4249_v34  ;;  %v3885_v37 = vmin.f32 %v11567_v17, 20.0  ;;  %v11601_v30 = vmul.f32 %v7814_v32, %v4045_v31  ;;  %v11603_v10 = vmul.f32 %v7804_v0, %v4027_v3 }
 0x331   : > { %7047 = vmatmul.msk.f32.gmra.mxu1 %vm1492_vm8, %v11576_v35  ;;  %v4440_v28 = vmul.f32 %v4392_v22, %v4296_v39  ;;  %vm4344_vm15 = vcmp.gt.f32.partialorder %v11183_v16, 20.0  ;;  %v4140_v51 = vadd.f32 2.0, %v11597_v2  ;;  %7815 = vrcp.f32 %v4122_v9 }
 0x332   : > { %v4441_v44 = vmul.f32 %v4393_v56, %v4297_v20  ;;  %vm4345_vm0 = vcmp.gt.f32.partialorder %v11210_v62, 20.0  ;;  %v4141_v1 = vadd.f32 2.0, %v11601_v30  ;;  %v4123_v24 = vadd.f32 2.0, %v11603_v10 }
 0x333   : > { %v4488_v19 = vsel %vm4344_vm15, %v11183_v16, %v4440_v28  ;;  %v3954_v49 = vmul.f32 1.442695, %v3884_v4  ;;  %7817 = vrcp.f32 %v4140_v51  ;;  %v3956_v0 = vmul.f32 1.442695, %v3885_v37 }
 0x334   : > { %4631 = vmatpush.msra.mxu2 %v4488_v19  ;;  %v4489_v26 = vsel %vm4345_vm0, %v11210_v62, %v4441_v44  ;;  %7819 = vrcp.f32 %v4141_v1  ;;  %v4010_v57 = vadd.f32 2.0, %v11457_v55  ;;  %v11619_v16 = vadd.f32 %v11545_v59, %v10999_v42  ;;  %v3677_v62 = vpop.f32.mrf.mxu0  ;;  %v3703_v4 = vpop.f32.mrf.mxu1 }
 0x335   : > { %4657 = vmatpush.msra.mxu3 %v4489_v26  ;;  %7048 = vmatmul.msk.f32.vlgmr.msra.gmra.mxu2 %vm1492_vm8, %v11504_v7  ;;  %7821 = vrcp.f32 %v4123_v24  ;;  %v4011_v6 = vadd.f32 2.0, %v11462_v36  ;;  %v11627_v22 = vadd.f32 %v3677_v62, %v11110_v52  ;;  %v11630_v61 = vadd.f32 %v3703_v4, %v11110_v52 }
 0x336   : > { %7051 = vmatmul.msk.f32.vlgmr.msra.gmra.mxu3 %vm1492_vm8, %v11504_v7  ;;  %7823 = vpow2.f32 %v11542_v14  ;;  %v11624_v41 = vmul.f32 %v11457_v55, %v4010_v57  ;;  %v3870_v48 = vmin.f32 %v11619_v16, 20.0  ;;  %v11643_v53 = vadd.f32 %v11547_v46, %v10999_v42 }
 0x337   : > { %v7816_v59 = vpop.eup %7815  ;;  %7825 = vpow2.f32 %v3954_v49  ;;  %v11635_v8 = vmul.f32 %v11462_v36, %v4011_v6  ;;  %v3902_v32 = vmin.f32 %v11627_v22, 20.0  ;;  %vm4362_vm1 = vcmp.gt.f32.partialorder %v11447_v18, 20.0 }
 0x338   : > { %7827 = vpow2.f32 %v3956_v0  ;;  %v4218_v40 = vmul.f32 %v7816_v59, %v4122_v9  ;;  %v4106_v14 = vadd.f32 2.0, %v11624_v41  ;;  %v4410_v34 = vmul.f32 %v11578_v5, %v11447_v18 }
 0x339   : > { %v11632_v27 = vpop.f32.mrf.mxu2  ;;  %v7818_v55 = vpop.eup %7817  ;;  %v4107_v3 = vadd.f32 2.0, %v11635_v8  ;;  %v3903_v58 = vmin.f32 %v11630_v61, 20.0  ;;  %vm4363_vm2 = vcmp.gt.f32.partialorder %v11450_v60, 20.0  ;;  %v11654_v46 = vadd.f32 %v11585_v21, %v11038_v63 }
 0x33a   : > { %v7820_v43 = vpop.eup %7819  ;;  %v4266_v36 = vsub.f32 2.0, %v4218_v40  ;;  %7829 = vrcp.f32 %v4106_v14  ;;  %v3990_v31 = vmul.f32 1.442695, %v3902_v32  ;;  %v4236_v29 = vmul.f32 %v7818_v55, %v4140_v51 }
 0x33b   : > { %v11638_v11 = vpop.f32.mrf.mxu3  ;;  %v7822_v39 = vpop.eup %7821  ;;  %7831 = vrcp.f32 %v4107_v3  ;;  %v3992_v5 = vmul.f32 1.442695, %v3903_v58  ;;  %v4428_v37 = vmul.f32 %v11597_v2, %v11527_v23  ;;  %v11666_v21 = vadd.f32 %v11587_v45, %v11038_v63 }
 0x33c   : > { %v11656_v25 = vpop.eup %7823  ;;  %v4314_v20 = vmul.f32 %v7816_v59, %v4266_v36  ;;  %v4219_v56 = vmul.f32 %v7822_v39, %v4123_v24  ;;  %7833 = vpow2.f32 %v3990_v31  ;;  %v4284_v28 = vsub.f32 2.0, %v4236_v29 }
 0x33d   : > { %7049 = vmatmul.msk.f32.gmra.mxu2 %vm1492_vm8, %v11538_v47  ;;  %v7826_v9 = vpop.eup %7825  ;;  %7835 = vpow2.f32 %v3992_v5  ;;  %v4237_v24 = vmul.f32 %v7820_v43, %v4141_v1  ;;  %v4429_v49 = vmul.f32 %v11601_v30, %v11530_v50  ;;  %v4411_v2 = vmul.f32 %v11603_v10, %v11450_v60 }
 0x33e   : > { %7052 = vmatmul.msk.f32.gmra.mxu3 %vm1492_vm8, %v11538_v47  ;;  %v7828_v44 = vpop.eup %7827  ;;  %v4458_v51 = vmul.f32 %v4410_v34, %v4314_v20  ;;  %v4267_v19 = vsub.f32 2.0, %v4219_v56  ;;  %v3886_v26 = vmin.f32 %v11654_v46, 20.0  ;;  %v4332_v0 = vmul.f32 %v7818_v55, %v4284_v28 }
 0x33f   : > { %v4285_v6 = vsub.f32 2.0, %v4237_v24  ;;  %v4028_v62 = vadd.f32 2.0, %v7826_v9  ;;  %v3887_v30 = vmin.f32 %v11666_v21, 20.0  ;;  %vm4380_vm4 = vcmp.gt.f32.partialorder %v11527_v23, 20.0 }
 0x340   : > { %v4506_v45 = vsel %vm4362_vm1, %v11447_v18, %v4458_v51  ;;  %v4315_v57 = vmul.f32 %v7822_v39, %v4267_v19  ;;  %v7830_v1 = vpop.eup %7829  ;;  %v4476_v10 = vmul.f32 %v4428_v37, %v4332_v0  ;;  %v4029_v40 = vadd.f32 2.0, %v7828_v44 }
 0x341   : > { %v11676_v4 = vpop.f32.mrf.mxu2  ;;  %4682 = vmatpush.msrb.mxu0 %v4506_v45  ;;  %v7832_v55 = vpop.eup %7831  ;;  %v4202_v36 = vmul.f32 %v7830_v1, %v4106_v14  ;;  %v4333_v34 = vmul.f32 %v7820_v43, %v4285_v6  ;;  %v11682_v18 = vmul.f32 %v7826_v9, %v4028_v62  ;;  %v4394_v39 = vmul.f32 %v11624_v41, %v11389_v13 }
 0x342   : > { %v4459_v32 = vmul.f32 %v4411_v2, %v4315_v57  ;;  %v7834_v58 = vpop.eup %7833  ;;  %v4203_v31 = vmul.f32 %v7832_v55, %v4107_v3  ;;  %v4524_v29 = vsel %vm4380_vm4, %v11527_v23, %v4476_v10  ;;  %v11687_v20 = vmul.f32 %v7828_v44, %v4029_v40 }
 0x343   : > { %v11678_v59 = vpop.f32.mrf.mxu3  ;;  %v7836_v56 = vpop.eup %7835  ;;  %v4250_v43 = vsub.f32 2.0, %v4202_v36  ;;  %v4046_v5 = vadd.f32 2.0, %v7834_v58  ;;  %v4477_v9 = vmul.f32 %v4429_v49, %v4333_v34  ;;  %vm4381_vm5 = vcmp.gt.f32.partialorder %v11530_v50, 20.0  ;;  %4733 = vmatpush.msrb.mxu2 %v4524_v29 }
 0x344   : > { %v4507_v14 = vsel %vm4363_vm2, %v11450_v60, %v4459_v32  ;;  %v4251_v41 = vsub.f32 2.0, %v4203_v31  ;;  %v4047_v3 = vadd.f32 2.0, %v7836_v56  ;;  %v4124_v23 = vadd.f32 2.0, %v11682_v18 }
 0x345   : > { %7050 = vmatmul.msk.f32.gmra.mxu2 %vm1492_vm8, %v11576_v35  ;;  %4708 = vmatpush.msrb.mxu1 %v4507_v14  ;;  %v4298_v37 = vmul.f32 %v7830_v1, %v4250_v43  ;;  %v11698_v28 = vmul.f32 %v7834_v58, %v4046_v5  ;;  %v4525_v44 = vsel %vm4381_vm5, %v11530_v50, %v4477_v9  ;;  %v4125_v60 = vadd.f32 2.0, %v11687_v20 }
 0x346   : > { %7053 = vmatmul.msk.f32.gmra.mxu3 %vm1492_vm8, %v11576_v35  ;;  %v4299_v51 = vmul.f32 %v7832_v55, %v4251_v41  ;;  %v4395_v19 = vmul.f32 %v11635_v8, %v11394_v15  ;;  %v11704_v24 = vmul.f32 %v7836_v56, %v4047_v3  ;;  %7837 = vrcp.f32 %v4124_v23 }
 0x347   : > { %4759 = vmatpush.msrb.mxu3 %v4525_v44  ;;  %v3871_v49 = vmin.f32 %v11643_v53, 20.0  ;;  %v4442_v2 = vmul.f32 %v4394_v39, %v4298_v37  ;;  %v4142_v0 = vadd.f32 2.0, %v11698_v28  ;;  %7839 = vrcp.f32 %v4125_v60 }
 0x348   : > { %v3958_v45 = vmul.f32 1.442695, %v3886_v26  ;;  %vm4346_vm6 = vcmp.gt.f32.partialorder %v11389_v13, 20.0  ;;  %v4443_v50 = vmul.f32 %v4395_v19, %v4299_v51  ;;  %v4143_v57 = vadd.f32 2.0, %v11704_v24 }
 0x349   : > { %v3960_v6 = vmul.f32 1.442695, %v3887_v30  ;;  %v4490_v62 = vsel %vm4346_vm6, %v11389_v13, %v4442_v2  ;;  %vm4347_vm7 = vcmp.gt.f32.partialorder %v11394_v15, 20.0  ;;  %v4012_v8 = vadd.f32 2.0, %v11559_v12  ;;  %v3729_v1 = vpop.f32.mrf.mxu2 }
 0x34a   : > { %v3926_v40 = vmul.f32 1.442695, %v3870_v48  ;;  %4683 = vmatpush.msrb.mxu0 %v4490_v62  ;;  %v4491_v26 = vsel %vm4347_vm7, %v11394_v15, %v4443_v50  ;;  %7841 = vrcp.f32 %v4142_v0  ;;  %v3928_v55 = vmul.f32 1.442695, %v3871_v49 }
 0x34b   : > { %v3755_v10 = vpop.f32.mrf.mxu3  ;;  %4709 = vmatpush.msrb.mxu1 %v4491_v26  ;;  %7054 = vmatmul.msk.f32.vlgmr.msrb.gmra.mxu0 %vm1492_vm8, %v11504_v7  ;;  %7843 = vrcp.f32 %v4143_v57  ;;  %v4060_v13 = vmul.f32 %v11559_v12, %v4012_v8  ;;  %v4013_v30 = vadd.f32 2.0, %v11656_v25  ;;  %v11723_v48 = vadd.f32 %v3729_v1, %v11110_v52 }
 0x34c   : > { %v7838_v32 = vpop.eup %7837  ;;  %7845 = vpow2.f32 %v3958_v45  ;;  %7057 = vmatmul.msk.f32.vlgmr.msrb.gmra.mxu1 %vm1492_vm8, %v11504_v7  ;;  %v11726_v15 = vadd.f32 %v3755_v10, %v11110_v52  ;;  %v4412_v3 = vmul.f32 %v11682_v18, %v11554_v33  ;;  %vm4364_vm9 = vcmp.gt.f32.partialorder %v11554_v33, 20.0 }
 0x34d   : > { %v7840_v36 = vpop.eup %7839  ;;  %7847 = vpow2.f32 %v3960_v6  ;;  %v4220_v34 = vmul.f32 %v7838_v32, %v4124_v23  ;;  %v4108_v58 = vadd.f32 2.0, %v4060_v13  ;;  %v11729_v12 = vmul.f32 %v11656_v25, %v4013_v30 }
 0x34e   : > { %7849 = vpow2.f32 %v3926_v40  ;;  %v4221_v39 = vmul.f32 %v7840_v36, %v4125_v60  ;;  %v3904_v31 = vmin.f32 %v11723_v48, 20.0  ;;  %v3905_v56 = vmin.f32 %v11726_v15, 20.0 }
 0x34f   : > { %7851 = vpow2.f32 %v3928_v55  ;;  %v4268_v29 = vsub.f32 2.0, %v4220_v34  ;;  %v4109_v5 = vadd.f32 2.0, %v11729_v12  ;;  %v4413_v60 = vmul.f32 %v11687_v20, %v11567_v17 }
 0x350   : > { %v7842_v14 = vpop.eup %7841  ;;  %v4269_v43 = vsub.f32 2.0, %v4221_v39  ;;  %7853 = vrcp.f32 %v4108_v58  ;;  %v3994_v23 = vmul.f32 1.442695, %v3904_v31  ;;  %v3996_v37 = vmul.f32 1.442695, %v3905_v56 }
 0x351   : > { %v7844_v9 = vpop.eup %7843  ;;  %v4316_v41 = vmul.f32 %v7838_v32, %v4268_v29  ;;  %7855 = vrcp.f32 %v4109_v5  ;;  %v4238_v49 = vmul.f32 %v7842_v14, %v4142_v0  ;;  %vm4365_vm3 = vcmp.gt.f32.partialorder %v11567_v17, 20.0 }
 0x352   : > { %v7846_v25 = vpop.eup %7845  ;;  %v4317_v44 = vmul.f32 %v7840_v36, %v4269_v43  ;;  %7857 = vpow2.f32 %v3994_v23  ;;  %v4239_v45 = vmul.f32 %v7844_v9, %v4143_v57  ;;  %v4430_v50 = vmul.f32 %v11698_v28, %v11627_v22 }
 0x353   : > { %v7848_v51 = vpop.eup %7847  ;;  %7055 = vmatmul.msk.f32.gmra.mxu0 %vm1492_vm8, %v11538_v47  ;;  %v4460_v19 = vmul.f32 %v4412_v3, %v4316_v41  ;;  %7859 = vpow2.f32 %v3996_v37  ;;  %v4286_v62 = vsub.f32 2.0, %v4238_v49  ;;  %v4030_v8 = vadd.f32 2.0, %v7846_v25 }
 0x354   : > { %v7850_v2 = vpop.eup %7849  ;;  %7058 = vmatmul.msk.f32.gmra.mxu1 %vm1492_vm8, %v11538_v47  ;;  %v4461_v18 = vmul.f32 %v4413_v60, %v4317_v44  ;;  %v4431_v0 = vmul.f32 %v11704_v24, %v11630_v61  ;;  %v4287_v40 = vsub.f32 2.0, %v4239_v45  ;;  %v4031_v26 = vadd.f32 2.0, %v7848_v51 }
 0x355   : > { %v7852_v20 = vpop.eup %7851  ;;  %v4508_v6 = vsel %vm4364_vm9, %v11554_v33, %v4460_v19  ;;  %v4396_v57 = vmul.f32 %v4060_v13, %v11469_v54  ;;  %v4334_v30 = vmul.f32 %v7842_v14, %v4286_v62  ;;  %v11751_v32 = vmul.f32 %v7846_v25, %v4030_v8 }
 0x356   : > { %v7854_v1 = vpop.eup %7853  ;;  %4734 = vmatpush.msrb.mxu2 %v4508_v6  ;;  %v4509_v10 = vsel %vm4365_vm3, %v11567_v17, %v4461_v18  ;;  %vm4382_vm10 = vcmp.gt.f32.partialorder %v11627_v22, 20.0  ;;  %v4335_v33 = vmul.f32 %v7844_v9, %v4287_v40  ;;  %vm4383_vm11 = vcmp.gt.f32.partialorder %v11630_v61, 20.0 }
 0x357   : > { %4760 = vmatpush.msrb.mxu3 %v4509_v10  ;;  %v4204_v55 = vmul.f32 %v7854_v1, %v4108_v58  ;;  %v7856_v28 = vpop.eup %7855  ;;  %v11755_v36 = vmul.f32 %v7848_v51, %v4031_v26  ;;  %v4478_v39 = vmul.f32 %v4430_v50, %v4334_v30  ;;  %v4126_v31 = vadd.f32 2.0, %v11751_v32 }
 0x358   : > { %v7858_v24 = vpop.eup %7857  ;;  %v4205_v17 = vmul.f32 %v7856_v28, %v4109_v5  ;;  %v4479_v29 = vmul.f32 %v4431_v0, %v4335_v33  ;;  %v4014_v56 = vadd.f32 2.0, %v7850_v2  ;;  %v4015_v14 = vadd.f32 2.0, %v7852_v20 }
 0x359   : > { %v4252_v34 = vsub.f32 2.0, %v4204_v55  ;;  %v7860_v58 = vpop.eup %7859  ;;  %v4127_v13 = vadd.f32 2.0, %v11755_v36  ;;  %v4048_v41 = vadd.f32 2.0, %v7858_v24  ;;  %v4526_v3 = vsel %vm4382_vm10, %v11627_v22, %v4478_v39 }
 0x35a   : > { %v4253_v9 = vsub.f32 2.0, %v4205_v17  ;;  %v11768_v5 = vadd.f32 %v11676_v4, %v11038_v63  ;;  %v4049_v23 = vadd.f32 2.0, %v7860_v58  ;;  %4785 = vmatpush.msra.mxu0 %v4526_v3  ;;  %v4527_v37 = vsel %vm4383_vm11, %v11630_v61, %v4479_v29 }
 0x35b   : > { %7056 = vmatmul.msk.f32.gmra.mxu0 %vm1492_vm8, %v11576_v35  ;;  %v4300_v43 = vmul.f32 %v7854_v1, %v4252_v34  ;;  %7861 = vrcp.f32 %v4126_v31  ;;  %v4397_v60 = vmul.f32 %v11729_v12, %v11512_v38  ;;  %4811 = vmatpush.msra.mxu1 %v4527_v37  ;;  %v11777_v22 = vadd.f32 %v11678_v59, %v11038_v63 }
 0x35c   : > { %7059 = vmatmul.msk.f32.gmra.mxu1 %vm1492_vm8, %v11576_v35  ;;  %v4301_v44 = vmul.f32 %v7856_v28, %v4253_v9  ;;  %7863 = vrcp.f32 %v4127_v13  ;;  %vm4348_vm12 = vcmp.gt.f32.partialorder %v11469_v54, 20.0  ;;  %v11780_v4 = vmul.f32 %v7850_v2, %v4014_v56 }
 0x35d   : > { %v4444_v25 = vmul.f32 %v4396_v57, %v4300_v43  ;;  %v11782_v51 = vmul.f32 %v7852_v20, %v4015_v14  ;;  %v11785_v49 = vmul.f32 %v7858_v24, %v4048_v41  ;;  %vm4349_vm13 = vcmp.gt.f32.partialorder %v11512_v38, 20.0 }
 0x35e   : > { %v4445_v19 = vmul.f32 %v4397_v60, %v4301_v44  ;;  %v11788_v12 = vmul.f32 %v7860_v58, %v4049_v23  ;;  %v4110_v18 = vadd.f32 2.0, %v11780_v4  ;;  %v3888_v45 = vmin.f32 %v11768_v5, 20.0 }
 0x35f   : > { %v4492_v61 = vsel %vm4348_vm12, %v11469_v54, %v4444_v25  ;;  %v4111_v59 = vadd.f32 2.0, %v11782_v51  ;;  %v3889_v20 = vmin.f32 %v11777_v22, 20.0  ;;  %v11801_v62 = vadd.f32 %v11632_v27, %v10999_v42 }
 0x360   : > { %4735 = vmatpush.msrb.mxu2 %v4492_v61  ;;  %v4493_v2 = vsel %vm4349_vm13, %v11512_v38, %v4445_v19  ;;  %7865 = vrcp.f32 %v4110_v18  ;;  %v4144_v38 = vadd.f32 2.0, %v11785_v49  ;;  %v11808_v1 = vadd.f32 %v11638_v11, %v10999_v42 }
 0x361   : > { %7060 = vmatmul.msk.f32.vlgmr.msrb.gmra.mxu2 %vm1492_vm8, %v11504_v7  ;;  %v7862_v54 = vpop.eup %7861  ;;  %4761 = vmatpush.msrb.mxu3 %v4493_v2  ;;  %7867 = vrcp.f32 %v4111_v59  ;;  %v4145_v0 = vadd.f32 2.0, %v11788_v12  ;;  %v3962_v40 = vmul.f32 1.442695, %v3888_v45  ;;  %v3964_v27 = vmul.f32 1.442695, %v3889_v20 }
 0x362   : > { %v7864_v6 = vpop.eup %7863  ;;  %7063 = vmatmul.msk.f32.vlgmr.msrb.gmra.mxu3 %vm1492_vm8, %v11504_v7  ;;  %v4222_v8 = vmul.f32 %v7862_v54, %v4126_v31  ;;  %v3872_v30 = vmin.f32 %v11801_v62, 20.0  ;;  %7869 = vrcp.f32 %v4144_v38  ;;  %v4414_v33 = vmul.f32 %v11751_v32, %v11654_v46 }
 0x363   : > { %v4223_v10 = vmul.f32 %v7864_v6, %v4127_v13  ;;  %v3873_v11 = vmin.f32 %v11808_v1, 20.0  ;;  %7871 = vrcp.f32 %v4145_v0  ;;  %v4415_v17 = vmul.f32 %v11755_v36, %v11666_v21 }
 0x364   : > { %v4270_v55 = vsub.f32 2.0, %v4222_v8  ;;  %7873 = vpow2.f32 %v3962_v40  ;;  %vm4366_vm14 = vcmp.gt.f32.partialorder %v11654_v46, 20.0  ;;  %v3930_v56 = vmul.f32 1.442695, %v3872_v30 }
 0x365   : > { %v4271_v57 = vsub.f32 2.0, %v4223_v10  ;;  %7875 = vpow2.f32 %v3964_v27  ;;  %vm4367_vm15 = vcmp.gt.f32.partialorder %v11666_v21, 20.0  ;;  %v3932_v43 = vmul.f32 1.442695, %v3873_v11 }
 0x366   : > { %v11797_v50 = vpop.f32.mrf.mxu0  ;;  %v4318_v28 = vmul.f32 %v7862_v54, %v4270_v55  ;;  %v7866_v24 = vpop.eup %7865  ;;  %v4398_v25 = vmul.f32 %v11780_v4, %v11619_v16  ;;  %7877 = vpow2.f32 %v3930_v56  ;;  %vm4350_vm0 = vcmp.gt.f32.partialorder %v11619_v16, 20.0 }
 0x367   : > { %v4319_v34 = vmul.f32 %v7864_v6, %v4271_v57  ;;  %v7868_v39 = vpop.eup %7867  ;;  %v4206_v58 = vmul.f32 %v7866_v24, %v4110_v18  ;;  %7879 = vpow2.f32 %v3932_v43  ;;  %vm4351_vm1 = vcmp.gt.f32.partialorder %v11643_v53, 20.0 }
 0x368   : > { %v4462_v31 = vmul.f32 %v4414_v33, %v4318_v28  ;;  %v4207_v13 = vmul.f32 %v7868_v39, %v4111_v59  ;;  %v7870_v3 = vpop.eup %7869  ;;  %v4433_v40 = vmul.f32 %v11788_v12, %v11726_v15  ;;  %vm4384_vm2 = vcmp.gt.f32.partialorder %v11723_v48, 20.0 }
 0x369   : > { %v11811_v26 = vpop.f32.mrf.mxu1  ;;  %7061 = vmatmul.msk.f32.gmra.mxu2 %vm1492_vm8, %v11538_v47  ;;  %v4463_v29 = vmul.f32 %v4415_v17, %v4319_v34  ;;  %v4254_v14 = vsub.f32 2.0, %v4206_v58  ;;  %v7872_v44 = vpop.eup %7871  ;;  %v4240_v59 = vmul.f32 %v7870_v3, %v4144_v38  ;;  %vm4385_vm4 = vcmp.gt.f32.partialorder %v11726_v15, 20.0 }
 0x36a   : > { %7064 = vmatmul.msk.f32.gmra.mxu3 %vm1492_vm8, %v11538_v47  ;;  %v4510_v36 = vsel %vm4366_vm14, %v11654_v46, %v4462_v31  ;;  %v4255_v41 = vsub.f32 2.0, %v4207_v13  ;;  %v4399_v46 = vmul.f32 %v11782_v51, %v11643_v53  ;;  %v7874_v61 = vpop.eup %7873  ;;  %v4241_v4 = vmul.f32 %v7872_v44, %v4145_v0 }
 0x36b   : > { %4786 = vmatpush.msra.mxu0 %v4510_v36  ;;  %v4511_v9 = vsel %vm4367_vm15, %v11666_v21, %v4463_v29  ;;  %v4302_v37 = vmul.f32 %v7866_v24, %v4254_v14  ;;  %v7876_v18 = vpop.eup %7875  ;;  %v4288_v54 = vsub.f32 2.0, %v4240_v59  ;;  %v4032_v20 = vadd.f32 2.0, %v7874_v61 }
 0x36c   : > { %4812 = vmatpush.msra.mxu1 %v4511_v9  ;;  %v4303_v60 = vmul.f32 %v7868_v39, %v4255_v41  ;;  %v4289_v38 = vsub.f32 2.0, %v4241_v4  ;;  %v4033_v8 = vadd.f32 2.0, %v7876_v18  ;;  %v7878_v10 = vpop.eup %7877  ;;  %vm4368_vm5 = vcmp.gt.f32.partialorder %v11768_v5, 20.0 }
 0x36d   : > { %v4446_v19 = vmul.f32 %v4398_v25, %v4302_v37  ;;  %v4080_v0 = vmul.f32 %v7874_v61, %v4032_v20  ;;  %v7880_v28 = vpop.eup %7879  ;;  %v4016_v39 = vadd.f32 2.0, %v7878_v10  ;;  %vm4369_vm6 = vcmp.gt.f32.partialorder %v11777_v22, 20.0 }
 0x36e   : > { %v11822_v32 = vpop.f32.mrf.mxu0  ;;  %v4447_v21 = vmul.f32 %v4399_v46, %v4303_v60  ;;  %v4337_v57 = vmul.f32 %v7872_v44, %v4289_v38  ;;  %v4081_v30 = vmul.f32 %v7876_v18, %v4033_v8  ;;  %v4017_v58 = vadd.f32 2.0, %v7880_v28 }
 0x36f   : > { %v4494_v45 = vsel %vm4350_vm0, %v11619_v16, %v4446_v19  ;;  %v4432_v16 = vmul.f32 %v11785_v49, %v11723_v48  ;;  %v4128_v24 = vadd.f32 2.0, %v4080_v0  ;;  %v4064_v13 = vmul.f32 %v7878_v10, %v4016_v39 }
 0x370   : > { %4787 = vmatpush.msra.mxu0 %v4494_v45  ;;  %v4495_v51 = vsel %vm4351_vm1, %v11643_v53, %v4447_v21  ;;  %v4336_v53 = vmul.f32 %v7870_v3, %v4288_v54  ;;  %v4481_v11 = vmul.f32 %v4433_v40, %v4337_v57  ;;  %v4129_v34 = vadd.f32 2.0, %v4081_v30 }
 0x371   : > { %v11829_v23 = vpop.f32.mrf.mxu1  ;;  %7062 = vmatmul.msk.f32.gmra.mxu2 %vm1492_vm8, %v11576_v35  ;;  %4813 = vmatpush.msra.mxu1 %v4495_v51  ;;  %7881 = vrcp.f32 %v4128_v24  ;;  %v4065_v56 = vmul.f32 %v7880_v28, %v4017_v58  ;;  %v4416_v61 = vmul.f32 %v4080_v0, %v11768_v5  ;;  %v11878_v38 = vadd.f32 %v11797_v50, %v10999_v42 }
 0x372   : > { %7065 = vmatmul.msk.f32.gmra.mxu3 %vm1492_vm8, %v11576_v35  ;;  %7066 = vmatmul.msk.f32.vlgmr.msra.gmra.mxu0 %vm1492_vm8, %v11504_v7  ;;  %v4480_v33 = vmul.f32 %v4432_v16, %v4336_v53  ;;  %v4529_v31 = vsel %vm4385_vm4, %v11726_v15, %v4481_v11  ;;  %v11887_v40 = vadd.f32 %v11829_v23, %v11038_v63  ;;  %vm4352_vm7 = vcmp.gt.f32.partialorder %v11801_v62, 20.0 }
 0x373   : > { %7069 = vmatmul.msk.f32.vlgmr.msra.gmra.mxu1 %vm1492_vm8, %v11504_v7  ;;  %4863 = vmatpush.msra.mxu3 %v4529_v31  ;;  %v4113_v36 = vadd.f32 2.0, %v4065_v56  ;;  %v4400_v50 = vmul.f32 %v4064_v13, %v11801_v62  ;;  %v11896_v23 = vadd.f32 %v11811_v26, %v10999_v42  ;;  %vm4353_vm9 = vcmp.gt.f32.partialorder %v11808_v1, 20.0 }
 0x374   : > { %v4528_v17 = vsel %vm4384_vm2, %v11723_v48, %v4480_v33  ;;  %v4112_v48 = vadd.f32 2.0, %v4064_v13  ;;  %vm4371_vm12 = vcmp.gt.f32.partialorder %v11887_v40, 20.0  ;;  %vm4354_vm13 = vcmp.gt.f32.partialorder %v11878_v38, 20.0 }
 0x375   : > { %4837 = vmatpush.msra.mxu2 %v4528_v17  ;;  %v3875_v58 = vmin.f32 %v11896_v23, 20.0  ;;  %vm4355_vm14 = vcmp.gt.f32.partialorder %v11896_v23, 20.0 }
 0x376   : > { %v3781_v2 = vpop.f32.mrf.mxu0 }
 0x377   : > { %v11844_v6 = vadd.f32 %v3781_v2, %v11110_v52  ;;  %v7882_v14 = vpop.eup %7881  ;;  %v4417_v2 = vmul.f32 %v4081_v30, %v11777_v22  ;;  %v3874_v30 = vmin.f32 %v11878_v38, 20.0 }
 0x378   : > { %v4224_v9 = vmul.f32 %v7882_v14, %v4128_v24 }
 0x379   : > { %v3906_v55 = vmin.f32 %v11844_v6, 20.0  ;;  %v3807_v27 = vpop.f32.mrf.mxu1  ;;  %v3934_v31 = vmul.f32 1.442695, %v3874_v30  ;;  %vm4386_vm3 = vcmp.gt.f32.partialorder %v11844_v6, 20.0 }
 0x37a   : > { %v11856_v49 = vadd.f32 %v3807_v27, %v11110_v52  ;;  %7067 = vmatmul.msk.f32.gmra.mxu0 %vm1492_vm8, %v11538_v47  ;;  %v4272_v3 = vsub.f32 2.0, %v4224_v9 }
 0x37b   : > { %v3998_v7 = vmul.f32 1.442695, %v3906_v55  ;;  %7070 = vmatmul.msk.f32.gmra.mxu1 %vm1492_vm8, %v11538_v47 }
 0x37c   : > { %v3907_v12 = vmin.f32 %v11856_v49, 20.0  ;;  %v4320_v46 = vmul.f32 %v7882_v14, %v4272_v3  ;;  %vm4387_vm10 = vcmp.gt.f32.partialorder %v11856_v49, 20.0 }
 0x37d   : > { %7883 = vpow2.f32 %v3998_v7 }
 0x37e   : > { %v4000_v29 = vmul.f32 1.442695, %v3907_v12  ;;  %7885 = vrcp.f32 %v4129_v34  ;;  %v4464_v4 = vmul.f32 %v4416_v61, %v4320_v46 }
 0x380   : > { %7887 = vpow2.f32 %v4000_v29  ;;  %v4512_v16 = vsel %vm4368_vm5, %v11768_v5, %v4464_v4  ;;  %v11908_v29 = vld [vmem:[%s13209_s0 + $0x60] sm:$0xff] }
 0x381   : > { %7889 = vrcp.f32 %v4112_v48  ;;  %4838 = vmatpush.msra.mxu2 %v4512_v16 }
 0x382   : > { %7891 = vrcp.f32 %v4113_v36  ;;  %7068 = vmatmul.msk.f32.gmra.mxu0 %vm1492_vm8, %v11576_v35 }
 0x383   : > { %v7884_v43 = vpop.eup %7883  ;;  %7071 = vmatmul.msk.f32.gmra.mxu1 %vm1492_vm8, %v11576_v35  ;;  %v11883_v35 = vadd.f32 %v11822_v32, %v11038_v63  ;;  %v4401_v32 = vmul.f32 %v4065_v56, %v11808_v1 }
 0x384   : > { %v7886_v15 = vpop.eup %7885  ;;  %v4050_v41 = vadd.f32 2.0, %v7884_v43 }
 0x385   : > { %v4225_v37 = vmul.f32 %v7886_v15, %v4129_v34  ;;  %v3890_v11 = vmin.f32 %v11883_v35, 20.0  ;;  %v3891_v34 = vmin.f32 %v11887_v40, 20.0  ;;  %vm4370_vm11 = vcmp.gt.f32.partialorder %v11883_v35, 20.0 }
 0x386   : > { %v7888_v25 = vpop.eup %7887  ;;  %v4098_v44 = vmul.f32 %v7884_v43, %v4050_v41 }
 0x387   : > { %v4051_v60 = vadd.f32 2.0, %v7888_v25  ;;  %v4273_v19 = vsub.f32 2.0, %v4225_v37  ;;  %v7890_v18 = vpop.eup %7889 }
 0x388   : > { %v4146_v47 = vadd.f32 2.0, %v4098_v44  ;;  %v11868_v21 = vpop.f32.mrf.mxu2  ;;  %v7892_v59 = vpop.eup %7891  ;;  %v4208_v54 = vmul.f32 %v7890_v18, %v4112_v48  ;;  %v4434_v13 = vmul.f32 %v4098_v44, %v11844_v6 }
 0x389   : > { %v4099_v45 = vmul.f32 %v7888_v25, %v4051_v60  ;;  %v4321_v51 = vmul.f32 %v7886_v15, %v4273_v19  ;;  %v4209_v20 = vmul.f32 %v7892_v59, %v4113_v36  ;;  %v3968_v36 = vmul.f32 1.442695, %v3891_v34 }
 0x38a   : > { %7893 = vrcp.f32 %v4146_v47  ;;  %v4256_v0 = vsub.f32 2.0, %v4208_v54  ;;  %v3936_v15 = vmul.f32 1.442695, %v3875_v58  ;;  %v11929_v46 = vadd.f32 %v11868_v21, %v10999_v42 }
 0x38b   : > { %v4147_v8 = vadd.f32 2.0, %v4099_v45  ;;  %v4465_v53 = vmul.f32 %v4417_v2, %v4321_v51  ;;  %v4257_v10 = vsub.f32 2.0, %v4209_v20  ;;  %v4435_v41 = vmul.f32 %v4099_v45, %v11856_v49 }
 0x38c   : > { %v4304_v27 = vmul.f32 %v7890_v18, %v4256_v0  ;;  %v3876_v4 = vmin.f32 %v11929_v46, 20.0  ;;  %vm4356_vm4 = vcmp.gt.f32.partialorder %v11929_v46, 20.0 }
 0x38d   : > { %7895 = vrcp.f32 %v4147_v8  ;;  %v3853_v55 = vpop.f32.mrf.mxu3  ;;  %v4513_v5 = vsel %vm4369_vm6, %v11777_v22, %v4465_v53  ;;  %v4305_v57 = vmul.f32 %v7892_v59, %v4257_v10 }
 0x38e   : > { %4864 = vmatpush.msra.mxu3 %v4513_v5  ;;  %v4448_v24 = vmul.f32 %v4400_v50, %v4304_v27  ;;  %7897 = vpow2.f32 %v3934_v31  ;;  %v11932_v19 = vadd.f32 %v3853_v55, %v10999_v42  ;;  %v3938_v55 = vmul.f32 1.442695, %v3876_v4 }
 0x38f   : > { %v4449_v7 = vmul.f32 %v4401_v32, %v4305_v57 }
 0x390   : > { %v7894_v28 = vpop.eup %7893  ;;  %v3830_v33 = vpop.f32.mrf.mxu2  ;;  %v4496_v12 = vsel %vm4352_vm7, %v11801_v62, %v4448_v24  ;;  %v3877_v20 = vmin.f32 %v11932_v19, 20.0  ;;  %vm4357_vm7 = vcmp.gt.f32.partialorder %v11932_v19, 20.0 }
 0x391   : > { %v4242_v22 = vmul.f32 %v7894_v28, %v4146_v47  ;;  %v4497_v17 = vsel %vm4353_vm9, %v11808_v1, %v4449_v7  ;;  %4839 = vmatpush.msra.mxu2 %v4496_v12  ;;  %v3966_v1 = vmul.f32 1.442695, %v3890_v11  ;;  %v11916_v43 = vadd.f32 %v3830_v33, %v11038_v63  ;;  %v11963_v7 = vpop.permute.xlu1 %4547  ;;  %v11965_v12 = vpop.permute.xlu2 %4542 }
 0x392   : > { %4865 = vmatpush.msra.mxu3 %v4497_v17  ;;  %7072 = vmatmul.msk.f32.vlgmr.msra.gmra.mxu2 %vm1492_vm8, %v11908_v29  ;;  %v3940_v5 = vmul.f32 1.442695, %v3877_v20 }
 0x393   : > { %v7896_v39 = vpop.eup %7895  ;;  %v4290_v26 = vsub.f32 2.0, %v4242_v22  ;;  %7075 = vmatmul.msk.f32.vlgmr.msra.gmra.mxu3 %vm1492_vm8, %v11908_v29  ;;  %7899 = vpow2.f32 %v3966_v1  ;;  %v3892_v18 = vmin.f32 %v11916_v43, 20.0  ;;  %vm4372_vm1 = vcmp.gt.f32.partialorder %v11916_v43, 20.0 }
 0x394   : > { %v4243_v62 = vmul.f32 %v7896_v39, %v4147_v8  ;;  %7901 = vpow2.f32 %v3968_v36  ;;  %v7898_v47 = vpop.eup %7897 }
 0x395   : > { %v3856_v56 = vpop.f32.mrf.mxu3  ;;  %v4338_v48 = vmul.f32 %v7894_v28, %v4290_v26  ;;  %7903 = vpow2.f32 %v3936_v15  ;;  %v3970_v8 = vmul.f32 1.442695, %v3892_v18  ;;  %v4018_v32 = vadd.f32 2.0, %v7898_v47 }
 0x396   : > { %v4291_v14 = vsub.f32 2.0, %v4243_v62  ;;  %v11921_v25 = vadd.f32 %v3856_v56, %v11038_v63 }
 0x397   : > { %v4482_v9 = vmul.f32 %v4434_v13, %v4338_v48  ;;  %v4066_v34 = vmul.f32 %v7898_v47, %v4018_v32 }
 0x398   : > { %v3833_v3 = vpop.f32.mrf.mxu2  ;;  %v4339_v37 = vmul.f32 %v7896_v39, %v4291_v14  ;;  %v3893_v21 = vmin.f32 %v11921_v25, 20.0  ;;  %vm4373_vm2 = vcmp.gt.f32.partialorder %v11921_v25, 20.0 }
 0x399   : > { %v11924_v44 = vadd.f32 %v3833_v3, %v11110_v52  ;;  %v4530_v60 = vsel %vm4386_vm3, %v11844_v6, %v4482_v9  ;;  %v11940_v6 = vld [vmem:[%s13209_s0 + $0x68] sm:$0xff]  ;;  %v7900_v54 = vpop.eup %7899  ;;  %v4114_v1 = vadd.f32 2.0, %v4066_v34 }
 0x39a   : > { %4889 = vmatpush.msrb.mxu0 %v4530_v60  ;;  %v4483_v61 = vmul.f32 %v4435_v41, %v4339_v37  ;;  %7073 = vmatmul.msk.f32.gmra.mxu2 %vm1492_vm8, %v11940_v6  ;;  %v7902_v53 = vpop.eup %7901  ;;  %v3972_v0 = vmul.f32 1.442695, %v3893_v21  ;;  %v4034_v27 = vadd.f32 2.0, %v7900_v54 }
 0x39b   : > { %v3908_v63 = vmin.f32 %v11924_v44, 20.0  ;;  %7076 = vmatmul.msk.f32.gmra.mxu3 %vm1492_vm8, %v11940_v6  ;;  %v7904_v10 = vpop.eup %7903  ;;  %v4035_v57 = vadd.f32 2.0, %v7902_v53  ;;  %vm4388_vm15 = vcmp.gt.f32.partialorder %v11924_v44, 20.0 }
 0x39c   : > { %v4531_v42 = vsel %vm4387_vm10, %v11856_v49, %v4483_v61  ;;  %v4082_v28 = vmul.f32 %v7900_v54, %v4034_v27  ;;  %v4019_v24 = vadd.f32 2.0, %v7904_v10  ;;  %v4402_v54 = vmul.f32 %v4066_v34, %v11878_v38 }
 0x39d   : > { %v4002_v59 = vmul.f32 1.442695, %v3908_v63  ;;  %v3859_v45 = vpop.f32.mrf.mxu3  ;;  %4915 = vmatpush.msrb.mxu1 %v4531_v42  ;;  %v4581_v2 = vpop.f32.mrf.mxu0  ;;  %v4083_v33 = vmul.f32 %v7902_v53, %v4035_v57 }
 0x39e   : > { %v11950_v51 = vadd.f32 %v3859_v45, %v11110_v52  ;;  %v4607_v16 = vpop.f32.mrf.mxu1  ;;  %v11957_v52 = vld [vmem:[%s13209_s0 + $0x70] sm:$0xff]  ;;  %v4130_v39 = vadd.f32 2.0, %v4082_v28  ;;  %v11968_v58 = vadd.f32 %v4581_v2, %v11965_v12  ;;  %v11976_v48 = vmul.f32 %v7904_v10, %v4019_v24 }
 0x39f   : > { %7905 = vpow2.f32 %v4002_v59  ;;  %v4131_v31 = vadd.f32 2.0, %v4083_v33  ;;  %v11974_v56 = vadd.f32 %v4607_v16, %v11965_v12  ;;  %v4418_v47 = vmul.f32 %v4082_v28, %v11883_v35  ;;  %v11992_v59 = vpop.permute.xlu0 %4552 }
 0x3a0   : > { %v3909_v49 = vmin.f32 %v11950_v51, 20.0  ;;  %7907 = vpow2.f32 %v3970_v8  ;;  %v4115_v3 = vadd.f32 2.0, %v11976_v48  ;;  %v4980_v60 = vmin.f32 %v11968_v58, 20.0 }
 0x3a1   : > { %v4981_v42 = vmin.f32 %v11974_v56, 20.0  ;;  %v4419_v2 = vmul.f32 %v4083_v33, %v11887_v40  ;;  %vm4389_vm0 = vcmp.gt.f32.partialorder %v11950_v51, 20.0  ;;  %vm5460_vm10 = vcmp.gt.f32.partialorder %v11968_v58, 20.0 }
 0x3a2   : > { %v4004_v50 = vmul.f32 1.442695, %v3909_v49  ;;  %7074 = vmatmul.msk.f32.gmra.mxu2 %vm1492_vm8, %v11957_v52 }
 0x3a3   : > { %7077 = vmatmul.msk.f32.gmra.mxu3 %vm1492_vm8, %v11957_v52 }
 0x3a4   : > { %7909 = vpow2.f32 %v4004_v50 }
 0x3a5   : > { %v7906_v30 = vpop.eup %7905  ;;  %7911 = vpow2.f32 %v3972_v0  ;;  %v4584_v22 = vpop.f32.mrf.mxu0 }
 0x3a6   : > { %7913 = vpow2.f32 %v3938_v55  ;;  %v4052_v11 = vadd.f32 2.0, %v7906_v30  ;;  %v4610_v17 = vpop.f32.mrf.mxu1  ;;  %v11971_v62 = vadd.f32 %v4584_v22, %v11963_v7  ;;  %v7908_v13 = vpop.eup %7907 }
 0x3a7   : > { %7915 = vpow2.f32 %v3940_v5  ;;  %v11979_v41 = vadd.f32 %v4610_v17, %v11963_v7  ;;  %v4036_v21 = vadd.f32 2.0, %v7908_v13 }
 0x3a8   : > { %v4100_v26 = vmul.f32 %v7906_v30, %v4052_v11  ;;  %7917 = vrcp.f32 %v4130_v39  ;;  %v4996_v61 = vmin.f32 %v11971_v62, 20.0  ;;  %vm5476_vm9 = vcmp.gt.f32.partialorder %v11971_v62, 20.0 }
 0x3a9   : > { %7919 = vrcp.f32 %v4131_v31  ;;  %v4997_v53 = vmin.f32 %v11979_v41, 20.0  ;;  %v12007_v27 = vmul.f32 %v7908_v13, %v4036_v21  ;;  %vm5477_vm3 = vcmp.gt.f32.partialorder %v11979_v41, 20.0 }
 0x3aa   : > { %v7910_v36 = vpop.eup %7909  ;;  %v4148_v14 = vadd.f32 2.0, %v4100_v26  ;;  %7921 = vrcp.f32 %v4114_v1  ;;  %v4436_v45 = vmul.f32 %v4100_v26, %v11924_v44  ;;  %v5060_v55 = vmul.f32 1.442695, %v4996_v61 }
 0x3ab   : > { %v7912_v9 = vpop.eup %7911  ;;  %v4053_v15 = vadd.f32 2.0, %v7910_v36  ;;  %v4132_v34 = vadd.f32 2.0, %v12007_v27 }
 0x3ac   : > { %v11982_v37 = vpop.eup %7913  ;;  %7923 = vrcp.f32 %v4148_v14  ;;  %v4037_v20 = vadd.f32 2.0, %v7912_v9 }
 0x3ad   : > { %v11986_v18 = vpop.eup %7915  ;;  %v11988_v63 = vmul.f32 %v7910_v36, %v4053_v15  ;;  %v4587_v4 = vpop.f32.mrf.mxu0  ;;  %7925 = vrcp.f32 %v4115_v3  ;;  %v4020_v13 = vadd.f32 2.0, %v11982_v37 }
 0x3ae   : > { %v7918_v8 = vpop.eup %7917  ;;  %v12000_v49 = vadd.f32 %v4587_v4, %v11992_v59  ;;  %v4613_v0 = vpop.f32.mrf.mxu1  ;;  %v12011_v28 = vmul.f32 %v7912_v9, %v4037_v20 }
 0x3af   : > { %v4149_v16 = vadd.f32 2.0, %v11988_v63  ;;  %v7920_v10 = vpop.eup %7919  ;;  %v12004_v50 = vadd.f32 %v4613_v0, %v11992_v59  ;;  %v4226_v5 = vmul.f32 %v7918_v8, %v4130_v39 }
 0x3b0   : > { %v7922_v57 = vpop.eup %7921  ;;  %v5012_v32 = vmin.f32 %v12000_v49, 20.0  ;;  %v4227_v30 = vmul.f32 %v7920_v10, %v4131_v31  ;;  %v4133_v4 = vadd.f32 2.0, %v12011_v28  ;;  %vm5492_vm5 = vcmp.gt.f32.partialorder %v12000_v49, 20.0 }
 0x3b1   : > { %7927 = vrcp.f32 %v4149_v16  ;;  %v5013_v24 = vmin.f32 %v12004_v50, 20.0  ;;  %v4274_v11 = vsub.f32 2.0, %v4226_v5  ;;  %v4210_v22 = vmul.f32 %v7922_v57, %v4114_v1 }
 0x3b2   : > { %v7924_v33 = vpop.eup %7923  ;;  %v5092_v17 = vmul.f32 1.442695, %v5012_v32  ;;  %v4275_v39 = vsub.f32 2.0, %v4227_v30  ;;  %7929 = vrcp.f32 %v4132_v34  ;;  %vm5493_vm6 = vcmp.gt.f32.partialorder %v12004_v50, 20.0 }
 0x3b3   : > { %v4244_v26 = vmul.f32 %v7924_v33, %v4148_v14  ;;  %v5094_v36 = vmul.f32 1.442695, %v5013_v24  ;;  %v4322_v15 = vmul.f32 %v7918_v8, %v4274_v11  ;;  %v4258_v61 = vsub.f32 2.0, %v4210_v22  ;;  %v7926_v31 = vpop.eup %7925 }
 0x3b4   : > { %7931 = vpow2.f32 %v5092_v17  ;;  %v4323_v9 = vmul.f32 %v7920_v10, %v4275_v39  ;;  %v4211_v0 = vmul.f32 %v7926_v31, %v4115_v3  ;;  %v5062_v14 = vmul.f32 1.442695, %v4997_v53 }
 0x3b5   : > { %v4292_v21 = vsub.f32 2.0, %v4244_v26  ;;  %7933 = vpow2.f32 %v5094_v36  ;;  %v4466_v1 = vmul.f32 %v4418_v47, %v4322_v15  ;;  %v4306_v20 = vmul.f32 %v7922_v57, %v4258_v61 }
 0x3b6   : > { %v4467_v32 = vmul.f32 %v4419_v2, %v4323_v9  ;;  %7935 = vrcp.f32 %v4133_v4  ;;  %v4259_v10 = vsub.f32 2.0, %v4211_v0  ;;  %v4403_v3 = vmul.f32 %v11976_v48, %v11896_v23 }
 0x3b7   : > { %v7928_v5 = vpop.eup %7927  ;;  %v4340_v30 = vmul.f32 %v7924_v33, %v4292_v21  ;;  %v4514_v8 = vsel %vm4370_vm11, %v11883_v35, %v4466_v1  ;;  %v4450_v24 = vmul.f32 %v4402_v54, %v4306_v20  ;;  %v12027_v2 = vmul.f32 %v11982_v37, %v4020_v13 }
 0x3b8   : > { %v4245_v11 = vmul.f32 %v7928_v5, %v4149_v16  ;;  %4890 = vmatpush.msrb.mxu0 %v4514_v8  ;;  %v4515_v22 = vsel %vm4371_vm12, %v11887_v40, %v4467_v32  ;;  %v7930_v53 = vpop.eup %7929  ;;  %v4307_v54 = vmul.f32 %v7926_v31, %v4259_v10  ;;  %v4633_v16 = vpop.f32.mrf.mxu2  ;;  %7937 = vpow2.f32 %v5060_v55 }
 0x3b9   : > { %v4484_v47 = vmul.f32 %v4436_v45, %v4340_v30  ;;  %4916 = vmatpush.msrb.mxu1 %v4515_v22  ;;  %v4498_v35 = vsel %vm4354_vm13, %v11878_v38, %v4450_v24  ;;  %v4659_v40 = vpop.f32.mrf.mxu3  ;;  %v4228_v45 = vmul.f32 %v7930_v53, %v4132_v34  ;;  %v4116_v37 = vadd.f32 2.0, %v12027_v2 }
 0x3ba   : > { %v4293_v57 = vsub.f32 2.0, %v4245_v11  ;;  %v7932_v33 = vpop.eup %7931  ;;  %4891 = vmatpush.msrb.mxu0 %v4498_v35  ;;  %v4437_v39 = vmul.f32 %v11988_v63, %v11950_v51  ;;  %v4451_v38 = vmul.f32 %v4403_v3, %v4307_v54  ;;  %v4021_v61 = vadd.f32 2.0, %v11986_v18 }
 0x3bb   : > { %v4532_v48 = vsel %vm4388_vm15, %v11924_v44, %v4484_v47  ;;  %v7934_v17 = vpop.eup %7933  ;;  %v5156_v26 = vadd.f32 2.0, %v7932_v33  ;;  %7078 = vmatmul.msk.f32.vlgmr.msrb.gmra.mxu0 %vm1492_vm8, %v11908_v29  ;;  %v4276_v15 = vsub.f32 2.0, %v4228_v45  ;;  %7939 = vrcp.f32 %v4116_v37 }
 0x3bc   : > { %4941 = vmatpush.msrb.mxu2 %v4532_v48  ;;  %v4341_v13 = vmul.f32 %v7928_v5, %v4293_v57  ;;  %v7936_v36 = vpop.eup %7935  ;;  %v5157_v55 = vadd.f32 2.0, %v7934_v17  ;;  %v4499_v34 = vsel %vm4355_vm14, %v11896_v23, %v4451_v38  ;;  %v4420_v21 = vmul.f32 %v12007_v27, %v11916_v43 }
 0x3bd   : > { %v12040_v44 = vmul.f32 %v7932_v33, %v5156_v26  ;;  %4917 = vmatpush.msrb.mxu1 %v4499_v34  ;;  %v4324_v9 = vmul.f32 %v7930_v53, %v4276_v15  ;;  %v4229_v1 = vmul.f32 %v7936_v36, %v4133_v4  ;;  %v5028_v20 = vmul.f32 1.442695, %v4980_v60 }
 0x3be   : > { %v4485_v63 = vmul.f32 %v4437_v39, %v4341_v13  ;;  %v12046_v31 = vmul.f32 %v7934_v17, %v5157_v55  ;;  %7941 = vpow2.f32 %v5062_v14  ;;  %7081 = vmatmul.msk.f32.vlgmr.msrb.gmra.mxu1 %vm1492_vm8, %v11908_v29  ;;  %v7938_v5 = vpop.eup %7937  ;;  %v5030_v32 = vmul.f32 1.442695, %v4981_v42 }
 0x3bf   : > { %v5252_v0 = vadd.f32 2.0, %v12040_v44  ;;  %v12062_v4 = vadd.f32 %v4633_v16, %v11965_v12  ;;  %v4468_v60 = vmul.f32 %v4420_v21, %v4324_v9  ;;  %v4277_v30 = vsub.f32 2.0, %v4229_v1 }
 0x3c0   : > { %v4533_v23 = vsel %vm4389_vm0, %v11950_v51, %v4485_v63  ;;  %v5253_v27 = vadd.f32 2.0, %v12046_v31  ;;  %v4636_v14 = vpop.f32.mrf.mxu2  ;;  %v12066_v8 = vmul.f32 %v11986_v18, %v4021_v61  ;;  %v12069_v24 = vadd.f32 %v4659_v40, %v11965_v12 }
 0x3c1   : > { %4967 = vmatpush.msrb.mxu3 %v4533_v23  ;;  %7943 = vrcp.f32 %v5252_v0  ;;  %v7940_v51 = vpop.eup %7939  ;;  %v12072_v42 = vadd.f32 %v4636_v14, %v11963_v7  ;;  %v4662_v10 = vpop.f32.mrf.mxu3  ;;  %v4516_v11 = vsel %vm4372_vm1, %v11916_v43, %v4468_v60  ;;  %v4325_v22 = vmul.f32 %v7936_v36, %v4277_v30 }
 0x3c2   : > { %7945 = vrcp.f32 %v5253_v27  ;;  %4942 = vmatpush.msrb.mxu2 %v4516_v11  ;;  %v4421_v18 = vmul.f32 %v12011_v28, %v11921_v25  ;;  %v4212_v3 = vmul.f32 %v7940_v51, %v4116_v37  ;;  %v4982_v47 = vmin.f32 %v12062_v4, 20.0 }
 0x3c3   : > { %7079 = vmatmul.msk.f32.gmra.mxu0 %vm1492_vm8, %v11940_v6  ;;  %7947 = vpow2.f32 %v5028_v20  ;;  %v4998_v53 = vmin.f32 %v12072_v42, 20.0  ;;  %v4117_v35 = vadd.f32 2.0, %v12066_v8  ;;  %v4983_v57 = vmin.f32 %v12069_v24, 20.0 }
 0x3c4   : > { %v7942_v54 = vpop.eup %7941  ;;  %7949 = vpow2.f32 %v5030_v32  ;;  %v4469_v16 = vmul.f32 %v4421_v18, %v4325_v22  ;;  %v4260_v43 = vsub.f32 2.0, %v4212_v3  ;;  %v4404_v48 = vmul.f32 %v12027_v2, %v11929_v46 }
 0x3c5   : > { %7951 = vrcp.f32 %v4117_v35  ;;  %v5140_v45 = vadd.f32 2.0, %v7938_v5  ;;  %v5032_v17 = vmul.f32 1.442695, %v4982_v47  ;;  %v5064_v39 = vmul.f32 1.442695, %v4998_v53 }
 0x3c6   : > { %7082 = vmatmul.msk.f32.gmra.mxu1 %vm1492_vm8, %v11940_v6  ;;  %v4517_v33 = vsel %vm4373_vm2, %v11921_v25, %v4469_v16  ;;  %v4308_v40 = vmul.f32 %v7940_v51, %v4260_v43  ;;  %v5141_v38 = vadd.f32 2.0, %v7942_v54  ;;  %v12091_v13 = vadd.f32 %v4662_v10, %v11963_v7 }
 0x3c7   : > { %v7944_v28 = vpop.eup %7943  ;;  %4968 = vmatpush.msrb.mxu3 %v4517_v33  ;;  %v12093_v34 = vmul.f32 %v7938_v5, %v5140_v45  ;;  %v5540_v63 = vmul.f32 %v12040_v44, %v12000_v49  ;;  %v5541_v2 = vmul.f32 %v12046_v31, %v12004_v50  ;;  %7953 = vpow2.f32 %v5064_v39 }
 0x3c8   : > { %v7946_v37 = vpop.eup %7945  ;;  %v5348_v26 = vmul.f32 %v7944_v28, %v5252_v0  ;;  %v4452_v36 = vmul.f32 %v4404_v48, %v4308_v40  ;;  %v4639_v55 = vpop.f32.mrf.mxu2  ;;  %v12112_v14 = vmul.f32 %v7942_v54, %v5141_v38  ;;  %v4999_v30 = vmin.f32 %v12091_v13, 20.0 }
 0x3c9   : > { %v5349_v15 = vmul.f32 %v7946_v37, %v5253_v27  ;;  %v7948_v25 = vpop.eup %7947  ;;  %v12100_v61 = vadd.f32 %v4639_v55, %v11992_v59  ;;  %v4665_v9 = vpop.f32.mrf.mxu3  ;;  %v5236_v31 = vadd.f32 2.0, %v12093_v34  ;;  %v4405_v11 = vmul.f32 %v12066_v8, %v11932_v19 }
 0x3ca   : > { %v5396_v21 = vsub.f32 2.0, %v5348_v26  ;;  %v7950_v1 = vpop.eup %7949  ;;  %v4500_v20 = vsel %vm4356_vm4, %v11929_v46, %v4452_v36  ;;  %v12108_v0 = vadd.f32 %v4665_v9, %v11992_v59  ;;  %v4685_v44 = vpop.f32.mrf.mxu0  ;;  %v5237_v54 = vadd.f32 2.0, %v12112_v14 }
 0x3cb   : > { %7080 = vmatmul.msk.f32.gmra.mxu0 %vm1492_vm8, %v11957_v52  ;;  %v5397_v23 = vsub.f32 2.0, %v5349_v15  ;;  %v7952_v5 = vpop.eup %7951  ;;  %4943 = vmatpush.msrb.mxu2 %v4500_v20  ;;  %v5014_v32 = vmin.f32 %v12100_v61, 20.0  ;;  %v4711_v27 = vpop.f32.mrf.mxu1  ;;  %7955 = vrcp.f32 %v5236_v31  ;;  %v5066_v16 = vmul.f32 1.442695, %v4999_v30 }
 0x3cc   : > { %v5444_v60 = vmul.f32 %v7944_v28, %v5396_v21  ;;  %v4213_v51 = vmul.f32 %v7952_v5, %v4117_v35  ;;  %7084 = vmatmul.msk.f32.vlgmr.msrb.gmra.mxu2 %vm1492_vm8, %v11908_v29  ;;  %v5015_v46 = vmin.f32 %v12108_v0, 20.0  ;;  %v12128_v33 = vadd.f32 %v4685_v44, %v11965_v12 }
 0x3cd   : > { %v5445_v10 = vmul.f32 %v7946_v37, %v5397_v23  ;;  %v5096_v22 = vmul.f32 1.442695, %v5014_v32  ;;  %v7954_v28 = vpop.eup %7953  ;;  %v5124_v40 = vadd.f32 2.0, %v7948_v25  ;;  %v5125_v48 = vadd.f32 2.0, %v7950_v1 }
 0x3ce   : > { %v5588_v18 = vmul.f32 %v5540_v63, %v5444_v60  ;;  %7083 = vmatmul.msk.f32.gmra.mxu1 %vm1492_vm8, %v11957_v52  ;;  %v4261_v3 = vsub.f32 2.0, %v4213_v51  ;;  %v5098_v47 = vmul.f32 1.442695, %v5015_v46  ;;  %v5142_v55 = vadd.f32 2.0, %v7954_v28 }
 0x3cf   : > { %v5589_v53 = vmul.f32 %v5541_v2, %v5445_v10  ;;  %7957 = vpow2.f32 %v5096_v22  ;;  %v12133_v38 = vmul.f32 %v7948_v25, %v5124_v40  ;;  %v4984_v15 = vmin.f32 %v12128_v33, 20.0 }
 0x3d0   : > { %v5636_v35 = vsel %vm5492_vm5, %v12000_v49, %v5588_v18  ;;  %v4309_v8 = vmul.f32 %v7952_v5, %v4261_v3  ;;  %7959 = vpow2.f32 %v5098_v47  ;;  %v5034_v49 = vmul.f32 1.442695, %v4983_v57 }
 0x3d1   : > { %5685 = vmatpush.msra.mxu0 %v5636_v35  ;;  %v5637_v43 = vsel %vm5493_vm6, %v12004_v50, %v5589_v53  ;;  %7961 = vpow2.f32 %v5032_v17  ;;  %v7956_v39 = vpop.eup %7955  ;;  %v12135_v50 = vmul.f32 %v7950_v1, %v5125_v48  ;;  %v12142_v63 = vadd.f32 %v4711_v27, %v11965_v12 }
 0x3d2   : > { %5708 = vmatpush.msra.mxu1 %v5637_v43  ;;  %v4453_v45 = vmul.f32 %v4405_v11, %v4309_v8  ;;  %v4688_v37 = vpop.f32.mrf.mxu0  ;;  %7963 = vrcp.f32 %v5237_v54  ;;  %v5332_v17 = vmul.f32 %v7956_v39, %v5236_v31  ;;  %v5220_v25 = vadd.f32 2.0, %v12133_v38 }
 0x3d3   : > { %v4714_v26 = vpop.f32.mrf.mxu1  ;;  %7965 = vpow2.f32 %v5066_v16  ;;  %v5221_v2 = vadd.f32 2.0, %v12135_v50  ;;  %v12149_v20 = vmul.f32 %v7954_v28, %v5142_v55  ;;  %v5524_v5 = vmul.f32 %v12093_v34, %v11971_v62 }
 0x3d4   : > { %v4501_v36 = vsel %vm4357_vm7, %v11932_v19, %v4453_v45  ;;  %7085 = vmatmul.msk.f32.gmra.mxu2 %vm1492_vm8, %v11940_v6  ;;  %7967 = vpow2.f32 %v5034_v49  ;;  %v5380_v21 = vsub.f32 2.0, %v5332_v17  ;;  %v4985_v60 = vmin.f32 %v12142_v63, 20.0 }
 0x3d5   : > { %v7958_v57 = vpop.eup %7957  ;;  %4969 = vmatpush.msrb.mxu3 %v4501_v36  ;;  %7969 = vrcp.f32 %v5220_v25  ;;  %v12162_v30 = vadd.f32 %v4688_v37, %v11963_v7  ;;  %v5238_v34 = vadd.f32 2.0, %v12149_v20  ;;  %v5525_v3 = vmul.f32 %v12112_v14, %v11979_v41 }
 0x3d6   : > { %v7960_v9 = vpop.eup %7959  ;;  %7087 = vmatmul.msk.f32.vlgmr.msrb.gmra.mxu3 %vm1492_vm8, %v11908_v29  ;;  %v5158_v19 = vadd.f32 2.0, %v7958_v57  ;;  %v5428_v31 = vmul.f32 %v7956_v39, %v5380_v21  ;;  %7971 = vrcp.f32 %v5221_v2  ;;  %v12157_v29 = vmul.f32 1.442695, %v4984_v15 }
 0x3d7   : > { %v5159_v1 = vadd.f32 2.0, %v7960_v9  ;;  %v7962_v44 = vpop.eup %7961  ;;  %v12170_v47 = vadd.f32 %v4714_v26, %v11963_v7  ;;  %v5000_v28 = vmin.f32 %v12162_v30, 20.0  ;;  %vm5461_vm11 = vcmp.gt.f32.partialorder %v11974_v56, 20.0 }
 0x3d8   : > { %v12151_v23 = vmul.f32 %v7958_v57, %v5158_v19  ;;  %v7964_v32 = vpop.eup %7963  ;;  %v5572_v10 = vmul.f32 %v5524_v5, %v5428_v31  ;;  %v5508_v39 = vmul.f32 %v12133_v38, %v11968_v58  ;;  %vm5494_vm12 = vcmp.gt.f32.partialorder %v12100_v61, 20.0 }
 0x3d9   : > { %v12155_v27 = vmul.f32 %v7960_v9, %v5159_v1  ;;  %v7966_v51 = vpop.eup %7965  ;;  %v5333_v11 = vmul.f32 %v7964_v32, %v5237_v54  ;;  %v5126_v9 = vadd.f32 2.0, %v7962_v44  ;;  %vm5495_vm13 = vcmp.gt.f32.partialorder %v12108_v0, 20.0 }
 0x3da   : > { %v5254_v46 = vadd.f32 2.0, %v12151_v23  ;;  %v4691_v22 = vpop.f32.mrf.mxu0  ;;  %v12175_v16 = vpop.eup %7967  ;;  %v5620_v54 = vsel %vm5476_vm9, %v11971_v62, %v5572_v10  ;;  %v5143_v48 = vadd.f32 2.0, %v7966_v51  ;;  %vm5478_vm14 = vcmp.gt.f32.partialorder %v12072_v42, 20.0 }
 0x3db   : > { %v5255_v18 = vadd.f32 2.0, %v12155_v27  ;;  %v12173_v53 = vadd.f32 %v4691_v22, %v11992_v59  ;;  %v4717_v35 = vpop.f32.mrf.mxu1  ;;  %v5381_v8 = vsub.f32 2.0, %v5333_v11  ;;  %v7970_v43 = vpop.eup %7969  ;;  %5686 = vmatpush.msra.mxu0 %v5620_v54  ;;  %v5068_v11 = vmul.f32 1.442695, %v5000_v28 }
 0x3dc   : > { %7973 = vrcp.f32 %v5254_v46  ;;  %7086 = vmatmul.msk.f32.gmra.mxu2 %vm1492_vm8, %v11957_v52  ;;  %v12183_v14 = vadd.f32 %v4717_v35, %v11992_v59  ;;  %v7972_v49 = vpop.eup %7971  ;;  %v5316_v62 = vmul.f32 %v7970_v43, %v5220_v25  ;;  %v12194_v17 = vmul.f32 %v7966_v51, %v5143_v48 }
 0x3dd   : > { %7975 = vrcp.f32 %v5255_v18  ;;  %v5016_v40 = vmin.f32 %v12173_v53, 20.0  ;;  %v5429_v45 = vmul.f32 %v7964_v32, %v5381_v8  ;;  %v5317_v26 = vmul.f32 %v7972_v49, %v5221_v2 }
 0x3de   : > { %7088 = vmatmul.msk.f32.gmra.mxu3 %vm1492_vm8, %v11940_v6  ;;  %v5017_v37 = vmin.f32 %v12183_v14, 20.0  ;;  %7977 = vrcp.f32 %v5238_v34  ;;  %v5364_v57 = vsub.f32 2.0, %v5316_v62  ;;  %v5001_v6 = vmin.f32 %v12170_v47, 20.0 }
 0x3df   : > { %v5100_v36 = vmul.f32 1.442695, %v5016_v40  ;;  %v5573_v55 = vmul.f32 %v5525_v3, %v5429_v45  ;;  %v5365_v19 = vsub.f32 2.0, %v5317_v26  ;;  %v5239_v25 = vadd.f32 2.0, %v12194_v17 }
 0x3e0   : > { %v5102_v15 = vmul.f32 1.442695, %v5017_v37  ;;  %v5412_v38 = vmul.f32 %v7970_v43, %v5364_v57  ;;  %v12202_v2 = vmul.f32 %v7962_v44, %v5126_v9  ;;  %v5509_v32 = vmul.f32 %v12135_v50, %v11974_v56  ;;  %v12210_v44 = vld [vmem:[%s13209_s0 + $0x78] sm:$0xff] }
 0x3e1   : > { %7979 = vpow2.f32 %v5100_v36  ;;  %v5621_v1 = vsel %vm5477_vm3, %v11979_v41, %v5573_v55  ;;  %v5413_v5 = vmul.f32 %v7972_v49, %v5365_v19  ;;  %v5070_v35 = vmul.f32 1.442695, %v5001_v6 }
 0x3e2   : > { %v7974_v21 = vpop.eup %7973  ;;  %7981 = vpow2.f32 %v5102_v15  ;;  %5709 = vmatpush.msra.mxu1 %v5621_v1  ;;  %v5556_v22 = vmul.f32 %v5508_v39, %v5412_v38  ;;  %v5222_v41 = vadd.f32 2.0, %v12202_v2  ;;  %v5542_v50 = vmul.f32 %v12151_v23, %v12100_v61 }
 0x3e3   : > { %v7976_v31 = vpop.eup %7975  ;;  %v5350_v51 = vmul.f32 %v7974_v21, %v5254_v46  ;;  %7983 = vrcp.f32 %v5239_v25  ;;  %v5557_v54 = vmul.f32 %v5509_v32, %v5413_v5  ;;  %v5127_v23 = vadd.f32 2.0, %v12175_v16  ;;  %v12246_v5 = vld [vmem:[%s13209_s0 + $0x80] sm:$0xf] }
 0x3e4   : > { %v7978_v10 = vpop.eup %7977  ;;  %v5351_v3 = vmul.f32 %v7976_v31, %v5255_v18  ;;  %v5604_v46 = vsel %vm5460_vm10, %v11968_v58, %v5556_v22  ;;  %v4737_v18 = vpop.f32.mrf.mxu2  ;;  %7985 = vrcp.f32 %v5222_v41  ;;  %v5038_v22 = vmul.f32 1.442695, %v4985_v60 }
 0x3e5   : > { %v5398_v8 = vsub.f32 2.0, %v5350_v51  ;;  %v5334_v43 = vmul.f32 %v7978_v10, %v5238_v34  ;;  %5687 = vmatpush.msra.mxu0 %v5604_v46  ;;  %v5605_v48 = vsel %vm5461_vm11, %v11974_v56, %v5557_v54  ;;  %7987 = vpow2.f32 %v5068_v11  ;;  %v4763_v62 = vpop.f32.mrf.mxu3 }
 0x3e6   : > { %7089 = vmatmul.msk.f32.gmra.mxu3 %vm1492_vm8, %v11957_v52  ;;  %v5399_v28 = vsub.f32 2.0, %v5351_v3  ;;  %v5543_v52 = vmul.f32 %v12155_v27, %v12108_v0  ;;  %5710 = vmatpush.msra.mxu1 %v5605_v48  ;;  %v12230_v26 = vadd.f32 %v4737_v18, %v11965_v12  ;;  %v5526_v27 = vmul.f32 %v12149_v20, %v12072_v42 }
 0x3e7   : > { %v7980_v40 = vpop.eup %7979  ;;  %v5446_v34 = vmul.f32 %v7974_v21, %v5398_v8  ;;  %v5382_v49 = vsub.f32 2.0, %v5334_v43  ;;  %7090 = vmatmul.msk.f32.vlgmr.msra.gmra.mxu0 %vm1492_vm8, %v12210_v44  ;;  %7092 = vmatmul.msk.f32.vlgmr.msra.gmra.mxu1 %vm1492_vm8, %v12210_v44  ;;  %v12239_v21 = vmul.f32 %v12175_v16, %v5127_v23  ;;  %7989 = vpow2.f32 %v5070_v35 }
 0x3e8   : > { %v7982_v45 = vpop.eup %7981  ;;  %v5160_v58 = vadd.f32 2.0, %v7980_v40  ;;  %v5447_v37 = vmul.f32 %v7976_v31, %v5399_v28  ;;  %v12250_v16 = vadd.f32 %v4763_v62, %v11965_v12  ;;  %v5527_v54 = vmul.f32 %v12194_v17, %v12091_v13 }
 0x3e9   : > { %v7984_v39 = vpop.eup %7983  ;;  %v5161_v56 = vadd.f32 2.0, %v7982_v45  ;;  %v5590_v36 = vmul.f32 %v5542_v50, %v5446_v34  ;;  %v5430_v15 = vmul.f32 %v7978_v10, %v5382_v49  ;;  %v5223_v3 = vadd.f32 2.0, %v12239_v21 }
 0x3ea   : > { %v5208_v55 = vmul.f32 %v7980_v40, %v5160_v58  ;;  %v5591_v57 = vmul.f32 %v5543_v52, %v5447_v37  ;;  %v5335_v9 = vmul.f32 %v7984_v39, %v5239_v25  ;;  %v7986_v1 = vpop.eup %7985  ;;  %v4987_v60 = vmin.f32 %v12250_v16, 20.0 }
 0x3eb   : > { %v5209_v6 = vmul.f32 %v7982_v45, %v5161_v56  ;;  %v5638_v19 = vsel %vm5494_vm12, %v12100_v61, %v5590_v36  ;;  %v5574_v20 = vmul.f32 %v5526_v27, %v5430_v15  ;;  %v4986_v61 = vmin.f32 %v12230_v26, 20.0  ;;  %v7988_v32 = vpop.eup %7987 }
 0x3ec   : > { %v5256_v38 = vadd.f32 2.0, %v5208_v55  ;;  %5731 = vmatpush.msra.mxu2 %v5638_v19  ;;  %v5639_v31 = vsel %vm5495_vm13, %v12108_v0, %v5591_v57  ;;  %v5383_v51 = vsub.f32 2.0, %v5335_v9  ;;  %v4740_v10 = vpop.f32.mrf.mxu2  ;;  %v5318_v11 = vmul.f32 %v7986_v1, %v5222_v41 }
 0x3ed   : > { %v5257_v25 = vadd.f32 2.0, %v5209_v6  ;;  %5754 = vmatpush.msra.mxu3 %v5639_v31  ;;  %v5622_v0 = vsel %vm5478_vm14, %v12072_v42, %v5574_v20  ;;  %v4766_v42 = vpop.f32.mrf.mxu3  ;;  %v5040_v41 = vmul.f32 1.442695, %v4986_v61  ;;  %v5510_v43 = vmul.f32 %v12202_v2, %v12062_v4  ;;  %v7990_v28 = vpop.eup %7989 }
 0x3ee   : > { %7991 = vrcp.f32 %v5256_v38  ;;  %5732 = vmatpush.msra.mxu2 %v5622_v0  ;;  %v5431_v35 = vmul.f32 %v7984_v39, %v5383_v51  ;;  %v5366_v8 = vsub.f32 2.0, %v5318_v11  ;;  %v12267_v50 = vadd.f32 %v4740_v10, %v11963_v7 }
 0x3ef   : > { %7993 = vrcp.f32 %v5257_v25  ;;  %7091 = vmatmul.msk.f32.gmra.mxu0 %vm1492_vm8, %v12246_v5  ;;  %7093 = vmatmul.msk.f32.gmra.mxu1 %vm1492_vm8, %v12246_v5  ;;  %v5144_v18 = vadd.f32 2.0, %v7988_v32  ;;  %vm5479_vm15 = vcmp.gt.f32.partialorder %v12091_v13, 20.0  ;;  %v4789_v17 = vpop.f32.mrf.mxu0  ;;  %v5544_v34 = vmul.f32 %v5208_v55, %v12173_v53 }
 0x3f0   : > { %7995 = vpow2.f32 %v12157_v29  ;;  %v5575_v29 = vmul.f32 %v5527_v54, %v5431_v35  ;;  %v5414_v46 = vmul.f32 %v7986_v1, %v5366_v8  ;;  %v12270_v40 = vpop.f32.mrf.mxu1  ;;  %vm5462_vm0 = vcmp.gt.f32.partialorder %v12062_v4, 20.0 }
 0x3f1   : > { %7997 = vrcp.f32 %v5223_v3  ;;  %v5545_v45 = vmul.f32 %v5209_v6, %v12183_v14  ;;  %v12276_v58 = vmul.f32 %v7988_v32, %v5144_v18  ;;  %v5042_v37 = vmul.f32 1.442695, %v4987_v60 }
 0x3f2   : > { %7999 = vpow2.f32 %v5038_v22  ;;  %v5623_v49 = vsel %vm5479_vm15, %v12091_v13, %v5575_v29  ;;  %v5558_v2 = vmul.f32 %v5510_v43, %v5414_v46  ;;  %v5002_v39 = vmin.f32 %v12267_v50, 20.0 }
 0x3f3   : > { %8001 = vpow2.f32 %v5040_v41  ;;  %5755 = vmatpush.msra.mxu3 %v5623_v49  ;;  %v12281_v55 = vadd.f32 %v4766_v42, %v11963_v7  ;;  %v5240_v9 = vadd.f32 2.0, %v12276_v58  ;;  %v5511_v19 = vmul.f32 %v12239_v21, %v12069_v24 }
 0x3f4   : > { %v7992_v48 = vpop.eup %7991  ;;  %v5606_v56 = vsel %vm5462_vm0, %v12062_v4, %v5558_v2  ;;  %v4743_v36 = vpop.f32.mrf.mxu2  ;;  %v5072_v32 = vmul.f32 1.442695, %v5002_v39  ;;  %vm5496_vm1 = vcmp.gt.f32.partialorder %v12173_v53, 20.0  ;;  %vm5497_vm2 = vcmp.gt.f32.partialorder %v12183_v14, 20.0 }
 0x3f5   : > { %v7994_v23 = vpop.eup %7993  ;;  %v5352_v52 = vmul.f32 %v7992_v48, %v5256_v38  ;;  %5733 = vmatpush.msra.mxu2 %v5606_v56  ;;  %v12284_v57 = vadd.f32 %v4743_v36, %v11992_v59  ;;  %v4769_v4 = vpop.f32.mrf.mxu3  ;;  %v5145_v38 = vadd.f32 2.0, %v7990_v28  ;;  %8003 = vrcp.f32 %v5240_v9 }
 0x3f6   : > { %v7996_v62 = vpop.eup %7995  ;;  %v5353_v27 = vmul.f32 %v7994_v23, %v5257_v25  ;;  %7094 = vmatmul.msk.f32.vlgmr.msra.gmra.mxu2 %vm1492_vm8, %v12210_v44  ;;  %v12293_v25 = vadd.f32 %v4769_v4, %v11992_v59  ;;  %v5003_v10 = vmin.f32 %v12281_v55, 20.0  ;;  %v12304_v43 = vadd.f32 %v4789_v17, %v11965_v12 }
 0x3f7   : > { %v7998_v13 = vpop.eup %7997  ;;  %v5400_v15 = vsub.f32 2.0, %v5352_v52  ;;  %v5018_v20 = vmin.f32 %v12284_v57, 20.0  ;;  %v4792_v35 = vpop.f32.mrf.mxu0  ;;  %v12301_v41 = vmul.f32 %v7990_v28, %v5145_v38  ;;  %vm5463_vm4 = vcmp.gt.f32.partialorder %v12069_v24, 20.0 }
 0x3f8   : > { %v5319_v6 = vmul.f32 %v7998_v13, %v5223_v3  ;;  %v5401_v1 = vsub.f32 2.0, %v5353_v27  ;;  %v8000_v31 = vpop.eup %7999  ;;  %v5019_v22 = vmin.f32 %v12293_v25, 20.0  ;;  %v4818_v54 = vpop.f32.mrf.mxu1  ;;  %v5074_v49 = vmul.f32 1.442695, %v5003_v10 }
 0x3f9   : > { %v5448_v61 = vmul.f32 %v7992_v48, %v5400_v15  ;;  %v12296_v21 = vpop.eup %8001  ;;  %v5104_v11 = vmul.f32 1.442695, %v5018_v20  ;;  %v5241_v48 = vadd.f32 2.0, %v12301_v41  ;;  %v5128_v28 = vadd.f32 2.0, %v7996_v62 }
 0x3fa   : > { %v5367_v0 = vsub.f32 2.0, %v5319_v6  ;;  %v5449_v51 = vmul.f32 %v7994_v23, %v5401_v1  ;;  %v5106_v60 = vmul.f32 1.442695, %v5019_v22  ;;  %v4988_v23 = vmin.f32 %v12304_v43, 20.0 }
 0x3fb   : > { %v5592_v3 = vmul.f32 %v5544_v34, %v5448_v61  ;;  %8005 = vpow2.f32 %v5104_v11  ;;  %v8004_v34 = vpop.eup %8003  ;;  %v12315_v2 = vmul.f32 %v7996_v62, %v5128_v28  ;;  %vm5480_vm5 = vcmp.gt.f32.partialorder %v12162_v30, 20.0 }
 0x3fc   : > { %v5415_v42 = vmul.f32 %v7998_v13, %v5367_v0  ;;  %v5593_v8 = vmul.f32 %v5545_v45, %v5449_v51  ;;  %8007 = vpow2.f32 %v5072_v32  ;;  %v12322_v45 = vadd.f32 %v12270_v40, %v11965_v12 }
 0x3fd   : > { %v5640_v29 = vsel %vm5496_vm1, %v12173_v53, %v5592_v3  ;;  %8009 = vpow2.f32 %v5106_v60  ;;  %v5336_v53 = vmul.f32 %v8004_v34, %v5240_v9  ;;  %v5224_v62 = vadd.f32 2.0, %v12315_v2 }
 0x3fe   : > { %v5559_v46 = vmul.f32 %v5511_v19, %v5415_v42  ;;  %5777 = vmatpush.msrb.mxu0 %v5640_v29  ;;  %v5641_v18 = vsel %vm5497_vm2, %v12183_v14, %v5593_v8  ;;  %7095 = vmatmul.msk.f32.gmra.mxu2 %vm1492_vm8, %v12246_v5  ;;  %8011 = vrcp.f32 %v5241_v48  ;;  %v5129_v14 = vadd.f32 2.0, %v8000_v31 }
 0x3ff   : > { %5800 = vmatpush.msrb.mxu1 %v5641_v18  ;;  %8013 = vpow2.f32 %v5042_v37  ;;  %v5528_v37 = vmul.f32 %v12276_v58, %v12162_v30  ;;  %v4795_v56 = vpop.f32.mrf.mxu0  ;;  %v12331_v40 = vadd.f32 %v4792_v35, %v11963_v7  ;;  %v12337_v19 = vadd.f32 %v4818_v54, %v11963_v7 }
 0x400   : > { %v5607_v17 = vsel %vm5463_vm4, %v12069_v24, %v5559_v46  ;;  %v5384_v24 = vsub.f32 2.0, %v5336_v53  ;;  %8015 = vpow2.f32 %v5074_v49  ;;  %v12328_v39 = vmul.f32 %v8000_v31, %v5129_v14  ;;  %v4821_v36 = vpop.f32.mrf.mxu1 }
 0x401   : > { %5756 = vmatpush.msra.mxu3 %v5607_v17  ;;  %v8006_v52 = vpop.eup %8005  ;;  %v12334_v9 = vadd.f32 %v4795_v56, %v11992_v59  ;;  %8017 = vrcp.f32 %v5224_v62  ;;  %v12341_v4 = vadd.f32 %v4821_v36, %v11992_v59  ;;  %vm5481_vm6 = vcmp.gt.f32.partialorder %v12170_v47, 20.0 }
 0x402   : > { %7096 = vmatmul.msk.f32.vlgmr.msra.gmra.mxu3 %vm1492_vm8, %v12210_v44  ;;  %v8008_v27 = vpop.eup %8007  ;;  %v5162_v13 = vadd.f32 2.0, %v8006_v52  ;;  %v5432_v15 = vmul.f32 %v8004_v34, %v5384_v24  ;;  %v5225_v58 = vadd.f32 2.0, %v12328_v39  ;;  %v4989_v3 = vmin.f32 %v12322_v45, 20.0 }
 0x403   : > { %v8010_v6 = vpop.eup %8009  ;;  %v5020_v61 = vmin.f32 %v12334_v9, 20.0  ;;  %v5021_v51 = vmin.f32 %v12341_v4, 20.0  ;;  %v5146_v10 = vadd.f32 2.0, %v8008_v27  ;;  %v5529_v18 = vmul.f32 %v12301_v41, %v12170_v47 }
 0x404   : > { %v8012_v1 = vpop.eup %8011  ;;  %v5210_v38 = vmul.f32 %v8006_v52, %v5162_v13  ;;  %v5163_v31 = vadd.f32 2.0, %v8010_v6  ;;  %v5576_v20 = vmul.f32 %v5528_v37, %v5432_v15  ;;  %8019 = vrcp.f32 %v5225_v58 }
 0x405   : > { %v8014_v32 = vpop.eup %8013  ;;  %v5337_v0 = vmul.f32 %v8012_v1, %v5241_v48  ;;  %v5108_v8 = vmul.f32 1.442695, %v5020_v61  ;;  %v5110_v60 = vmul.f32 1.442695, %v5021_v51  ;;  %v12352_v29 = vmul.f32 %v8008_v27, %v5146_v10 }
 0x406   : > { %v5258_v11 = vadd.f32 2.0, %v5210_v38  ;;  %v12346_v22 = vmul.f32 %v8010_v6, %v5163_v31  ;;  %v5624_v35 = vsel %vm5480_vm5, %v12162_v30, %v5576_v20  ;;  %v8016_v54 = vpop.eup %8015  ;;  %v5004_v48 = vmin.f32 %v12331_v40, 20.0 }
 0x407   : > { %5778 = vmatpush.msrb.mxu0 %v5624_v35  ;;  %v5385_v42 = vsub.f32 2.0, %v5337_v0  ;;  %v8018_v34 = vpop.eup %8017  ;;  %v5005_v49 = vmin.f32 %v12337_v19, 20.0  ;;  %v5242_v28 = vadd.f32 2.0, %v12352_v29  ;;  %vm5464_vm7 = vcmp.gt.f32.partialorder %v12128_v33, 20.0 }
 0x408   : > { %8021 = vrcp.f32 %v5258_v11  ;;  %v5259_v46 = vadd.f32 2.0, %v12346_v22  ;;  %v5320_v17 = vmul.f32 %v8018_v34, %v5224_v62  ;;  %v5147_v53 = vadd.f32 2.0, %v8016_v54 }
 0x409   : > { %v5433_v30 = vmul.f32 %v8012_v1, %v5385_v42  ;;  %8023 = vpow2.f32 %v5108_v8  ;;  %vm5465_vm9 = vcmp.gt.f32.partialorder %v12142_v63, 20.0  ;;  %v5130_v41 = vadd.f32 2.0, %v12296_v21 }
 0x40a   : > { %7097 = vmatmul.msk.f32.gmra.mxu3 %vm1492_vm8, %v12246_v5  ;;  %8025 = vrcp.f32 %v5259_v46  ;;  %v8020_v14 = vpop.eup %8019  ;;  %v5368_v52 = vsub.f32 2.0, %v5320_v17  ;;  %v12365_v56 = vmul.f32 %v8016_v54, %v5147_v53  ;;  %v5512_v62 = vmul.f32 %v12315_v2, %v12128_v33 }
 0x40b   : > { %v5577_v24 = vmul.f32 %v5529_v18, %v5433_v30  ;;  %8027 = vpow2.f32 %v5110_v60  ;;  %v5321_v37 = vmul.f32 %v8020_v14, %v5225_v58  ;;  %v12373_v27 = vmul.f32 %v12296_v21, %v5130_v41 }
 0x40c   : > { %8029 = vrcp.f32 %v5242_v28  ;;  %v5131_v13 = vadd.f32 2.0, %v8014_v32  ;;  %v5416_v6 = vmul.f32 %v8018_v34, %v5368_v52  ;;  %v5513_v58 = vmul.f32 %v12328_v39, %v12142_v63 }
 0x40d   : > { %v5625_v36 = vsel %vm5481_vm6, %v12170_v47, %v5577_v24  ;;  %v5369_v1 = vsub.f32 2.0, %v5321_v37  ;;  %v5243_v31 = vadd.f32 2.0, %v12365_v56  ;;  %v5546_v61 = vmul.f32 %v5210_v38, %v12284_v57 }
 0x40e   : > { %v8022_v15 = vpop.eup %8021  ;;  %5801 = vmatpush.msrb.mxu1 %v5625_v36  ;;  %v5226_v0 = vadd.f32 2.0, %v12373_v27  ;;  %v12380_v2 = vmul.f32 %v8014_v32, %v5131_v13  ;;  %v5560_v51 = vmul.f32 %v5512_v62, %v5416_v6  ;;  %v5547_v52 = vmul.f32 %v12346_v22, %v12293_v25 }
 0x40f   : > { %v8024_v20 = vpop.eup %8023  ;;  %v5354_v47 = vmul.f32 %v8022_v15, %v5258_v11  ;;  %v5417_v10 = vmul.f32 %v8020_v14, %v5369_v1  ;;  %8031 = vrcp.f32 %v5243_v31  ;;  %v5076_v14 = vmul.f32 1.442695, %v5004_v48 }
 0x410   : > { %v8026_v21 = vpop.eup %8025  ;;  %v5164_v35 = vadd.f32 2.0, %v8024_v20  ;;  %8033 = vrcp.f32 %v5226_v0  ;;  %v5227_v39 = vadd.f32 2.0, %v12380_v2  ;;  %v5608_v38 = vsel %vm5464_vm7, %v12128_v33, %v5560_v51 }
 0x411   : > { %v8028_v54 = vpop.eup %8027  ;;  %v5402_v42 = vsub.f32 2.0, %v5354_v47  ;;  %v5355_v8 = vmul.f32 %v8026_v21, %v5259_v46  ;;  %v5561_v11 = vmul.f32 %v5513_v58, %v5417_v10  ;;  %5779 = vmatpush.msrb.mxu0 %v5608_v38  ;;  %v5078_v37 = vmul.f32 1.442695, %v5005_v49 }
 0x412   : > { %v8030_v60 = vpop.eup %8029  ;;  %v12386_v18 = vmul.f32 %v8024_v20, %v5164_v35  ;;  %v5165_v32 = vadd.f32 2.0, %v8028_v54  ;;  %8035 = vrcp.f32 %v5227_v39  ;;  %7098 = vmatmul.msk.f32.vlgmr.msrb.gmra.mxu0 %vm1492_vm8, %v12210_v44  ;;  %vm5498_vm3 = vcmp.gt.f32.partialorder %v12284_v57, 20.0 }
 0x413   : > { %v5450_v17 = vmul.f32 %v8022_v15, %v5402_v42  ;;  %v5403_v53 = vsub.f32 2.0, %v5355_v8  ;;  %v5338_v46 = vmul.f32 %v8030_v60, %v5242_v28  ;;  %v5609_v24 = vsel %vm5465_vm9, %v12142_v63, %v5561_v11 }
 0x414   : > { %v5260_v33 = vadd.f32 2.0, %v12386_v18  ;;  %v12398_v41 = vmul.f32 %v8028_v54, %v5165_v32  ;;  %5802 = vmatpush.msrb.mxu1 %v5609_v24  ;;  %vm5499_vm10 = vcmp.gt.f32.partialorder %v12293_v25, 20.0  ;;  %v5530_v49 = vmul.f32 %v12352_v29, %v12267_v50 }
 0x415   : > { %v12388_v34 = vpop.f32.mrf.mxu2  ;;  %v5594_v36 = vmul.f32 %v5546_v61, %v5450_v17  ;;  %v5451_v28 = vmul.f32 %v8026_v21, %v5403_v53  ;;  %v8032_v62 = vpop.eup %8031  ;;  %7100 = vmatmul.msk.f32.vlgmr.msrb.gmra.mxu1 %vm1492_vm8, %v12210_v44  ;;  %v5386_v48 = vsub.f32 2.0, %v5338_v46  ;;  %v5044_v61 = vmul.f32 1.442695, %v4988_v23 }
 0x416   : > { %v12390_v30 = vpop.f32.mrf.mxu3  ;;  %v5261_v63 = vadd.f32 2.0, %v12398_v41  ;;  %v8034_v13 = vpop.eup %8033  ;;  %8037 = vrcp.f32 %v5260_v33  ;;  %v5339_v1 = vmul.f32 %v8032_v62, %v5243_v31  ;;  %v5046_v29 = vmul.f32 1.442695, %v4989_v3 }
 0x417   : > { %v5642_v15 = vsel %vm5498_vm3, %v12284_v57, %v5594_v36  ;;  %v5595_v22 = vmul.f32 %v5547_v52, %v5451_v28  ;;  %v5434_v6 = vmul.f32 %v8030_v60, %v5386_v48  ;;  %v5322_v58 = vmul.f32 %v8034_v13, %v5226_v0 }
 0x418   : > { %8039 = vrcp.f32 %v5261_v63  ;;  %5823 = vmatpush.msrb.mxu2 %v5642_v15  ;;  %v8036_v20 = vpop.eup %8035  ;;  %v5387_v51 = vsub.f32 2.0, %v5339_v1  ;;  %vm5482_vm11 = vcmp.gt.f32.partialorder %v12267_v50, 20.0  ;;  %v5531_v0 = vmul.f32 %v12365_v56, %v12281_v55 }
 0x419   : > { %8041 = vpow2.f32 %v5076_v14  ;;  %v5643_v47 = vsel %vm5499_vm10, %v12293_v25, %v5595_v22  ;;  %v5578_v21 = vmul.f32 %v5530_v49, %v5434_v6  ;;  %v5370_v57 = vsub.f32 2.0, %v5322_v58 }
 0x41a   : > { %5846 = vmatpush.msrb.mxu3 %v5643_v47  ;;  %v5323_v10 = vmul.f32 %v8036_v20, %v5227_v39  ;;  %8043 = vpow2.f32 %v5078_v37  ;;  %7099 = vmatmul.msk.f32.gmra.mxu0 %vm1492_vm8, %v12246_v5  ;;  %v5435_v25 = vmul.f32 %v8032_v62, %v5387_v51  ;;  %v5514_v3 = vmul.f32 %v12373_v27, %v12230_v26 }
 0x41b   : > { %v5626_v23 = vsel %vm5482_vm11, %v12267_v50, %v5578_v21  ;;  %v5418_v42 = vmul.f32 %v8034_v13, %v5370_v57  ;;  %8045 = vpow2.f32 %v5044_v61  ;;  %vm5483_vm12 = vcmp.gt.f32.partialorder %v12281_v55, 20.0 }
 0x41c   : > { %v8038_v54 = vpop.eup %8037  ;;  %5824 = vmatpush.msrb.mxu2 %v5626_v23  ;;  %v5371_v8 = vsub.f32 2.0, %v5323_v10  ;;  %v5579_v60 = vmul.f32 %v5531_v0, %v5435_v25  ;;  %v5515_v56 = vmul.f32 %v12380_v2, %v12250_v16  ;;  %8047 = vpow2.f32 %v5046_v29 }
 0x41d   : > { %v4844_v35 = vpop.f32.mrf.mxu2  ;;  %7101 = vmatmul.msk.f32.gmra.mxu1 %vm1492_vm8, %v12246_v5  ;;  %v5562_v50 = vmul.f32 %v5514_v3, %v5418_v42  ;;  %vm5466_vm13 = vcmp.gt.f32.partialorder %v12230_v26, 20.0  ;;  %v5356_v27 = vmul.f32 %v8038_v54, %v5260_v33  ;;  %v12434_v17 = vadd.f32 %v12388_v34, %v11965_v12 }
 0x41e   : > { %v12416_v31 = vpop.f32.mrf.mxu3  ;;  %v8040_v39 = vpop.eup %8039  ;;  %v5419_v11 = vmul.f32 %v8036_v20, %v5371_v8  ;;  %v5627_v32 = vsel %vm5483_vm12, %v12281_v55, %v5579_v60  ;;  %v5548_v52 = vmul.f32 %v12386_v18, %v12334_v9  ;;  %vm5467_vm14 = vcmp.gt.f32.partialorder %v12250_v16, 20.0 }
 0x41f   : > { %v8042_v38 = vpop.eup %8041  ;;  %5847 = vmatpush.msrb.mxu3 %v5627_v32  ;;  %v5610_v53 = vsel %vm5466_vm13, %v12230_v26, %v5562_v50  ;;  %v5357_v14 = vmul.f32 %v8040_v39, %v5261_v63  ;;  %v5404_v55 = vsub.f32 2.0, %v5356_v27  ;;  %v5549_v33 = vmul.f32 %v12398_v41, %v12341_v4 }
 0x420   : > { %v5563_v46 = vmul.f32 %v5515_v56, %v5419_v11  ;;  %v8044_v24 = vpop.eup %8043  ;;  %5825 = vmatpush.msrb.mxu2 %v5610_v53  ;;  %v5148_v2 = vadd.f32 2.0, %v8042_v38  ;;  %v12444_v34 = vadd.f32 %v12390_v30, %v11965_v12  ;;  %v4990_v30 = vmin.f32 %v12434_v17, 20.0 }
 0x421   : > { %7102 = vmatmul.msk.f32.vlgmr.msrb.gmra.mxu2 %vm1492_vm8, %v12210_v44  ;;  %v5405_v18 = vsub.f32 2.0, %v5357_v14  ;;  %v8046_v28 = vpop.eup %8045  ;;  %v5452_v41 = vmul.f32 %v8038_v54, %v5404_v55  ;;  %v5149_v15 = vadd.f32 2.0, %v8044_v24  ;;  %vm5500_vm15 = vcmp.gt.f32.partialorder %v12334_v9, 20.0 }
 0x422   : > { %v5611_v26 = vsel %vm5467_vm14, %v12250_v16, %v5563_v46  ;;  %v5196_v48 = vmul.f32 %v8042_v38, %v5148_v2  ;;  %v12457_v16 = vadd.f32 %v4844_v35, %v11963_v7  ;;  %v8048_v22 = vpop.eup %8047  ;;  %vm5501_vm0 = vcmp.gt.f32.partialorder %v12341_v4, 20.0 }
 0x423   : > { %5848 = vmatpush.msrb.mxu3 %v5611_v26  ;;  %v5453_v13 = vmul.f32 %v8040_v39, %v5405_v18  ;;  %v5596_v1 = vmul.f32 %v5548_v52, %v5452_v41  ;;  %v5197_v61 = vmul.f32 %v8044_v24, %v5149_v15  ;;  %v12468_v57 = vadd.f32 %v12416_v31, %v11963_v7 }
 0x424   : > { %7104 = vmatmul.msk.f32.vlgmr.msrb.gmra.mxu3 %vm1492_vm8, %v12210_v44  ;;  %v5244_v58 = vadd.f32 2.0, %v5196_v48  ;;  %v5132_v35 = vadd.f32 2.0, %v8046_v28  ;;  %v4991_v23 = vmin.f32 %v12444_v34, 20.0  ;;  %v5133_v25 = vadd.f32 2.0, %v8048_v22 }
 0x425   : > { %v4847_v37 = vpop.f32.mrf.mxu2  ;;  %v5597_v20 = vmul.f32 %v5549_v33, %v5453_v13  ;;  %v5644_v51 = vsel %vm5500_vm15, %v12334_v9, %v5596_v1  ;;  %v5245_v29 = vadd.f32 2.0, %v5197_v61  ;;  %v5006_v0 = vmin.f32 %v12457_v16, 20.0 }
 0x426   : > { %v4873_v36 = vpop.f32.mrf.mxu3  ;;  %v12450_v62 = vadd.f32 %v4847_v37, %v11992_v59  ;;  %8049 = vrcp.f32 %v5244_v58  ;;  %5869 = vmatpush.msra.mxu0 %v5644_v51  ;;  %v5180_v9 = vmul.f32 %v8046_v28, %v5132_v35  ;;  %v5181_v31 = vmul.f32 %v8048_v22, %v5133_v25 }
 0x427   : > { %v12453_v63 = vadd.f32 %v4873_v36, %v11992_v59  ;;  %v5645_v10 = vsel %vm5501_vm0, %v12341_v4, %v5597_v20  ;;  %v5048_v54 = vmul.f32 1.442695, %v4990_v30  ;;  %v5007_v42 = vmin.f32 %v12468_v57, 20.0 }
 0x428   : > { %v5022_v49 = vmin.f32 %v12450_v62, 20.0  ;;  %5892 = vmatpush.msra.mxu1 %v5645_v10  ;;  %v5228_v4 = vadd.f32 2.0, %v5180_v9  ;;  %v5050_v8 = vmul.f32 1.442695, %v4991_v23  ;;  %v5229_v39 = vadd.f32 2.0, %v5181_v31 }
 0x429   : > { %v5023_v6 = vmin.f32 %v12453_v63, 20.0  ;;  %7103 = vmatmul.msk.f32.gmra.mxu2 %vm1492_vm8, %v12246_v5  ;;  %v5080_v50 = vmul.f32 1.442695, %v5006_v0  ;;  %v5082_v56 = vmul.f32 1.442695, %v5007_v42  ;;  %v5532_v52 = vmul.f32 %v5196_v48, %v12331_v40 }
 0x42a   : > { %v5112_v47 = vmul.f32 1.442695, %v5022_v49  ;;  %vm5484_vm1 = vcmp.gt.f32.partialorder %v12331_v40, 20.0  ;;  %v5533_v30 = vmul.f32 %v5197_v61, %v12337_v19  ;;  %vm5485_vm2 = vcmp.gt.f32.partialorder %v12337_v19, 20.0 }
 0x42b   : > { %v5114_v21 = vmul.f32 1.442695, %v5023_v6  ;;  %v5516_v61 = vmul.f32 %v5180_v9, %v12304_v43  ;;  %vm5468_vm4 = vcmp.gt.f32.partialorder %v12304_v43, 20.0  ;;  %vm5469_vm5 = vcmp.gt.f32.partialorder %v12322_v45, 20.0 }
 0x42c   : > { %8051 = vpow2.f32 %v5112_v47  ;;  %7105 = vmatmul.msk.f32.gmra.mxu3 %vm1492_vm8, %v12246_v5  ;;  %v8050_v3 = vpop.eup %8049  ;;  %vm5502_vm6 = vcmp.gt.f32.partialorder %v12450_v62, 20.0  ;;  %vm5503_vm7 = vcmp.gt.f32.partialorder %v12453_v63, 20.0  ;;  %vm5486_vm9 = vcmp.gt.f32.partialorder %v12457_v16, 20.0 }
 0x42d   : > { %8053 = vpow2.f32 %v5114_v21  ;;  %v5340_v60 = vmul.f32 %v8050_v3, %v5244_v58  ;;  %vm5487_vm3 = vcmp.gt.f32.partialorder %v12468_v57, 20.0  ;;  %vm5470_vm10 = vcmp.gt.f32.partialorder %v12434_v17, 20.0 }
 0x42e   : > { %8055 = vrcp.f32 %v5245_v29  ;;  %vm5471_vm11 = vcmp.gt.f32.partialorder %v12444_v34, 20.0 }
 0x42f   : > { %8057 = vrcp.f32 %v5228_v4  ;;  %v5388_v27 = vsub.f32 2.0, %v5340_v60 }
 0x430   : > { %8059 = vrcp.f32 %v5229_v39 }
 0x431   : > { %8061 = vpow2.f32 %v5048_v54  ;;  %v5436_v24 = vmul.f32 %v8050_v3, %v5388_v27 }
 0x432   : > { %v8052_v38 = vpop.eup %8051  ;;  %8063 = vpow2.f32 %v5050_v8 }
 0x433   : > { %v8054_v11 = vpop.eup %8053  ;;  %v5166_v32 = vadd.f32 2.0, %v8052_v38  ;;  %8065 = vpow2.f32 %v5080_v50  ;;  %v5580_v36 = vmul.f32 %v5532_v52, %v5436_v24 }
 0x434   : > { %v8056_v53 = vpop.eup %8055  ;;  %v5167_v46 = vadd.f32 2.0, %v8054_v11  ;;  %8067 = vpow2.f32 %v5082_v56 }
 0x435   : > { %v5214_v14 = vmul.f32 %v8052_v38, %v5166_v32  ;;  %v5341_v55 = vmul.f32 %v8056_v53, %v5245_v29  ;;  %v8058_v33 = vpop.eup %8057  ;;  %v5628_v48 = vsel %vm5484_vm1, %v12331_v40, %v5580_v36  ;;  %v5517_v40 = vmul.f32 %v5181_v31, %v12322_v45 }
 0x436   : > { %v5215_v2 = vmul.f32 %v8054_v11, %v5167_v46  ;;  %v8060_v28 = vpop.eup %8059  ;;  %v5324_v13 = vmul.f32 %v8058_v33, %v5228_v4  ;;  %5870 = vmatpush.msra.mxu0 %v5628_v48 }
 0x437   : > { %v5262_v26 = vadd.f32 2.0, %v5214_v14  ;;  %v5389_v18 = vsub.f32 2.0, %v5341_v55  ;;  %v8062_v15 = vpop.eup %8061  ;;  %v5325_v49 = vmul.f32 %v8060_v28, %v5229_v39  ;;  %v5550_v11 = vmul.f32 %v5214_v14, %v12450_v62 }
 0x438   : > { %v4893_v37 = vpop.f32.mrf.mxu0  ;;  %v5263_v41 = vadd.f32 2.0, %v5215_v2  ;;  %v8064_v6 = vpop.eup %8063  ;;  %v5372_v1 = vsub.f32 2.0, %v5324_v13  ;;  %v5551_v27 = vmul.f32 %v5215_v2, %v12453_v63 }
 0x439   : > { %8069 = vrcp.f32 %v5262_v26  ;;  %v5437_v22 = vmul.f32 %v8056_v53, %v5389_v18  ;;  %v5373_v47 = vsub.f32 2.0, %v5325_v49  ;;  %v8066_v21 = vpop.eup %8065  ;;  %v5135_v50 = vadd.f32 2.0, %v8064_v6 }
 0x43a   : > { %8071 = vrcp.f32 %v5263_v41  ;;  %v5420_v51 = vmul.f32 %v8058_v33, %v5372_v1  ;;  %v8068_v10 = vpop.eup %8067  ;;  %v5150_v8 = vadd.f32 2.0, %v8066_v21  ;;  %v12496_v56 = vadd.f32 %v4893_v37, %v11965_v12 }
 0x43b   : > { %v4919_v58 = vpop.f32.mrf.mxu1  ;;  %v5581_v20 = vmul.f32 %v5533_v30, %v5437_v22  ;;  %v5421_v35 = vmul.f32 %v8060_v28, %v5373_v47  ;;  %v5151_v38 = vadd.f32 2.0, %v8068_v10 }
 0x43c   : > { %v5564_v23 = vmul.f32 %v5516_v61, %v5420_v51  ;;  %v5198_v32 = vmul.f32 %v8066_v21, %v5150_v8  ;;  %v4992_v14 = vmin.f32 %v12496_v56, 20.0  ;;  %v12508_v2 = vadd.f32 %v4919_v58, %v11965_v12 }
 0x43d   : > { %v5629_v29 = vsel %vm5485_vm2, %v12337_v19, %v5581_v20  ;;  %v5565_v0 = vmul.f32 %v5517_v40, %v5421_v35  ;;  %v5199_v46 = vmul.f32 %v8068_v10, %v5151_v38  ;;  %vm5472_vm0 = vcmp.gt.f32.partialorder %v12496_v56, 20.0 }
 0x43e   : > { %5893 = vmatpush.msra.mxu1 %v5629_v29  ;;  %v5612_v4 = vsel %vm5468_vm4, %v12304_v43, %v5564_v23  ;;  %v5134_v43 = vadd.f32 2.0, %v8062_v15  ;;  %v5246_v55 = vadd.f32 2.0, %v5198_v32  ;;  %v5052_v13 = vmul.f32 1.442695, %v4992_v14 }
 0x43f   : > { %v8070_v25 = vpop.eup %8069  ;;  %5871 = vmatpush.msra.mxu0 %v5612_v4  ;;  %v5613_v9 = vsel %vm5469_vm5, %v12322_v45, %v5565_v0  ;;  %v5534_v0 = vmul.f32 %v5198_v32, %v12457_v16  ;;  %vm5473_vm1 = vcmp.gt.f32.partialorder %v12508_v2, 20.0 }
 0x440   : > { %v8072_v54 = vpop.eup %8071  ;;  %v4896_v42 = vpop.f32.mrf.mxu0  ;;  %v5358_v3 = vmul.f32 %v8070_v25, %v5262_v26  ;;  %5894 = vmatpush.msra.mxu1 %v5613_v9  ;;  %7106 = vmatmul.msk.f32.vlgmr.msra.gmra.mxu0 %vm1492_vm8, %v12210_v44  ;;  %v12499_v24 = vmul.f32 %v8062_v15, %v5134_v43  ;;  %v5247_v26 = vadd.f32 2.0, %v5199_v46  ;;  %8073 = vrcp.f32 %v5246_v55 }
 0x441   : > { %v5359_v19 = vmul.f32 %v8072_v54, %v5263_v41  ;;  %7108 = vmatmul.msk.f32.vlgmr.msra.gmra.mxu1 %vm1492_vm8, %v12210_v44  ;;  %v12501_v44 = vmul.f32 %v8064_v6, %v5135_v50  ;;  %v4993_v15 = vmin.f32 %v12508_v2, 20.0 }
 0x442   : > { %v5406_v31 = vsub.f32 2.0, %v5358_v3  ;;  %8075 = vrcp.f32 %v5247_v26  ;;  %v5230_v18 = vadd.f32 2.0, %v12499_v24  ;;  %v5535_v3 = vmul.f32 %v5199_v46, %v12468_v57 }
 0x443   : > { %v4922_v39 = vpop.f32.mrf.mxu1  ;;  %v5407_v60 = vsub.f32 2.0, %v5359_v19  ;;  %v5231_v41 = vadd.f32 2.0, %v12501_v44  ;;  %v5054_v21 = vmul.f32 1.442695, %v4993_v15  ;;  %v5518_v50 = vmul.f32 %v12499_v24, %v12434_v17 }
 0x444   : > { %v5454_v45 = vmul.f32 %v8070_v25, %v5406_v31  ;;  %8077 = vrcp.f32 %v5230_v18  ;;  %v5519_v32 = vmul.f32 %v12501_v44, %v12444_v34 }
 0x445   : > { %v5455_v53 = vmul.f32 %v8072_v54, %v5407_v60  ;;  %8079 = vrcp.f32 %v5231_v41 }
 0x446   : > { %v5598_v52 = vmul.f32 %v5550_v11, %v5454_v45  ;;  %v8074_v22 = vpop.eup %8073  ;;  %8081 = vpow2.f32 %v5052_v13 }
 0x447   : > { %v5599_v33 = vmul.f32 %v5551_v27, %v5455_v53  ;;  %v5342_v58 = vmul.f32 %v8074_v22, %v5246_v55  ;;  %8083 = vpow2.f32 %v5054_v21 }
 0x448   : > { %v5646_v37 = vsel %vm5502_vm6, %v12450_v62, %v5598_v52  ;;  %v4899_v28 = vpop.f32.mrf.mxu0  ;;  %7107 = vmatmul.msk.f32.gmra.mxu0 %vm1492_vm8, %v12246_v5  ;;  %v12516_v62 = vadd.f32 %v4896_v42, %v11963_v7  ;;  %v8076_v6 = vpop.eup %8075 }
 0x449   : > { %5915 = vmatpush.msra.mxu2 %v5646_v37  ;;  %v5647_v36 = vsel %vm5503_vm7, %v12453_v63, %v5599_v33  ;;  %7109 = vmatmul.msk.f32.gmra.mxu1 %vm1492_vm8, %v12246_v5  ;;  %v12521_v63 = vadd.f32 %v4922_v39, %v11963_v7  ;;  %v12525_v48 = vadd.f32 %v4899_v28, %v11992_v59  ;;  %v5390_v61 = vsub.f32 2.0, %v5342_v58 }
 0x44a   : > { %5938 = vmatpush.msra.mxu3 %v5647_v36  ;;  %v5008_v1 = vmin.f32 %v12516_v62, 20.0  ;;  %v5343_v20 = vmul.f32 %v8076_v6, %v5247_v26  ;;  %v8078_v47 = vpop.eup %8077  ;;  %vm5488_vm14 = vcmp.gt.f32.partialorder %v12516_v62, 20.0 }
 0x44b   : > { %v4925_v30 = vpop.f32.mrf.mxu1  ;;  %v5009_v5 = vmin.f32 %v12521_v63, 20.0  ;;  %v5024_v51 = vmin.f32 %v12525_v48, 20.0  ;;  %v8080_v10 = vpop.eup %8079  ;;  %v5326_v40 = vmul.f32 %v8078_v47, %v5230_v18  ;;  %v5438_v25 = vmul.f32 %v8074_v22, %v5390_v61  ;;  %v12566_v22 = vld [vmem:[%s13209_s0 + $0x80] sm:$0xf] }
 0x44c   : > { %v12528_v49 = vadd.f32 %v4925_v30, %v11992_v59  ;;  %v5391_v35 = vsub.f32 2.0, %v5343_v20  ;;  %v5084_v23 = vmul.f32 1.442695, %v5008_v1  ;;  %v5327_v54 = vmul.f32 %v8080_v10, %v5231_v41  ;;  %v8082_v39 = vpop.eup %8081 }
 0x44d   : > { %v5086_v42 = vmul.f32 1.442695, %v5009_v5  ;;  %v5374_v9 = vsub.f32 2.0, %v5326_v40  ;;  %v5116_v19 = vmul.f32 1.442695, %v5024_v51  ;;  %v5582_v31 = vmul.f32 %v5534_v0, %v5438_v25  ;;  %v8084_v55 = vpop.eup %8083 }
 0x44e   : > { %v5025_v29 = vmin.f32 %v12528_v49, 20.0  ;;  %v5439_v4 = vmul.f32 %v8076_v6, %v5391_v35  ;;  %v5375_v8 = vsub.f32 2.0, %v5327_v54  ;;  %8085 = vpow2.f32 %v5084_v23 }
 0x44f   : > { %v5422_v43 = vmul.f32 %v8078_v47, %v5374_v9  ;;  %v5630_v11 = vsel %vm5486_vm9, %v12457_v16, %v5582_v31  ;;  %8087 = vpow2.f32 %v5086_v42  ;;  %v4945_v27 = vpop.f32.mrf.mxu2  ;;  %v5136_v33 = vadd.f32 2.0, %v8082_v39 }
 0x450   : > { %v5118_v60 = vmul.f32 1.442695, %v5025_v29  ;;  %v5583_v38 = vmul.f32 %v5535_v3, %v5439_v4  ;;  %v5423_v45 = vmul.f32 %v8080_v10, %v5375_v8  ;;  %5916 = vmatpush.msra.mxu2 %v5630_v11  ;;  %8089 = vpow2.f32 %v5116_v19 }
 0x451   : > { %v5566_v46 = vmul.f32 %v5518_v50, %v5422_v43  ;;  %v12561_v36 = vmul.f32 %v8082_v39, %v5136_v33  ;;  %v12584_v61 = vadd.f32 %v4945_v27, %v11965_v12  ;;  %vm5504_vm12 = vcmp.gt.f32.partialorder %v12525_v48, 20.0 }
 0x452   : > { %v5631_v53 = vsel %vm5487_vm3, %v12468_v57, %v5583_v38  ;;  %v5567_v24 = vmul.f32 %v5519_v32, %v5423_v45  ;;  %8091 = vpow2.f32 %v5118_v60  ;;  %v12555_v57 = vld [vmem:[%s13209_s0 + $0x78] sm:$0xff]  ;;  %vm5505_vm13 = vcmp.gt.f32.partialorder %v12528_v49, 20.0 }
 0x453   : > { %5939 = vmatpush.msra.mxu3 %v5631_v53  ;;  %v5614_v16 = vsel %vm5470_vm10, %v12434_v17, %v5566_v46  ;;  %v5232_v58 = vadd.f32 2.0, %v12561_v36  ;;  %v4994_v0 = vmin.f32 %v12584_v61, 20.0  ;;  %vm5489_vm15 = vcmp.gt.f32.partialorder %v12521_v63, 20.0 }
 0x454   : > { %5917 = vmatpush.msra.mxu2 %v5614_v16  ;;  %v5615_v44 = vsel %vm5471_vm11, %v12444_v34, %v5567_v24  ;;  %v8086_v26 = vpop.eup %8085  ;;  %v5137_v34 = vadd.f32 2.0, %v8084_v55  ;;  %vm5474_vm7 = vcmp.gt.f32.partialorder %v12584_v61, 20.0  ;;  %vm6533_vm11 = vcmask 1043456  }
 0x455   : > { %5940 = vmatpush.msra.mxu3 %v5615_v44  ;;  %7110 = vmatmul.msk.f32.vlgmr.msra.gmra.mxu2 %vm1492_vm8, %v12555_v57  ;;  %v8088_v17 = vpop.eup %8087  ;;  %v5152_v41 = vadd.f32 2.0, %v8086_v26  ;;  %8093 = vrcp.f32 %v5232_v58  ;;  %v5056_v39 = vmul.f32 1.442695, %v4994_v0 }
 0x456   : > { %7112 = vmatmul.msk.f32.vlgmr.msra.gmra.mxu3 %vm1492_vm8, %v12555_v57  ;;  %v8090_v14 = vpop.eup %8089  ;;  %v5153_v30 = vadd.f32 2.0, %v8088_v17  ;;  %v12575_v5 = vmul.f32 %v8084_v55, %v5137_v34 }
 0x457   : > { %v5168_v18 = vadd.f32 2.0, %v8090_v14  ;;  %v4948_v28 = vpop.f32.mrf.mxu2  ;;  %v12570_v6 = vmul.f32 %v8086_v26, %v5152_v41 }
 0x458   : > { %v8092_v37 = vpop.eup %8091  ;;  %v12572_v1 = vmul.f32 %v8088_v17, %v5153_v30  ;;  %v12578_v20 = vadd.f32 %v4948_v28, %v11963_v7  ;;  %v5233_v29 = vadd.f32 2.0, %v12575_v5 }
 0x459   : > { %v4971_v52 = vpop.f32.mrf.mxu3  ;;  %v5169_v13 = vadd.f32 2.0, %v8092_v37  ;;  %v5216_v47 = vmul.f32 %v8090_v14, %v5168_v18  ;;  %v5248_v21 = vadd.f32 2.0, %v12570_v6 }
 0x45a   : > { %v5249_v10 = vadd.f32 2.0, %v12572_v1  ;;  %v5010_v35 = vmin.f32 %v12578_v20, 20.0  ;;  %v12594_v54 = vadd.f32 %v4971_v52, %v11965_v12  ;;  %vm5490_vm2 = vcmp.gt.f32.partialorder %v12578_v20, 20.0 }
 0x45b   : > { %v5217_v51 = vmul.f32 %v8092_v37, %v5169_v13  ;;  %8095 = vrcp.f32 %v5248_v21  ;;  %v5264_v40 = vadd.f32 2.0, %v5216_v47  ;;  %v8094_v9 = vpop.eup %8093  ;;  %v5552_v14 = vmul.f32 %v5216_v47, %v12525_v48 }
 0x45c   : > { %8097 = vrcp.f32 %v5249_v10  ;;  %v5088_v42 = vmul.f32 1.442695, %v5010_v35  ;;  %v4995_v43 = vmin.f32 %v12594_v54, 20.0  ;;  %v5536_v47 = vmul.f32 %v12570_v6, %v12516_v62 }
 0x45d   : > { %7111 = vmatmul.msk.f32.gmra.mxu2 %vm1492_vm8, %v12566_v22  ;;  %v5265_v25 = vadd.f32 2.0, %v5217_v51  ;;  %8099 = vrcp.f32 %v5233_v29  ;;  %v5553_v37 = vmul.f32 %v5217_v51, %v12528_v49  ;;  %vm5475_vm9 = vcmp.gt.f32.partialorder %v12594_v54, 20.0 }
 0x45e   : > { %7113 = vmatmul.msk.f32.gmra.mxu3 %vm1492_vm8, %v12566_v22  ;;  %8101 = vrcp.f32 %v5264_v40  ;;  %v5058_v24 = vmul.f32 1.442695, %v4995_v43 }
 0x45f   : > { %v4951_v4 = vpop.f32.mrf.mxu2  ;;  %8103 = vrcp.f32 %v5265_v25 }
 0x460   : > { %v12598_v31 = vadd.f32 %v4951_v4, %v11992_v59  ;;  %8105 = vpow2.f32 %v5088_v42 }
 0x461   : > { %v4974_v15 = vpop.f32.mrf.mxu3  ;;  %v8096_v8 = vpop.eup %8095  ;;  %8107 = vpow2.f32 %v5056_v39  ;;  %v5537_v39 = vmul.f32 %v12572_v1, %v12521_v63 }
 0x462   : > { %v12590_v23 = vadd.f32 %v4974_v15, %v11963_v7  ;;  %v8098_v60 = vpop.eup %8097  ;;  %v5026_v12 = vmin.f32 %v12598_v31, 20.0  ;;  %v5344_v50 = vmul.f32 %v8096_v8, %v5248_v21  ;;  %v5520_v21 = vmul.f32 %v12561_v36, %v12496_v56 }
 0x463   : > { %v8100_v11 = vpop.eup %8099  ;;  %v5345_v53 = vmul.f32 %v8098_v60, %v5249_v10  ;;  %vm5506_vm4 = vcmp.gt.f32.partialorder %v12598_v31, 20.0 }
 0x464   : > { %v5011_v19 = vmin.f32 %v12590_v23, 20.0  ;;  %v5120_v32 = vmul.f32 1.442695, %v5026_v12  ;;  %v8102_v46 = vpop.eup %8101  ;;  %v5392_v16 = vsub.f32 2.0, %v5344_v50  ;;  %v5329_v55 = vmul.f32 %v8100_v11, %v5233_v29  ;;  %v5689_v15 = vpop.f32.mrf.mxu0 }
 0x465   : > { %v8104_v52 = vpop.eup %8103  ;;  %v5360_v33 = vmul.f32 %v8102_v46, %v5264_v40  ;;  %v5393_v26 = vsub.f32 2.0, %v5345_v53  ;;  %vm5491_vm6 = vcmp.gt.f32.partialorder %v12590_v23, 20.0 }
 0x466   : > { %v5090_v45 = vmul.f32 1.442695, %v5011_v19  ;;  %8109 = vpow2.f32 %v5120_v32  ;;  %v8106_v44 = vpop.eup %8105  ;;  %v5361_v34 = vmul.f32 %v8104_v52, %v5265_v25  ;;  %v5440_v41 = vmul.f32 %v8096_v8, %v5392_v16  ;;  %v5712_v32 = vpop.f32.mrf.mxu1 }
 0x467   : > { %v8108_v18 = vpop.eup %8107  ;;  %v5408_v28 = vsub.f32 2.0, %v5360_v33  ;;  %v5377_v30 = vsub.f32 2.0, %v5329_v55  ;;  %v5154_v10 = vadd.f32 2.0, %v8106_v44  ;;  %v5441_v51 = vmul.f32 %v8098_v60, %v5393_v26 }
 0x468   : > { %v5584_v8 = vmul.f32 %v5536_v47, %v5440_v41  ;;  %v5521_v60 = vmul.f32 %v12575_v5, %v12508_v2 }
 0x469   : > { %v4977_v3 = vpop.f32.mrf.mxu3  ;;  %v5456_v42 = vmul.f32 %v8102_v46, %v5408_v28  ;;  %v5425_v36 = vmul.f32 %v8100_v11, %v5377_v30  ;;  %v12619_v50 = vmul.f32 %v8106_v44, %v5154_v10 }
 0x46a   : > { %v12601_v7 = vadd.f32 %v4977_v3, %v11992_v59  ;;  %v5328_v59 = vmul.f32 %v8094_v9, %v5232_v58  ;;  %v5409_v58 = vsub.f32 2.0, %v5361_v34  ;;  %v5138_v3 = vadd.f32 2.0, %v8108_v18 }
 0x46b   : > { %v5569_v46 = vmul.f32 %v5521_v60, %v5425_v36 }
 0x46c   : > { %v5027_v38 = vmin.f32 %v12601_v7, 20.0  ;;  %v5376_v17 = vsub.f32 2.0, %v5328_v59  ;;  %v8110_v13 = vpop.eup %8109  ;;  %v5457_v4 = vmul.f32 %v8104_v52, %v5409_v58  ;;  %v12628_v53 = vmul.f32 %v8108_v18, %v5138_v3  ;;  %v5692_v44 = vpop.f32.mrf.mxu0 }
 0x46d   : > { %v5170_v35 = vadd.f32 2.0, %v8110_v13  ;;  %v5632_v52 = vsel %vm5488_vm14, %v12516_v62, %v5584_v8  ;;  %vm5507_vm5 = vcmp.gt.f32.partialorder %v12601_v7, 20.0 }
 0x46e   : > { %v5122_v27 = vmul.f32 1.442695, %v5027_v38  ;;  %v5424_v40 = vmul.f32 %v8094_v9, %v5376_v17  ;;  %v5600_v38 = vmul.f32 %v5552_v14, %v5456_v42  ;;  %v5601_v43 = vmul.f32 %v5553_v37, %v5457_v4  ;;  %v12650_v14 = vpop.permute.xlu0 %5663  ;;  %v5715_v28 = vpop.f32.mrf.mxu1 }
 0x46f   : > { %v12613_v19 = vmul.f32 %v8110_v13, %v5170_v35  ;;  %v5585_v9 = vmul.f32 %v5537_v39, %v5441_v51  ;;  %v5234_v62 = vadd.f32 2.0, %v12628_v53  ;;  %v12657_v37 = vadd.f32 %v5692_v44, %v12650_v14 }
 0x470   : > { %8111 = vpow2.f32 %v5122_v27  ;;  %v5648_v1 = vsel %vm5504_vm12, %v12525_v48, %v5600_v38  ;;  %v5568_v11 = vmul.f32 %v5520_v21, %v5424_v40  ;;  %v5649_v59 = vsel %vm5505_vm13, %v12528_v49, %v5601_v43  ;;  %v12640_v49 = vpop.permute.xlu1 %5658 }
 0x471   : > { %8113 = vpow2.f32 %v5090_v45  ;;  %v5266_v27 = vadd.f32 2.0, %v12613_v19  ;;  %5961 = vmatpush.msrb.mxu0 %v5648_v1  ;;  %5984 = vmatpush.msrb.mxu1 %v5649_v59  ;;  %v5633_v48 = vsel %vm5489_vm15, %v12521_v63, %v5585_v9  ;;  %v12646_v26 = vadd.f32 %v5689_v15, %v12640_v49 }
 0x472   : > { %8115 = vpow2.f32 %v5058_v24  ;;  %v5250_v24 = vadd.f32 2.0, %v12619_v50  ;;  %v5616_v33 = vsel %vm5472_vm0, %v12496_v56, %v5568_v11  ;;  %v5617_v63 = vsel %vm5473_vm1, %v12508_v2, %v5569_v46 }
 0x473   : > { %5962 = vmatpush.msrb.mxu0 %v5632_v52  ;;  %8117 = vrcp.f32 %v5266_v27  ;;  %5985 = vmatpush.msrb.mxu1 %v5633_v48  ;;  %v6040_v2 = vmin.f32 %v12646_v26, 20.0  ;;  %v12663_v34 = vadd.f32 %v5712_v32, %v12640_v49  ;;  %v6056_v13 = vmin.f32 %v12657_v37, 20.0 }
 0x474   : > { %8119 = vrcp.f32 %v5250_v24  ;;  %v12669_v35 = vadd.f32 %v5715_v28, %v12650_v14  ;;  %v5554_v60 = vmul.f32 %v12613_v19, %v12598_v31  ;;  %v5538_v32 = vmul.f32 %v12619_v50, %v12578_v20 }
 0x475   : > { %5963 = vmatpush.msrb.mxu0 %v5616_v33  ;;  %5986 = vmatpush.msrb.mxu1 %v5617_v63  ;;  %v6072_v10 = vmul.f32 1.442695, %v6040_v2  ;;  %vm6376_vm3 = vcmp.gt.f32.partialorder %v12657_v37, 20.0  ;;  %vm6361_vm10 = vcmp.gt.f32.partialorder %v12663_v34, 20.0 }
 0x476   : > { %v8112_v29 = vpop.eup %8111  ;;  %7114 = vmatmul.msk.f32.vlgmr.msrb.gmra.mxu0 %vm1492_vm8, %v12555_v57  ;;  %7116 = vmatmul.msk.f32.vlgmr.msrb.gmra.mxu1 %vm1492_vm8, %v12555_v57  ;;  %v6057_v36 = vmin.f32 %v12669_v35, 20.0  ;;  %vm6377_vm12 = vcmp.gt.f32.partialorder %v12669_v35, 20.0 }
 0x477   : > { %v8114_v25 = vpop.eup %8113  ;;  %v5171_v0 = vadd.f32 2.0, %v8112_v29 }
 0x478   : > { %v8116_v6 = vpop.eup %8115  ;;  %v5155_v45 = vadd.f32 2.0, %v8114_v25 }
 0x479   : > { %v12617_v12 = vmul.f32 %v8112_v29, %v5171_v0  ;;  %v5139_v16 = vadd.f32 2.0, %v8116_v6  ;;  %v8118_v18 = vpop.eup %8117  ;;  %v6041_v29 = vmin.f32 %v12663_v34, 20.0  ;;  %v5735_v51 = vpop.f32.mrf.mxu2  ;;  %v6104_v0 = vmul.f32 1.442695, %v6056_v13 }
 0x47a   : > { %v12638_v55 = vmul.f32 %v8114_v25, %v5155_v45  ;;  %v8120_v30 = vpop.eup %8119  ;;  %v5362_v42 = vmul.f32 %v8118_v18, %v5266_v27 }
 0x47b   : > { %v5267_v5 = vadd.f32 2.0, %v12617_v12  ;;  %v12654_v56 = vmul.f32 %v8116_v6, %v5139_v16  ;;  %v5346_v58 = vmul.f32 %v8120_v30, %v5250_v24  ;;  %v6074_v39 = vmul.f32 1.442695, %v6041_v29 }
 0x47c   : > { %v5251_v17 = vadd.f32 2.0, %v12638_v55  ;;  %v5410_v43 = vsub.f32 2.0, %v5362_v42  ;;  %v5555_v45 = vmul.f32 %v12617_v12, %v12601_v7  ;;  %v5539_v46 = vmul.f32 %v12638_v55, %v12590_v23 }
 0x47d   : > { %8121 = vrcp.f32 %v5267_v5  ;;  %v5235_v41 = vadd.f32 2.0, %v12654_v56  ;;  %v5394_v40 = vsub.f32 2.0, %v5346_v58  ;;  %v12691_v55 = vadd.f32 %v5735_v51, %v12640_v49 }
 0x47e   : > { %8123 = vrcp.f32 %v5251_v17  ;;  %7115 = vmatmul.msk.f32.gmra.mxu0 %vm1492_vm8, %v12566_v22  ;;  %7117 = vmatmul.msk.f32.gmra.mxu1 %vm1492_vm8, %v12566_v22  ;;  %v5458_v1 = vmul.f32 %v8118_v18, %v5410_v43  ;;  %v5522_v18 = vmul.f32 %v12628_v53, %v12584_v61 }
 0x47f   : > { %8125 = vrcp.f32 %v5234_v62  ;;  %v5442_v9 = vmul.f32 %v8120_v30, %v5394_v40  ;;  %vm6362_vm13 = vcmp.gt.f32.partialorder %v12691_v55, 20.0 }
 0x480   : > { %8127 = vrcp.f32 %v5235_v41  ;;  %v5602_v24 = vmul.f32 %v5554_v60, %v5458_v1 }
 0x481   : > { %8129 = vpow2.f32 %v6072_v10  ;;  %v5738_v19 = vpop.f32.mrf.mxu2  ;;  %v5586_v12 = vmul.f32 %v5538_v32, %v5442_v9 }
 0x482   : > { %8131 = vpow2.f32 %v6104_v0  ;;  %v12687_v50 = vadd.f32 %v5738_v19, %v12650_v14 }
 0x483   : > { %v8122_v15 = vpop.eup %8121  ;;  %8133 = vpow2.f32 %v6074_v39 }
 0x484   : > { %v8124_v21 = vpop.eup %8123  ;;  %v5363_v3 = vmul.f32 %v8122_v15, %v5267_v5  ;;  %v6106_v5 = vmul.f32 1.442695, %v6057_v36  ;;  %v6058_v30 = vmin.f32 %v12687_v50, 20.0  ;;  %vm6378_vm14 = vcmp.gt.f32.partialorder %v12687_v50, 20.0 }
 0x485   : > { %v8126_v47 = vpop.eup %8125  ;;  %v5347_v25 = vmul.f32 %v8124_v21, %v5251_v17  ;;  %v5758_v4 = vpop.f32.mrf.mxu3  ;;  %v5650_v17 = vsel %vm5506_vm4, %v12598_v31, %v5602_v24  ;;  %v5634_v31 = vsel %vm5490_vm2, %v12578_v20, %v5586_v12  ;;  %v5523_v20 = vmul.f32 %v12654_v56, %v12594_v54 }
 0x486   : > { %v5330_v38 = vmul.f32 %v8126_v47, %v5234_v62  ;;  %v5411_v6 = vsub.f32 2.0, %v5363_v3  ;;  %v8128_v27 = vpop.eup %8127  ;;  %8135 = vpow2.f32 %v6106_v5  ;;  %6007 = vmatpush.msrb.mxu2 %v5650_v17 }
 0x487   : > { %v5395_v8 = vsub.f32 2.0, %v5347_v25  ;;  %v8130_v44 = vpop.eup %8129  ;;  %v5331_v62 = vmul.f32 %v8128_v27, %v5235_v41 }
 0x488   : > { %v5459_v11 = vmul.f32 %v8122_v15, %v5411_v6  ;;  %v5378_v52 = vsub.f32 2.0, %v5330_v38  ;;  %v8132_v28 = vpop.eup %8131  ;;  %v6136_v58 = vadd.f32 2.0, %v8130_v44  ;;  %6008 = vmatpush.msrb.mxu2 %v5634_v31 }
 0x489   : > { %v5443_v59 = vmul.f32 %v8124_v21, %v5395_v8  ;;  %v5379_v15 = vsub.f32 2.0, %v5331_v62  ;;  %v8134_v53 = vpop.eup %8133  ;;  %v6108_v21 = vmul.f32 1.442695, %v6058_v30  ;;  %v6152_v29 = vadd.f32 2.0, %v8132_v28 }
 0x48a   : > { %v5603_v16 = vmul.f32 %v5555_v45, %v5459_v11  ;;  %v5426_v33 = vmul.f32 %v8126_v47, %v5378_v52  ;;  %v6042_v47 = vmin.f32 %v12691_v55, 20.0  ;;  %v6137_v0 = vadd.f32 2.0, %v8134_v53 }
 0x48b   : > { %v5587_v48 = vmul.f32 %v5539_v46, %v5443_v59  ;;  %8137 = vpow2.f32 %v6108_v21  ;;  %v5427_v25 = vmul.f32 %v8128_v27, %v5379_v15  ;;  %v12717_v3 = vmul.f32 %v8130_v44, %v6136_v58 }
 0x48c   : > { %v5651_v2 = vsel %vm5507_vm5, %v12601_v7, %v5603_v16  ;;  %v5570_v41 = vmul.f32 %v5522_v18, %v5426_v33  ;;  %v8136_v42 = vpop.eup %8135  ;;  %v12719_v39 = vmul.f32 %v8132_v28, %v6152_v29  ;;  %v12724_v36 = vmul.f32 %v8134_v53, %v6137_v0 }
 0x48d   : > { %v5761_v63 = vpop.f32.mrf.mxu3  ;;  %6030 = vmatpush.msrb.mxu3 %v5651_v2  ;;  %v5635_v7 = vsel %vm5491_vm6, %v12590_v23, %v5587_v48  ;;  %v12713_v23 = vadd.f32 %v5758_v4, %v12640_v49  ;;  %v5571_v8 = vmul.f32 %v5523_v20, %v5427_v25  ;;  %v6153_v38 = vadd.f32 2.0, %v8136_v42 }
 0x48e   : > { %v12699_v13 = vadd.f32 %v5761_v63, %v12650_v14  ;;  %v5618_v51 = vsel %vm5474_vm7, %v12584_v61, %v5570_v41  ;;  %v6076_v61 = vmul.f32 1.442695, %v6042_v47  ;;  %v6200_v60 = vadd.f32 2.0, %v12717_v3 }
 0x48f   : > { %6031 = vmatpush.msrb.mxu3 %v5635_v7  ;;  %6009 = vmatpush.msrb.mxu2 %v5618_v51  ;;  %v6043_v56 = vmin.f32 %v12713_v23, 20.0  ;;  %v5619_v4 = vsel %vm5475_vm9, %v12594_v54, %v5571_v8  ;;  %v5781_v43 = vpop.f32.mrf.mxu0  ;;  %v6216_v32 = vadd.f32 2.0, %v12719_v39  ;;  %v6201_v1 = vadd.f32 2.0, %v12724_v36 }
 0x490   : > { %v6059_v10 = vmin.f32 %v12699_v13, 20.0  ;;  %7118 = vmatmul.msk.f32.vlgmr.msrb.gmra.mxu2 %vm1492_vm8, %v12555_v57  ;;  %v12730_v45 = vadd.f32 %v5781_v43, %v12640_v49  ;;  %v12737_v11 = vmul.f32 %v8136_v42, %v6153_v38  ;;  %vm6363_vm15 = vcmp.gt.f32.partialorder %v12713_v23, 20.0 }
 0x491   : > { %6032 = vmatpush.msrb.mxu3 %v5619_v4  ;;  %v8138_v9 = vpop.eup %8137  ;;  %v6078_v27 = vmul.f32 1.442695, %v6043_v56  ;;  %vm6379_vm0 = vcmp.gt.f32.partialorder %v12699_v13, 20.0 }
 0x492   : > { %v6110_v40 = vmul.f32 1.442695, %v6059_v10  ;;  %v5804_v6 = vpop.f32.mrf.mxu1  ;;  %7120 = vmatmul.msk.f32.vlgmr.msrb.gmra.mxu3 %vm1492_vm8, %v12555_v57  ;;  %v6154_v59 = vadd.f32 2.0, %v8138_v9  ;;  %v6044_v57 = vmin.f32 %v12730_v45, 20.0  ;;  %v6217_v19 = vadd.f32 2.0, %v12737_v11 }
 0x493   : > { %v12734_v54 = vadd.f32 %v5804_v6, %v12640_v49  ;;  %vm6364_vm4 = vcmp.gt.f32.partialorder %v12730_v45, 20.0 }
 0x494   : > { %8139 = vpow2.f32 %v6110_v40  ;;  %v12744_v24 = vmul.f32 %v8138_v9, %v6154_v59  ;;  %v6080_v44 = vmul.f32 1.442695, %v6044_v57 }
 0x495   : > { %8141 = vpow2.f32 %v6076_v61  ;;  %v6045_v5 = vmin.f32 %v12734_v54, 20.0  ;;  %vm6365_vm5 = vcmp.gt.f32.partialorder %v12734_v54, 20.0 }
 0x496   : > { %8143 = vrcp.f32 %v6200_v60  ;;  %v6218_v31 = vadd.f32 2.0, %v12744_v24 }
 0x497   : > { %8145 = vrcp.f32 %v6216_v32  ;;  %v5784_v12 = vpop.f32.mrf.mxu0  ;;  %v6082_v63 = vmul.f32 1.442695, %v6045_v5 }
 0x498   : > { %7119 = vmatmul.msk.f32.gmra.mxu2 %vm1492_vm8, %v12566_v22  ;;  %8147 = vpow2.f32 %v6078_v27  ;;  %v12749_v33 = vadd.f32 %v5784_v12, %v12650_v14 }
 0x499   : > { %8149 = vrcp.f32 %v6201_v1 }
 0x49a   : > { %v8140_v46 = vpop.eup %8139  ;;  %v5807_v48 = vpop.f32.mrf.mxu1  ;;  %7121 = vmatmul.msk.f32.gmra.mxu3 %vm1492_vm8, %v12566_v22  ;;  %v6060_v18 = vmin.f32 %v12749_v33, 20.0  ;;  %8151 = vrcp.f32 %v6217_v19  ;;  %vm6360_vm8 = vcmp.gt.f32.partialorder %v12646_v26, 20.0  ;;  %vm6380_vm1 = vcmp.gt.f32.partialorder %v12749_v33, 20.0 }
 0x49b   : > { %v8142_v52 = vpop.eup %8141  ;;  %v6155_v16 = vadd.f32 2.0, %v8140_v46  ;;  %v12752_v62 = vadd.f32 %v5807_v48, %v12650_v14  ;;  %8153 = vpow2.f32 %v6080_v44  ;;  %v6392_v48 = vmul.f32 %v12717_v3, %v12646_v26 }
 0x49c   : > { %v8144_v17 = vpop.eup %8143  ;;  %v6138_v2 = vadd.f32 2.0, %v8142_v52  ;;  %v6112_v41 = vmul.f32 1.442695, %v6060_v18  ;;  %8155 = vpow2.f32 %v6082_v63 }
 0x49d   : > { %v6061_v28 = vmin.f32 %v12752_v62, 20.0  ;;  %v8146_v30 = vpop.eup %8145  ;;  %v12757_v7 = vmul.f32 %v8140_v46, %v6155_v16  ;;  %v6264_v47 = vmul.f32 %v8144_v17, %v6200_v60  ;;  %vm6381_vm2 = vcmp.gt.f32.partialorder %v12752_v62, 20.0 }
 0x49e   : > { %v8148_v22 = vpop.eup %8147  ;;  %v6280_v58 = vmul.f32 %v8146_v30, %v6216_v32  ;;  %v12759_v21 = vmul.f32 %v8142_v52, %v6138_v2  ;;  %8157 = vpow2.f32 %v6112_v41  ;;  %v6408_v52 = vmul.f32 %v12719_v39, %v12657_v37 }
 0x49f   : > { %v6114_v15 = vmul.f32 1.442695, %v6061_v28  ;;  %v8150_v53 = vpop.eup %8149  ;;  %v6139_v10 = vadd.f32 2.0, %v8148_v22  ;;  %8159 = vrcp.f32 %v6218_v31  ;;  %v6219_v29 = vadd.f32 2.0, %v12757_v7 }
 0x4a0   : > { %v6265_v51 = vmul.f32 %v8150_v53, %v6201_v1  ;;  %v8152_v20 = vpop.eup %8151  ;;  %v6312_v25 = vsub.f32 2.0, %v6280_v58  ;;  %v6202_v0 = vadd.f32 2.0, %v12759_v21  ;;  %v6296_v56 = vsub.f32 2.0, %v6264_v47 }
 0x4a1   : > { %8161 = vpow2.f32 %v6114_v15  ;;  %v8154_v40 = vpop.eup %8153  ;;  %v12763_v8 = vmul.f32 %v8148_v22, %v6139_v10  ;;  %v6281_v60 = vmul.f32 %v8152_v20, %v6217_v19  ;;  %v6393_v19 = vmul.f32 %v12724_v36, %v12663_v34 }
 0x4a2   : > { %v8156_v42 = vpop.eup %8155  ;;  %8163 = vrcp.f32 %v6219_v29  ;;  %v6297_v4 = vsub.f32 2.0, %v6265_v51  ;;  %v6140_v43 = vadd.f32 2.0, %v8154_v40  ;;  %v6344_v32 = vmul.f32 %v8146_v30, %v6312_v25 }
 0x4a3   : > { %8165 = vrcp.f32 %v6202_v0  ;;  %v6141_v27 = vadd.f32 2.0, %v8156_v42  ;;  %v6203_v1 = vadd.f32 2.0, %v12763_v8  ;;  %v6328_v57 = vmul.f32 %v8144_v17, %v6296_v56 }
 0x4a4   : > { %v8158_v61 = vpop.eup %8157  ;;  %v6329_v5 = vmul.f32 %v8150_v53, %v6297_v4  ;;  %v12774_v44 = vmul.f32 %v8154_v40, %v6140_v43  ;;  %v6440_v2 = vmul.f32 %v6408_v52, %v6344_v32  ;;  %v6313_v18 = vsub.f32 2.0, %v6281_v60  ;;  %v5827_v22 = vpop.f32.mrf.mxu2 }
 0x4a5   : > { %v8160_v38 = vpop.eup %8159  ;;  %v6156_v6 = vadd.f32 2.0, %v8158_v61  ;;  %v12777_v28 = vmul.f32 %v8156_v42, %v6141_v27  ;;  %8167 = vrcp.f32 %v6203_v1  ;;  %v6424_v3 = vmul.f32 %v6392_v48, %v6328_v57  ;;  %v12805_v4 = vpop.permute.xlu2 %6498 }
 0x4a6   : > { %v6282_v16 = vmul.f32 %v8160_v38, %v6218_v31  ;;  %v6425_v30 = vmul.f32 %v6393_v19, %v6329_v5  ;;  %v12784_v41 = vadd.f32 2.0, %v12774_v44  ;;  %v12788_v53 = vadd.f32 %v5827_v22, %v12640_v49 }
 0x4a7   : > { %v8162_v9 = vpop.eup %8161  ;;  %v12766_v59 = vmul.f32 %v8158_v61, %v6156_v6  ;;  %v5850_v58 = vpop.f32.mrf.mxu3  ;;  %v6472_v10 = vsel %vm6376_vm3, %v12657_v37, %v6440_v2  ;;  %v6345_v47 = vmul.f32 %v8152_v20, %v6313_v18  ;;  %v12793_v51 = vadd.f32 2.0, %v12777_v28 }
 0x4a8   : > { %v6157_v46 = vadd.f32 2.0, %v8162_v9  ;;  %v8164_v12 = vpop.eup %8163  ;;  %v6314_v31 = vsub.f32 2.0, %v6282_v16  ;;  %v6046_v40 = vmin.f32 %v12788_v53, 20.0  ;;  %v12797_v25 = vadd.f32 %v5850_v58, %v12640_v49 }
 0x4a9   : > { %v6220_v63 = vadd.f32 2.0, %v12766_v59  ;;  %v8166_v39 = vpop.eup %8165  ;;  %v6283_v36 = vmul.f32 %v8164_v12, %v6219_v29  ;;  %v6456_v42 = vsel %vm6360_vm8, %v12646_v26, %v6424_v3  ;;  %v6457_v61 = vsel %vm6361_vm10, %v12663_v34, %v6425_v30  ;;  %v12811_v34 = vpop.permute.xlu0 %6493 }
 0x4aa   : > { %v12779_v17 = vmul.f32 %v8162_v9, %v6157_v46  ;;  %v6266_v29 = vmul.f32 %v8166_v39, %v6202_v0  ;;  %v6409_v37 = vmul.f32 %v12737_v11, %v12669_v35  ;;  %v6346_v20 = vmul.f32 %v8160_v38, %v6314_v31 }
 0x4ab   : > { %8169 = vrcp.f32 %v6220_v63  ;;  %v8168_v56 = vpop.eup %8167  ;;  %v6315_v0 = vsub.f32 2.0, %v6283_v36  ;;  %v6084_v43 = vmul.f32 1.442695, %v6046_v40  ;;  %v6047_v6 = vmin.f32 %v12797_v25, 20.0 }
 0x4ac   : > { %v6221_v15 = vadd.f32 2.0, %v12779_v17  ;;  %v6517_v9 = vmul.f32 %v12805_v4, %v6472_v10  ;;  %v6441_v32 = vmul.f32 %v6409_v37, %v6345_v47  ;;  %v6298_v11 = vsub.f32 2.0, %v6266_v29  ;;  %v5830_v5 = vpop.f32.mrf.mxu2 }
 0x4ad   : > { %v6410_v38 = vmul.f32 %v12744_v24, %v12687_v50  ;;  %v6086_v60 = vmul.f32 1.442695, %v6047_v6  ;;  %v12816_v27 = vmul.f32 %v12811_v34, %v6456_v42  ;;  %v6502_v46 = vmul.f32 %v12811_v34, %v6457_v61 }
 0x4ae   : > { %8171 = vrcp.f32 %v6221_v15  ;;  %v6267_v57 = vmul.f32 %v8168_v56, %v6203_v1  ;;  %v6347_v48 = vmul.f32 %v8164_v12, %v6315_v0  ;;  %v12821_v19 = vadd.f32 %v5830_v5, %v12650_v14 }
 0x4af   : > { %8173 = vrcp.f32 %v12784_v41  ;;  %v6442_v16 = vmul.f32 %v6410_v38, %v6346_v20  ;;  %v5853_v2 = vpop.f32.mrf.mxu3  ;;  %v6473_v24 = vsel %vm6377_vm12, %v12669_v35, %v6441_v32  ;;  %v12829_v1 = vsel %vm6533_vm11, %v6517_v9, 0.0 }
 0x4b0   : > { %8175 = vrcp.f32 %v12793_v51  ;;  %v12826_v30 = vadd.f32 %v5853_v2, %v12650_v14  ;;  %v6330_v36 = vmul.f32 %v8166_v39, %v6298_v11  ;;  %v6411_v12 = vmul.f32 %v12757_v7, %v12699_v13 }
 0x4b1   : > { %v8170_v26 = vpop.eup %8169  ;;  %8177 = vpow2.f32 %v6084_v43  ;;  %v6062_v22 = vmin.f32 %v12821_v19, 20.0  ;;  %v6394_v35 = vmul.f32 %v12759_v21, %v12691_v55  ;;  %v6299_v10 = vsub.f32 2.0, %v6267_v57 }
 0x4b2   : > { %8179 = vpow2.f32 %v6086_v60  ;;  %v6284_v18 = vmul.f32 %v8170_v26, %v6220_v63  ;;  %v6063_v63 = vmin.f32 %v12826_v30, 20.0  ;;  %v6518_v47 = vmul.f32 %v12805_v4, %v6473_v24 }
 0x4b3   : > { %v6474_v29 = vsel %vm6378_vm14, %v12687_v50, %v6442_v16  ;;  %v6443_v39 = vmul.f32 %v6411_v12, %v6347_v48  ;;  %v6116_v40 = vmul.f32 1.442695, %v6062_v22  ;;  %v6426_v0 = vmul.f32 %v6394_v35, %v6330_v36 }
 0x4b4   : > { %v8172_v52 = vpop.eup %8171  ;;  %v6316_v42 = vsub.f32 2.0, %v6284_v18  ;;  %v6118_v37 = vmul.f32 1.442695, %v6063_v63  ;;  %v6331_v6 = vmul.f32 %v8168_v56, %v6299_v10  ;;  %v6542_v32 = vsel %vm6533_vm11, %v6518_v47, 0.0 }
 0x4b5   : > { %v6285_v3 = vmul.f32 %v8172_v52, %v6221_v15  ;;  %v8174_v31 = vpop.eup %8173  ;;  %8181 = vpow2.f32 %v6116_v40  ;;  %v6395_v11 = vmul.f32 %v12763_v8, %v12713_v23  ;;  %v6519_v38 = vmul.f32 %v12805_v4, %v6474_v29 }
 0x4b6   : > { %v8176_v58 = vpop.eup %8175  ;;  %v6268_v21 = vmul.f32 %v8174_v31, %v12784_v41  ;;  %8183 = vpow2.f32 %v6118_v37  ;;  %v6475_v60 = vsel %vm6379_vm0, %v12699_v13, %v6443_v39  ;;  %v6348_v41 = vmul.f32 %v8170_v26, %v6316_v42 }
 0x4b7   : > { %v8178_v15 = vpop.eup %8177  ;;  %v6317_v7 = vsub.f32 2.0, %v6285_v3  ;;  %v6269_v43 = vmul.f32 %v8176_v58, %v12793_v51  ;;  %v6458_v56 = vsel %vm6362_vm13, %v12691_v55, %v6426_v0  ;;  %v6427_v2 = vmul.f32 %v6395_v11, %v6331_v6 }
 0x4b8   : > { %v6142_v61 = vadd.f32 2.0, %v8178_v15  ;;  %v8180_v20 = vpop.eup %8179  ;;  %v6300_v5 = vsub.f32 2.0, %v6268_v21  ;;  %v6412_v8 = vmul.f32 %v12766_v59, %v12749_v33  ;;  %v6413_v24 = vmul.f32 %v12779_v17, %v12752_v62 }
 0x4b9   : > { %v6143_v50 = vadd.f32 2.0, %v8180_v20  ;;  %v6349_v57 = vmul.f32 %v8172_v52, %v6317_v7  ;;  %v6301_v16 = vsub.f32 2.0, %v6269_v43  ;;  %v6543_v26 = vadd.f32 %v6542_v32, %v6502_v46 }
 0x4ba   : > { %v12844_v9 = vmul.f32 %v8178_v15, %v6142_v61  ;;  %v6520_v52 = vmul.f32 %v12805_v4, %v6475_v60  ;;  %v6550_v18 = vsel %vm6533_vm11, %v6519_v38, 0.0  ;;  %v6444_v3 = vmul.f32 %v6412_v8, %v6348_v41 }
 0x4bb   : > { %v12855_v48 = vmul.f32 %v8180_v20, %v6143_v50  ;;  %v8182_v13 = vpop.eup %8181  ;;  %v6445_v36 = vmul.f32 %v6413_v24, %v6349_v57  ;;  %v6503_v59 = vmul.f32 %v12811_v34, %v6458_v56  ;;  %v6332_v35 = vmul.f32 %v8174_v31, %v6300_v5 }
 0x4bc   : > { %v6206_v51 = vadd.f32 2.0, %v12844_v9  ;;  %v6158_v12 = vadd.f32 2.0, %v8182_v13  ;;  %v8184_v22 = vpop.eup %8183  ;;  %v6333_v10 = vmul.f32 %v8176_v58, %v6301_v16  ;;  %v6459_v17 = vsel %vm6363_vm15, %v12713_v23, %v6427_v2 }
 0x4bd   : > { %v6207_v55 = vadd.f32 2.0, %v12855_v48  ;;  %v6159_v63 = vadd.f32 2.0, %v8184_v22  ;;  %v6551_v15 = vadd.f32 %v6550_v18, %v6503_v59  ;;  %v6558_v47 = vsel %vm6533_vm11, %v6520_v52, 0.0 }
 0x4be   : > { %8185 = vrcp.f32 %v6206_v51  ;;  %v6190_v46 = vmul.f32 %v8182_v13, %v6158_v12  ;;  %v6396_v29 = vmul.f32 %v12774_v44, %v12730_v45  ;;  %v6397_v39 = vmul.f32 %v12777_v28, %v12734_v54  ;;  %v5896_v24 = vpop.f32.mrf.mxu1 }
 0x4bf   : > { %8187 = vrcp.f32 %v6207_v55  ;;  %v6476_v58 = vsel %vm6380_vm1, %v12749_v33, %v6444_v3  ;;  %v6477_v23 = vsel %vm6381_vm2, %v12752_v62, %v6445_v36  ;;  %v6191_v42 = vmul.f32 %v8184_v22, %v6159_v63 }
 0x4c0   : > { %v6222_v40 = vadd.f32 2.0, %v6190_v46  ;;  %v6504_v7 = vmul.f32 %v12811_v34, %v6459_v17  ;;  %v6428_v61 = vmul.f32 %v6396_v29, %v6332_v35  ;;  %v6429_v37 = vmul.f32 %v6397_v39, %v6333_v10 }
 0x4c1   : > { %v6535_v44 = vadd.f32 %v12829_v1, %v12816_v27  ;;  %v6223_v28 = vadd.f32 2.0, %v6191_v42  ;;  %v6521_v33 = vmul.f32 %v12805_v4, %v6476_v58  ;;  %v6522_v62 = vmul.f32 %v12805_v4, %v6477_v23 }
 0x4c2   : > { %8189 = vrcp.f32 %v6222_v40  ;;  %v6559_v21 = vadd.f32 %v6558_v47, %v6504_v7  ;;  %v6552_v43 = vrot.slane %v6551_v15, 4  ;;  %v6544_v32 = vrot.slane %v6543_v26, 4 }
 0x4c3   : > { %8191 = vrcp.f32 %v6223_v28  ;;  %v6460_v11 = vsel %vm6364_vm4, %v12730_v45, %v6428_v61  ;;  %v6461_v27 = vsel %vm6365_vm5, %v12734_v54, %v6429_v37  ;;  %v6536_v38 = vrot.slane %v6535_v44, 4 }
 0x4c4   : > { %v8186_v31 = vpop.eup %8185  ;;  %v6560_v60 = vrot.slane %v6559_v21, 4  ;;  %v6566_v41 = vsel %vm6533_vm11, %v6521_v33, 0.0  ;;  %v6574_v57 = vsel %vm6533_vm11, %v6522_v62, 0.0  ;;  %v6553_v5 = vadd.f32 %v6552_v43, %v6551_v15 }
 0x4c5   : > { %v6270_v20 = vmul.f32 %v8186_v31, %v6206_v51  ;;  %v8188_v0 = vpop.eup %8187  ;;  %v12890_v51 = vpop.f32.mrf.mxu0  ;;  %v6505_v16 = vmul.f32 %v12811_v34, %v6460_v11  ;;  %v6506_v2 = vmul.f32 %v12811_v34, %v6461_v27  ;;  %v6545_v45 = vadd.f32 %v6544_v32, %v6543_v26 }
 0x4c6   : > { %v6271_v50 = vmul.f32 %v8188_v0, %v6207_v55  ;;  %v6398_v18 = vmul.f32 %v12844_v9, %v12788_v53  ;;  %v6561_v36 = vadd.f32 %v6560_v60, %v6559_v21  ;;  %v6537_v59 = vadd.f32 %v6536_v38, %v6535_v44 }
 0x4c7   : > { %v6302_v6 = vsub.f32 2.0, %v6270_v20  ;;  %v6567_v52 = vadd.f32 %v6566_v41, %v6505_v16  ;;  %v6575_v55 = vadd.f32 %v6574_v57, %v6506_v2  ;;  %v6554_v35 = vrot.slane %v6553_v5, 2 }
 0x4c8   : > { %v6303_v1 = vsub.f32 2.0, %v6271_v50  ;;  %v8190_v56 = vpop.eup %8189  ;;  %v6399_v17 = vmul.f32 %v12855_v48, %v12797_v25  ;;  %v6546_v63 = vrot.slane %v6545_v45, 2  ;;  %v6414_v26 = vmul.f32 %v6190_v46, %v12821_v19 }
 0x4c9   : > { %v6334_v8 = vmul.f32 %v8186_v31, %v6302_v6  ;;  %v6286_v13 = vmul.f32 %v8190_v56, %v6222_v40  ;;  %v8192_v54 = vpop.eup %8191  ;;  %v6568_v29 = vrot.slane %v6567_v52, 4  ;;  %v6576_v39 = vrot.slane %v6575_v55, 4 }
 0x4ca   : > { %v6335_v3 = vmul.f32 %v8188_v0, %v6303_v1  ;;  %v6287_v22 = vmul.f32 %v8192_v54, %v6223_v28  ;;  %vm6366_vm6 = vcmp.gt.f32.partialorder %v12788_v53, 20.0  ;;  %v6562_v31 = vrot.slane %v6561_v36, 2 }
 0x4cb   : > { %v6318_v12 = vsub.f32 2.0, %v6286_v13  ;;  %v6430_v10 = vmul.f32 %v6398_v18, %v6334_v8  ;;  %v6415_v40 = vmul.f32 %v6191_v42, %v12826_v30  ;;  %v6555_v7 = vadd.f32 %v6554_v35, %v6553_v5 }
 0x4cc   : > { %v6319_v47 = vsub.f32 2.0, %v6287_v22  ;;  %v6431_v9 = vmul.f32 %v6399_v17, %v6335_v3  ;;  %vm6367_vm7 = vcmp.gt.f32.partialorder %v12797_v25, 20.0  ;;  %vm6382_vm9 = vcmp.gt.f32.partialorder %v12821_v19, 20.0 }
 0x4cd   : > { %v6350_v15 = vmul.f32 %v8190_v56, %v6318_v12  ;;  %v6462_v61 = vsel %vm6366_vm6, %v12788_v53, %v6430_v10  ;;  %vm6383_vm8 = vcmp.gt.f32.partialorder %v12826_v30, 20.0  ;;  %v12907_v37 = vadd.f32 %v5896_v24, %v12640_v49  ;;  %v5876_v20 = vpop.f32.mrf.mxu0  ;;  %v5899_v53 = vpop.f32.mrf.mxu1 }
 0x4ce   : > { %v6351_v23 = vmul.f32 %v8192_v54, %v6319_v47  ;;  %v6569_v44 = vadd.f32 %v6568_v29, %v6567_v52  ;;  %v6577_v28 = vadd.f32 %v6576_v39, %v6575_v55  ;;  %v6463_v42 = vsel %vm6367_vm7, %v12797_v25, %v6431_v9 }
 0x4cf   : > { %v6446_v58 = vmul.f32 %v6414_v26, %v6350_v15  ;;  %v6538_v21 = vrot.slane %v6537_v59, 2  ;;  %v6563_v33 = vadd.f32 %v6562_v31, %v6561_v36  ;;  %v6507_v62 = vmul.f32 %v12811_v34, %v6462_v61 }
 0x4d0   : > { %v6447_v46 = vmul.f32 %v6415_v40, %v6351_v23  ;;  %v6547_v43 = vadd.f32 %v6546_v63, %v6545_v45  ;;  %v12916_v32 = vadd.f32 %v5876_v20, %v12650_v14  ;;  %v6556_v11 = vrot.slane %v6555_v7, 1  ;;  %v12930_v63 = vpop.permute.xlu1 %6664 }
 0x4d1   : > { %v6478_v48 = vsel %vm6382_vm9, %v12821_v19, %v6446_v58  ;;  %v6508_v25 = vmul.f32 %v12811_v34, %v6463_v42  ;;  %v12920_v1 = vadd.f32 %v5899_v53, %v12650_v14  ;;  %v6570_v38 = vrot.slane %v6569_v44, 2 }
 0x4d2   : > { %v6523_v0 = vmul.f32 %v12805_v4, %v6478_v48  ;;  %v6479_v19 = vsel %vm6383_vm8, %v12826_v30, %v6447_v46  ;;  %v6578_v60 = vrot.slane %v6577_v28, 2  ;;  %v6049_v30 = vmin.f32 %v12907_v37, 20.0 }
 0x4d3   : > { %v6524_v50 = vmul.f32 %v12805_v4, %v6479_v19  ;;  %v6564_v57 = vrot.slane %v6563_v33, 1  ;;  %v6539_v2 = vadd.f32 %v6538_v21, %v6537_v59  ;;  %v6064_v8 = vmin.f32 %v12916_v32, 20.0 }
 0x4d4   : > { %v6582_v6 = vsel %vm6533_vm11, %v6523_v0, 0.0  ;;  %v6548_v45 = vrot.slane %v6547_v43, 1  ;;  %v6065_v52 = vmin.f32 %v12920_v1, 20.0  ;;  %v6571_v55 = vadd.f32 %v6570_v38, %v6569_v44 }
 0x4d5   : > { %v6583_v27 = vadd.f32 %v6582_v6, %v6507_v62  ;;  %v6590_v41 = vsel %vm6533_vm11, %v6524_v50, 0.0  ;;  %v6579_v18 = vadd.f32 %v6578_v60, %v6577_v28  ;;  %v6090_v3 = vmul.f32 1.442695, %v6049_v30 }
 0x4d6   : > { %v6591_v5 = vadd.f32 %v6590_v41, %v6508_v25  ;;  %v6557_v36 = vadd.f32 %v6556_v11, %v6555_v7  ;;  %v6565_v35 = vadd.f32 %v6564_v57, %v6563_v33  ;;  %v6540_v10 = vrot.slane %v6539_v2, 1 }
 0x4d7   : > { %v6584_v56 = vrot.slane %v6583_v27, 4  ;;  %v12928_v17 = vadd.f32 %v12890_v51, %v12640_v49  ;;  %v6120_v59 = vmul.f32 1.442695, %v6064_v8  ;;  %v6122_v47 = vmul.f32 1.442695, %v6065_v52 }
 0x4d8   : > { %v5919_v16 = vpop.f32.mrf.mxu2  ;;  %v6592_v54 = vrot.slane %v6591_v5, 4  ;;  %v6549_v29 = vadd.f32 %v6548_v45, %v6547_v43  ;;  %v6572_v39 = vrot.slane %v6571_v55, 1  ;;  %v6580_v9 = vrot.slane %v6579_v18, 1 }
 0x4d9   : > { %v5942_v24 = vpop.f32.mrf.mxu3  ;;  %v6585_v13 = vadd.f32 %v6584_v56, %v6583_v27  ;;  %8193 = vpow2.f32 %v6090_v3  ;;  %v6669_v31 = vadd.f32 %v12930_v63, %v6557_v36  ;;  %v6670_v40 = vadd.f32 %v12930_v63, %v6565_v35 }
 0x4da   : > { %v6593_v22 = vadd.f32 %v6592_v54, %v6591_v5  ;;  %v6048_v7 = vmin.f32 %v12928_v17, 20.0  ;;  %8195 = vpow2.f32 %v6120_v59  ;;  %v6541_v48 = vadd.f32 %v6540_v10, %v6539_v2 }
 0x4db   : > { %v6586_v12 = vrot.slane %v6585_v13, 2  ;;  %8197 = vpow2.f32 %v6122_v47  ;;  %v6668_v46 = vadd.f32 %v12930_v63, %v6549_v29  ;;  %v12937_v20 = vadd.f32 %v5919_v16, %v12640_v49 }
 0x4dc   : > { %v6594_v26 = vrot.slane %v6593_v22, 2  ;;  %v6573_v28 = vadd.f32 %v6572_v39, %v6571_v55  ;;  %v6581_v42 = vadd.f32 %v6580_v9, %v6579_v18  ;;  %v6700_v0 = vrot.slane %v6669_v31, 6 }
 0x4dd   : > { %v6587_v15 = vadd.f32 %v6586_v12, %v6585_v13  ;;  %v6701_v62 = vrot.slane %v6670_v40, 5  ;;  %v6088_v43 = vmul.f32 1.442695, %v6048_v7  ;;  %v12943_v6 = vadd.f32 %v5942_v24, %v12640_v49 }
 0x4de   : > { %v6595_v23 = vadd.f32 %v6594_v26, %v6593_v22  ;;  %vm6715_vm3 = vcmask 1042434   ;;  %v6667_v11 = vadd.f32 %v12930_v63, %v6541_v48  ;;  %v6050_v60 = vmin.f32 %v12937_v20, 20.0 }
 0x4df   : > { %v6588_v58 = vrot.slane %v6587_v15, 1  ;;  %v8194_v19 = vpop.eup %8193  ;;  %v6671_v41 = vadd.f32 %v12930_v63, %v6573_v28  ;;  %v6672_v30 = vadd.f32 %v12930_v63, %v6581_v42  ;;  %v6699_v57 = vrot.slane %v6668_v46, 7 }
 0x4e0   : > { %v5922_v51 = vpop.f32.mrf.mxu2  ;;  %v6596_v61 = vrot.slane %v6595_v23, 1  ;;  %v8196_v38 = vpop.eup %8195  ;;  %v6145_v5 = vadd.f32 2.0, %v8194_v19  ;;  %vm6713_vm10 = vcmask 1040384   ;;  %v6716_v2 = vsel %vm6715_vm3, %v6700_v0, %v6701_v62 }
 0x4e1   : > { %v5945_v44 = vpop.f32.mrf.mxu3  ;;  %v12940_v53 = vadd.f32 %v5922_v51, %v12650_v14  ;;  %v6589_v21 = vadd.f32 %v6588_v58, %v6587_v15  ;;  %v8198_v56 = vpop.eup %8197  ;;  %8199 = vpow2.f32 %v6088_v43  ;;  %v6051_v8 = vmin.f32 %v12943_v6, 20.0 }
 0x4e2   : > { %v6597_v33 = vadd.f32 %v6596_v61, %v6595_v23  ;;  %v12946_v50 = vadd.f32 %v5945_v44, %v12650_v14  ;;  %v6160_v13 = vadd.f32 2.0, %v8196_v38  ;;  %vm6717_vm12 = vcmask 1041408  }
 0x4e3   : > { %v6673_v25 = vadd.f32 %v12930_v63, %v6589_v21  ;;  %v6066_v16 = vmin.f32 %v12940_v53, 20.0  ;;  %vm6721_vm13 = vcmask 1046534   ;;  %v6161_v52 = vadd.f32 2.0, %v8198_v56 }
 0x4e4   : > { %v6674_v27 = vadd.f32 %v12930_v63, %v6597_v33  ;;  %v6067_v54 = vmin.f32 %v12946_v50, 20.0  ;;  %v6092_v55 = vmul.f32 1.442695, %v6050_v60  ;;  %v6702_v3 = vrot.slane %v6671_v41, 4 }
 0x4e5   : > { %v6704_v24 = vrot.slane %v6673_v25, 2  ;;  %v6703_v36 = vrot.slane %v6672_v30, 3  ;;  %v12959_v12 = vmul.f32 %v8194_v19, %v6145_v5  ;;  %v6124_v22 = vmul.f32 1.442695, %v6066_v16 }
 0x4e6   : > { %v6705_v45 = vrot.slane %v6674_v27, 1  ;;  %vm6719_vm14 = vcmask 1044484   ;;  %v6094_v59 = vmul.f32 1.442695, %v6051_v8  ;;  %vm6723_vm15 = vcmask 1045508  }
 0x4e7   : > { %v12970_v47 = vmul.f32 %v8196_v38, %v6160_v13  ;;  %v6126_v29 = vmul.f32 1.442695, %v6067_v54  ;;  %v8200_v39 = vpop.eup %8199  ;;  %v12972_v9 = vmul.f32 %v8198_v56, %v6161_v52  ;;  %8201 = vpow2.f32 %v6092_v55 }
 0x4e8   : > { %v6722_v26 = vsel %vm6721_vm13, %v6704_v24, %v6705_v45  ;;  %v6714_v31 = vsel %vm6713_vm10, %v6667_v11, %v6699_v57  ;;  %v6720_v58 = vsel %vm6719_vm14, %v6702_v3, %v6703_v36  ;;  %8203 = vpow2.f32 %v6124_v22 }
 0x4e9   : > { %v6718_v40 = vsel %vm6717_vm12, %v6714_v31, %v6716_v2  ;;  %v6724_v7 = vsel %vm6723_vm15, %v6720_v58, %v6722_v26  ;;  %v6209_v51 = vadd.f32 2.0, %v12959_v12  ;;  %8205 = vpow2.f32 %v6094_v59 }
 0x4ea   : > { %v6725_v48 = vsel %vm6533_vm11, %v6718_v40, %v6724_v7  ;;  %v6144_v46 = vadd.f32 2.0, %v8200_v39  ;;  %v6224_v44 = vadd.f32 2.0, %v12970_v47  ;;  %8207 = vpow2.f32 %v6126_v29 }
 0x4eb   : > { %6735 = vst [vmem:[%s12983_s5] sm:$0xff] %v6725_v48  ;;  %v6225_v28 = vadd.f32 2.0, %v12972_v9  ;;  %8209 = vrcp.f32 %v6209_v51  ;;  %vm6369_vm0 = vcmp.gt.f32.partialorder %v12907_v37, 20.0  ;;  %vm6384_vm1 = vcmp.gt.f32.partialorder %v12916_v32, 20.0 }
 0x4ec   : > { %v12993_v25 = vmul.f32 %v8200_v39, %v6144_v46  ;;  %8211 = vrcp.f32 %v6224_v44  ;;  %vm6385_vm2 = vcmp.gt.f32.partialorder %v12920_v1, 20.0  ;;  %vm6386_vm4 = vcmp.gt.f32.partialorder %v12940_v53, 20.0 }
 0x4ed   : > { %v8202_v62 = vpop.eup %8201  ;;  %8213 = vrcp.f32 %v6225_v28  ;;  %vm6387_vm5 = vcmp.gt.f32.partialorder %v12946_v50, 20.0  ;;  %vm6370_vm6 = vcmp.gt.f32.partialorder %v12937_v20, 20.0  ;;  %vm6371_vm7 = vcmp.gt.f32.partialorder %v12943_v6, 20.0 }
 0x4ee   : > { %v8204_v11 = vpop.eup %8203  ;;  %v6146_v30 = vadd.f32 2.0, %v8202_v62  ;;  %v6208_v16 = vadd.f32 2.0, %v12993_v25 }
 0x4ef   : > { %v8206_v38 = vpop.eup %8205  ;;  %v6162_v56 = vadd.f32 2.0, %v8204_v11 }
 0x4f0   : > { %v8208_v41 = vpop.eup %8207  ;;  %v6147_v2 = vadd.f32 2.0, %v8206_v38  ;;  %v12998_v13 = vmul.f32 %v8202_v62, %v6146_v30 }
 0x4f1   : > { %v8210_v8 = vpop.eup %8209  ;;  %v6163_v24 = vadd.f32 2.0, %v8208_v41  ;;  %v13000_v52 = vmul.f32 %v8204_v11, %v6162_v56 }
 0x4f2   : > { %v8212_v45 = vpop.eup %8211  ;;  %v6273_v36 = vmul.f32 %v8210_v8, %v6209_v51  ;;  %v6210_v59 = vadd.f32 2.0, %v12998_v13 }
 0x4f3   : > { %v5965_v18 = vpop.f32.mrf.mxu0  ;;  %v5988_v10 = vpop.f32.mrf.mxu1  ;;  %v13004_v22 = vmul.f32 %v8208_v41, %v6163_v24  ;;  %v6226_v29 = vadd.f32 2.0, %v13000_v52 }
 0x4f4   : > { %v12962_v35 = vadd.f32 %v5965_v18, %v12640_v49  ;;  %v12967_v15 = vadd.f32 %v5988_v10, %v12640_v49  ;;  %v8214_v54 = vpop.eup %8213  ;;  %v13002_v18 = vmul.f32 %v8206_v38, %v6147_v2  ;;  %v6305_v7 = vsub.f32 2.0, %v6273_v36 }
 0x4f5   : > { %v6227_v48 = vadd.f32 2.0, %v13004_v22 }
 0x4f6   : > { %v6052_v23 = vmin.f32 %v12962_v35, 20.0  ;;  %v6053_v61 = vmin.f32 %v12967_v15, 20.0  ;;  %v6211_v58 = vadd.f32 2.0, %v13002_v18 }
 0x4f8   : > { %v6096_v0 = vmul.f32 1.442695, %v6052_v23  ;;  %v6098_v19 = vmul.f32 1.442695, %v6053_v61  ;;  %v6288_v61 = vmul.f32 %v8212_v45, %v6224_v44 }
 0x4fa   : > { %8215 = vpow2.f32 %v6096_v0  ;;  %v6320_v38 = vsub.f32 2.0, %v6288_v61 }
 0x4fb   : > { %v5968_v42 = vpop.f32.mrf.mxu0  ;;  %v5991_v33 = vpop.f32.mrf.mxu1  ;;  %8217 = vpow2.f32 %v6098_v19 }
 0x4fc   : > { %v12988_v21 = vadd.f32 %v5968_v42, %v12650_v14  ;;  %v12991_v43 = vadd.f32 %v5991_v33, %v12650_v14  ;;  %v6289_v42 = vmul.f32 %v8214_v54, %v6225_v28  ;;  %v6401_v28 = vmul.f32 %v12959_v12, %v12907_v37 }
 0x4fd   : > { %v6352_v24 = vmul.f32 %v8212_v45, %v6320_v38 }
 0x4fe   : > { %v6068_v27 = vmin.f32 %v12988_v21, 20.0  ;;  %v6069_v60 = vmin.f32 %v12991_v43, 20.0  ;;  %vm6388_vm9 = vcmp.gt.f32.partialorder %v12988_v21, 20.0  ;;  %vm6389_vm8 = vcmp.gt.f32.partialorder %v12991_v43, 20.0 }
 0x500   : > { %v6128_v57 = vmul.f32 1.442695, %v6068_v27  ;;  %v6130_v5 = vmul.f32 1.442695, %v6069_v60  ;;  %v8216_v55 = vpop.eup %8215  ;;  %v6337_v27 = vmul.f32 %v8210_v8, %v6305_v7  ;;  %v6321_v60 = vsub.f32 2.0, %v6289_v42 }
 0x501   : > { %v8218_v3 = vpop.eup %8217  ;;  %v6148_v39 = vadd.f32 2.0, %v8216_v55 }
 0x502   : > { %8219 = vpow2.f32 %v6128_v57  ;;  %v6149_v23 = vadd.f32 2.0, %v8218_v3  ;;  %v6433_v8 = vmul.f32 %v6401_v28, %v6337_v27 }
 0x503   : > { %8221 = vpow2.f32 %v6130_v5  ;;  %v13014_v33 = vmul.f32 %v8216_v55, %v6148_v39  ;;  %v6417_v39 = vmul.f32 %v12972_v9, %v12920_v1 }
 0x504   : > { %8223 = vrcp.f32 %v6208_v16  ;;  %v13017_v19 = vmul.f32 %v8218_v3, %v6149_v23  ;;  %v6353_v3 = vmul.f32 %v8214_v54, %v6321_v60  ;;  %v6465_v54 = vsel %vm6369_vm0, %v12907_v37, %v6433_v8 }
 0x505   : > { %8225 = vrcp.f32 %v6210_v59  ;;  %v6212_v41 = vadd.f32 2.0, %v13014_v33  ;;  %vm6368_vm0 = vcmp.gt.f32.partialorder %v12928_v17, 20.0 }
 0x506   : > { %8227 = vrcp.f32 %v6226_v29  ;;  %v6213_v56 = vadd.f32 2.0, %v13017_v19  ;;  %v6449_v42 = vmul.f32 %v6417_v39, %v6353_v3 }
 0x507   : > { %8229 = vrcp.f32 %v6211_v58 }
 0x508   : > { %v8220_v10 = vpop.eup %8219  ;;  %8231 = vrcp.f32 %v6227_v48 }
 0x509   : > { %v8222_v26 = vpop.eup %8221  ;;  %v6164_v31 = vadd.f32 2.0, %v8220_v10 }
 0x50a   : > { %v6165_v40 = vadd.f32 2.0, %v8222_v26  ;;  %v8224_v51 = vpop.eup %8223 }
 0x50b   : > { %v13010_v46 = vmul.f32 %v8220_v10, %v6164_v31  ;;  %v6272_v44 = vmul.f32 %v8224_v51, %v6208_v16  ;;  %v13023_v57 = vpop.eup %8225  ;;  %v6416_v10 = vmul.f32 %v12970_v47, %v12916_v32  ;;  %v6400_v47 = vmul.f32 %v12993_v25, %v12928_v17 }
 0x50c   : > { %v13012_v0 = vmul.f32 %v8222_v26, %v6165_v40  ;;  %v8228_v16 = vpop.eup %8227  ;;  %v6274_v9 = vmul.f32 %v13023_v57, %v6210_v59 }
 0x50d   : > { %v6228_v62 = vadd.f32 2.0, %v13010_v46  ;;  %v6304_v2 = vsub.f32 2.0, %v6272_v44  ;;  %v13029_v55 = vpop.eup %8229  ;;  %v6290_v31 = vmul.f32 %v8228_v16, %v6226_v29  ;;  %v6448_v61 = vmul.f32 %v6416_v10, %v6352_v24 }
 0x50e   : > { %v6229_v11 = vadd.f32 2.0, %v13012_v0  ;;  %v8232_v36 = vpop.eup %8231  ;;  %v6275_v29 = vmul.f32 %v13029_v55, %v6211_v58  ;;  %v6306_v8 = vsub.f32 2.0, %v6274_v9  ;;  %v6402_v24 = vmul.f32 %v12998_v13, %v12937_v20 }
 0x50f   : > { %8233 = vrcp.f32 %v6228_v62  ;;  %v6336_v7 = vmul.f32 %v8224_v51, %v6304_v2  ;;  %v6291_v44 = vmul.f32 %v8232_v36, %v6227_v48  ;;  %v6322_v51 = vsub.f32 2.0, %v6290_v31 }
 0x510   : > { %8235 = vrcp.f32 %v6229_v11  ;;  %v13057_v58 = vsel %vm6384_vm1, %v12916_v32, %v6448_v61  ;;  %v6307_v3 = vsub.f32 2.0, %v6275_v29  ;;  %v6418_v13 = vmul.f32 %v13000_v52, %v12940_v53 }
 0x511   : > { %8237 = vrcp.f32 %v6212_v41  ;;  %v6354_v39 = vmul.f32 %v8228_v16, %v6322_v51  ;;  %vm6372_vm1 = vcmp.gt.f32.partialorder %v12962_v35, 20.0 }
 0x512   : > { %8239 = vrcp.f32 %v6213_v56 }
 0x513   : > { %v6011_v30 = vpop.f32.mrf.mxu2  ;;  %v6450_v51 = vmul.f32 %v6418_v13, %v6354_v39  ;;  %v6404_v39 = vmul.f32 %v13014_v33, %v12962_v35 }
 0x514   : > { %v13027_v5 = vadd.f32 %v6011_v30, %v12640_v49  ;;  %v13047_v30 = vmul.f32 %v6400_v47, %v6336_v7  ;;  %v6419_v47 = vmul.f32 %v13004_v22, %v12946_v50  ;;  %v6420_v22 = vmul.f32 %v13010_v46, %v12988_v21 }
 0x515   : > { %v8234_v26 = vpop.eup %8233  ;;  %v6034_v45 = vpop.f32.mrf.mxu3  ;;  %v6482_v46 = vsel %vm6386_vm4, %v12940_v53, %v6450_v51  ;;  %v6405_v53 = vmul.f32 %v13017_v19, %v12967_v15 }
 0x516   : > { %v6054_v12 = vmin.f32 %v13027_v5, 20.0  ;;  %v8236_v40 = vpop.eup %8235  ;;  %v13039_v27 = vadd.f32 %v6034_v45, %v12640_v49  ;;  %v6292_v60 = vmul.f32 %v8234_v26, %v6228_v62  ;;  %v13050_v49 = vmul.f32 %v12811_v34, %v6465_v54 }
 0x517   : > { %v6293_v37 = vmul.f32 %v8236_v40, %v6229_v11  ;;  %v8238_v48 = vpop.eup %8237  ;;  %v6481_v62 = vsel %vm6385_vm2, %v12920_v1, %v6449_v42  ;;  %v6323_v11 = vsub.f32 2.0, %v6291_v44  ;;  %v6338_v44 = vmul.f32 %v13023_v57, %v6306_v8 }
 0x518   : > { %v6100_v23 = vmul.f32 1.442695, %v6054_v12  ;;  %v6055_v28 = vmin.f32 %v13039_v27, 20.0  ;;  %v8240_v59 = vpop.eup %8239  ;;  %v6324_v31 = vsub.f32 2.0, %v6292_v60  ;;  %v6276_v1 = vmul.f32 %v8238_v48, %v6212_v41 }
 0x519   : > { %v6277_v45 = vmul.f32 %v8240_v59, %v6213_v56  ;;  %v6526_v61 = vmul.f32 %v12805_v4, %v6481_v62  ;;  %v6355_v16 = vmul.f32 %v8232_v36, %v6323_v11  ;;  %v6339_v56 = vmul.f32 %v13029_v55, %v6307_v3 }
 0x51a   : > { %8241 = vpow2.f32 %v6100_v23  ;;  %v6102_v2 = vmul.f32 1.442695, %v6055_v28  ;;  %v6325_v23 = vsub.f32 2.0, %v6293_v37  ;;  %v6356_v9 = vmul.f32 %v8234_v26, %v6324_v31 }
 0x51b   : > { %v6014_v38 = vpop.f32.mrf.mxu2  ;;  %v6308_v52 = vsub.f32 2.0, %v6276_v1  ;;  %v6309_v36 = vsub.f32 2.0, %v6277_v45  ;;  %v6451_v57 = vmul.f32 %v6419_v47, %v6355_v16  ;;  %v6421_v37 = vmul.f32 %v13012_v0, %v12991_v43 }
 0x51c   : > { %v13054_v25 = vadd.f32 %v6014_v38, %v12650_v14  ;;  %8243 = vpow2.f32 %v6102_v2  ;;  %v6357_v29 = vmul.f32 %v8236_v40, %v6325_v23  ;;  %v6434_v26 = vmul.f32 %v6402_v24, %v6338_v44 }
 0x51d   : > { %v6037_v32 = vpop.f32.mrf.mxu3  ;;  %v6403_v40 = vmul.f32 %v13002_v18, %v12943_v6  ;;  %v6452_v62 = vmul.f32 %v6420_v22, %v6356_v9  ;;  %v6340_v8 = vmul.f32 %v8238_v48, %v6308_v52  ;;  %v6341_v3 = vmul.f32 %v8240_v59, %v6309_v36 }
 0x51e   : > { %v6070_v12 = vmin.f32 %v13054_v25, 20.0  ;;  %v13070_v42 = vadd.f32 %v6037_v32, %v12650_v14  ;;  %v6453_v11 = vmul.f32 %v6421_v37, %v6357_v29  ;;  %v6483_v18 = vsel %vm6387_vm5, %v12946_v50, %v6451_v57 }
 0x51f   : > { %v6435_v24 = vmul.f32 %v6403_v40, %v6339_v56  ;;  %v6527_v59 = vmul.f32 %v12805_v4, %v6482_v46  ;;  %v6484_v50 = vsel %vm6388_vm9, %v12988_v21, %v6452_v62  ;;  %v6528_v32 = vmul.f32 %v12805_v4, %v6483_v18 }
 0x520   : > { %v8242_v10 = vpop.eup %8241  ;;  %v6132_v54 = vmul.f32 1.442695, %v6070_v12  ;;  %v6071_v38 = vmin.f32 %v13070_v42, 20.0  ;;  %v6485_v31 = vsel %vm6389_vm8, %v12991_v43, %v6453_v11  ;;  %v6436_v33 = vmul.f32 %v6404_v39, %v6340_v8 }
 0x521   : > { %v6150_v7 = vadd.f32 2.0, %v8242_v10  ;;  %v6437_v1 = vmul.f32 %v6405_v53, %v6341_v3  ;;  %v6606_v45 = vsel %vm6533_vm11, %v6526_v61, 0.0  ;;  %v6467_v21 = vsel %vm6371_vm7, %v12943_v6, %v6435_v24 }
 0x522   : > { %8245 = vpow2.f32 %v6132_v54  ;;  %v8244_v60 = vpop.eup %8243  ;;  %v6134_v55 = vmul.f32 1.442695, %v6071_v38  ;;  %v6529_v43 = vmul.f32 %v12805_v4, %v6484_v50  ;;  %v6530_v13 = vmul.f32 %v12805_v4, %v6485_v31 }
 0x523   : > { %v13075_v41 = vmul.f32 %v8242_v10, %v6150_v7  ;;  %v6151_v28 = vadd.f32 2.0, %v8244_v60  ;;  %v6466_v10 = vsel %vm6370_vm6, %v12937_v20, %v6434_v26  ;;  %v6614_v47 = vsel %vm6533_vm11, %v6527_v59, 0.0 }
 0x524   : > { %v6511_v44 = vmul.f32 %v12811_v34, %v6466_v10  ;;  %vm6373_vm2 = vcmp.gt.f32.partialorder %v12967_v15, 20.0  ;;  %v6622_v61 = vsel %vm6533_vm11, %v6528_v32, 0.0  ;;  %v6468_v56 = vsel %vm6372_vm1, %v12962_v35, %v6436_v33 }
 0x525   : > { %v6214_v14 = vadd.f32 2.0, %v13075_v41  ;;  %v13091_v0 = vmul.f32 %v8244_v60, %v6151_v28  ;;  %v6469_v9 = vsel %vm6373_vm2, %v12967_v15, %v6437_v1  ;;  %v6525_v6 = vmul.f32 %v12805_v4, %v13057_v58 }
 0x526   : > { %v6607_v38 = vadd.f32 %v6606_v45, %v13050_v49  ;;  %v6512_v51 = vmul.f32 %v12811_v34, %v6467_v21  ;;  %v6630_v60 = vsel %vm6533_vm11, %v6529_v43, 0.0  ;;  %v6638_v57 = vsel %vm6533_vm11, %v6530_v13, 0.0 }
 0x527   : > { %8247 = vrcp.f32 %v6214_v14  ;;  %v6215_v48 = vadd.f32 2.0, %v13091_v0  ;;  %v6513_v35 = vmul.f32 %v12811_v34, %v6468_v56  ;;  %v6514_v15 = vmul.f32 %v12811_v34, %v6469_v9 }
 0x528   : > { %8249 = vpow2.f32 %v6134_v55  ;;  %v8246_v2 = vpop.eup %8245  ;;  %v6623_v37 = vadd.f32 %v6622_v61, %v6512_v51  ;;  %v6464_v49 = vsel %vm6368_vm0, %v12928_v17, %v13047_v30  ;;  %v6598_v62 = vsel %vm6533_vm11, %v6525_v6, 0.0 }
 0x529   : > { %v6166_v12 = vadd.f32 2.0, %v8246_v2  ;;  %8251 = vrcp.f32 %v6215_v48  ;;  %v6631_v26 = vadd.f32 %v6630_v60, %v6513_v35  ;;  %v6639_v40 = vadd.f32 %v6638_v57, %v6514_v15 }
 0x52a   : > { %v6509_v8 = vmul.f32 %v12811_v34, %v6464_v49  ;;  %v6608_v3 = vrot.slane %v6607_v38, 4  ;;  %v6624_v24 = vrot.slane %v6623_v37, 4  ;;  %v6406_v18 = vmul.f32 %v13075_v41, %v13027_v5 }
 0x52b   : > { %v6198_v23 = vmul.f32 %v8246_v2, %v6166_v12  ;;  %v6632_v17 = vrot.slane %v6631_v26, 4  ;;  %v6640_v30 = vrot.slane %v6639_v40, 4  ;;  %vm6374_vm4 = vcmp.gt.f32.partialorder %v13027_v5, 20.0 }
 0x52c   : > { %v6599_v10 = vadd.f32 %v6598_v62, %v6509_v8  ;;  %v6625_v32 = vadd.f32 %v6624_v24, %v6623_v37  ;;  %v6407_v1 = vmul.f32 %v13091_v0, %v13039_v27  ;;  %vm6390_vm5 = vcmp.gt.f32.partialorder %v13054_v25, 20.0 }
 0x52d   : > { %v8248_v20 = vpop.eup %8247  ;;  %v6230_v54 = vadd.f32 2.0, %v6198_v23  ;;  %v6422_v31 = vmul.f32 %v6198_v23, %v13054_v25  ;;  %v6641_v45 = vadd.f32 %v6640_v30, %v6639_v40  ;;  %vm6375_vm6 = vcmp.gt.f32.partialorder %v13039_v27, 20.0 }
 0x52e   : > { %v8250_v19 = vpop.eup %8249  ;;  %v6278_v7 = vmul.f32 %v8248_v20, %v6214_v14  ;;  %v6615_v14 = vadd.f32 %v6614_v47, %v6511_v44  ;;  %v6600_v21 = vrot.slane %v6599_v10, 4  ;;  %vm6391_vm7 = vcmp.gt.f32.partialorder %v13070_v42, 20.0 }
 0x52f   : > { %v6167_v16 = vadd.f32 2.0, %v8250_v19  ;;  %8253 = vrcp.f32 %v6230_v54  ;;  %v8252_v36 = vpop.eup %8251  ;;  %v6642_v6 = vrot.slane %v6641_v45, 2 }
 0x530   : > { %v6310_v52 = vsub.f32 2.0, %v6278_v7  ;;  %v6279_v55 = vmul.f32 %v8252_v36, %v6215_v48  ;;  %v6616_v11 = vrot.slane %v6615_v14, 4 }
 0x531   : > { %v6199_v29 = vmul.f32 %v8250_v19, %v6167_v16  ;;  %v6633_v19 = vadd.f32 %v6632_v17, %v6631_v26  ;;  %v6626_v16 = vrot.slane %v6625_v32, 2  ;;  %v6643_v35 = vadd.f32 %v6642_v6, %v6641_v45 }
 0x532   : > { %v6342_v28 = vmul.f32 %v8248_v20, %v6310_v52  ;;  %v6311_v2 = vsub.f32 2.0, %v6279_v55  ;;  %v6617_v48 = vadd.f32 %v6616_v11, %v6615_v14  ;;  %v6609_v20 = vadd.f32 %v6608_v3, %v6607_v38 }
 0x533   : > { %v6231_v22 = vadd.f32 2.0, %v6199_v29  ;;  %v6423_v61 = vmul.f32 %v6199_v29, %v13070_v42  ;;  %v6634_v9 = vrot.slane %v6633_v19, 2  ;;  %v6627_v14 = vadd.f32 %v6626_v16, %v6625_v32 }
 0x534   : > { %v6438_v39 = vmul.f32 %v6406_v18, %v6342_v28  ;;  %v6343_v59 = vmul.f32 %v8252_v36, %v6311_v2  ;;  %v6618_v43 = vrot.slane %v6617_v48, 2  ;;  %v6610_v0 = vrot.slane %v6609_v20, 2 }
 0x535   : > { %8255 = vrcp.f32 %v6231_v22  ;;  %v8254_v58 = vpop.eup %8253  ;;  %v6635_v37 = vadd.f32 %v6634_v9, %v6633_v19  ;;  %v6628_v26 = vrot.slane %v6627_v14, 1  ;;  %v6644_v2 = vrot.slane %v6643_v35, 1 }
 0x536   : > { %v6294_v46 = vmul.f32 %v8254_v58, %v6230_v54  ;;  %v6470_v7 = vsel %vm6374_vm4, %v13027_v5, %v6438_v39  ;;  %v6439_v13 = vmul.f32 %v6407_v1, %v6343_v59  ;;  %v6619_v36 = vadd.f32 %v6618_v43, %v6617_v48 }
 0x537   : > { %v6515_v56 = vmul.f32 %v12811_v34, %v6470_v7  ;;  %v6611_v60 = vadd.f32 %v6610_v0, %v6609_v20  ;;  %v6636_v11 = vrot.slane %v6635_v37, 1  ;;  %v6629_v24 = vadd.f32 %v6628_v26, %v6627_v14 }
 0x538   : > { %v6326_v12 = vsub.f32 2.0, %v6294_v46  ;;  %v6471_v51 = vsel %vm6375_vm6, %v13039_v27, %v6439_v13  ;;  %v6645_v17 = vadd.f32 %v6644_v2, %v6643_v35 }
 0x539   : > { %v6516_v15 = vmul.f32 %v12811_v34, %v6471_v51  ;;  %v6612_v28 = vrot.slane %v6611_v60, 1  ;;  %v6678_v59 = vadd.f32 %v12930_v63, %v6629_v24 }
 0x53a   : > { %v6358_v50 = vmul.f32 %v8254_v58, %v6326_v12  ;;  %v6620_v58 = vrot.slane %v6619_v36, 1  ;;  %v6680_v32 = vadd.f32 %v12930_v63, %v6645_v17 }
 0x53b   : > { %v8256_v53 = vpop.eup %8255  ;;  %v6613_v12 = vadd.f32 %v6612_v28, %v6611_v60  ;;  %v6708_v45 = vrot.slane %v6678_v59, 5 }
 0x53c   : > { %v6295_v33 = vmul.f32 %v8256_v53, %v6231_v22  ;;  %v6454_v41 = vmul.f32 %v6422_v31, %v6358_v50  ;;  %v6710_v43 = vrot.slane %v6680_v32, 3 }
 0x53d   : > { %v6676_v50 = vadd.f32 %v12930_v63, %v6613_v12 }
 0x53e   : > { %v6327_v54 = vsub.f32 2.0, %v6295_v33  ;;  %v6486_v23 = vsel %vm6390_vm5, %v13054_v25, %v6454_v41  ;;  %v6601_v25 = vadd.f32 %v6600_v21, %v6599_v10  ;;  %v6637_v10 = vadd.f32 %v6636_v11, %v6635_v37 }
 0x53f   : > { %v6531_v44 = vmul.f32 %v12805_v4, %v6486_v23  ;;  %v6706_v7 = vrot.slane %v6676_v50, 7 }
 0x540   : > { %v6359_v47 = vmul.f32 %v8256_v53, %v6327_v54  ;;  %v6602_v27 = vrot.slane %v6601_v25, 2  ;;  %v6679_v20 = vadd.f32 %v12930_v63, %v6637_v10 }
 0x541   : > { %v6646_v5 = vsel %vm6533_vm11, %v6531_v44, 0.0 }
 0x542   : > { %v6455_v38 = vmul.f32 %v6423_v61, %v6359_v47  ;;  %v6647_v52 = vadd.f32 %v6646_v5, %v6515_v56  ;;  %v6603_v8 = vadd.f32 %v6602_v27, %v6601_v25  ;;  %v6709_v21 = vrot.slane %v6679_v20, 4 }
 0x544   : > { %v6487_v29 = vsel %vm6391_vm7, %v13070_v42, %v6455_v38  ;;  %v6648_v57 = vrot.slane %v6647_v52, 4  ;;  %v6604_v39 = vrot.slane %v6603_v8, 1  ;;  %v6729_v61 = vsel %vm6719_vm14, %v6709_v21, %v6710_v43 }
 0x545   : > { %v6532_v22 = vmul.f32 %v12805_v4, %v6487_v29  ;;  %v6621_v4 = vadd.f32 %v6620_v58, %v6619_v36 }
 0x546   : > { %v6649_v55 = vadd.f32 %v6648_v57, %v6647_v52  ;;  %v6605_v1 = vadd.f32 %v6604_v39, %v6603_v8 }
 0x547   : > { %v6654_v49 = vsel %vm6533_vm11, %v6532_v22, 0.0  ;;  %v6677_v48 = vadd.f32 %v12930_v63, %v6621_v4 }
 0x548   : > { %v6655_v40 = vadd.f32 %v6654_v49, %v6516_v15  ;;  %v6650_v62 = vrot.slane %v6649_v55, 2  ;;  %v6675_v23 = vadd.f32 %v12930_v63, %v6605_v1 }
 0x549   : > { %v6707_v19 = vrot.slane %v6677_v48, 6 }
 0x54a   : > { %v6656_v42 = vrot.slane %v6655_v40, 4  ;;  %v6651_v46 = vadd.f32 %v6650_v62, %v6649_v55  ;;  %v6726_v47 = vsel %vm6713_vm10, %v6675_v23, %v6706_v7 }
 0x54b   : > { %v6727_v44 = vsel %vm6715_vm3, %v6707_v19, %v6708_v45 }
 0x54c   : > { %v6657_v3 = vadd.f32 %v6656_v42, %v6655_v40  ;;  %v6652_v18 = vrot.slane %v6651_v46, 1  ;;  %v6728_v56 = vsel %vm6717_vm12, %v6726_v47, %v6727_v44 }
 0x54e   : > { %v6658_v34 = vrot.slane %v6657_v3, 2  ;;  %v6653_v30 = vadd.f32 %v6652_v18, %v6651_v46 }
 0x550   : > { %v6659_v53 = vadd.f32 %v6658_v34, %v6657_v3  ;;  %v6681_v33 = vadd.f32 %v12930_v63, %v6653_v30 }
 0x552   : > { %v6660_v31 = vrot.slane %v6659_v53, 1  ;;  %v6711_v13 = vrot.slane %v6681_v33, 2 }
 0x554   : > { %v6661_v41 = vadd.f32 %v6660_v31, %v6659_v53 }
 0x556   : > { %v6682_v54 = vadd.f32 %v12930_v63, %v6661_v41 }
 0x558   : > { %v6712_v16 = vrot.slane %v6682_v54, 1 }
 0x55a   : > { %v6730_v0 = vsel %vm6721_vm13, %v6711_v13, %v6712_v16 }
 0x55b   : > { %v6731_v9 = vsel %vm6723_vm15, %v6729_v61, %v6730_v0 }
 0x55c   : > { %v6732_v63 = vsel %vm6533_vm11, %v6728_v56, %v6731_v9 }
 0x55d   : > { %6736 = vst [vmem:[%s12983_s5 + $0x8] sm:$0xff] %v6732_v63 }
 0x55e   : > { %8301 = shalt.err (!%p8298_p3)
}
 0x55f   : > { %7126 = dma.vmem_to_hbm [thread:$0]  (%p8394_p5), %s6751_s9, 256, %s6753_s11, %s6738_s28  }
 0x560 PF: > { %p7132_p4 = scmp.ge.s32.totalorder %s8336_s15, 2  ;;  %s6764_s27 = sand.u32 1, %s8324_s12  }
 0x561   : > { %s6765_s10 = scalar_lea.sflag [#allocation3], %s6764_s27 }
 0x562   : > { %p7129_p7 = pnand %p7132_p4, %p8398_p6 }
 0x564   : > { %p7130_p8 = pneg %p7129_p7 }
 0x566   : > { %8319 = dma.done.wait (%p7130_p8), %s6765_s10, 256  }
 0x567   : > { %8321 = vsyncadd (%p7130_p8), %s6765_s10, 4294967040  ;;  %p13_p9 = scmp.ge.s32.totalorder %s8382_s18, 4   ;;  %s13723_s12 = smov %s8328_s13 }
 0x568   : > { %s13724_s13 = smov %s8332_s14  ;;  %s13725_s14 = smov %s8392_s21 }
 0x569   : > { %s13726_s15 = smov %s8382_s18  ;;  %15 = sbr.rel (!%p13_p9) target bundleno = 3 (0x3), region = 97 }
 0x56e   :  { %6771 = vsyncpa [#allocation3], 1 }
 0x56f   :  { %6773 = vsyncpa [#allocation3 + $0x1], 1 }

</bundles_post_ra>
